<compile_context>
chip_gen: v7x
topology: tpu7x:2x2x1
jax: 0.10.0
libtpu: 0.0.40
codegen_flags: <defaults>
</compile_context>

<pallas_src>
import numpy as np
import jax
import jax.numpy as jnp
from jax.experimental import pallas as pl
from jax.experimental.pallas import tpu as pltpu


# ----------------------------------------------------------------------------
# constant folding (numpy, trace-time): reflect-pad + transpose + fft2/fftshift
# + band crop + ifftshift/ifft2 (+ both CenterCrops) as real matrices
# ----------------------------------------------------------------------------
def _reflect_mat(L, p):
    """0/1 matrix implementing torch 'reflect' padding of a length-L axis by p."""
    m = np.zeros((L + 2 * p, L), np.float64)
    for u in range(L + 2 * p):
        if u < p:
            s = p - u
        elif u < p + L:
            s = u - p
        else:
            s = 2 * L + p - u - 2
        m[u, s] = 1.0
    return m


def _build_constants(H, W):
    """In the untransposed frame (kernel consumes the raw (H, W) slab X):
         low  = | CL_low  X  CR_low |   -> (H//2, W//2)
         zh   = | CL_hi   X  CR_hi  |   -> (H, W),  high = X - zh
       Each constant is returned with its Re/Im parts stacked (rows for CL,
       columns for CR)."""
    ph, pw = 3 * H // 4, 3 * W // 4
    Hp, Wp = H + 2 * ph, W + 2 * pw
    PH_m = _reflect_mat(H, ph)                 # (Hp, H)
    PW_m = _reflect_mat(W, pw)                 # (Wp, W)

    # fftshift + band crop indices on the padded, transposed spectrum
    r0, r1 = int(Wp / 4), int(Wp / 4 * 3)
    c0, c1 = int(Hp / 4), int(Hp / 4 * 3)
    Mr, Mc = r1 - r0, c1 - c0
    ksel = np.arange(r0, r1) - Wp // 2         # kept W-axis frequencies
    lsel = np.arange(c0, c1) - Hp // 2         # kept H-axis frequencies

    # forward DFT (norm='forward'), fftshift, band crop, reflect-pad all folded
    Ar = (np.exp(-2j * np.pi * np.outer(ksel, np.arange(Wp)) / Wp) / Wp) @ PW_m   # (Mr, W)
    Ac = (np.exp(-2j * np.pi * np.outer(lsel, np.arange(Hp)) / Hp) / Hp) @ PH_m   # (Mc, H)

    # low path: ifftshift + ifft2 (norm='forward') on the crop, then CenterCrop(W//2, H//2)
    ct2 = int(round((Mr - W // 2) / 2.0))
    cl2 = int(round((Mc - H // 2) / 2.0))
    Gr = np.exp(2j * np.pi * np.outer(ct2 + np.arange(W // 2), np.arange(Mr) - Mr // 2) / Mr)
    Gc = np.exp(2j * np.pi * np.outer(cl2 + np.arange(H // 2), np.arange(Mc) - Mc // 2) / Mc)

    # zeroed-high path: ifftshift + ifft2 at padded size, then CenterCrop(W, H)
    Hr = np.exp(2j * np.pi * np.outer(pw + np.arange(W), ksel) / Wp)              # (W, Mr)
    Hc = np.exp(2j * np.pi * np.outer(ph + np.arange(H), lsel) / Hp)              # (H, Mc)

    CL_low = Gc @ Ac            # (H//2, H) complex
    CR_low = (Gr @ Ar).T        # (W, W//2) complex
    CL_hi = Hc @ Ac             # (H, H)    complex
    CR_hi = (Hr @ Ar).T         # (W, W)    complex

    cll = np.concatenate([CL_low.real, CL_low.imag], axis=0)   # (H,  H)
    clh = np.concatenate([CL_hi.real, CL_hi.imag], axis=0)     # (2H, H)
    crl = np.concatenate([CR_low.real, CR_low.imag], axis=1)   # (W,  W)
    crh = np.concatenate([CR_hi.real, CR_hi.imag], axis=1)     # (W, 2W)
    return (jnp.asarray(cll, jnp.float32), jnp.asarray(clh, jnp.float32),
            jnp.asarray(crl, jnp.float32), jnp.asarray(crh, jnp.float32))


def _pick_batch(nc, h, w, budget=18 * 2**20):
    """Slabs per grid step.  ~12 f32 HW-sized live arrays per slab (double-buffered
    x/low/high blocks + flip scratch + matmul intermediates), sized against a
    conservative (v7x-safe) ~18 MiB working-set budget; keep >= 4 grid steps so the
    parallel grid axis feeds both TensorCores on v7x and the pipeline stays primed."""
    per_slab = 4 * h * w * 12
    b = max(1, min(nc, 16, budget // max(per_slab, 1)))
    while b > 1 and -(-nc // b) < 4:
        b = (b + 1) // 2
    return b


def _vmem_limit(est_bytes):
    # raise the scoped VMEM limit (16 MiB default on v5e), stay well under v7x's
    # 64 MiB physical VMEM.
    return int(min(max(est_bytes * 1.4, 32 * 2**20), 46 * 2**20))


# ----------------------------------------------------------------------------
# kernel 1: spectral low-pass + (orig - zeroed_high), B slabs per grid step
# ----------------------------------------------------------------------------
def _make_spectral_kernel(B, H, W):
    cH, cW = H // 2, W // 2
    BcW, BW = B * cW, B * W

    def kernel(x_ref, cll_ref, clh_ref, crl_ref, crh_ref,
               low_ref, high_ref, rl_s, rh_s):
        x2 = x_ref[...].reshape(B * H, W)                      # free reshape (H % 8 == 0)
        # right (lane-axis) transform, batched over all B slabs: M = B*H.
        # Separate CR_low / CR_hi operands -> no unaligned column slicing of r.
        rl = jnp.dot(x2, crl_ref[...], preferred_element_type=jnp.float32)   # (B*H, 2cW)
        rh = jnp.dot(x2, crh_ref[...], preferred_element_type=jnp.float32)   # (B*H, 2W)

        # flip the batch from rows to lanes so the left transform is ONE matmul
        # per path.  Scratch column layout: [all-b Re blocks | all-b Im blocks].
        for b in range(B):
            rlb = rl[b * H:(b + 1) * H, :]
            rhb = rh[b * H:(b + 1) * H, :]
            rl_s[:, b * cW:(b + 1) * cW] = rlb[:, :cW]
            rl_s[:, BcW + b * cW:BcW + (b + 1) * cW] = rlb[:, cW:]
            rh_s[:, b * W:(b + 1) * W] = rhb[:, :W]
            rh_s[:, BW + b * W:BW + (b + 1) * W] = rhb[:, W:]

        # left (sublane-axis) transform: one matmul per path, N = 2*B*cW / 2*B*W.
        t = jnp.dot(cll_ref[...], rl_s[...], preferred_element_type=jnp.float32)  # (H, 2BcW)
        q = jnp.dot(clh_ref[...], rh_s[...], preferred_element_type=jnp.float32)  # (2H, 2BW)

        # complex |.| recombination, vectorized over all slabs at once.
        re_l = t[:cH, :BcW] - t[cH:, BcW:]
        im_l = t[:cH, BcW:] + t[cH:, :BcW]
        low_all = jnp.sqrt(re_l * re_l + im_l * im_l)          # (cH, B*cW)
        re_h = q[:H, :BW] - q[H:, BW:]
        im_h = q[:H, BW:] + q[H:, :BW]
        zh_all = jnp.sqrt(re_h * re_h + im_h * im_h)           # (H, B*W)

        # un-flip into (B, ., .) output blocks: cheap slab-sized copies only.
        for b in range(B):
            low_ref[b] = low_all[:, b * cW:(b + 1) * cW]
            high_ref[b] = x_ref[b] - zh_all[:, b * W:(b + 1) * W]

    return kernel


# ----------------------------------------------------------------------------
# kernel 2: 7x7 stride-2 channel-mixing conv on parity planes + alpha blend
# ----------------------------------------------------------------------------
def _make_conv_blend_kernel(C, cH, cW):
    T = cH * cW

    def kernel(planes_ref, low_ref, kmat_ref, alpha_ref, out_ref, acc_ref):
        # planes_ref: (1, 4, cH+3, cW+3, C) channels-last stride-2 parity planes
        # of the zero-padded `high`; tap (u, v) is a shifted window of plane
        # (u&1, v&1): row shift is a free leading-dim slice, column shift a cheap
        # sublane slice -> 49 channel-mixing matmuls, no im2col materialization.
        first = True
        for u in range(7):
            a, p = u & 1, u // 2
            for v in range(7):
                b, q = v & 1, v // 2
                xw = planes_ref[0, 2 * a + b, p:p + cH, q:q + cW, :]   # (cH, cW, C)
                x2 = xw.reshape(T, C)                                  # free (cW % 8 == 0)
                contrib = jnp.dot(x2, kmat_ref[u * 7 + v],
                                  preferred_element_type=jnp.float32)  # (T, C)
                if first:
                    acc_ref[...] = contrib
                    first = False
                else:
                    acc_ref[...] += contrib
        alpha = alpha_ref[0, 0]                                        # SMEM scalar
        conv_cf = jnp.transpose(acc_ref[...])                          # (C, T) channels-first
        # lane-dense, channels-first blended output
        out_ref[0] = (1.0 - alpha) * low_ref[0] + alpha * conv_cf

    return kernel


# ----------------------------------------------------------------------------
# wrapper
# ----------------------------------------------------------------------------
def flc_pooling_learn_alpha_blurred(x, weight, alpha):
    """x: (N, C, H, W); weight: (C, C, 7, 7) = downsample_high.weight; alpha: scalar.
    Returns the module output, shape (N, C, W//2, H//2), float32.
    Implements the module defaults: transpose=True, padding='reflect', half_precision=False."""
    N, C, H, W = x.shape
    assert H % 8 == 0 and W % 8 == 0 and H >= 8 and W >= 8
    cH, cW = H // 2, W // 2
    T = cH * cW

    cll, clh, crl, crh = _build_constants(H, W)

    # untransposed slabs (the module's transpose(2,3) is folded into the constants)
    xf = x.astype(jnp.float32).reshape(N * C, H, W)
    nc = N * C
    B = _pick_batch(nc, H, W)
    ncp = -(-nc // B) * B
    if ncp != nc:
        xf = jnp.pad(xf, ((0, ncp - nc), (0, 0), (0, 0)))

    const_bytes = 8 * (cll.size + clh.size + crl.size + crh.size)
    est1 = const_bytes + B * 4 * H * W * 12
    low, high = pl.pallas_call(
        _make_spectral_kernel(B, H, W),
        out_shape=(jax.ShapeDtypeStruct((ncp, cH, cW), jnp.float32),
                   jax.ShapeDtypeStruct((ncp, H, W), jnp.float32)),
        grid_spec=pltpu.PrefetchScalarGridSpec(
            num_scalar_prefetch=0,
            grid=(ncp // B,),
            in_specs=[
                pl.BlockSpec((B, H, W), lambda i: (i, 0, 0)),
                pl.BlockSpec(cll.shape, lambda i: (0, 0)),
                pl.BlockSpec(clh.shape, lambda i: (0, 0)),
                pl.BlockSpec(crl.shape, lambda i: (0, 0)),
                pl.BlockSpec(crh.shape, lambda i: (0, 0)),
            ],
            out_specs=[
                pl.BlockSpec((B, cH, cW), lambda i: (i, 0, 0)),
                pl.BlockSpec((B, H, W), lambda i: (i, 0, 0)),
            ],
            scratch_shapes=[
                pltpu.VMEM((H, 2 * B * cW), jnp.float32),   # low-path flip scratch
                pltpu.VMEM((H, 2 * B * W), jnp.float32),    # hi-path flip scratch
            ],
        ),
        compiler_params=pltpu.CompilerParams(
            dimension_semantics=("parallel",),
            vmem_limit_bytes=_vmem_limit(est1)),
    )(xf, cll, clh, crl, crh)

    low = low[:nc].reshape(N, C, T)            # channels-first, lane-dense spatial (free reshape)
    high = high[:nc].reshape(N, C, H, W)       # untransposed frame: orig_x.T - zeroed_high

    # ---- downsample_high: stride-2 parity planes (no 49x im2col blow-up) ----
    hp = jnp.pad(high, ((0, 0), (0, 0), (3, 3), (3, 3)))            # (N, C, H+6, W+6)
    planes = jnp.stack([hp[:, :, a::2, b::2] for a in range(2) for b in range(2)],
                       axis=1)                                      # (N, 4, C, cH+3, cW+3)
    planes = jnp.transpose(planes, (0, 1, 3, 4, 2))                 # channels-last

    # tap matrices: kmat[u*7+v, ci, co] = weight[co, ci, v, u]
    # (spatial transpose folds the module's transposed-frame conv into our frame)
    kmat = jnp.transpose(weight.astype(jnp.float32), (3, 2, 1, 0)).reshape(49, C, C)
    alpha_arr = jnp.asarray(alpha, jnp.float32).reshape(1, 1)

    PH, PW = cH + 3, cW + 3
    est2 = 4 * (2 * 4 * PH * PW * C + 4 * C * T + 2 * 49 * C * C + 5 * T * C)
    out_cf = pl.pallas_call(
        _make_conv_blend_kernel(C, cH, cW),
        out_shape=jax.ShapeDtypeStruct((N, C, T), jnp.float32),
        grid_spec=pltpu.PrefetchScalarGridSpec(
            num_scalar_prefetch=0,
            grid=(N,),
            in_specs=[
                pl.BlockSpec((1, 4, PH, PW, C), lambda n: (n, 0, 0, 0, 0)),
                pl.BlockSpec((1, C, T), lambda n: (n, 0, 0)),
                pl.BlockSpec((49, C, C), lambda n: (0, 0, 0)),
                pl.BlockSpec(memory_space=pltpu.MemorySpace.SMEM),   # alpha scalar
            ],
            out_specs=pl.BlockSpec((1, C, T), lambda n: (n, 0, 0)),
            scratch_shapes=[pltpu.VMEM((T, C), jnp.float32)],
        ),
        compiler_params=pltpu.CompilerParams(
            dimension_semantics=("parallel",),
            vmem_limit_bytes=_vmem_limit(est2)),
    )(planes, low, kmat, alpha_arr)

    # back to the module's (transposed) output frame: (N, C, W//2, H//2)
    return jnp.swapaxes(out_cf.reshape(N, C, cH, cW), 2, 3)


# ----------------------------------------------------------------------------
# pure numpy reference mirroring the PyTorch module (float64 FFTs)
# ----------------------------------------------------------------------------
def _conv2d_ref(x, w):
    """stride-2, pad-3, bias-free cross-correlation (nn.Conv2d semantics), float64."""
    n, c, hin, win = x.shape
    ho, wo = (hin - 1) // 2 + 1, (win - 1) // 2 + 1
    xp = np.pad(x, ((0, 0), (0, 0), (3, 3), (3, 3)))
    out = np.zeros((n, w.shape[0], ho, wo), np.float64)
    for a in range(7):
        for b in range(7):
            patch = xp[:, :, a:a + 2 * ho:2, b:b + 2 * wo:2]
            out += np.einsum('oc,nchw->nohw', w[:, :, a, b], patch)
    return out


def _reference(x, weight, alpha):
    x = np.asarray(x, np.float64)
    w = np.asarray(weight, np.float64)
    n, c, h, wdt = x.shape
    ph, pw = 3 * h // 4, 3 * wdt // 4
    orig_t = np.swapaxes(x, 2, 3)
    xp = np.swapaxes(np.pad(x, ((0, 0), (0, 0), (ph, ph), (pw, pw)), mode='reflect'), 2, 3)
    p2, p3 = xp.shape[-2], xp.shape[-1]
    spec = np.fft.fftshift(np.fft.fft2(xp, axes=(-2, -1)) / (p2 * p3))
    r0, r1 = int(p2 / 4), int(p2 / 4 * 3)
    c0, c1 = int(p3 / 4), int(p3 / 4 * 3)
    low = spec[:, :, r0:r1, c0:c1]
    zh = np.zeros_like(spec)
    zh[:, :, r0:r1, c0:c1] = low
    mr, mc = low.shape[-2], low.shape[-1]
    low_sp = np.abs(np.fft.ifft2(np.fft.ifftshift(low), axes=(-2, -1)) * (mr * mc))
    zh_sp = np.abs(np.fft.ifft2(np.fft.ifftshift(zh), axes=(-2, -1)) * (p2 * p3))
    ct = int(round((p2 - wdt) / 2.0))
    cl = int(round((p3 - h) / 2.0))
    zh_c = zh_sp[:, :, ct:ct + wdt, cl:cl + h]                  # CenterCrop((W, H))
    high = orig_t - zh_c
    conv = _conv2d_ref(high, w)                                 # downsample_high
    ct2 = int(round((mr - wdt // 2) / 2.0))
    cl2 = int(round((mc - h // 2) / 2.0))
    low_c = low_sp[:, :, ct2:ct2 + wdt // 2, cl2:cl2 + h // 2]  # CenterCrop((W//2, H//2))
    return low_c * (1.0 - alpha) + conv * alpha


if __name__ == "__main__":
    key = jax.random.PRNGKey(0)
    kx, kw = jax.random.split(key)
    N, C, H, W = 2, 4, 16, 16
    x = jax.random.normal(kx, (N, C, H, W), dtype=jnp.float32)
    bound = float(1.0 / np.sqrt(C * 7 * 7))              # ~ nn.Conv2d default init scale
    weight = jax.random.uniform(kw, (C, C, 7, 7), jnp.float32, -bound, bound)
    alpha = 0.3                                          # nn.Parameter(torch.tensor(0.3))

    fwd = jax.jit(flc_pooling_learn_alpha_blurred)
    out = jax.block_until_ready(fwd(x, weight, jnp.float32(alpha)))

    assert out.shape == (N, C, W // 2, H // 2), out.shape
    assert out.dtype == jnp.float32, out.dtype

    ref = _reference(np.asarray(x), np.asarray(weight), alpha)
    np.testing.assert_allclose(np.asarray(out, np.float64), ref, rtol=2e-2, atol=2e-2)
    print("KERNEL_OK")
</pallas_src>

<mosaic_0001>
module attributes {stable_mosaic.version = 11 : i64} {
  func.func @kernel(%arg0: i32, %arg1: memref<2x16x16xf32, #tpu.memory_space<vmem>>, %arg2: memref<16x16xf32, #tpu.memory_space<vmem>>, %arg3: memref<32x16xf32, #tpu.memory_space<vmem>>, %arg4: memref<16x16xf32, #tpu.memory_space<vmem>>, %arg5: memref<16x32xf32, #tpu.memory_space<vmem>>, %arg6: memref<2x8x8xf32, #tpu.memory_space<vmem>>, %arg7: memref<2x16x16xf32, #tpu.memory_space<vmem>>, %arg8: memref<16x32xf32, #tpu.memory_space<vmem>>, %arg9: memref<16x64xf32, #tpu.memory_space<vmem>>) attributes {dimension_semantics = [#tpu.dimension_semantics<parallel>], iteration_bounds = array<i64: 4>, scalar_prefetch = 0 : i64, scratch_operands = 2 : i64, tpu.core_type = #tpu.core_type<tc>, window_params = [{transform_indices = @transform_0, window_bounds = array<i64: 2, 16, 16>}, {pipeline_mode = #tpu.pipeline_mode<synchronous>, transform_indices = @transform_1, window_bounds = array<i64: 16, 16>}, {pipeline_mode = #tpu.pipeline_mode<synchronous>, transform_indices = @transform_2, window_bounds = array<i64: 32, 16>}, {pipeline_mode = #tpu.pipeline_mode<synchronous>, transform_indices = @transform_3, window_bounds = array<i64: 16, 16>}, {pipeline_mode = #tpu.pipeline_mode<synchronous>, transform_indices = @transform_4, window_bounds = array<i64: 16, 32>}, {transform_indices = @transform_5, window_bounds = array<i64: 2, 8, 8>}, {transform_indices = @transform_6, window_bounds = array<i64: 2, 16, 16>}]} {
    %c0 = arith.constant 0 : index
    %c0_0 = arith.constant 0 : index
    %c0_1 = arith.constant 0 : index
    %0 = vector.load %arg1[%c0, %c0_0, %c0_1] : memref<2x16x16xf32, #tpu.memory_space<vmem>>, vector<2x16x16xf32>
    %1 = vector.shape_cast %0 : vector<2x16x16xf32> to vector<32x16xf32>
    %c0_2 = arith.constant 0 : index
    %c0_3 = arith.constant 0 : index
    %2 = vector.load %arg4[%c0_2, %c0_3] : memref<16x16xf32, #tpu.memory_space<vmem>>, vector<16x16xf32>
    %cst = arith.constant dense<0.000000e+00> : vector<32x16xf32>
    %3 = tpu.matmul %1, %2, %cst {dimension_numbers = #tpu.dot_dimension_numbers<[1], [0], [0], [1], [0, 0, 1, 1], [], []>} : vector<32x16xf32>, vector<16x16xf32>, vector<32x16xf32> -> vector<32x16xf32>
    %c0_4 = arith.constant 0 : index
    %c0_5 = arith.constant 0 : index
    %4 = vector.load %arg5[%c0_4, %c0_5] : memref<16x32xf32, #tpu.memory_space<vmem>>, vector<16x32xf32>
    %cst_6 = arith.constant dense<0.000000e+00> : vector<32x32xf32>
    %5 = tpu.matmul %1, %4, %cst_6 {dimension_numbers = #tpu.dot_dimension_numbers<[1], [0], [0], [1], [0, 0, 1, 1], [], []>} : vector<32x16xf32>, vector<16x32xf32>, vector<32x32xf32> -> vector<32x32xf32>
    %6 = vector.extract_strided_slice %3 {offsets = [0, 0], sizes = [16, 16], strides = [1, 1]} : vector<32x16xf32> to vector<16x16xf32>
    %7 = vector.extract_strided_slice %5 {offsets = [0, 0], sizes = [16, 32], strides = [1, 1]} : vector<32x32xf32> to vector<16x32xf32>
    %8 = vector.extract_strided_slice %6 {offsets = [0, 0], sizes = [16, 8], strides = [1, 1]} : vector<16x16xf32> to vector<16x8xf32>
    %c0_7 = arith.constant 0 : index
    %c0_8 = arith.constant 0 : index
    %9 = vector.load %arg8[%c0_7, %c0_8] : memref<16x32xf32, #tpu.memory_space<vmem>>, vector<16x8xf32>
    tpu.vector_store %arg8[%c0_7, %c0_8], %8 {strides = array<i32>} : memref<16x32xf32, #tpu.memory_space<vmem>>, vector<16x8xf32>,
    %10 = vector.extract_strided_slice %6 {offsets = [0, 8], sizes = [16, 8], strides = [1, 1]} : vector<16x16xf32> to vector<16x8xf32>
    %c0_9 = arith.constant 0 : index
    %c16 = arith.constant 16 : index
    %11 = vector.load %arg8[%c0_9, %c16] : memref<16x32xf32, #tpu.memory_space<vmem>>, vector<16x8xf32>
    tpu.vector_store %arg8[%c0_9, %c16], %10 {strides = array<i32>} : memref<16x32xf32, #tpu.memory_space<vmem>>, vector<16x8xf32>,
    %12 = vector.extract_strided_slice %7 {offsets = [0, 0], sizes = [16, 16], strides = [1, 1]} : vector<16x32xf32> to vector<16x16xf32>
    %c0_10 = arith.constant 0 : index
    %c0_11 = arith.constant 0 : index
    %13 = vector.load %arg9[%c0_10, %c0_11] : memref<16x64xf32, #tpu.memory_space<vmem>>, vector<16x16xf32>
    tpu.vector_store %arg9[%c0_10, %c0_11], %12 {strides = array<i32>} : memref<16x64xf32, #tpu.memory_space<vmem>>, vector<16x16xf32>,
    %14 = vector.extract_strided_slice %7 {offsets = [0, 16], sizes = [16, 16], strides = [1, 1]} : vector<16x32xf32> to vector<16x16xf32>
    %c0_12 = arith.constant 0 : index
    %c32 = arith.constant 32 : index
    %15 = vector.load %arg9[%c0_12, %c32] : memref<16x64xf32, #tpu.memory_space<vmem>>, vector<16x16xf32>
    tpu.vector_store %arg9[%c0_12, %c32], %14 {strides = array<i32>} : memref<16x64xf32, #tpu.memory_space<vmem>>, vector<16x16xf32>,
    %16 = vector.extract_strided_slice %3 {offsets = [16, 0], sizes = [16, 16], strides = [1, 1]} : vector<32x16xf32> to vector<16x16xf32>
    %17 = vector.extract_strided_slice %5 {offsets = [16, 0], sizes = [16, 32], strides = [1, 1]} : vector<32x32xf32> to vector<16x32xf32>
    %18 = vector.extract_strided_slice %16 {offsets = [0, 0], sizes = [16, 8], strides = [1, 1]} : vector<16x16xf32> to vector<16x8xf32>
    %c0_13 = arith.constant 0 : index
    %c8 = arith.constant 8 : index
    %19 = vector.load %arg8[%c0_13, %c8] : memref<16x32xf32, #tpu.memory_space<vmem>>, vector<16x8xf32>
    tpu.vector_store %arg8[%c0_13, %c8], %18 {strides = array<i32>} : memref<16x32xf32, #tpu.memory_space<vmem>>, vector<16x8xf32>,
    %20 = vector.extract_strided_slice %16 {offsets = [0, 8], sizes = [16, 8], strides = [1, 1]} : vector<16x16xf32> to vector<16x8xf32>
    %c0_14 = arith.constant 0 : index
    %c24 = arith.constant 24 : index
    %21 = vector.load %arg8[%c0_14, %c24] : memref<16x32xf32, #tpu.memory_space<vmem>>, vector<16x8xf32>
    tpu.vector_store %arg8[%c0_14, %c24], %20 {strides = array<i32>} : memref<16x32xf32, #tpu.memory_space<vmem>>, vector<16x8xf32>,
    %22 = vector.extract_strided_slice %17 {offsets = [0, 0], sizes = [16, 16], strides = [1, 1]} : vector<16x32xf32> to vector<16x16xf32>
    %c0_15 = arith.constant 0 : index
    %c16_16 = arith.constant 16 : index
    %23 = vector.load %arg9[%c0_15, %c16_16] : memref<16x64xf32, #tpu.memory_space<vmem>>, vector<16x16xf32>
    tpu.vector_store %arg9[%c0_15, %c16_16], %22 {strides = array<i32>} : memref<16x64xf32, #tpu.memory_space<vmem>>, vector<16x16xf32>,
    %24 = vector.extract_strided_slice %17 {offsets = [0, 16], sizes = [16, 16], strides = [1, 1]} : vector<16x32xf32> to vector<16x16xf32>
    %c0_17 = arith.constant 0 : index
    %c48 = arith.constant 48 : index
    %25 = vector.load %arg9[%c0_17, %c48] : memref<16x64xf32, #tpu.memory_space<vmem>>, vector<16x16xf32>
    tpu.vector_store %arg9[%c0_17, %c48], %24 {strides = array<i32>} : memref<16x64xf32, #tpu.memory_space<vmem>>, vector<16x16xf32>,
    %c0_18 = arith.constant 0 : index
    %c0_19 = arith.constant 0 : index
    %26 = vector.load %arg2[%c0_18, %c0_19] : memref<16x16xf32, #tpu.memory_space<vmem>>, vector<16x16xf32>
    %c0_20 = arith.constant 0 : index
    %c0_21 = arith.constant 0 : index
    %27 = vector.load %arg8[%c0_20, %c0_21] : memref<16x32xf32, #tpu.memory_space<vmem>>, vector<16x32xf32>
    %cst_22 = arith.constant dense<0.000000e+00> : vector<16x32xf32>
    %28 = tpu.matmul %26, %27, %cst_22 {dimension_numbers = #tpu.dot_dimension_numbers<[1], [0], [0], [1], [0, 0, 1, 1], [], []>} : vector<16x16xf32>, vector<16x32xf32>, vector<16x32xf32> -> vector<16x32xf32>
    %c0_23 = arith.constant 0 : index
    %c0_24 = arith.constant 0 : index
    %29 = vector.load %arg3[%c0_23, %c0_24] : memref<32x16xf32, #tpu.memory_space<vmem>>, vector<32x16xf32>
    %c0_25 = arith.constant 0 : index
    %c0_26 = arith.constant 0 : index
    %30 = vector.load %arg9[%c0_25, %c0_26] : memref<16x64xf32, #tpu.memory_space<vmem>>, vector<16x64xf32>
    %cst_27 = arith.constant dense<0.000000e+00> : vector<32x64xf32>
    %31 = tpu.matmul %29, %30, %cst_27 {dimension_numbers = #tpu.dot_dimension_numbers<[1], [0], [0], [1], [0, 0, 1, 1], [], []>} : vector<32x16xf32>, vector<16x64xf32>, vector<32x64xf32> -> vector<32x64xf32>
    %32 = vector.extract_strided_slice %28 {offsets = [0, 0], sizes = [8, 16], strides = [1, 1]} : vector<16x32xf32> to vector<8x16xf32>
    %33 = vector.extract_strided_slice %28 {offsets = [8, 16], sizes = [8, 16], strides = [1, 1]} : vector<16x32xf32> to vector<8x16xf32>
    %34 = arith.subf %32, %33 : vector<8x16xf32>
    %35 = vector.extract_strided_slice %28 {offsets = [0, 16], sizes = [8, 16], strides = [1, 1]} : vector<16x32xf32> to vector<8x16xf32>
    %36 = vector.extract_strided_slice %28 {offsets = [8, 0], sizes = [8, 16], strides = [1, 1]} : vector<16x32xf32> to vector<8x16xf32>
    %37 = arith.addf %35, %36 : vector<8x16xf32>
    %38 = arith.mulf %34, %34 : vector<8x16xf32>
    %39 = arith.mulf %37, %37 : vector<8x16xf32>
    %40 = arith.addf %38, %39 : vector<8x16xf32>
    %41 = math.sqrt %40 : vector<8x16xf32>
    %42 = vector.extract_strided_slice %31 {offsets = [0, 0], sizes = [16, 32], strides = [1, 1]} : vector<32x64xf32> to vector<16x32xf32>
    %43 = vector.extract_strided_slice %31 {offsets = [16, 32], sizes = [16, 32], strides = [1, 1]} : vector<32x64xf32> to vector<16x32xf32>
    %44 = arith.subf %42, %43 : vector<16x32xf32>
    %45 = vector.extract_strided_slice %31 {offsets = [0, 32], sizes = [16, 32], strides = [1, 1]} : vector<32x64xf32> to vector<16x32xf32>
    %46 = vector.extract_strided_slice %31 {offsets = [16, 0], sizes = [16, 32], strides = [1, 1]} : vector<32x64xf32> to vector<16x32xf32>
    %47 = arith.addf %45, %46 : vector<16x32xf32>
    %48 = arith.mulf %44, %44 : vector<16x32xf32>
    %49 = arith.mulf %47, %47 : vector<16x32xf32>
    %50 = arith.addf %48, %49 : vector<16x32xf32>
    %51 = math.sqrt %50 : vector<16x32xf32>
    %52 = vector.extract_strided_slice %41 {offsets = [0, 0], sizes = [8, 8], strides = [1, 1]} : vector<8x16xf32> to vector<8x8xf32>
    %c0_28 = arith.constant 0 : index
    %c0_29 = arith.constant 0 : index
    %c0_30 = arith.constant 0 : index
    %53 = vector.load %arg6[%c0_28, %c0_29, %c0_30] : memref<2x8x8xf32, #tpu.memory_space<vmem>>, vector<1x8x8xf32>
    %54 = vector.shape_cast %53 : vector<1x8x8xf32> to vector<8x8xf32>
    %55 = vector.shape_cast %52 : vector<8x8xf32> to vector<1x8x8xf32>
    tpu.vector_store %arg6[%c0_28, %c0_29, %c0_30], %55 {strides = array<i32>} : memref<2x8x8xf32, #tpu.memory_space<vmem>>, vector<1x8x8xf32>,
    %c0_31 = arith.constant 0 : index
    %c0_32 = arith.constant 0 : index
    %c0_33 = arith.constant 0 : index
    %56 = vector.load %arg1[%c0_31, %c0_32, %c0_33] : memref<2x16x16xf32, #tpu.memory_space<vmem>>, vector<1x16x16xf32>
    %57 = vector.shape_cast %56 : vector<1x16x16xf32> to vector<16x16xf32>
    %58 = vector.extract_strided_slice %51 {offsets = [0, 0], sizes = [16, 16], strides = [1, 1]} : vector<16x32xf32> to vector<16x16xf32>
    %59 = arith.subf %57, %58 : vector<16x16xf32>
    %c0_34 = arith.constant 0 : index
    %c0_35 = arith.constant 0 : index
    %c0_36 = arith.constant 0 : index
    %60 = vector.load %arg7[%c0_34, %c0_35, %c0_36] : memref<2x16x16xf32, #tpu.memory_space<vmem>>, vector<1x16x16xf32>
    %61 = vector.shape_cast %60 : vector<1x16x16xf32> to vector<16x16xf32>
    %62 = vector.shape_cast %59 : vector<16x16xf32> to vector<1x16x16xf32>
    tpu.vector_store %arg7[%c0_34, %c0_35, %c0_36], %62 {strides = array<i32>} : memref<2x16x16xf32, #tpu.memory_space<vmem>>, vector<1x16x16xf32>,
    %63 = vector.extract_strided_slice %41 {offsets = [0, 8], sizes = [8, 8], strides = [1, 1]} : vector<8x16xf32> to vector<8x8xf32>
    %c1 = arith.constant 1 : index
    %c0_37 = arith.constant 0 : index
    %c0_38 = arith.constant 0 : index
    %64 = vector.load %arg6[%c1, %c0_37, %c0_38] : memref<2x8x8xf32, #tpu.memory_space<vmem>>, vector<1x8x8xf32>
    %65 = vector.shape_cast %64 : vector<1x8x8xf32> to vector<8x8xf32>
    %66 = vector.shape_cast %63 : vector<8x8xf32> to vector<1x8x8xf32>
    tpu.vector_store %arg6[%c1, %c0_37, %c0_38], %66 {strides = array<i32>} : memref<2x8x8xf32, #tpu.memory_space<vmem>>, vector<1x8x8xf32>,
    %c1_39 = arith.constant 1 : index
    %c0_40 = arith.constant 0 : index
    %c0_41 = arith.constant 0 : index
    %67 = vector.load %arg1[%c1_39, %c0_40, %c0_41] : memref<2x16x16xf32, #tpu.memory_space<vmem>>, vector<1x16x16xf32>
    %68 = vector.shape_cast %67 : vector<1x16x16xf32> to vector<16x16xf32>
    %69 = vector.extract_strided_slice %51 {offsets = [0, 16], sizes = [16, 16], strides = [1, 1]} : vector<16x32xf32> to vector<16x16xf32>
    %70 = arith.subf %68, %69 : vector<16x16xf32>
    %c1_42 = arith.constant 1 : index
    %c0_43 = arith.constant 0 : index
    %c0_44 = arith.constant 0 : index
    %71 = vector.load %arg7[%c1_42, %c0_43, %c0_44] : memref<2x16x16xf32, #tpu.memory_space<vmem>>, vector<1x16x16xf32>
    %72 = vector.shape_cast %71 : vector<1x16x16xf32> to vector<16x16xf32>
    %73 = vector.shape_cast %70 : vector<16x16xf32> to vector<1x16x16xf32>
    tpu.vector_store %arg7[%c1_42, %c0_43, %c0_44], %73 {strides = array<i32>} : memref<2x16x16xf32, #tpu.memory_space<vmem>>, vector<1x16x16xf32>,
    return
  }
  func.func @transform_0(%arg0: i32) -> (i32, i32, i32) {
    %c0_i32 = arith.constant 0 : i32
    %c0_i32_0 = arith.constant 0 : i32
    %c0_i32_1 = arith.constant 0 : i32
    return %arg0, %c0_i32, %c0_i32_0 : i32, i32, i32
  }
  func.func @transform_1(%arg0: i32) -> (i32, i32) {
    %c0_i32 = arith.constant 0 : i32
    %c0_i32_0 = arith.constant 0 : i32
    %c0_i32_1 = arith.constant 0 : i32
    return %c0_i32, %c0_i32_0 : i32, i32
  }
  func.func @transform_2(%arg0: i32) -> (i32, i32) {
    %c0_i32 = arith.constant 0 : i32
    %c0_i32_0 = arith.constant 0 : i32
    %c0_i32_1 = arith.constant 0 : i32
    return %c0_i32, %c0_i32_0 : i32, i32
  }
  func.func @transform_3(%arg0: i32) -> (i32, i32) {
    %c0_i32 = arith.constant 0 : i32
    %c0_i32_0 = arith.constant 0 : i32
    %c0_i32_1 = arith.constant 0 : i32
    return %c0_i32, %c0_i32_0 : i32, i32
  }
  func.func @transform_4(%arg0: i32) -> (i32, i32) {
    %c0_i32 = arith.constant 0 : i32
    %c0_i32_0 = arith.constant 0 : i32
    %c0_i32_1 = arith.constant 0 : i32
    return %c0_i32, %c0_i32_0 : i32, i32
  }
  func.func @transform_5(%arg0: i32) -> (i32, i32, i32) {
    %c0_i32 = arith.constant 0 : i32
    %c0_i32_0 = arith.constant 0 : i32
    %c0_i32_1 = arith.constant 0 : i32
    return %arg0, %c0_i32, %c0_i32_0 : i32, i32, i32
  }
  func.func @transform_6(%arg0: i32) -> (i32, i32, i32) {
    %c0_i32 = arith.constant 0 : i32
    %c0_i32_0 = arith.constant 0 : i32
    %c0_i32_1 = arith.constant 0 : i32
    return %arg0, %c0_i32, %c0_i32_0 : i32, i32, i32
  }
}

module attributes {stable_mosaic.version = 11 : i64} {
  func.func @kernel(%arg0: i32, %arg1: memref<1x4x11x11x4xf32, #tpu.memory_space<vmem>>, %arg2: memref<1x4x64xf32, #tpu.memory_space<vmem>>, %arg3: memref<49x4x4xf32, #tpu.memory_space<vmem>>, %arg4: memref<1x1xf32, #tpu.memory_space<smem>>, %arg5: memref<1x4x64xf32, #tpu.memory_space<vmem>>, %arg6: memref<64x4xf32, #tpu.memory_space<vmem>>) attributes {dimension_semantics = [#tpu.dimension_semantics<parallel>], iteration_bounds = array<i64: 2>, scalar_prefetch = 0 : i64, scratch_operands = 1 : i64, tpu.core_type = #tpu.core_type<tc>, window_params = [{transform_indices = @transform_0, window_bounds = array<i64: 1, 4, 11, 11, 4>}, {transform_indices = @transform_1, window_bounds = array<i64: 1, 4, 64>}, {pipeline_mode = #tpu.pipeline_mode<synchronous>, transform_indices = @transform_2, window_bounds = array<i64: 49, 4, 4>}, {transform_indices = @transform_3, window_bounds = array<i64: 1, 1>}, {transform_indices = @transform_4, window_bounds = array<i64: 1, 4, 64>}]} {
    %c0 = arith.constant 0 : index
    %c0_0 = arith.constant 0 : index
    %c0_1 = arith.constant 0 : index
    %c0_2 = arith.constant 0 : index
    %c0_3 = arith.constant 0 : index
    %0 = vector.load %arg1[%c0, %c0_0, %c0_1, %c0_2, %c0_3] : memref<1x4x11x11x4xf32, #tpu.memory_space<vmem>>, vector<1x1x8x8x4xf32>
    %1 = vector.shape_cast %0 : vector<1x1x8x8x4xf32> to vector<8x8x4xf32>
    %2 = vector.shape_cast %1 : vector<8x8x4xf32> to vector<64x4xf32>
    %c0_4 = arith.constant 0 : index
    %c0_5 = arith.constant 0 : index
    %c0_6 = arith.constant 0 : index
    %3 = vector.load %arg3[%c0_4, %c0_5, %c0_6] : memref<49x4x4xf32, #tpu.memory_space<vmem>>, vector<1x4x4xf32>
    %4 = vector.shape_cast %3 : vector<1x4x4xf32> to vector<4x4xf32>
    %cst = arith.constant dense<0.000000e+00> : vector<64x4xf32>
    %5 = tpu.matmul %2, %4, %cst {dimension_numbers = #tpu.dot_dimension_numbers<[1], [0], [0], [1], [0, 0, 1, 1], [], []>} : vector<64x4xf32>, vector<4x4xf32>, vector<64x4xf32> -> vector<64x4xf32>
    %c0_7 = arith.constant 0 : index
    %c0_8 = arith.constant 0 : index
    %6 = vector.load %arg6[%c0_7, %c0_8] : memref<64x4xf32, #tpu.memory_space<vmem>>, vector<64x4xf32>
    tpu.vector_store %arg6[%c0_7, %c0_8], %5 {strides = array<i32>} : memref<64x4xf32, #tpu.memory_space<vmem>>, vector<64x4xf32>,
    %c0_9 = arith.constant 0 : index
    %c1 = arith.constant 1 : index
    %c0_10 = arith.constant 0 : index
    %c0_11 = arith.constant 0 : index
    %c0_12 = arith.constant 0 : index
    %7 = vector.load %arg1[%c0_9, %c1, %c0_10, %c0_11, %c0_12] : memref<1x4x11x11x4xf32, #tpu.memory_space<vmem>>, vector<1x1x8x8x4xf32>
    %8 = vector.shape_cast %7 : vector<1x1x8x8x4xf32> to vector<8x8x4xf32>
    %9 = vector.shape_cast %8 : vector<8x8x4xf32> to vector<64x4xf32>
    %c1_13 = arith.constant 1 : index
    %c0_14 = arith.constant 0 : index
    %c0_15 = arith.constant 0 : index
    %10 = vector.load %arg3[%c1_13, %c0_14, %c0_15] : memref<49x4x4xf32, #tpu.memory_space<vmem>>, vector<1x4x4xf32>
    %11 = vector.shape_cast %10 : vector<1x4x4xf32> to vector<4x4xf32>
    %cst_16 = arith.constant dense<0.000000e+00> : vector<64x4xf32>
    %12 = tpu.matmul %9, %11, %cst_16 {dimension_numbers = #tpu.dot_dimension_numbers<[1], [0], [0], [1], [0, 0, 1, 1], [], []>} : vector<64x4xf32>, vector<4x4xf32>, vector<64x4xf32> -> vector<64x4xf32>
    %c0_17 = arith.constant 0 : index
    %c0_18 = arith.constant 0 : index
    %13 = vector.load %arg6[%c0_17, %c0_18] : memref<64x4xf32, #tpu.memory_space<vmem>>, vector<64x4xf32>
    %14 = arith.addf %13, %12 : vector<64x4xf32>
    %c0_19 = arith.constant 0 : index
    %c0_20 = arith.constant 0 : index
    %15 = vector.load %arg6[%c0_19, %c0_20] : memref<64x4xf32, #tpu.memory_space<vmem>>, vector<64x4xf32>
    tpu.vector_store %arg6[%c0_19, %c0_20], %14 {strides = array<i32>} : memref<64x4xf32, #tpu.memory_space<vmem>>, vector<64x4xf32>,
    %c0_21 = arith.constant 0 : index
    %c0_22 = arith.constant 0 : index
    %c0_23 = arith.constant 0 : index
    %c1_24 = arith.constant 1 : index
    %c0_25 = arith.constant 0 : index
    %16 = vector.load %arg1[%c0_21, %c0_22, %c0_23, %c1_24, %c0_25] : memref<1x4x11x11x4xf32, #tpu.memory_space<vmem>>, vector<1x1x8x8x4xf32>
    %17 = vector.shape_cast %16 : vector<1x1x8x8x4xf32> to vector<8x8x4xf32>
    %18 = vector.shape_cast %17 : vector<8x8x4xf32> to vector<64x4xf32>
    %c2 = arith.constant 2 : index
    %c0_26 = arith.constant 0 : index
    %c0_27 = arith.constant 0 : index
    %19 = vector.load %arg3[%c2, %c0_26, %c0_27] : memref<49x4x4xf32, #tpu.memory_space<vmem>>, vector<1x4x4xf32>
    %20 = vector.shape_cast %19 : vector<1x4x4xf32> to vector<4x4xf32>
    %cst_28 = arith.constant dense<0.000000e+00> : vector<64x4xf32>
    %21 = tpu.matmul %18, %20, %cst_28 {dimension_numbers = #tpu.dot_dimension_numbers<[1], [0], [0], [1], [0, 0, 1, 1], [], []>} : vector<64x4xf32>, vector<4x4xf32>, vector<64x4xf32> -> vector<64x4xf32>
    %c0_29 = arith.constant 0 : index
    %c0_30 = arith.constant 0 : index
    %22 = vector.load %arg6[%c0_29, %c0_30] : memref<64x4xf32, #tpu.memory_space<vmem>>, vector<64x4xf32>
    %23 = arith.addf %22, %21 : vector<64x4xf32>
    %c0_31 = arith.constant 0 : index
    %c0_32 = arith.constant 0 : index
    %24 = vector.load %arg6[%c0_31, %c0_32] : memref<64x4xf32, #tpu.memory_space<vmem>>, vector<64x4xf32>
    tpu.vector_store %arg6[%c0_31, %c0_32], %23 {strides = array<i32>} : memref<64x4xf32, #tpu.memory_space<vmem>>, vector<64x4xf32>,
    %c0_33 = arith.constant 0 : index
    %c1_34 = arith.constant 1 : index
    %c0_35 = arith.constant 0 : index
    %c1_36 = arith.constant 1 : index
    %c0_37 = arith.constant 0 : index
    %25 = vector.load %arg1[%c0_33, %c1_34, %c0_35, %c1_36, %c0_37] : memref<1x4x11x11x4xf32, #tpu.memory_space<vmem>>, vector<1x1x8x8x4xf32>
    %26 = vector.shape_cast %25 : vector<1x1x8x8x4xf32> to vector<8x8x4xf32>
    %27 = vector.shape_cast %26 : vector<8x8x4xf32> to vector<64x4xf32>
    %c3 = arith.constant 3 : index
    %c0_38 = arith.constant 0 : index
    %c0_39 = arith.constant 0 : index
    %28 = vector.load %arg3[%c3, %c0_38, %c0_39] : memref<49x4x4xf32, #tpu.memory_space<vmem>>, vector<1x4x4xf32>
    %29 = vector.shape_cast %28 : vector<1x4x4xf32> to vector<4x4xf32>
    %cst_40 = arith.constant dense<0.000000e+00> : vector<64x4xf32>
    %30 = tpu.matmul %27, %29, %cst_40 {dimension_numbers = #tpu.dot_dimension_numbers<[1], [0], [0], [1], [0, 0, 1, 1], [], []>} : vector<64x4xf32>, vector<4x4xf32>, vector<64x4xf32> -> vector<64x4xf32>
    %c0_41 = arith.constant 0 : index
    %c0_42 = arith.constant 0 : index
    %31 = vector.load %arg6[%c0_41, %c0_42] : memref<64x4xf32, #tpu.memory_space<vmem>>, vector<64x4xf32>
    %32 = arith.addf %31, %30 : vector<64x4xf32>
    %c0_43 = arith.constant 0 : index
    %c0_44 = arith.constant 0 : index
    %33 = vector.load %arg6[%c0_43, %c0_44] : memref<64x4xf32, #tpu.memory_space<vmem>>, vector<64x4xf32>
    tpu.vector_store %arg6[%c0_43, %c0_44], %32 {strides = array<i32>} : memref<64x4xf32, #tpu.memory_space<vmem>>, vector<64x4xf32>,
    %c0_45 = arith.constant 0 : index
    %c0_46 = arith.constant 0 : index
    %c0_47 = arith.constant 0 : index
    %c2_48 = arith.constant 2 : index
    %c0_49 = arith.constant 0 : index
    %34 = vector.load %arg1[%c0_45, %c0_46, %c0_47, %c2_48, %c0_49] : memref<1x4x11x11x4xf32, #tpu.memory_space<vmem>>, vector<1x1x8x8x4xf32>
    %35 = vector.shape_cast %34 : vector<1x1x8x8x4xf32> to vector<8x8x4xf32>
    %36 = vector.shape_cast %35 : vector<8x8x4xf32> to vector<64x4xf32>
    %c4 = arith.constant 4 : index
    %c0_50 = arith.constant 0 : index
    %c0_51 = arith.constant 0 : index
    %37 = vector.load %arg3[%c4, %c0_50, %c0_51] : memref<49x4x4xf32, #tpu.memory_space<vmem>>, vector<1x4x4xf32>
    %38 = vector.shape_cast %37 : vector<1x4x4xf32> to vector<4x4xf32>
    %cst_52 = arith.constant dense<0.000000e+00> : vector<64x4xf32>
    %39 = tpu.matmul %36, %38, %cst_52 {dimension_numbers = #tpu.dot_dimension_numbers<[1], [0], [0], [1], [0, 0, 1, 1], [], []>} : vector<64x4xf32>, vector<4x4xf32>, vector<64x4xf32> -> vector<64x4xf32>
    %c0_53 = arith.constant 0 : index
    %c0_54 = arith.constant 0 : index
    %40 = vector.load %arg6[%c0_53, %c0_54] : memref<64x4xf32, #tpu.memory_space<vmem>>, vector<64x4xf32>
    %41 = arith.addf %40, %39 : vector<64x4xf32>
    %c0_55 = arith.constant 0 : index
    %c0_56 = arith.constant 0 : index
    %42 = vector.load %arg6[%c0_55, %c0_56] : memref<64x4xf32, #tpu.memory_space<vmem>>, vector<64x4xf32>
    tpu.vector_store %arg6[%c0_55, %c0_56], %41 {strides = array<i32>} : memref<64x4xf32, #tpu.memory_space<vmem>>, vector<64x4xf32>,
    %c0_57 = arith.constant 0 : index
    %c1_58 = arith.constant 1 : index
    %c0_59 = arith.constant 0 : index
    %c2_60 = arith.constant 2 : index
    %c0_61 = arith.constant 0 : index
    %43 = vector.load %arg1[%c0_57, %c1_58, %c0_59, %c2_60, %c0_61] : memref<1x4x11x11x4xf32, #tpu.memory_space<vmem>>, vector<1x1x8x8x4xf32>
    %44 = vector.shape_cast %43 : vector<1x1x8x8x4xf32> to vector<8x8x4xf32>
    %45 = vector.shape_cast %44 : vector<8x8x4xf32> to vector<64x4xf32>
    %c5 = arith.constant 5 : index
    %c0_62 = arith.constant 0 : index
    %c0_63 = arith.constant 0 : index
    %46 = vector.load %arg3[%c5, %c0_62, %c0_63] : memref<49x4x4xf32, #tpu.memory_space<vmem>>, vector<1x4x4xf32>
    %47 = vector.shape_cast %46 : vector<1x4x4xf32> to vector<4x4xf32>
    %cst_64 = arith.constant dense<0.000000e+00> : vector<64x4xf32>
    %48 = tpu.matmul %45, %47, %cst_64 {dimension_numbers = #tpu.dot_dimension_numbers<[1], [0], [0], [1], [0, 0, 1, 1], [], []>} : vector<64x4xf32>, vector<4x4xf32>, vector<64x4xf32> -> vector<64x4xf32>
    %c0_65 = arith.constant 0 : index
    %c0_66 = arith.constant 0 : index
    %49 = vector.load %arg6[%c0_65, %c0_66] : memref<64x4xf32, #tpu.memory_space<vmem>>, vector<64x4xf32>
    %50 = arith.addf %49, %48 : vector<64x4xf32>
    %c0_67 = arith.constant 0 : index
    %c0_68 = arith.constant 0 : index
    %51 = vector.load %arg6[%c0_67, %c0_68] : memref<64x4xf32, #tpu.memory_space<vmem>>, vector<64x4xf32>
    tpu.vector_store %arg6[%c0_67, %c0_68], %50 {strides = array<i32>} : memref<64x4xf32, #tpu.memory_space<vmem>>, vector<64x4xf32>,
    %c0_69 = arith.constant 0 : index
    %c0_70 = arith.constant 0 : index
    %c0_71 = arith.constant 0 : index
    %c3_72 = arith.constant 3 : index
    %c0_73 = arith.constant 0 : index
    %52 = vector.load %arg1[%c0_69, %c0_70, %c0_71, %c3_72, %c0_73] : memref<1x4x11x11x4xf32, #tpu.memory_space<vmem>>, vector<1x1x8x8x4xf32>
    %53 = vector.shape_cast %52 : vector<1x1x8x8x4xf32> to vector<8x8x4xf32>
    %54 = vector.shape_cast %53 : vector<8x8x4xf32> to vector<64x4xf32>
    %c6 = arith.constant 6 : index
    %c0_74 = arith.constant 0 : index
    %c0_75 = arith.constant 0 : index
    %55 = vector.load %arg3[%c6, %c0_74, %c0_75] : memref<49x4x4xf32, #tpu.memory_space<vmem>>, vector<1x4x4xf32>
    %56 = vector.shape_cast %55 : vector<1x4x4xf32> to vector<4x4xf32>
    %cst_76 = arith.constant dense<0.000000e+00> : vector<64x4xf32>
    %57 = tpu.matmul %54, %56, %cst_76 {dimension_numbers = #tpu.dot_dimension_numbers<[1], [0], [0], [1], [0, 0, 1, 1], [], []>} : vector<64x4xf32>, vector<4x4xf32>, vector<64x4xf32> -> vector<64x4xf32>
    %c0_77 = arith.constant 0 : index
    %c0_78 = arith.constant 0 : index
    %58 = vector.load %arg6[%c0_77, %c0_78] : memref<64x4xf32, #tpu.memory_space<vmem>>, vector<64x4xf32>
    %59 = arith.addf %58, %57 : vector<64x4xf32>
    %c0_79 = arith.constant 0 : index
    %c0_80 = arith.constant 0 : index
    %60 = vector.load %arg6[%c0_79, %c0_80] : memref<64x4xf32, #tpu.memory_space<vmem>>, vector<64x4xf32>
    tpu.vector_store %arg6[%c0_79, %c0_80], %59 {strides = array<i32>} : memref<64x4xf32, #tpu.memory_space<vmem>>, vector<64x4xf32>,
    %c0_81 = arith.constant 0 : index
    %c2_82 = arith.constant 2 : index
    %c0_83 = arith.constant 0 : index
    %c0_84 = arith.constant 0 : index
    %c0_85 = arith.constant 0 : index
    %61 = vector.load %arg1[%c0_81, %c2_82, %c0_83, %c0_84, %c0_85] : memref<1x4x11x11x4xf32, #tpu.memory_space<vmem>>, vector<1x1x8x8x4xf32>
    %62 = vector.shape_cast %61 : vector<1x1x8x8x4xf32> to vector<8x8x4xf32>
    %63 = vector.shape_cast %62 : vector<8x8x4xf32> to vector<64x4xf32>
    %c7 = arith.constant 7 : index
    %c0_86 = arith.constant 0 : index
    %c0_87 = arith.constant 0 : index
    %64 = vector.load %arg3[%c7, %c0_86, %c0_87] : memref<49x4x4xf32, #tpu.memory_space<vmem>>, vector<1x4x4xf32>
    %65 = vector.shape_cast %64 : vector<1x4x4xf32> to vector<4x4xf32>
    %cst_88 = arith.constant dense<0.000000e+00> : vector<64x4xf32>
    %66 = tpu.matmul %63, %65, %cst_88 {dimension_numbers = #tpu.dot_dimension_numbers<[1], [0], [0], [1], [0, 0, 1, 1], [], []>} : vector<64x4xf32>, vector<4x4xf32>, vector<64x4xf32> -> vector<64x4xf32>
    %c0_89 = arith.constant 0 : index
    %c0_90 = arith.constant 0 : index
    %67 = vector.load %arg6[%c0_89, %c0_90] : memref<64x4xf32, #tpu.memory_space<vmem>>, vector<64x4xf32>
    %68 = arith.addf %67, %66 : vector<64x4xf32>
    %c0_91 = arith.constant 0 : index
    %c0_92 = arith.constant 0 : index
    %69 = vector.load %arg6[%c0_91, %c0_92] : memref<64x4xf32, #tpu.memory_space<vmem>>, vector<64x4xf32>
    tpu.vector_store %arg6[%c0_91, %c0_92], %68 {strides = array<i32>} : memref<64x4xf32, #tpu.memory_space<vmem>>, vector<64x4xf32>,
    %c0_93 = arith.constant 0 : index
    %c3_94 = arith.constant 3 : index
    %c0_95 = arith.constant 0 : index
    %c0_96 = arith.constant 0 : index
    %c0_97 = arith.constant 0 : index
    %70 = vector.load %arg1[%c0_93, %c3_94, %c0_95, %c0_96, %c0_97] : memref<1x4x11x11x4xf32, #tpu.memory_space<vmem>>, vector<1x1x8x8x4xf32>
    %71 = vector.shape_cast %70 : vector<1x1x8x8x4xf32> to vector<8x8x4xf32>
    %72 = vector.shape_cast %71 : vector<8x8x4xf32> to vector<64x4xf32>
    %c8 = arith.constant 8 : index
    %c0_98 = arith.constant 0 : index
    %c0_99 = arith.constant 0 : index
    %73 = vector.load %arg3[%c8, %c0_98, %c0_99] : memref<49x4x4xf32, #tpu.memory_space<vmem>>, vector<1x4x4xf32>
    %74 = vector.shape_cast %73 : vector<1x4x4xf32> to vector<4x4xf32>
    %cst_100 = arith.constant dense<0.000000e+00> : vector<64x4xf32>
    %75 = tpu.matmul %72, %74, %cst_100 {dimension_numbers = #tpu.dot_dimension_numbers<[1], [0], [0], [1], [0, 0, 1, 1], [], []>} : vector<64x4xf32>, vector<4x4xf32>, vector<64x4xf32> -> vector<64x4xf32>
    %c0_101 = arith.constant 0 : index
    %c0_102 = arith.constant 0 : index
    %76 = vector.load %arg6[%c0_101, %c0_102] : memref<64x4xf32, #tpu.memory_space<vmem>>, vector<64x4xf32>
    %77 = arith.addf %76, %75 : vector<64x4xf32>
    %c0_103 = arith.constant 0 : index
    %c0_104 = arith.constant 0 : index
    %78 = vector.load %arg6[%c0_103, %c0_104] : memref<64x4xf32, #tpu.memory_space<vmem>>, vector<64x4xf32>
    tpu.vector_store %arg6[%c0_103, %c0_104], %77 {strides = array<i32>} : memref<64x4xf32, #tpu.memory_space<vmem>>, vector<64x4xf32>,
    %c0_105 = arith.constant 0 : index
    %c2_106 = arith.constant 2 : index
    %c0_107 = arith.constant 0 : index
    %c1_108 = arith.constant 1 : index
    %c0_109 = arith.constant 0 : index
    %79 = vector.load %arg1[%c0_105, %c2_106, %c0_107, %c1_108, %c0_109] : memref<1x4x11x11x4xf32, #tpu.memory_space<vmem>>, vector<1x1x8x8x4xf32>
    %80 = vector.shape_cast %79 : vector<1x1x8x8x4xf32> to vector<8x8x4xf32>
    %81 = vector.shape_cast %80 : vector<8x8x4xf32> to vector<64x4xf32>
    %c9 = arith.constant 9 : index
    %c0_110 = arith.constant 0 : index
    %c0_111 = arith.constant 0 : index
    %82 = vector.load %arg3[%c9, %c0_110, %c0_111] : memref<49x4x4xf32, #tpu.memory_space<vmem>>, vector<1x4x4xf32>
    %83 = vector.shape_cast %82 : vector<1x4x4xf32> to vector<4x4xf32>
    %cst_112 = arith.constant dense<0.000000e+00> : vector<64x4xf32>
    %84 = tpu.matmul %81, %83, %cst_112 {dimension_numbers = #tpu.dot_dimension_numbers<[1], [0], [0], [1], [0, 0, 1, 1], [], []>} : vector<64x4xf32>, vector<4x4xf32>, vector<64x4xf32> -> vector<64x4xf32>
    %c0_113 = arith.constant 0 : index
    %c0_114 = arith.constant 0 : index
    %85 = vector.load %arg6[%c0_113, %c0_114] : memref<64x4xf32, #tpu.memory_space<vmem>>, vector<64x4xf32>
    %86 = arith.addf %85, %84 : vector<64x4xf32>
    %c0_115 = arith.constant 0 : index
    %c0_116 = arith.constant 0 : index
    %87 = vector.load %arg6[%c0_115, %c0_116] : memref<64x4xf32, #tpu.memory_space<vmem>>, vector<64x4xf32>
    tpu.vector_store %arg6[%c0_115, %c0_116], %86 {strides = array<i32>} : memref<64x4xf32, #tpu.memory_space<vmem>>, vector<64x4xf32>,
    %c0_117 = arith.constant 0 : index
    %c3_118 = arith.constant 3 : index
    %c0_119 = arith.constant 0 : index
    %c1_120 = arith.constant 1 : index
    %c0_121 = arith.constant 0 : index
    %88 = vector.load %arg1[%c0_117, %c3_118, %c0_119, %c1_120, %c0_121] : memref<1x4x11x11x4xf32, #tpu.memory_space<vmem>>, vector<1x1x8x8x4xf32>
    %89 = vector.shape_cast %88 : vector<1x1x8x8x4xf32> to vector<8x8x4xf32>
    %90 = vector.shape_cast %89 : vector<8x8x4xf32> to vector<64x4xf32>
    %c10 = arith.constant 10 : index
    %c0_122 = arith.constant 0 : index
    %c0_123 = arith.constant 0 : index
    %91 = vector.load %arg3[%c10, %c0_122, %c0_123] : memref<49x4x4xf32, #tpu.memory_space<vmem>>, vector<1x4x4xf32>
    %92 = vector.shape_cast %91 : vector<1x4x4xf32> to vector<4x4xf32>
    %cst_124 = arith.constant dense<0.000000e+00> : vector<64x4xf32>
    %93 = tpu.matmul %90, %92, %cst_124 {dimension_numbers = #tpu.dot_dimension_numbers<[1], [0], [0], [1], [0, 0, 1, 1], [], []>} : vector<64x4xf32>, vector<4x4xf32>, vector<64x4xf32> -> vector<64x4xf32>
    %c0_125 = arith.constant 0 : index
    %c0_126 = arith.constant 0 : index
    %94 = vector.load %arg6[%c0_125, %c0_126] : memref<64x4xf32, #tpu.memory_space<vmem>>, vector<64x4xf32>
    %95 = arith.addf %94, %93 : vector<64x4xf32>
    %c0_127 = arith.constant 0 : index
    %c0_128 = arith.constant 0 : index
    %96 = vector.load %arg6[%c0_127, %c0_128] : memref<64x4xf32, #tpu.memory_space<vmem>>, vector<64x4xf32>
    tpu.vector_store %arg6[%c0_127, %c0_128], %95 {strides = array<i32>} : memref<64x4xf32, #tpu.memory_space<vmem>>, vector<64x4xf32>,
    %c0_129 = arith.constant 0 : index
    %c2_130 = arith.constant 2 : index
    %c0_131 = arith.constant 0 : index
    %c2_132 = arith.constant 2 : index
    %c0_133 = arith.constant 0 : index
    %97 = vector.load %arg1[%c0_129, %c2_130, %c0_131, %c2_132, %c0_133] : memref<1x4x11x11x4xf32, #tpu.memory_space<vmem>>, vector<1x1x8x8x4xf32>
    %98 = vector.shape_cast %97 : vector<1x1x8x8x4xf32> to vector<8x8x4xf32>
    %99 = vector.shape_cast %98 : vector<8x8x4xf32> to vector<64x4xf32>
    %c11 = arith.constant 11 : index
    %c0_134 = arith.constant 0 : index
    %c0_135 = arith.constant 0 : index
    %100 = vector.load %arg3[%c11, %c0_134, %c0_135] : memref<49x4x4xf32, #tpu.memory_space<vmem>>, vector<1x4x4xf32>
    %101 = vector.shape_cast %100 : vector<1x4x4xf32> to vector<4x4xf32>
    %cst_136 = arith.constant dense<0.000000e+00> : vector<64x4xf32>
    %102 = tpu.matmul %99, %101, %cst_136 {dimension_numbers = #tpu.dot_dimension_numbers<[1], [0], [0], [1], [0, 0, 1, 1], [], []>} : vector<64x4xf32>, vector<4x4xf32>, vector<64x4xf32> -> vector<64x4xf32>
    %c0_137 = arith.constant 0 : index
    %c0_138 = arith.constant 0 : index
    %103 = vector.load %arg6[%c0_137, %c0_138] : memref<64x4xf32, #tpu.memory_space<vmem>>, vector<64x4xf32>
    %104 = arith.addf %103, %102 : vector<64x4xf32>
    %c0_139 = arith.constant 0 : index
    %c0_140 = arith.constant 0 : index
    %105 = vector.load %arg6[%c0_139, %c0_140] : memref<64x4xf32, #tpu.memory_space<vmem>>, vector<64x4xf32>
    tpu.vector_store %arg6[%c0_139, %c0_140], %104 {strides = array<i32>} : memref<64x4xf32, #tpu.memory_space<vmem>>, vector<64x4xf32>,
    %c0_141 = arith.constant 0 : index
    %c3_142 = arith.constant 3 : index
    %c0_143 = arith.constant 0 : index
    %c2_144 = arith.constant 2 : index
    %c0_145 = arith.constant 0 : index
    %106 = vector.load %arg1[%c0_141, %c3_142, %c0_143, %c2_144, %c0_145] : memref<1x4x11x11x4xf32, #tpu.memory_space<vmem>>, vector<1x1x8x8x4xf32>
    %107 = vector.shape_cast %106 : vector<1x1x8x8x4xf32> to vector<8x8x4xf32>
    %108 = vector.shape_cast %107 : vector<8x8x4xf32> to vector<64x4xf32>
    %c12 = arith.constant 12 : index
    %c0_146 = arith.constant 0 : index
    %c0_147 = arith.constant 0 : index
    %109 = vector.load %arg3[%c12, %c0_146, %c0_147] : memref<49x4x4xf32, #tpu.memory_space<vmem>>, vector<1x4x4xf32>
    %110 = vector.shape_cast %109 : vector<1x4x4xf32> to vector<4x4xf32>
    %cst_148 = arith.constant dense<0.000000e+00> : vector<64x4xf32>
    %111 = tpu.matmul %108, %110, %cst_148 {dimension_numbers = #tpu.dot_dimension_numbers<[1], [0], [0], [1], [0, 0, 1, 1], [], []>} : vector<64x4xf32>, vector<4x4xf32>, vector<64x4xf32> -> vector<64x4xf32>
    %c0_149 = arith.constant 0 : index
    %c0_150 = arith.constant 0 : index
    %112 = vector.load %arg6[%c0_149, %c0_150] : memref<64x4xf32, #tpu.memory_space<vmem>>, vector<64x4xf32>
    %113 = arith.addf %112, %111 : vector<64x4xf32>
    %c0_151 = arith.constant 0 : index
    %c0_152 = arith.constant 0 : index
    %114 = vector.load %arg6[%c0_151, %c0_152] : memref<64x4xf32, #tpu.memory_space<vmem>>, vector<64x4xf32>
    tpu.vector_store %arg6[%c0_151, %c0_152], %113 {strides = array<i32>} : memref<64x4xf32, #tpu.memory_space<vmem>>, vector<64x4xf32>,
    %c0_153 = arith.constant 0 : index
    %c2_154 = arith.constant 2 : index
    %c0_155 = arith.constant 0 : index
    %c3_156 = arith.constant 3 : index
    %c0_157 = arith.constant 0 : index
    %115 = vector.load %arg1[%c0_153, %c2_154, %c0_155, %c3_156, %c0_157] : memref<1x4x11x11x4xf32, #tpu.memory_space<vmem>>, vector<1x1x8x8x4xf32>
    %116 = vector.shape_cast %115 : vector<1x1x8x8x4xf32> to vector<8x8x4xf32>
    %117 = vector.shape_cast %116 : vector<8x8x4xf32> to vector<64x4xf32>
    %c13 = arith.constant 13 : index
    %c0_158 = arith.constant 0 : index
    %c0_159 = arith.constant 0 : index
    %118 = vector.load %arg3[%c13, %c0_158, %c0_159] : memref<49x4x4xf32, #tpu.memory_space<vmem>>, vector<1x4x4xf32>
    %119 = vector.shape_cast %118 : vector<1x4x4xf32> to vector<4x4xf32>
    %cst_160 = arith.constant dense<0.000000e+00> : vector<64x4xf32>
    %120 = tpu.matmul %117, %119, %cst_160 {dimension_numbers = #tpu.dot_dimension_numbers<[1], [0], [0], [1], [0, 0, 1, 1], [], []>} : vector<64x4xf32>, vector<4x4xf32>, vector<64x4xf32> -> vector<64x4xf32>
    %c0_161 = arith.constant 0 : index
    %c0_162 = arith.constant 0 : index
    %121 = vector.load %arg6[%c0_161, %c0_162] : memref<64x4xf32, #tpu.memory_space<vmem>>, vector<64x4xf32>
    %122 = arith.addf %121, %120 : vector<64x4xf32>
    %c0_163 = arith.constant 0 : index
    %c0_164 = arith.constant 0 : index
    %123 = vector.load %arg6[%c0_163, %c0_164] : memref<64x4xf32, #tpu.memory_space<vmem>>, vector<64x4xf32>
    tpu.vector_store %arg6[%c0_163, %c0_164], %122 {strides = array<i32>} : memref<64x4xf32, #tpu.memory_space<vmem>>, vector<64x4xf32>,
    %c0_165 = arith.constant 0 : index
    %c0_166 = arith.constant 0 : index
    %c1_167 = arith.constant 1 : index
    %c0_168 = arith.constant 0 : index
    %c0_169 = arith.constant 0 : index
    %124 = vector.load %arg1[%c0_165, %c0_166, %c1_167, %c0_168, %c0_169] : memref<1x4x11x11x4xf32, #tpu.memory_space<vmem>>, vector<1x1x8x8x4xf32>
    %125 = vector.shape_cast %124 : vector<1x1x8x8x4xf32> to vector<8x8x4xf32>
    %126 = vector.shape_cast %125 : vector<8x8x4xf32> to vector<64x4xf32>
    %c14 = arith.constant 14 : index
    %c0_170 = arith.constant 0 : index
    %c0_171 = arith.constant 0 : index
    %127 = vector.load %arg3[%c14, %c0_170, %c0_171] : memref<49x4x4xf32, #tpu.memory_space<vmem>>, vector<1x4x4xf32>
    %128 = vector.shape_cast %127 : vector<1x4x4xf32> to vector<4x4xf32>
    %cst_172 = arith.constant dense<0.000000e+00> : vector<64x4xf32>
    %129 = tpu.matmul %126, %128, %cst_172 {dimension_numbers = #tpu.dot_dimension_numbers<[1], [0], [0], [1], [0, 0, 1, 1], [], []>} : vector<64x4xf32>, vector<4x4xf32>, vector<64x4xf32> -> vector<64x4xf32>
    %c0_173 = arith.constant 0 : index
    %c0_174 = arith.constant 0 : index
    %130 = vector.load %arg6[%c0_173, %c0_174] : memref<64x4xf32, #tpu.memory_space<vmem>>, vector<64x4xf32>
    %131 = arith.addf %130, %129 : vector<64x4xf32>
    %c0_175 = arith.constant 0 : index
    %c0_176 = arith.constant 0 : index
    %132 = vector.load %arg6[%c0_175, %c0_176] : memref<64x4xf32, #tpu.memory_space<vmem>>, vector<64x4xf32>
    tpu.vector_store %arg6[%c0_175, %c0_176], %131 {strides = array<i32>} : memref<64x4xf32, #tpu.memory_space<vmem>>, vector<64x4xf32>,
    %c0_177 = arith.constant 0 : index
    %c1_178 = arith.constant 1 : index
    %c1_179 = arith.constant 1 : index
    %c0_180 = arith.constant 0 : index
    %c0_181 = arith.constant 0 : index
    %133 = vector.load %arg1[%c0_177, %c1_178, %c1_179, %c0_180, %c0_181] : memref<1x4x11x11x4xf32, #tpu.memory_space<vmem>>, vector<1x1x8x8x4xf32>
    %134 = vector.shape_cast %133 : vector<1x1x8x8x4xf32> to vector<8x8x4xf32>
    %135 = vector.shape_cast %134 : vector<8x8x4xf32> to vector<64x4xf32>
    %c15 = arith.constant 15 : index
    %c0_182 = arith.constant 0 : index
    %c0_183 = arith.constant 0 : index
    %136 = vector.load %arg3[%c15, %c0_182, %c0_183] : memref<49x4x4xf32, #tpu.memory_space<vmem>>, vector<1x4x4xf32>
    %137 = vector.shape_cast %136 : vector<1x4x4xf32> to vector<4x4xf32>
    %cst_184 = arith.constant dense<0.000000e+00> : vector<64x4xf32>
    %138 = tpu.matmul %135, %137, %cst_184 {dimension_numbers = #tpu.dot_dimension_numbers<[1], [0], [0], [1], [0, 0, 1, 1], [], []>} : vector<64x4xf32>, vector<4x4xf32>, vector<64x4xf32> -> vector<64x4xf32>
    %c0_185 = arith.constant 0 : index
    %c0_186 = arith.constant 0 : index
    %139 = vector.load %arg6[%c0_185, %c0_186] : memref<64x4xf32, #tpu.memory_space<vmem>>, vector<64x4xf32>
    %140 = arith.addf %139, %138 : vector<64x4xf32>
    %c0_187 = arith.constant 0 : index
    %c0_188 = arith.constant 0 : index
    %141 = vector.load %arg6[%c0_187, %c0_188] : memref<64x4xf32, #tpu.memory_space<vmem>>, vector<64x4xf32>
    tpu.vector_store %arg6[%c0_187, %c0_188], %140 {strides = array<i32>} : memref<64x4xf32, #tpu.memory_space<vmem>>, vector<64x4xf32>,
    %c0_189 = arith.constant 0 : index
    %c0_190 = arith.constant 0 : index
    %c1_191 = arith.constant 1 : index
    %c1_192 = arith.constant 1 : index
    %c0_193 = arith.constant 0 : index
    %142 = vector.load %arg1[%c0_189, %c0_190, %c1_191, %c1_192, %c0_193] : memref<1x4x11x11x4xf32, #tpu.memory_space<vmem>>, vector<1x1x8x8x4xf32>
    %143 = vector.shape_cast %142 : vector<1x1x8x8x4xf32> to vector<8x8x4xf32>
    %144 = vector.shape_cast %143 : vector<8x8x4xf32> to vector<64x4xf32>
    %c16 = arith.constant 16 : index
    %c0_194 = arith.constant 0 : index
    %c0_195 = arith.constant 0 : index
    %145 = vector.load %arg3[%c16, %c0_194, %c0_195] : memref<49x4x4xf32, #tpu.memory_space<vmem>>, vector<1x4x4xf32>
    %146 = vector.shape_cast %145 : vector<1x4x4xf32> to vector<4x4xf32>
    %cst_196 = arith.constant dense<0.000000e+00> : vector<64x4xf32>
    %147 = tpu.matmul %144, %146, %cst_196 {dimension_numbers = #tpu.dot_dimension_numbers<[1], [0], [0], [1], [0, 0, 1, 1], [], []>} : vector<64x4xf32>, vector<4x4xf32>, vector<64x4xf32> -> vector<64x4xf32>
    %c0_197 = arith.constant 0 : index
    %c0_198 = arith.constant 0 : index
    %148 = vector.load %arg6[%c0_197, %c0_198] : memref<64x4xf32, #tpu.memory_space<vmem>>, vector<64x4xf32>
    %149 = arith.addf %148, %147 : vector<64x4xf32>
    %c0_199 = arith.constant 0 : index
    %c0_200 = arith.constant 0 : index
    %150 = vector.load %arg6[%c0_199, %c0_200] : memref<64x4xf32, #tpu.memory_space<vmem>>, vector<64x4xf32>
    tpu.vector_store %arg6[%c0_199, %c0_200], %149 {strides = array<i32>} : memref<64x4xf32, #tpu.memory_space<vmem>>, vector<64x4xf32>,
    %c0_201 = arith.constant 0 : index
    %c1_202 = arith.constant 1 : index
    %c1_203 = arith.constant 1 : index
    %c1_204 = arith.constant 1 : index
    %c0_205 = arith.constant 0 : index
    %151 = vector.load %arg1[%c0_201, %c1_202, %c1_203, %c1_204, %c0_205] : memref<1x4x11x11x4xf32, #tpu.memory_space<vmem>>, vector<1x1x8x8x4xf32>
    %152 = vector.shape_cast %151 : vector<1x1x8x8x4xf32> to vector<8x8x4xf32>
    %153 = vector.shape_cast %152 : vector<8x8x4xf32> to vector<64x4xf32>
    %c17 = arith.constant 17 : index
    %c0_206 = arith.constant 0 : index
    %c0_207 = arith.constant 0 : index
    %154 = vector.load %arg3[%c17, %c0_206, %c0_207] : memref<49x4x4xf32, #tpu.memory_space<vmem>>, vector<1x4x4xf32>
    %155 = vector.shape_cast %154 : vector<1x4x4xf32> to vector<4x4xf32>
    %cst_208 = arith.constant dense<0.000000e+00> : vector<64x4xf32>
    %156 = tpu.matmul %153, %155, %cst_208 {dimension_numbers = #tpu.dot_dimension_numbers<[1], [0], [0], [1], [0, 0, 1, 1], [], []>} : vector<64x4xf32>, vector<4x4xf32>, vector<64x4xf32> -> vector<64x4xf32>
    %c0_209 = arith.constant 0 : index
    %c0_210 = arith.constant 0 : index
    %157 = vector.load %arg6[%c0_209, %c0_210] : memref<64x4xf32, #tpu.memory_space<vmem>>, vector<64x4xf32>
    %158 = arith.addf %157, %156 : vector<64x4xf32>
    %c0_211 = arith.constant 0 : index
    %c0_212 = arith.constant 0 : index
    %159 = vector.load %arg6[%c0_211, %c0_212] : memref<64x4xf32, #tpu.memory_space<vmem>>, vector<64x4xf32>
    tpu.vector_store %arg6[%c0_211, %c0_212], %158 {strides = array<i32>} : memref<64x4xf32, #tpu.memory_space<vmem>>, vector<64x4xf32>,
    %c0_213 = arith.constant 0 : index
    %c0_214 = arith.constant 0 : index
    %c1_215 = arith.constant 1 : index
    %c2_216 = arith.constant 2 : index
    %c0_217 = arith.constant 0 : index
    %160 = vector.load %arg1[%c0_213, %c0_214, %c1_215, %c2_216, %c0_217] : memref<1x4x11x11x4xf32, #tpu.memory_space<vmem>>, vector<1x1x8x8x4xf32>
    %161 = vector.shape_cast %160 : vector<1x1x8x8x4xf32> to vector<8x8x4xf32>
    %162 = vector.shape_cast %161 : vector<8x8x4xf32> to vector<64x4xf32>
    %c18 = arith.constant 18 : index
    %c0_218 = arith.constant 0 : index
    %c0_219 = arith.constant 0 : index
    %163 = vector.load %arg3[%c18, %c0_218, %c0_219] : memref<49x4x4xf32, #tpu.memory_space<vmem>>, vector<1x4x4xf32>
    %164 = vector.shape_cast %163 : vector<1x4x4xf32> to vector<4x4xf32>
    %cst_220 = arith.constant dense<0.000000e+00> : vector<64x4xf32>
    %165 = tpu.matmul %162, %164, %cst_220 {dimension_numbers = #tpu.dot_dimension_numbers<[1], [0], [0], [1], [0, 0, 1, 1], [], []>} : vector<64x4xf32>, vector<4x4xf32>, vector<64x4xf32> -> vector<64x4xf32>
    %c0_221 = arith.constant 0 : index
    %c0_222 = arith.constant 0 : index
    %166 = vector.load %arg6[%c0_221, %c0_222] : memref<64x4xf32, #tpu.memory_space<vmem>>, vector<64x4xf32>
    %167 = arith.addf %166, %165 : vector<64x4xf32>
    %c0_223 = arith.constant 0 : index
    %c0_224 = arith.constant 0 : index
    %168 = vector.load %arg6[%c0_223, %c0_224] : memref<64x4xf32, #tpu.memory_space<vmem>>, vector<64x4xf32>
    tpu.vector_store %arg6[%c0_223, %c0_224], %167 {strides = array<i32>} : memref<64x4xf32, #tpu.memory_space<vmem>>, vector<64x4xf32>,
    %c0_225 = arith.constant 0 : index
    %c1_226 = arith.constant 1 : index
    %c1_227 = arith.constant 1 : index
    %c2_228 = arith.constant 2 : index
    %c0_229 = arith.constant 0 : index
    %169 = vector.load %arg1[%c0_225, %c1_226, %c1_227, %c2_228, %c0_229] : memref<1x4x11x11x4xf32, #tpu.memory_space<vmem>>, vector<1x1x8x8x4xf32>
    %170 = vector.shape_cast %169 : vector<1x1x8x8x4xf32> to vector<8x8x4xf32>
    %171 = vector.shape_cast %170 : vector<8x8x4xf32> to vector<64x4xf32>
    %c19 = arith.constant 19 : index
    %c0_230 = arith.constant 0 : index
    %c0_231 = arith.constant 0 : index
    %172 = vector.load %arg3[%c19, %c0_230, %c0_231] : memref<49x4x4xf32, #tpu.memory_space<vmem>>, vector<1x4x4xf32>
    %173 = vector.shape_cast %172 : vector<1x4x4xf32> to vector<4x4xf32>
    %cst_232 = arith.constant dense<0.000000e+00> : vector<64x4xf32>
    %174 = tpu.matmul %171, %173, %cst_232 {dimension_numbers = #tpu.dot_dimension_numbers<[1], [0], [0], [1], [0, 0, 1, 1], [], []>} : vector<64x4xf32>, vector<4x4xf32>, vector<64x4xf32> -> vector<64x4xf32>
    %c0_233 = arith.constant 0 : index
    %c0_234 = arith.constant 0 : index
    %175 = vector.load %arg6[%c0_233, %c0_234] : memref<64x4xf32, #tpu.memory_space<vmem>>, vector<64x4xf32>
    %176 = arith.addf %175, %174 : vector<64x4xf32>
    %c0_235 = arith.constant 0 : index
    %c0_236 = arith.constant 0 : index
    %177 = vector.load %arg6[%c0_235, %c0_236] : memref<64x4xf32, #tpu.memory_space<vmem>>, vector<64x4xf32>
    tpu.vector_store %arg6[%c0_235, %c0_236], %176 {strides = array<i32>} : memref<64x4xf32, #tpu.memory_space<vmem>>, vector<64x4xf32>,
    %c0_237 = arith.constant 0 : index
    %c0_238 = arith.constant 0 : index
    %c1_239 = arith.constant 1 : index
    %c3_240 = arith.constant 3 : index
    %c0_241 = arith.constant 0 : index
    %178 = vector.load %arg1[%c0_237, %c0_238, %c1_239, %c3_240, %c0_241] : memref<1x4x11x11x4xf32, #tpu.memory_space<vmem>>, vector<1x1x8x8x4xf32>
    %179 = vector.shape_cast %178 : vector<1x1x8x8x4xf32> to vector<8x8x4xf32>
    %180 = vector.shape_cast %179 : vector<8x8x4xf32> to vector<64x4xf32>
    %c20 = arith.constant 20 : index
    %c0_242 = arith.constant 0 : index
    %c0_243 = arith.constant 0 : index
    %181 = vector.load %arg3[%c20, %c0_242, %c0_243] : memref<49x4x4xf32, #tpu.memory_space<vmem>>, vector<1x4x4xf32>
    %182 = vector.shape_cast %181 : vector<1x4x4xf32> to vector<4x4xf32>
    %cst_244 = arith.constant dense<0.000000e+00> : vector<64x4xf32>
    %183 = tpu.matmul %180, %182, %cst_244 {dimension_numbers = #tpu.dot_dimension_numbers<[1], [0], [0], [1], [0, 0, 1, 1], [], []>} : vector<64x4xf32>, vector<4x4xf32>, vector<64x4xf32> -> vector<64x4xf32>
    %c0_245 = arith.constant 0 : index
    %c0_246 = arith.constant 0 : index
    %184 = vector.load %arg6[%c0_245, %c0_246] : memref<64x4xf32, #tpu.memory_space<vmem>>, vector<64x4xf32>
    %185 = arith.addf %184, %183 : vector<64x4xf32>
    %c0_247 = arith.constant 0 : index
    %c0_248 = arith.constant 0 : index
    %186 = vector.load %arg6[%c0_247, %c0_248] : memref<64x4xf32, #tpu.memory_space<vmem>>, vector<64x4xf32>
    tpu.vector_store %arg6[%c0_247, %c0_248], %185 {strides = array<i32>} : memref<64x4xf32, #tpu.memory_space<vmem>>, vector<64x4xf32>,
    %c0_249 = arith.constant 0 : index
    %c2_250 = arith.constant 2 : index
    %c1_251 = arith.constant 1 : index
    %c0_252 = arith.constant 0 : index
    %c0_253 = arith.constant 0 : index
    %187 = vector.load %arg1[%c0_249, %c2_250, %c1_251, %c0_252, %c0_253] : memref<1x4x11x11x4xf32, #tpu.memory_space<vmem>>, vector<1x1x8x8x4xf32>
    %188 = vector.shape_cast %187 : vector<1x1x8x8x4xf32> to vector<8x8x4xf32>
    %189 = vector.shape_cast %188 : vector<8x8x4xf32> to vector<64x4xf32>
    %c21 = arith.constant 21 : index
    %c0_254 = arith.constant 0 : index
    %c0_255 = arith.constant 0 : index
    %190 = vector.load %arg3[%c21, %c0_254, %c0_255] : memref<49x4x4xf32, #tpu.memory_space<vmem>>, vector<1x4x4xf32>
    %191 = vector.shape_cast %190 : vector<1x4x4xf32> to vector<4x4xf32>
    %cst_256 = arith.constant dense<0.000000e+00> : vector<64x4xf32>
    %192 = tpu.matmul %189, %191, %cst_256 {dimension_numbers = #tpu.dot_dimension_numbers<[1], [0], [0], [1], [0, 0, 1, 1], [], []>} : vector<64x4xf32>, vector<4x4xf32>, vector<64x4xf32> -> vector<64x4xf32>
    %c0_257 = arith.constant 0 : index
    %c0_258 = arith.constant 0 : index
    %193 = vector.load %arg6[%c0_257, %c0_258] : memref<64x4xf32, #tpu.memory_space<vmem>>, vector<64x4xf32>
    %194 = arith.addf %193, %192 : vector<64x4xf32>
    %c0_259 = arith.constant 0 : index
    %c0_260 = arith.constant 0 : index
    %195 = vector.load %arg6[%c0_259, %c0_260] : memref<64x4xf32, #tpu.memory_space<vmem>>, vector<64x4xf32>
    tpu.vector_store %arg6[%c0_259, %c0_260], %194 {strides = array<i32>} : memref<64x4xf32, #tpu.memory_space<vmem>>, vector<64x4xf32>,
    %c0_261 = arith.constant 0 : index
    %c3_262 = arith.constant 3 : index
    %c1_263 = arith.constant 1 : index
    %c0_264 = arith.constant 0 : index
    %c0_265 = arith.constant 0 : index
    %196 = vector.load %arg1[%c0_261, %c3_262, %c1_263, %c0_264, %c0_265] : memref<1x4x11x11x4xf32, #tpu.memory_space<vmem>>, vector<1x1x8x8x4xf32>
    %197 = vector.shape_cast %196 : vector<1x1x8x8x4xf32> to vector<8x8x4xf32>
    %198 = vector.shape_cast %197 : vector<8x8x4xf32> to vector<64x4xf32>
    %c22 = arith.constant 22 : index
    %c0_266 = arith.constant 0 : index
    %c0_267 = arith.constant 0 : index
    %199 = vector.load %arg3[%c22, %c0_266, %c0_267] : memref<49x4x4xf32, #tpu.memory_space<vmem>>, vector<1x4x4xf32>
    %200 = vector.shape_cast %199 : vector<1x4x4xf32> to vector<4x4xf32>
    %cst_268 = arith.constant dense<0.000000e+00> : vector<64x4xf32>
    %201 = tpu.matmul %198, %200, %cst_268 {dimension_numbers = #tpu.dot_dimension_numbers<[1], [0], [0], [1], [0, 0, 1, 1], [], []>} : vector<64x4xf32>, vector<4x4xf32>, vector<64x4xf32> -> vector<64x4xf32>
    %c0_269 = arith.constant 0 : index
    %c0_270 = arith.constant 0 : index
    %202 = vector.load %arg6[%c0_269, %c0_270] : memref<64x4xf32, #tpu.memory_space<vmem>>, vector<64x4xf32>
    %203 = arith.addf %202, %201 : vector<64x4xf32>
    %c0_271 = arith.constant 0 : index
    %c0_272 = arith.constant 0 : index
    %204 = vector.load %arg6[%c0_271, %c0_272] : memref<64x4xf32, #tpu.memory_space<vmem>>, vector<64x4xf32>
    tpu.vector_store %arg6[%c0_271, %c0_272], %203 {strides = array<i32>} : memref<64x4xf32, #tpu.memory_space<vmem>>, vector<64x4xf32>,
    %c0_273 = arith.constant 0 : index
    %c2_274 = arith.constant 2 : index
    %c1_275 = arith.constant 1 : index
    %c1_276 = arith.constant 1 : index
    %c0_277 = arith.constant 0 : index
    %205 = vector.load %arg1[%c0_273, %c2_274, %c1_275, %c1_276, %c0_277] : memref<1x4x11x11x4xf32, #tpu.memory_space<vmem>>, vector<1x1x8x8x4xf32>
    %206 = vector.shape_cast %205 : vector<1x1x8x8x4xf32> to vector<8x8x4xf32>
    %207 = vector.shape_cast %206 : vector<8x8x4xf32> to vector<64x4xf32>
    %c23 = arith.constant 23 : index
    %c0_278 = arith.constant 0 : index
    %c0_279 = arith.constant 0 : index
    %208 = vector.load %arg3[%c23, %c0_278, %c0_279] : memref<49x4x4xf32, #tpu.memory_space<vmem>>, vector<1x4x4xf32>
    %209 = vector.shape_cast %208 : vector<1x4x4xf32> to vector<4x4xf32>
    %cst_280 = arith.constant dense<0.000000e+00> : vector<64x4xf32>
    %210 = tpu.matmul %207, %209, %cst_280 {dimension_numbers = #tpu.dot_dimension_numbers<[1], [0], [0], [1], [0, 0, 1, 1], [], []>} : vector<64x4xf32>, vector<4x4xf32>, vector<64x4xf32> -> vector<64x4xf32>
    %c0_281 = arith.constant 0 : index
    %c0_282 = arith.constant 0 : index
    %211 = vector.load %arg6[%c0_281, %c0_282] : memref<64x4xf32, #tpu.memory_space<vmem>>, vector<64x4xf32>
    %212 = arith.addf %211, %210 : vector<64x4xf32>
    %c0_283 = arith.constant 0 : index
    %c0_284 = arith.constant 0 : index
    %213 = vector.load %arg6[%c0_283, %c0_284] : memref<64x4xf32, #tpu.memory_space<vmem>>, vector<64x4xf32>
    tpu.vector_store %arg6[%c0_283, %c0_284], %212 {strides = array<i32>} : memref<64x4xf32, #tpu.memory_space<vmem>>, vector<64x4xf32>,
    %c0_285 = arith.constant 0 : index
    %c3_286 = arith.constant 3 : index
    %c1_287 = arith.constant 1 : index
    %c1_288 = arith.constant 1 : index
    %c0_289 = arith.constant 0 : index
    %214 = vector.load %arg1[%c0_285, %c3_286, %c1_287, %c1_288, %c0_289] : memref<1x4x11x11x4xf32, #tpu.memory_space<vmem>>, vector<1x1x8x8x4xf32>
    %215 = vector.shape_cast %214 : vector<1x1x8x8x4xf32> to vector<8x8x4xf32>
    %216 = vector.shape_cast %215 : vector<8x8x4xf32> to vector<64x4xf32>
    %c24 = arith.constant 24 : index
    %c0_290 = arith.constant 0 : index
    %c0_291 = arith.constant 0 : index
    %217 = vector.load %arg3[%c24, %c0_290, %c0_291] : memref<49x4x4xf32, #tpu.memory_space<vmem>>, vector<1x4x4xf32>
    %218 = vector.shape_cast %217 : vector<1x4x4xf32> to vector<4x4xf32>
    %cst_292 = arith.constant dense<0.000000e+00> : vector<64x4xf32>
    %219 = tpu.matmul %216, %218, %cst_292 {dimension_numbers = #tpu.dot_dimension_numbers<[1], [0], [0], [1], [0, 0, 1, 1], [], []>} : vector<64x4xf32>, vector<4x4xf32>, vector<64x4xf32> -> vector<64x4xf32>
    %c0_293 = arith.constant 0 : index
    %c0_294 = arith.constant 0 : index
    %220 = vector.load %arg6[%c0_293, %c0_294] : memref<64x4xf32, #tpu.memory_space<vmem>>, vector<64x4xf32>
    %221 = arith.addf %220, %219 : vector<64x4xf32>
    %c0_295 = arith.constant 0 : index
    %c0_296 = arith.constant 0 : index
    %222 = vector.load %arg6[%c0_295, %c0_296] : memref<64x4xf32, #tpu.memory_space<vmem>>, vector<64x4xf32>
    tpu.vector_store %arg6[%c0_295, %c0_296], %221 {strides = array<i32>} : memref<64x4xf32, #tpu.memory_space<vmem>>, vector<64x4xf32>,
    %c0_297 = arith.constant 0 : index
    %c2_298 = arith.constant 2 : index
    %c1_299 = arith.constant 1 : index
    %c2_300 = arith.constant 2 : index
    %c0_301 = arith.constant 0 : index
    %223 = vector.load %arg1[%c0_297, %c2_298, %c1_299, %c2_300, %c0_301] : memref<1x4x11x11x4xf32, #tpu.memory_space<vmem>>, vector<1x1x8x8x4xf32>
    %224 = vector.shape_cast %223 : vector<1x1x8x8x4xf32> to vector<8x8x4xf32>
    %225 = vector.shape_cast %224 : vector<8x8x4xf32> to vector<64x4xf32>
    %c25 = arith.constant 25 : index
    %c0_302 = arith.constant 0 : index
    %c0_303 = arith.constant 0 : index
    %226 = vector.load %arg3[%c25, %c0_302, %c0_303] : memref<49x4x4xf32, #tpu.memory_space<vmem>>, vector<1x4x4xf32>
    %227 = vector.shape_cast %226 : vector<1x4x4xf32> to vector<4x4xf32>
    %cst_304 = arith.constant dense<0.000000e+00> : vector<64x4xf32>
    %228 = tpu.matmul %225, %227, %cst_304 {dimension_numbers = #tpu.dot_dimension_numbers<[1], [0], [0], [1], [0, 0, 1, 1], [], []>} : vector<64x4xf32>, vector<4x4xf32>, vector<64x4xf32> -> vector<64x4xf32>
    %c0_305 = arith.constant 0 : index
    %c0_306 = arith.constant 0 : index
    %229 = vector.load %arg6[%c0_305, %c0_306] : memref<64x4xf32, #tpu.memory_space<vmem>>, vector<64x4xf32>
    %230 = arith.addf %229, %228 : vector<64x4xf32>
    %c0_307 = arith.constant 0 : index
    %c0_308 = arith.constant 0 : index
    %231 = vector.load %arg6[%c0_307, %c0_308] : memref<64x4xf32, #tpu.memory_space<vmem>>, vector<64x4xf32>
    tpu.vector_store %arg6[%c0_307, %c0_308], %230 {strides = array<i32>} : memref<64x4xf32, #tpu.memory_space<vmem>>, vector<64x4xf32>,
    %c0_309 = arith.constant 0 : index
    %c3_310 = arith.constant 3 : index
    %c1_311 = arith.constant 1 : index
    %c2_312 = arith.constant 2 : index
    %c0_313 = arith.constant 0 : index
    %232 = vector.load %arg1[%c0_309, %c3_310, %c1_311, %c2_312, %c0_313] : memref<1x4x11x11x4xf32, #tpu.memory_space<vmem>>, vector<1x1x8x8x4xf32>
    %233 = vector.shape_cast %232 : vector<1x1x8x8x4xf32> to vector<8x8x4xf32>
    %234 = vector.shape_cast %233 : vector<8x8x4xf32> to vector<64x4xf32>
    %c26 = arith.constant 26 : index
    %c0_314 = arith.constant 0 : index
    %c0_315 = arith.constant 0 : index
    %235 = vector.load %arg3[%c26, %c0_314, %c0_315] : memref<49x4x4xf32, #tpu.memory_space<vmem>>, vector<1x4x4xf32>
    %236 = vector.shape_cast %235 : vector<1x4x4xf32> to vector<4x4xf32>
    %cst_316 = arith.constant dense<0.000000e+00> : vector<64x4xf32>
    %237 = tpu.matmul %234, %236, %cst_316 {dimension_numbers = #tpu.dot_dimension_numbers<[1], [0], [0], [1], [0, 0, 1, 1], [], []>} : vector<64x4xf32>, vector<4x4xf32>, vector<64x4xf32> -> vector<64x4xf32>
    %c0_317 = arith.constant 0 : index
    %c0_318 = arith.constant 0 : index
    %238 = vector.load %arg6[%c0_317, %c0_318] : memref<64x4xf32, #tpu.memory_space<vmem>>, vector<64x4xf32>
    %239 = arith.addf %238, %237 : vector<64x4xf32>
    %c0_319 = arith.constant 0 : index
    %c0_320 = arith.constant 0 : index
    %240 = vector.load %arg6[%c0_319, %c0_320] : memref<64x4xf32, #tpu.memory_space<vmem>>, vector<64x4xf32>
    tpu.vector_store %arg6[%c0_319, %c0_320], %239 {strides = array<i32>} : memref<64x4xf32, #tpu.memory_space<vmem>>, vector<64x4xf32>,
    %c0_321 = arith.constant 0 : index
    %c2_322 = arith.constant 2 : index
    %c1_323 = arith.constant 1 : index
    %c3_324 = arith.constant 3 : index
    %c0_325 = arith.constant 0 : index
    %241 = vector.load %arg1[%c0_321, %c2_322, %c1_323, %c3_324, %c0_325] : memref<1x4x11x11x4xf32, #tpu.memory_space<vmem>>, vector<1x1x8x8x4xf32>
    %242 = vector.shape_cast %241 : vector<1x1x8x8x4xf32> to vector<8x8x4xf32>
    %243 = vector.shape_cast %242 : vector<8x8x4xf32> to vector<64x4xf32>
    %c27 = arith.constant 27 : index
    %c0_326 = arith.constant 0 : index
    %c0_327 = arith.constant 0 : index
    %244 = vector.load %arg3[%c27, %c0_326, %c0_327] : memref<49x4x4xf32, #tpu.memory_space<vmem>>, vector<1x4x4xf32>
    %245 = vector.shape_cast %244 : vector<1x4x4xf32> to vector<4x4xf32>
    %cst_328 = arith.constant dense<0.000000e+00> : vector<64x4xf32>
    %246 = tpu.matmul %243, %245, %cst_328 {dimension_numbers = #tpu.dot_dimension_numbers<[1], [0], [0], [1], [0, 0, 1, 1], [], []>} : vector<64x4xf32>, vector<4x4xf32>, vector<64x4xf32> -> vector<64x4xf32>
    %c0_329 = arith.constant 0 : index
    %c0_330 = arith.constant 0 : index
    %247 = vector.load %arg6[%c0_329, %c0_330] : memref<64x4xf32, #tpu.memory_space<vmem>>, vector<64x4xf32>
    %248 = arith.addf %247, %246 : vector<64x4xf32>
    %c0_331 = arith.constant 0 : index
    %c0_332 = arith.constant 0 : index
    %249 = vector.load %arg6[%c0_331, %c0_332] : memref<64x4xf32, #tpu.memory_space<vmem>>, vector<64x4xf32>
    tpu.vector_store %arg6[%c0_331, %c0_332], %248 {strides = array<i32>} : memref<64x4xf32, #tpu.memory_space<vmem>>, vector<64x4xf32>,
    %c0_333 = arith.constant 0 : index
    %c0_334 = arith.constant 0 : index
    %c2_335 = arith.constant 2 : index
    %c0_336 = arith.constant 0 : index
    %c0_337 = arith.constant 0 : index
    %250 = vector.load %arg1[%c0_333, %c0_334, %c2_335, %c0_336, %c0_337] : memref<1x4x11x11x4xf32, #tpu.memory_space<vmem>>, vector<1x1x8x8x4xf32>
    %251 = vector.shape_cast %250 : vector<1x1x8x8x4xf32> to vector<8x8x4xf32>
    %252 = vector.shape_cast %251 : vector<8x8x4xf32> to vector<64x4xf32>
    %c28 = arith.constant 28 : index
    %c0_338 = arith.constant 0 : index
    %c0_339 = arith.constant 0 : index
    %253 = vector.load %arg3[%c28, %c0_338, %c0_339] : memref<49x4x4xf32, #tpu.memory_space<vmem>>, vector<1x4x4xf32>
    %254 = vector.shape_cast %253 : vector<1x4x4xf32> to vector<4x4xf32>
    %cst_340 = arith.constant dense<0.000000e+00> : vector<64x4xf32>
    %255 = tpu.matmul %252, %254, %cst_340 {dimension_numbers = #tpu.dot_dimension_numbers<[1], [0], [0], [1], [0, 0, 1, 1], [], []>} : vector<64x4xf32>, vector<4x4xf32>, vector<64x4xf32> -> vector<64x4xf32>
    %c0_341 = arith.constant 0 : index
    %c0_342 = arith.constant 0 : index
    %256 = vector.load %arg6[%c0_341, %c0_342] : memref<64x4xf32, #tpu.memory_space<vmem>>, vector<64x4xf32>
    %257 = arith.addf %256, %255 : vector<64x4xf32>
    %c0_343 = arith.constant 0 : index
    %c0_344 = arith.constant 0 : index
    %258 = vector.load %arg6[%c0_343, %c0_344] : memref<64x4xf32, #tpu.memory_space<vmem>>, vector<64x4xf32>
    tpu.vector_store %arg6[%c0_343, %c0_344], %257 {strides = array<i32>} : memref<64x4xf32, #tpu.memory_space<vmem>>, vector<64x4xf32>,
    %c0_345 = arith.constant 0 : index
    %c1_346 = arith.constant 1 : index
    %c2_347 = arith.constant 2 : index
    %c0_348 = arith.constant 0 : index
    %c0_349 = arith.constant 0 : index
    %259 = vector.load %arg1[%c0_345, %c1_346, %c2_347, %c0_348, %c0_349] : memref<1x4x11x11x4xf32, #tpu.memory_space<vmem>>, vector<1x1x8x8x4xf32>
    %260 = vector.shape_cast %259 : vector<1x1x8x8x4xf32> to vector<8x8x4xf32>
    %261 = vector.shape_cast %260 : vector<8x8x4xf32> to vector<64x4xf32>
    %c29 = arith.constant 29 : index
    %c0_350 = arith.constant 0 : index
    %c0_351 = arith.constant 0 : index
    %262 = vector.load %arg3[%c29, %c0_350, %c0_351] : memref<49x4x4xf32, #tpu.memory_space<vmem>>, vector<1x4x4xf32>
    %263 = vector.shape_cast %262 : vector<1x4x4xf32> to vector<4x4xf32>
    %cst_352 = arith.constant dense<0.000000e+00> : vector<64x4xf32>
    %264 = tpu.matmul %261, %263, %cst_352 {dimension_numbers = #tpu.dot_dimension_numbers<[1], [0], [0], [1], [0, 0, 1, 1], [], []>} : vector<64x4xf32>, vector<4x4xf32>, vector<64x4xf32> -> vector<64x4xf32>
    %c0_353 = arith.constant 0 : index
    %c0_354 = arith.constant 0 : index
    %265 = vector.load %arg6[%c0_353, %c0_354] : memref<64x4xf32, #tpu.memory_space<vmem>>, vector<64x4xf32>
    %266 = arith.addf %265, %264 : vector<64x4xf32>
    %c0_355 = arith.constant 0 : index
    %c0_356 = arith.constant 0 : index
    %267 = vector.load %arg6[%c0_355, %c0_356] : memref<64x4xf32, #tpu.memory_space<vmem>>, vector<64x4xf32>
    tpu.vector_store %arg6[%c0_355, %c0_356], %266 {strides = array<i32>} : memref<64x4xf32, #tpu.memory_space<vmem>>, vector<64x4xf32>,
    %c0_357 = arith.constant 0 : index
    %c0_358 = arith.constant 0 : index
    %c2_359 = arith.constant 2 : index
    %c1_360 = arith.constant 1 : index
    %c0_361 = arith.constant 0 : index
    %268 = vector.load %arg1[%c0_357, %c0_358, %c2_359, %c1_360, %c0_361] : memref<1x4x11x11x4xf32, #tpu.memory_space<vmem>>, vector<1x1x8x8x4xf32>
    %269 = vector.shape_cast %268 : vector<1x1x8x8x4xf32> to vector<8x8x4xf32>
    %270 = vector.shape_cast %269 : vector<8x8x4xf32> to vector<64x4xf32>
    %c30 = arith.constant 30 : index
    %c0_362 = arith.constant 0 : index
    %c0_363 = arith.constant 0 : index
    %271 = vector.load %arg3[%c30, %c0_362, %c0_363] : memref<49x4x4xf32, #tpu.memory_space<vmem>>, vector<1x4x4xf32>
    %272 = vector.shape_cast %271 : vector<1x4x4xf32> to vector<4x4xf32>
    %cst_364 = arith.constant dense<0.000000e+00> : vector<64x4xf32>
    %273 = tpu.matmul %270, %272, %cst_364 {dimension_numbers = #tpu.dot_dimension_numbers<[1], [0], [0], [1], [0, 0, 1, 1], [], []>} : vector<64x4xf32>, vector<4x4xf32>, vector<64x4xf32> -> vector<64x4xf32>
    %c0_365 = arith.constant 0 : index
    %c0_366 = arith.constant 0 : index
    %274 = vector.load %arg6[%c0_365, %c0_366] : memref<64x4xf32, #tpu.memory_space<vmem>>, vector<64x4xf32>
    %275 = arith.addf %274, %273 : vector<64x4xf32>
    %c0_367 = arith.constant 0 : index
    %c0_368 = arith.constant 0 : index
    %276 = vector.load %arg6[%c0_367, %c0_368] : memref<64x4xf32, #tpu.memory_space<vmem>>, vector<64x4xf32>
    tpu.vector_store %arg6[%c0_367, %c0_368], %275 {strides = array<i32>} : memref<64x4xf32, #tpu.memory_space<vmem>>, vector<64x4xf32>,
    %c0_369 = arith.constant 0 : index
    %c1_370 = arith.constant 1 : index
    %c2_371 = arith.constant 2 : index
    %c1_372 = arith.constant 1 : index
    %c0_373 = arith.constant 0 : index
    %277 = vector.load %arg1[%c0_369, %c1_370, %c2_371, %c1_372, %c0_373] : memref<1x4x11x11x4xf32, #tpu.memory_space<vmem>>, vector<1x1x8x8x4xf32>
    %278 = vector.shape_cast %277 : vector<1x1x8x8x4xf32> to vector<8x8x4xf32>
    %279 = vector.shape_cast %278 : vector<8x8x4xf32> to vector<64x4xf32>
    %c31 = arith.constant 31 : index
    %c0_374 = arith.constant 0 : index
    %c0_375 = arith.constant 0 : index
    %280 = vector.load %arg3[%c31, %c0_374, %c0_375] : memref<49x4x4xf32, #tpu.memory_space<vmem>>, vector<1x4x4xf32>
    %281 = vector.shape_cast %280 : vector<1x4x4xf32> to vector<4x4xf32>
    %cst_376 = arith.constant dense<0.000000e+00> : vector<64x4xf32>
    %282 = tpu.matmul %279, %281, %cst_376 {dimension_numbers = #tpu.dot_dimension_numbers<[1], [0], [0], [1], [0, 0, 1, 1], [], []>} : vector<64x4xf32>, vector<4x4xf32>, vector<64x4xf32> -> vector<64x4xf32>
    %c0_377 = arith.constant 0 : index
    %c0_378 = arith.constant 0 : index
    %283 = vector.load %arg6[%c0_377, %c0_378] : memref<64x4xf32, #tpu.memory_space<vmem>>, vector<64x4xf32>
    %284 = arith.addf %283, %282 : vector<64x4xf32>
    %c0_379 = arith.constant 0 : index
    %c0_380 = arith.constant 0 : index
    %285 = vector.load %arg6[%c0_379, %c0_380] : memref<64x4xf32, #tpu.memory_space<vmem>>, vector<64x4xf32>
    tpu.vector_store %arg6[%c0_379, %c0_380], %284 {strides = array<i32>} : memref<64x4xf32, #tpu.memory_space<vmem>>, vector<64x4xf32>,
    %c0_381 = arith.constant 0 : index
    %c0_382 = arith.constant 0 : index
    %c2_383 = arith.constant 2 : index
    %c2_384 = arith.constant 2 : index
    %c0_385 = arith.constant 0 : index
    %286 = vector.load %arg1[%c0_381, %c0_382, %c2_383, %c2_384, %c0_385] : memref<1x4x11x11x4xf32, #tpu.memory_space<vmem>>, vector<1x1x8x8x4xf32>
    %287 = vector.shape_cast %286 : vector<1x1x8x8x4xf32> to vector<8x8x4xf32>
    %288 = vector.shape_cast %287 : vector<8x8x4xf32> to vector<64x4xf32>
    %c32 = arith.constant 32 : index
    %c0_386 = arith.constant 0 : index
    %c0_387 = arith.constant 0 : index
    %289 = vector.load %arg3[%c32, %c0_386, %c0_387] : memref<49x4x4xf32, #tpu.memory_space<vmem>>, vector<1x4x4xf32>
    %290 = vector.shape_cast %289 : vector<1x4x4xf32> to vector<4x4xf32>
    %cst_388 = arith.constant dense<0.000000e+00> : vector<64x4xf32>
    %291 = tpu.matmul %288, %290, %cst_388 {dimension_numbers = #tpu.dot_dimension_numbers<[1], [0], [0], [1], [0, 0, 1, 1], [], []>} : vector<64x4xf32>, vector<4x4xf32>, vector<64x4xf32> -> vector<64x4xf32>
    %c0_389 = arith.constant 0 : index
    %c0_390 = arith.constant 0 : index
    %292 = vector.load %arg6[%c0_389, %c0_390] : memref<64x4xf32, #tpu.memory_space<vmem>>, vector<64x4xf32>
    %293 = arith.addf %292, %291 : vector<64x4xf32>
    %c0_391 = arith.constant 0 : index
    %c0_392 = arith.constant 0 : index
    %294 = vector.load %arg6[%c0_391, %c0_392] : memref<64x4xf32, #tpu.memory_space<vmem>>, vector<64x4xf32>
    tpu.vector_store %arg6[%c0_391, %c0_392], %293 {strides = array<i32>} : memref<64x4xf32, #tpu.memory_space<vmem>>, vector<64x4xf32>,
    %c0_393 = arith.constant 0 : index
    %c1_394 = arith.constant 1 : index
    %c2_395 = arith.constant 2 : index
    %c2_396 = arith.constant 2 : index
    %c0_397 = arith.constant 0 : index
    %295 = vector.load %arg1[%c0_393, %c1_394, %c2_395, %c2_396, %c0_397] : memref<1x4x11x11x4xf32, #tpu.memory_space<vmem>>, vector<1x1x8x8x4xf32>
    %296 = vector.shape_cast %295 : vector<1x1x8x8x4xf32> to vector<8x8x4xf32>
    %297 = vector.shape_cast %296 : vector<8x8x4xf32> to vector<64x4xf32>
    %c33 = arith.constant 33 : index
    %c0_398 = arith.constant 0 : index
    %c0_399 = arith.constant 0 : index
    %298 = vector.load %arg3[%c33, %c0_398, %c0_399] : memref<49x4x4xf32, #tpu.memory_space<vmem>>, vector<1x4x4xf32>
    %299 = vector.shape_cast %298 : vector<1x4x4xf32> to vector<4x4xf32>
    %cst_400 = arith.constant dense<0.000000e+00> : vector<64x4xf32>
    %300 = tpu.matmul %297, %299, %cst_400 {dimension_numbers = #tpu.dot_dimension_numbers<[1], [0], [0], [1], [0, 0, 1, 1], [], []>} : vector<64x4xf32>, vector<4x4xf32>, vector<64x4xf32> -> vector<64x4xf32>
    %c0_401 = arith.constant 0 : index
    %c0_402 = arith.constant 0 : index
    %301 = vector.load %arg6[%c0_401, %c0_402] : memref<64x4xf32, #tpu.memory_space<vmem>>, vector<64x4xf32>
    %302 = arith.addf %301, %300 : vector<64x4xf32>
    %c0_403 = arith.constant 0 : index
    %c0_404 = arith.constant 0 : index
    %303 = vector.load %arg6[%c0_403, %c0_404] : memref<64x4xf32, #tpu.memory_space<vmem>>, vector<64x4xf32>
    tpu.vector_store %arg6[%c0_403, %c0_404], %302 {strides = array<i32>} : memref<64x4xf32, #tpu.memory_space<vmem>>, vector<64x4xf32>,
    %c0_405 = arith.constant 0 : index
    %c0_406 = arith.constant 0 : index
    %c2_407 = arith.constant 2 : index
    %c3_408 = arith.constant 3 : index
    %c0_409 = arith.constant 0 : index
    %304 = vector.load %arg1[%c0_405, %c0_406, %c2_407, %c3_408, %c0_409] : memref<1x4x11x11x4xf32, #tpu.memory_space<vmem>>, vector<1x1x8x8x4xf32>
    %305 = vector.shape_cast %304 : vector<1x1x8x8x4xf32> to vector<8x8x4xf32>
    %306 = vector.shape_cast %305 : vector<8x8x4xf32> to vector<64x4xf32>
    %c34 = arith.constant 34 : index
    %c0_410 = arith.constant 0 : index
    %c0_411 = arith.constant 0 : index
    %307 = vector.load %arg3[%c34, %c0_410, %c0_411] : memref<49x4x4xf32, #tpu.memory_space<vmem>>, vector<1x4x4xf32>
    %308 = vector.shape_cast %307 : vector<1x4x4xf32> to vector<4x4xf32>
    %cst_412 = arith.constant dense<0.000000e+00> : vector<64x4xf32>
    %309 = tpu.matmul %306, %308, %cst_412 {dimension_numbers = #tpu.dot_dimension_numbers<[1], [0], [0], [1], [0, 0, 1, 1], [], []>} : vector<64x4xf32>, vector<4x4xf32>, vector<64x4xf32> -> vector<64x4xf32>
    %c0_413 = arith.constant 0 : index
    %c0_414 = arith.constant 0 : index
    %310 = vector.load %arg6[%c0_413, %c0_414] : memref<64x4xf32, #tpu.memory_space<vmem>>, vector<64x4xf32>
    %311 = arith.addf %310, %309 : vector<64x4xf32>
    %c0_415 = arith.constant 0 : index
    %c0_416 = arith.constant 0 : index
    %312 = vector.load %arg6[%c0_415, %c0_416] : memref<64x4xf32, #tpu.memory_space<vmem>>, vector<64x4xf32>
    tpu.vector_store %arg6[%c0_415, %c0_416], %311 {strides = array<i32>} : memref<64x4xf32, #tpu.memory_space<vmem>>, vector<64x4xf32>,
    %c0_417 = arith.constant 0 : index
    %c2_418 = arith.constant 2 : index
    %c2_419 = arith.constant 2 : index
    %c0_420 = arith.constant 0 : index
    %c0_421 = arith.constant 0 : index
    %313 = vector.load %arg1[%c0_417, %c2_418, %c2_419, %c0_420, %c0_421] : memref<1x4x11x11x4xf32, #tpu.memory_space<vmem>>, vector<1x1x8x8x4xf32>
    %314 = vector.shape_cast %313 : vector<1x1x8x8x4xf32> to vector<8x8x4xf32>
    %315 = vector.shape_cast %314 : vector<8x8x4xf32> to vector<64x4xf32>
    %c35 = arith.constant 35 : index
    %c0_422 = arith.constant 0 : index
    %c0_423 = arith.constant 0 : index
    %316 = vector.load %arg3[%c35, %c0_422, %c0_423] : memref<49x4x4xf32, #tpu.memory_space<vmem>>, vector<1x4x4xf32>
    %317 = vector.shape_cast %316 : vector<1x4x4xf32> to vector<4x4xf32>
    %cst_424 = arith.constant dense<0.000000e+00> : vector<64x4xf32>
    %318 = tpu.matmul %315, %317, %cst_424 {dimension_numbers = #tpu.dot_dimension_numbers<[1], [0], [0], [1], [0, 0, 1, 1], [], []>} : vector<64x4xf32>, vector<4x4xf32>, vector<64x4xf32> -> vector<64x4xf32>
    %c0_425 = arith.constant 0 : index
    %c0_426 = arith.constant 0 : index
    %319 = vector.load %arg6[%c0_425, %c0_426] : memref<64x4xf32, #tpu.memory_space<vmem>>, vector<64x4xf32>
    %320 = arith.addf %319, %318 : vector<64x4xf32>
    %c0_427 = arith.constant 0 : index
    %c0_428 = arith.constant 0 : index
    %321 = vector.load %arg6[%c0_427, %c0_428] : memref<64x4xf32, #tpu.memory_space<vmem>>, vector<64x4xf32>
    tpu.vector_store %arg6[%c0_427, %c0_428], %320 {strides = array<i32>} : memref<64x4xf32, #tpu.memory_space<vmem>>, vector<64x4xf32>,
    %c0_429 = arith.constant 0 : index
    %c3_430 = arith.constant 3 : index
    %c2_431 = arith.constant 2 : index
    %c0_432 = arith.constant 0 : index
    %c0_433 = arith.constant 0 : index
    %322 = vector.load %arg1[%c0_429, %c3_430, %c2_431, %c0_432, %c0_433] : memref<1x4x11x11x4xf32, #tpu.memory_space<vmem>>, vector<1x1x8x8x4xf32>
    %323 = vector.shape_cast %322 : vector<1x1x8x8x4xf32> to vector<8x8x4xf32>
    %324 = vector.shape_cast %323 : vector<8x8x4xf32> to vector<64x4xf32>
    %c36 = arith.constant 36 : index
    %c0_434 = arith.constant 0 : index
    %c0_435 = arith.constant 0 : index
    %325 = vector.load %arg3[%c36, %c0_434, %c0_435] : memref<49x4x4xf32, #tpu.memory_space<vmem>>, vector<1x4x4xf32>
    %326 = vector.shape_cast %325 : vector<1x4x4xf32> to vector<4x4xf32>
    %cst_436 = arith.constant dense<0.000000e+00> : vector<64x4xf32>
    %327 = tpu.matmul %324, %326, %cst_436 {dimension_numbers = #tpu.dot_dimension_numbers<[1], [0], [0], [1], [0, 0, 1, 1], [], []>} : vector<64x4xf32>, vector<4x4xf32>, vector<64x4xf32> -> vector<64x4xf32>
    %c0_437 = arith.constant 0 : index
    %c0_438 = arith.constant 0 : index
    %328 = vector.load %arg6[%c0_437, %c0_438] : memref<64x4xf32, #tpu.memory_space<vmem>>, vector<64x4xf32>
    %329 = arith.addf %328, %327 : vector<64x4xf32>
    %c0_439 = arith.constant 0 : index
    %c0_440 = arith.constant 0 : index
    %330 = vector.load %arg6[%c0_439, %c0_440] : memref<64x4xf32, #tpu.memory_space<vmem>>, vector<64x4xf32>
    tpu.vector_store %arg6[%c0_439, %c0_440], %329 {strides = array<i32>} : memref<64x4xf32, #tpu.memory_space<vmem>>, vector<64x4xf32>,
    %c0_441 = arith.constant 0 : index
    %c2_442 = arith.constant 2 : index
    %c2_443 = arith.constant 2 : index
    %c1_444 = arith.constant 1 : index
    %c0_445 = arith.constant 0 : index
    %331 = vector.load %arg1[%c0_441, %c2_442, %c2_443, %c1_444, %c0_445] : memref<1x4x11x11x4xf32, #tpu.memory_space<vmem>>, vector<1x1x8x8x4xf32>
    %332 = vector.shape_cast %331 : vector<1x1x8x8x4xf32> to vector<8x8x4xf32>
    %333 = vector.shape_cast %332 : vector<8x8x4xf32> to vector<64x4xf32>
    %c37 = arith.constant 37 : index
    %c0_446 = arith.constant 0 : index
    %c0_447 = arith.constant 0 : index
    %334 = vector.load %arg3[%c37, %c0_446, %c0_447] : memref<49x4x4xf32, #tpu.memory_space<vmem>>, vector<1x4x4xf32>
    %335 = vector.shape_cast %334 : vector<1x4x4xf32> to vector<4x4xf32>
    %cst_448 = arith.constant dense<0.000000e+00> : vector<64x4xf32>
    %336 = tpu.matmul %333, %335, %cst_448 {dimension_numbers = #tpu.dot_dimension_numbers<[1], [0], [0], [1], [0, 0, 1, 1], [], []>} : vector<64x4xf32>, vector<4x4xf32>, vector<64x4xf32> -> vector<64x4xf32>
    %c0_449 = arith.constant 0 : index
    %c0_450 = arith.constant 0 : index
    %337 = vector.load %arg6[%c0_449, %c0_450] : memref<64x4xf32, #tpu.memory_space<vmem>>, vector<64x4xf32>
    %338 = arith.addf %337, %336 : vector<64x4xf32>
    %c0_451 = arith.constant 0 : index
    %c0_452 = arith.constant 0 : index
    %339 = vector.load %arg6[%c0_451, %c0_452] : memref<64x4xf32, #tpu.memory_space<vmem>>, vector<64x4xf32>
    tpu.vector_store %arg6[%c0_451, %c0_452], %338 {strides = array<i32>} : memref<64x4xf32, #tpu.memory_space<vmem>>, vector<64x4xf32>,
    %c0_453 = arith.constant 0 : index
    %c3_454 = arith.constant 3 : index
    %c2_455 = arith.constant 2 : index
    %c1_456 = arith.constant 1 : index
    %c0_457 = arith.constant 0 : index
    %340 = vector.load %arg1[%c0_453, %c3_454, %c2_455, %c1_456, %c0_457] : memref<1x4x11x11x4xf32, #tpu.memory_space<vmem>>, vector<1x1x8x8x4xf32>
    %341 = vector.shape_cast %340 : vector<1x1x8x8x4xf32> to vector<8x8x4xf32>
    %342 = vector.shape_cast %341 : vector<8x8x4xf32> to vector<64x4xf32>
    %c38 = arith.constant 38 : index
    %c0_458 = arith.constant 0 : index
    %c0_459 = arith.constant 0 : index
    %343 = vector.load %arg3[%c38, %c0_458, %c0_459] : memref<49x4x4xf32, #tpu.memory_space<vmem>>, vector<1x4x4xf32>
    %344 = vector.shape_cast %343 : vector<1x4x4xf32> to vector<4x4xf32>
    %cst_460 = arith.constant dense<0.000000e+00> : vector<64x4xf32>
    %345 = tpu.matmul %342, %344, %cst_460 {dimension_numbers = #tpu.dot_dimension_numbers<[1], [0], [0], [1], [0, 0, 1, 1], [], []>} : vector<64x4xf32>, vector<4x4xf32>, vector<64x4xf32> -> vector<64x4xf32>
    %c0_461 = arith.constant 0 : index
    %c0_462 = arith.constant 0 : index
    %346 = vector.load %arg6[%c0_461, %c0_462] : memref<64x4xf32, #tpu.memory_space<vmem>>, vector<64x4xf32>
    %347 = arith.addf %346, %345 : vector<64x4xf32>
    %c0_463 = arith.constant 0 : index
    %c0_464 = arith.constant 0 : index
    %348 = vector.load %arg6[%c0_463, %c0_464] : memref<64x4xf32, #tpu.memory_space<vmem>>, vector<64x4xf32>
    tpu.vector_store %arg6[%c0_463, %c0_464], %347 {strides = array<i32>} : memref<64x4xf32, #tpu.memory_space<vmem>>, vector<64x4xf32>,
    %c0_465 = arith.constant 0 : index
    %c2_466 = arith.constant 2 : index
    %c2_467 = arith.constant 2 : index
    %c2_468 = arith.constant 2 : index
    %c0_469 = arith.constant 0 : index
    %349 = vector.load %arg1[%c0_465, %c2_466, %c2_467, %c2_468, %c0_469] : memref<1x4x11x11x4xf32, #tpu.memory_space<vmem>>, vector<1x1x8x8x4xf32>
    %350 = vector.shape_cast %349 : vector<1x1x8x8x4xf32> to vector<8x8x4xf32>
    %351 = vector.shape_cast %350 : vector<8x8x4xf32> to vector<64x4xf32>
    %c39 = arith.constant 39 : index
    %c0_470 = arith.constant 0 : index
    %c0_471 = arith.constant 0 : index
    %352 = vector.load %arg3[%c39, %c0_470, %c0_471] : memref<49x4x4xf32, #tpu.memory_space<vmem>>, vector<1x4x4xf32>
    %353 = vector.shape_cast %352 : vector<1x4x4xf32> to vector<4x4xf32>
    %cst_472 = arith.constant dense<0.000000e+00> : vector<64x4xf32>
    %354 = tpu.matmul %351, %353, %cst_472 {dimension_numbers = #tpu.dot_dimension_numbers<[1], [0], [0], [1], [0, 0, 1, 1], [], []>} : vector<64x4xf32>, vector<4x4xf32>, vector<64x4xf32> -> vector<64x4xf32>
    %c0_473 = arith.constant 0 : index
    %c0_474 = arith.constant 0 : index
    %355 = vector.load %arg6[%c0_473, %c0_474] : memref<64x4xf32, #tpu.memory_space<vmem>>, vector<64x4xf32>
    %356 = arith.addf %355, %354 : vector<64x4xf32>
    %c0_475 = arith.constant 0 : index
    %c0_476 = arith.constant 0 : index
    %357 = vector.load %arg6[%c0_475, %c0_476] : memref<64x4xf32, #tpu.memory_space<vmem>>, vector<64x4xf32>
    tpu.vector_store %arg6[%c0_475, %c0_476], %356 {strides = array<i32>} : memref<64x4xf32, #tpu.memory_space<vmem>>, vector<64x4xf32>,
    %c0_477 = arith.constant 0 : index
    %c3_478 = arith.constant 3 : index
    %c2_479 = arith.constant 2 : index
    %c2_480 = arith.constant 2 : index
    %c0_481 = arith.constant 0 : index
    %358 = vector.load %arg1[%c0_477, %c3_478, %c2_479, %c2_480, %c0_481] : memref<1x4x11x11x4xf32, #tpu.memory_space<vmem>>, vector<1x1x8x8x4xf32>
    %359 = vector.shape_cast %358 : vector<1x1x8x8x4xf32> to vector<8x8x4xf32>
    %360 = vector.shape_cast %359 : vector<8x8x4xf32> to vector<64x4xf32>
    %c40 = arith.constant 40 : index
    %c0_482 = arith.constant 0 : index
    %c0_483 = arith.constant 0 : index
    %361 = vector.load %arg3[%c40, %c0_482, %c0_483] : memref<49x4x4xf32, #tpu.memory_space<vmem>>, vector<1x4x4xf32>
    %362 = vector.shape_cast %361 : vector<1x4x4xf32> to vector<4x4xf32>
    %cst_484 = arith.constant dense<0.000000e+00> : vector<64x4xf32>
    %363 = tpu.matmul %360, %362, %cst_484 {dimension_numbers = #tpu.dot_dimension_numbers<[1], [0], [0], [1], [0, 0, 1, 1], [], []>} : vector<64x4xf32>, vector<4x4xf32>, vector<64x4xf32> -> vector<64x4xf32>
    %c0_485 = arith.constant 0 : index
    %c0_486 = arith.constant 0 : index
    %364 = vector.load %arg6[%c0_485, %c0_486] : memref<64x4xf32, #tpu.memory_space<vmem>>, vector<64x4xf32>
    %365 = arith.addf %364, %363 : vector<64x4xf32>
    %c0_487 = arith.constant 0 : index
    %c0_488 = arith.constant 0 : index
    %366 = vector.load %arg6[%c0_487, %c0_488] : memref<64x4xf32, #tpu.memory_space<vmem>>, vector<64x4xf32>
    tpu.vector_store %arg6[%c0_487, %c0_488], %365 {strides = array<i32>} : memref<64x4xf32, #tpu.memory_space<vmem>>, vector<64x4xf32>,
    %c0_489 = arith.constant 0 : index
    %c2_490 = arith.constant 2 : index
    %c2_491 = arith.constant 2 : index
    %c3_492 = arith.constant 3 : index
    %c0_493 = arith.constant 0 : index
    %367 = vector.load %arg1[%c0_489, %c2_490, %c2_491, %c3_492, %c0_493] : memref<1x4x11x11x4xf32, #tpu.memory_space<vmem>>, vector<1x1x8x8x4xf32>
    %368 = vector.shape_cast %367 : vector<1x1x8x8x4xf32> to vector<8x8x4xf32>
    %369 = vector.shape_cast %368 : vector<8x8x4xf32> to vector<64x4xf32>
    %c41 = arith.constant 41 : index
    %c0_494 = arith.constant 0 : index
    %c0_495 = arith.constant 0 : index
    %370 = vector.load %arg3[%c41, %c0_494, %c0_495] : memref<49x4x4xf32, #tpu.memory_space<vmem>>, vector<1x4x4xf32>
    %371 = vector.shape_cast %370 : vector<1x4x4xf32> to vector<4x4xf32>
    %cst_496 = arith.constant dense<0.000000e+00> : vector<64x4xf32>
    %372 = tpu.matmul %369, %371, %cst_496 {dimension_numbers = #tpu.dot_dimension_numbers<[1], [0], [0], [1], [0, 0, 1, 1], [], []>} : vector<64x4xf32>, vector<4x4xf32>, vector<64x4xf32> -> vector<64x4xf32>
    %c0_497 = arith.constant 0 : index
    %c0_498 = arith.constant 0 : index
    %373 = vector.load %arg6[%c0_497, %c0_498] : memref<64x4xf32, #tpu.memory_space<vmem>>, vector<64x4xf32>
    %374 = arith.addf %373, %372 : vector<64x4xf32>
    %c0_499 = arith.constant 0 : index
    %c0_500 = arith.constant 0 : index
    %375 = vector.load %arg6[%c0_499, %c0_500] : memref<64x4xf32, #tpu.memory_space<vmem>>, vector<64x4xf32>
    tpu.vector_store %arg6[%c0_499, %c0_500], %374 {strides = array<i32>} : memref<64x4xf32, #tpu.memory_space<vmem>>, vector<64x4xf32>,
    %c0_501 = arith.constant 0 : index
    %c0_502 = arith.constant 0 : index
    %c3_503 = arith.constant 3 : index
    %c0_504 = arith.constant 0 : index
    %c0_505 = arith.constant 0 : index
    %376 = vector.load %arg1[%c0_501, %c0_502, %c3_503, %c0_504, %c0_505] : memref<1x4x11x11x4xf32, #tpu.memory_space<vmem>>, vector<1x1x8x8x4xf32>
    %377 = vector.shape_cast %376 : vector<1x1x8x8x4xf32> to vector<8x8x4xf32>
    %378 = vector.shape_cast %377 : vector<8x8x4xf32> to vector<64x4xf32>
    %c42 = arith.constant 42 : index
    %c0_506 = arith.constant 0 : index
    %c0_507 = arith.constant 0 : index
    %379 = vector.load %arg3[%c42, %c0_506, %c0_507] : memref<49x4x4xf32, #tpu.memory_space<vmem>>, vector<1x4x4xf32>
    %380 = vector.shape_cast %379 : vector<1x4x4xf32> to vector<4x4xf32>
    %cst_508 = arith.constant dense<0.000000e+00> : vector<64x4xf32>
    %381 = tpu.matmul %378, %380, %cst_508 {dimension_numbers = #tpu.dot_dimension_numbers<[1], [0], [0], [1], [0, 0, 1, 1], [], []>} : vector<64x4xf32>, vector<4x4xf32>, vector<64x4xf32> -> vector<64x4xf32>
    %c0_509 = arith.constant 0 : index
    %c0_510 = arith.constant 0 : index
    %382 = vector.load %arg6[%c0_509, %c0_510] : memref<64x4xf32, #tpu.memory_space<vmem>>, vector<64x4xf32>
    %383 = arith.addf %382, %381 : vector<64x4xf32>
    %c0_511 = arith.constant 0 : index
    %c0_512 = arith.constant 0 : index
    %384 = vector.load %arg6[%c0_511, %c0_512] : memref<64x4xf32, #tpu.memory_space<vmem>>, vector<64x4xf32>
    tpu.vector_store %arg6[%c0_511, %c0_512], %383 {strides = array<i32>} : memref<64x4xf32, #tpu.memory_space<vmem>>, vector<64x4xf32>,
    %c0_513 = arith.constant 0 : index
    %c1_514 = arith.constant 1 : index
    %c3_515 = arith.constant 3 : index
    %c0_516 = arith.constant 0 : index
    %c0_517 = arith.constant 0 : index
    %385 = vector.load %arg1[%c0_513, %c1_514, %c3_515, %c0_516, %c0_517] : memref<1x4x11x11x4xf32, #tpu.memory_space<vmem>>, vector<1x1x8x8x4xf32>
    %386 = vector.shape_cast %385 : vector<1x1x8x8x4xf32> to vector<8x8x4xf32>
    %387 = vector.shape_cast %386 : vector<8x8x4xf32> to vector<64x4xf32>
    %c43 = arith.constant 43 : index
    %c0_518 = arith.constant 0 : index
    %c0_519 = arith.constant 0 : index
    %388 = vector.load %arg3[%c43, %c0_518, %c0_519] : memref<49x4x4xf32, #tpu.memory_space<vmem>>, vector<1x4x4xf32>
    %389 = vector.shape_cast %388 : vector<1x4x4xf32> to vector<4x4xf32>
    %cst_520 = arith.constant dense<0.000000e+00> : vector<64x4xf32>
    %390 = tpu.matmul %387, %389, %cst_520 {dimension_numbers = #tpu.dot_dimension_numbers<[1], [0], [0], [1], [0, 0, 1, 1], [], []>} : vector<64x4xf32>, vector<4x4xf32>, vector<64x4xf32> -> vector<64x4xf32>
    %c0_521 = arith.constant 0 : index
    %c0_522 = arith.constant 0 : index
    %391 = vector.load %arg6[%c0_521, %c0_522] : memref<64x4xf32, #tpu.memory_space<vmem>>, vector<64x4xf32>
    %392 = arith.addf %391, %390 : vector<64x4xf32>
    %c0_523 = arith.constant 0 : index
    %c0_524 = arith.constant 0 : index
    %393 = vector.load %arg6[%c0_523, %c0_524] : memref<64x4xf32, #tpu.memory_space<vmem>>, vector<64x4xf32>
    tpu.vector_store %arg6[%c0_523, %c0_524], %392 {strides = array<i32>} : memref<64x4xf32, #tpu.memory_space<vmem>>, vector<64x4xf32>,
    %c0_525 = arith.constant 0 : index
    %c0_526 = arith.constant 0 : index
    %c3_527 = arith.constant 3 : index
    %c1_528 = arith.constant 1 : index
    %c0_529 = arith.constant 0 : index
    %394 = vector.load %arg1[%c0_525, %c0_526, %c3_527, %c1_528, %c0_529] : memref<1x4x11x11x4xf32, #tpu.memory_space<vmem>>, vector<1x1x8x8x4xf32>
    %395 = vector.shape_cast %394 : vector<1x1x8x8x4xf32> to vector<8x8x4xf32>
    %396 = vector.shape_cast %395 : vector<8x8x4xf32> to vector<64x4xf32>
    %c44 = arith.constant 44 : index
    %c0_530 = arith.constant 0 : index
    %c0_531 = arith.constant 0 : index
    %397 = vector.load %arg3[%c44, %c0_530, %c0_531] : memref<49x4x4xf32, #tpu.memory_space<vmem>>, vector<1x4x4xf32>
    %398 = vector.shape_cast %397 : vector<1x4x4xf32> to vector<4x4xf32>
    %cst_532 = arith.constant dense<0.000000e+00> : vector<64x4xf32>
    %399 = tpu.matmul %396, %398, %cst_532 {dimension_numbers = #tpu.dot_dimension_numbers<[1], [0], [0], [1], [0, 0, 1, 1], [], []>} : vector<64x4xf32>, vector<4x4xf32>, vector<64x4xf32> -> vector<64x4xf32>
    %c0_533 = arith.constant 0 : index
    %c0_534 = arith.constant 0 : index
    %400 = vector.load %arg6[%c0_533, %c0_534] : memref<64x4xf32, #tpu.memory_space<vmem>>, vector<64x4xf32>
    %401 = arith.addf %400, %399 : vector<64x4xf32>
    %c0_535 = arith.constant 0 : index
    %c0_536 = arith.constant 0 : index
    %402 = vector.load %arg6[%c0_535, %c0_536] : memref<64x4xf32, #tpu.memory_space<vmem>>, vector<64x4xf32>
    tpu.vector_store %arg6[%c0_535, %c0_536], %401 {strides = array<i32>} : memref<64x4xf32, #tpu.memory_space<vmem>>, vector<64x4xf32>,
    %c0_537 = arith.constant 0 : index
    %c1_538 = arith.constant 1 : index
    %c3_539 = arith.constant 3 : index
    %c1_540 = arith.constant 1 : index
    %c0_541 = arith.constant 0 : index
    %403 = vector.load %arg1[%c0_537, %c1_538, %c3_539, %c1_540, %c0_541] : memref<1x4x11x11x4xf32, #tpu.memory_space<vmem>>, vector<1x1x8x8x4xf32>
    %404 = vector.shape_cast %403 : vector<1x1x8x8x4xf32> to vector<8x8x4xf32>
    %405 = vector.shape_cast %404 : vector<8x8x4xf32> to vector<64x4xf32>
    %c45 = arith.constant 45 : index
    %c0_542 = arith.constant 0 : index
    %c0_543 = arith.constant 0 : index
    %406 = vector.load %arg3[%c45, %c0_542, %c0_543] : memref<49x4x4xf32, #tpu.memory_space<vmem>>, vector<1x4x4xf32>
    %407 = vector.shape_cast %406 : vector<1x4x4xf32> to vector<4x4xf32>
    %cst_544 = arith.constant dense<0.000000e+00> : vector<64x4xf32>
    %408 = tpu.matmul %405, %407, %cst_544 {dimension_numbers = #tpu.dot_dimension_numbers<[1], [0], [0], [1], [0, 0, 1, 1], [], []>} : vector<64x4xf32>, vector<4x4xf32>, vector<64x4xf32> -> vector<64x4xf32>
    %c0_545 = arith.constant 0 : index
    %c0_546 = arith.constant 0 : index
    %409 = vector.load %arg6[%c0_545, %c0_546] : memref<64x4xf32, #tpu.memory_space<vmem>>, vector<64x4xf32>
    %410 = arith.addf %409, %408 : vector<64x4xf32>
    %c0_547 = arith.constant 0 : index
    %c0_548 = arith.constant 0 : index
    %411 = vector.load %arg6[%c0_547, %c0_548] : memref<64x4xf32, #tpu.memory_space<vmem>>, vector<64x4xf32>
    tpu.vector_store %arg6[%c0_547, %c0_548], %410 {strides = array<i32>} : memref<64x4xf32, #tpu.memory_space<vmem>>, vector<64x4xf32>,
    %c0_549 = arith.constant 0 : index
    %c0_550 = arith.constant 0 : index
    %c3_551 = arith.constant 3 : index
    %c2_552 = arith.constant 2 : index
    %c0_553 = arith.constant 0 : index
    %412 = vector.load %arg1[%c0_549, %c0_550, %c3_551, %c2_552, %c0_553] : memref<1x4x11x11x4xf32, #tpu.memory_space<vmem>>, vector<1x1x8x8x4xf32>
    %413 = vector.shape_cast %412 : vector<1x1x8x8x4xf32> to vector<8x8x4xf32>
    %414 = vector.shape_cast %413 : vector<8x8x4xf32> to vector<64x4xf32>
    %c46 = arith.constant 46 : index
    %c0_554 = arith.constant 0 : index
    %c0_555 = arith.constant 0 : index
    %415 = vector.load %arg3[%c46, %c0_554, %c0_555] : memref<49x4x4xf32, #tpu.memory_space<vmem>>, vector<1x4x4xf32>
    %416 = vector.shape_cast %415 : vector<1x4x4xf32> to vector<4x4xf32>
    %cst_556 = arith.constant dense<0.000000e+00> : vector<64x4xf32>
    %417 = tpu.matmul %414, %416, %cst_556 {dimension_numbers = #tpu.dot_dimension_numbers<[1], [0], [0], [1], [0, 0, 1, 1], [], []>} : vector<64x4xf32>, vector<4x4xf32>, vector<64x4xf32> -> vector<64x4xf32>
    %c0_557 = arith.constant 0 : index
    %c0_558 = arith.constant 0 : index
    %418 = vector.load %arg6[%c0_557, %c0_558] : memref<64x4xf32, #tpu.memory_space<vmem>>, vector<64x4xf32>
    %419 = arith.addf %418, %417 : vector<64x4xf32>
    %c0_559 = arith.constant 0 : index
    %c0_560 = arith.constant 0 : index
    %420 = vector.load %arg6[%c0_559, %c0_560] : memref<64x4xf32, #tpu.memory_space<vmem>>, vector<64x4xf32>
    tpu.vector_store %arg6[%c0_559, %c0_560], %419 {strides = array<i32>} : memref<64x4xf32, #tpu.memory_space<vmem>>, vector<64x4xf32>,
    %c0_561 = arith.constant 0 : index
    %c1_562 = arith.constant 1 : index
    %c3_563 = arith.constant 3 : index
    %c2_564 = arith.constant 2 : index
    %c0_565 = arith.constant 0 : index
    %421 = vector.load %arg1[%c0_561, %c1_562, %c3_563, %c2_564, %c0_565] : memref<1x4x11x11x4xf32, #tpu.memory_space<vmem>>, vector<1x1x8x8x4xf32>
    %422 = vector.shape_cast %421 : vector<1x1x8x8x4xf32> to vector<8x8x4xf32>
    %423 = vector.shape_cast %422 : vector<8x8x4xf32> to vector<64x4xf32>
    %c47 = arith.constant 47 : index
    %c0_566 = arith.constant 0 : index
    %c0_567 = arith.constant 0 : index
    %424 = vector.load %arg3[%c47, %c0_566, %c0_567] : memref<49x4x4xf32, #tpu.memory_space<vmem>>, vector<1x4x4xf32>
    %425 = vector.shape_cast %424 : vector<1x4x4xf32> to vector<4x4xf32>
    %cst_568 = arith.constant dense<0.000000e+00> : vector<64x4xf32>
    %426 = tpu.matmul %423, %425, %cst_568 {dimension_numbers = #tpu.dot_dimension_numbers<[1], [0], [0], [1], [0, 0, 1, 1], [], []>} : vector<64x4xf32>, vector<4x4xf32>, vector<64x4xf32> -> vector<64x4xf32>
    %c0_569 = arith.constant 0 : index
    %c0_570 = arith.constant 0 : index
    %427 = vector.load %arg6[%c0_569, %c0_570] : memref<64x4xf32, #tpu.memory_space<vmem>>, vector<64x4xf32>
    %428 = arith.addf %427, %426 : vector<64x4xf32>
    %c0_571 = arith.constant 0 : index
    %c0_572 = arith.constant 0 : index
    %429 = vector.load %arg6[%c0_571, %c0_572] : memref<64x4xf32, #tpu.memory_space<vmem>>, vector<64x4xf32>
    tpu.vector_store %arg6[%c0_571, %c0_572], %428 {strides = array<i32>} : memref<64x4xf32, #tpu.memory_space<vmem>>, vector<64x4xf32>,
    %c0_573 = arith.constant 0 : index
    %c0_574 = arith.constant 0 : index
    %c3_575 = arith.constant 3 : index
    %c3_576 = arith.constant 3 : index
    %c0_577 = arith.constant 0 : index
    %430 = vector.load %arg1[%c0_573, %c0_574, %c3_575, %c3_576, %c0_577] : memref<1x4x11x11x4xf32, #tpu.memory_space<vmem>>, vector<1x1x8x8x4xf32>
    %431 = vector.shape_cast %430 : vector<1x1x8x8x4xf32> to vector<8x8x4xf32>
    %432 = vector.shape_cast %431 : vector<8x8x4xf32> to vector<64x4xf32>
    %c48 = arith.constant 48 : index
    %c0_578 = arith.constant 0 : index
    %c0_579 = arith.constant 0 : index
    %433 = vector.load %arg3[%c48, %c0_578, %c0_579] : memref<49x4x4xf32, #tpu.memory_space<vmem>>, vector<1x4x4xf32>
    %434 = vector.shape_cast %433 : vector<1x4x4xf32> to vector<4x4xf32>
    %cst_580 = arith.constant dense<0.000000e+00> : vector<64x4xf32>
    %435 = tpu.matmul %432, %434, %cst_580 {dimension_numbers = #tpu.dot_dimension_numbers<[1], [0], [0], [1], [0, 0, 1, 1], [], []>} : vector<64x4xf32>, vector<4x4xf32>, vector<64x4xf32> -> vector<64x4xf32>
    %c0_581 = arith.constant 0 : index
    %c0_582 = arith.constant 0 : index
    %436 = vector.load %arg6[%c0_581, %c0_582] : memref<64x4xf32, #tpu.memory_space<vmem>>, vector<64x4xf32>
    %437 = arith.addf %436, %435 : vector<64x4xf32>
    %c0_583 = arith.constant 0 : index
    %c0_584 = arith.constant 0 : index
    %438 = vector.load %arg6[%c0_583, %c0_584] : memref<64x4xf32, #tpu.memory_space<vmem>>, vector<64x4xf32>
    tpu.vector_store %arg6[%c0_583, %c0_584], %437 {strides = array<i32>} : memref<64x4xf32, #tpu.memory_space<vmem>>, vector<64x4xf32>,
    %c0_585 = arith.constant 0 : index
    %c0_586 = arith.constant 0 : index
    %439 = memref.load %arg4[%c0_585, %c0_586] : memref<1x1xf32, #tpu.memory_space<smem>>
    %c0_587 = arith.constant 0 : index
    %c0_588 = arith.constant 0 : index
    %440 = vector.load %arg6[%c0_587, %c0_588] : memref<64x4xf32, #tpu.memory_space<vmem>>, vector<64x4xf32>
    %441 = tpu.transpose %440, [1, 0] : vector<64x4xf32> -> vector<4x64xf32>
    %cst_589 = arith.constant 1.000000e+00 : f32
    %442 = arith.subf %cst_589, %439 : f32
    %c0_590 = arith.constant 0 : index
    %c0_591 = arith.constant 0 : index
    %c0_592 = arith.constant 0 : index
    %443 = vector.load %arg2[%c0_590, %c0_591, %c0_592] : memref<1x4x64xf32, #tpu.memory_space<vmem>>, vector<1x4x64xf32>
    %444 = vector.shape_cast %443 : vector<1x4x64xf32> to vector<4x64xf32>
    %445 = vector.broadcast %442 : f32 to vector<4x64xf32>
    %446 = arith.mulf %445, %444 : vector<4x64xf32>
    %447 = vector.broadcast %439 : f32 to vector<4x64xf32>
    %448 = arith.mulf %447, %441 : vector<4x64xf32>
    %449 = arith.addf %446, %448 : vector<4x64xf32>
    %c0_593 = arith.constant 0 : index
    %c0_594 = arith.constant 0 : index
    %c0_595 = arith.constant 0 : index
    %450 = vector.load %arg5[%c0_593, %c0_594, %c0_595] : memref<1x4x64xf32, #tpu.memory_space<vmem>>, vector<1x4x64xf32>
    %451 = vector.shape_cast %450 : vector<1x4x64xf32> to vector<4x64xf32>
    %452 = vector.shape_cast %449 : vector<4x64xf32> to vector<1x4x64xf32>
    tpu.vector_store %arg5[%c0_593, %c0_594, %c0_595], %452 {strides = array<i32>} : memref<1x4x64xf32, #tpu.memory_space<vmem>>, vector<1x4x64xf32>,
    return
  }
  func.func @transform_0(%arg0: i32) -> (i32, i32, i32, i32, i32) {
    %c0_i32 = arith.constant 0 : i32
    %c0_i32_0 = arith.constant 0 : i32
    %c0_i32_1 = arith.constant 0 : i32
    %c0_i32_2 = arith.constant 0 : i32
    %c0_i32_3 = arith.constant 0 : i32
    return %arg0, %c0_i32, %c0_i32_0, %c0_i32_1, %c0_i32_2 : i32, i32, i32, i32, i32
  }
  func.func @transform_1(%arg0: i32) -> (i32, i32, i32) {
    %c0_i32 = arith.constant 0 : i32
    %c0_i32_0 = arith.constant 0 : i32
    %c0_i32_1 = arith.constant 0 : i32
    return %arg0, %c0_i32, %c0_i32_0 : i32, i32, i32
  }
  func.func @transform_2(%arg0: i32) -> (i32, i32, i32) {
    %c0_i32 = arith.constant 0 : i32
    %c0_i32_0 = arith.constant 0 : i32
    %c0_i32_1 = arith.constant 0 : i32
    %c0_i32_2 = arith.constant 0 : i32
    return %c0_i32, %c0_i32_0, %c0_i32_1 : i32, i32, i32
  }
  func.func @transform_3(%arg0: i32) -> (i32, i32) {
    %c0_i32 = arith.constant 0 : i32
    %c0_i32_0 = arith.constant 0 : i32
    %c0_i32_1 = arith.constant 0 : i32
    return %c0_i32, %c0_i32_0 : i32, i32
  }
  func.func @transform_4(%arg0: i32) -> (i32, i32, i32) {
    %c0_i32 = arith.constant 0 : i32
    %c0_i32_0 = arith.constant 0 : i32
    %c0_i32_1 = arith.constant 0 : i32
    return %arg0, %c0_i32, %c0_i32_0 : i32, i32, i32
  }
}

</mosaic_0001>

<bundles_post_ra>
// kernel: flc_pooling_learn_alpha_blurred.2
= control target key start
LH: loop header
LB: loop body
LE: loop exit
PB: predicated region body
PF: predicated region fallthrough
CT: control target
= control target key end

     0   :  { %12 = vsyncpa [#allocation5], 0  ;;  %s1710_s0 = inlined_call_operand.hbm [shape: f32[8,16,16], index: 0, kind: input, shape index: {}]   ;;  %s1711_s1 = inlined_call_operand.vmem [shape: f32[16,16], index: 1, kind: input, shape index: {}]   ;;  %s1712_s2 = inlined_call_operand.hbm [shape: f32[32,16], index: 2, kind: input, shape index: {}]   ;;  %s1713_s3 = inlined_call_operand.hbm [shape: f32[16,16], index: 3, kind: input, shape index: {}]   ;;  %s1714_s4 = inlined_call_operand.hbm [shape: f32[16,32], index: 4, kind: input, shape index: {}]   ;;  %s1715_s5 = inlined_call_operand.vmem [shape: f32[8,8,8], index: 5, kind: output, shape index: {0}]   ;;  %s1716_s6 = inlined_call_operand.vmem [shape: f32[8,16,16], index: 6, kind: output, shape index: {1}]  }
   0x1   :  { %14 = vsyncpa [#allocation5 + $0x1], 0 }
   0x2   :  { %15 = vsyncpa [#allocation7], 0 }
   0x3   :  { %16 = vsyncpa [#allocation10], 0  ;;  %s1420_s21 = smov 0   ;;  %s1422_s22 = smov 0  }
   0x4   :  { %s1424_s23 = smov 0   ;;  %s1426_s24 = smov 0  }
   0x5 LB: > { %s1011_s25 = sadd.s32 4294967295, %s1371_s24   ;;  %p42_p0 = scmp.ne.s32.totalorder %s1363_s22, %s1359_s21  ;;  %s1371_s24 = sphi %s1426_s24, %s1733_s24   ;;  %s1367_s23 = sphi %s1424_s23, %s1732_s23   ;;  %s1363_s22 = sphi %s1422_s22, %s1731_s22   ;;  %s1359_s21 = sphi %s1420_s21, %s1730_s21  }
   0x6   : > { %p1442_p1 = scmp.eq.s32.totalorder %s1011_s25, 0  ;;  %p1013_p2 = scmp.ge.s32.totalorder %s1371_s24, 1 }
   0x7   : > { %p189_p3 = scmp.lt.s32.totalorder %s1371_s24, 5  ;;  %s1373_s29 = smov [#allocation6]  }
   0x8   : > { %s1721_s26 = scalar_select %p1442_p1, 1, 0 }
   0x9   : > { %p1450_p4 = por %p1442_p1, %p42_p0  ;;  %p1454_p5 = pnand %p1013_p2, %p189_p3 }
   0xa   : > { %s204_s30 = sshll.u32 %s1373_s29, 4  ;;  %s1374_s8 = smov [#allocation8]   ;;  %s1458_s30 = int_to_ptr.vmem [resolvable:$true] %s204_s30 }
   0xb   : > { %s1722_s27 = scalar_select %p1450_p4, 1, 0 }
   0xc   : > { %s1723_s28 = scalar_select %p1454_p5, 1, 0 }
   0xd   : > { %p1145_p6 = pneg %p1454_p5  ;;  %s217_s9 = sshll.u32 %s1374_s8, 4  ;;  %s1468_s9 = int_to_ptr.vmem [resolvable:$true] %s217_s9 }
   0xe   : > { %s1375_s10 = smov [#allocation9]   ;;  %s1215_s14 = scalar_lea.hbm %s1712_s2, 512 }
   0xf   : > { %p1464_p7 = pnand %p1145_p6, %p1442_p1  ;;  %s1470_s11 = sshll.u32 %s1375_s10, 4  ;;  %s231_s11 = int_to_ptr.vmem [resolvable:$true] %s1470_s11 }
  0x10   : > { %p1216_p8 = scmp.ne.s32.totalorder %s1712_s2, %s1215_s14  ;;  %p1222_p12 = scmp.lt.u32.totalorder %s1215_s14, %s1712_s2 }
  0x11   : > { %p1480_p9 = pneg %p1464_p7 }
  0x13   : > { %p1218_p10 = pnand %p1480_p9, %p1216_p8 }
  0x15   : > { %p1219_p11 = pneg %p1218_p10 }
  0x17   : > { %p1224_p13 = pnand %p1222_p12, %p1219_p11 }
  0x19   : > { %1227 = shalt.err (!%p1224_p13)
}
  0x1a   : > { %s1228_s20 = scalar_lea.vmem %s1458_s30, 512  ;;  %p1236_p6 = scmp.lt.s32.totalorder %s1458_s30, %s1458_s30 }
  0x1b   : > { %p1229_p0 = scmp.ne.s32.totalorder %s1458_s30, %s1228_s20  ;;  %p1237_p1 = scmp.lt.s32.totalorder %s1228_s20, %s1228_s20 }
  0x1d   : > { %p1231_p2 = pnand %p1229_p0, %p1480_p9  ;;  %p1238_p8 = por %p1237_p1, %p1236_p6 }
  0x1f   : > { %p1232_p3 = pneg %p1231_p2 }
  0x21   : > { %p1239_p10 = pnand %p1238_p8, %p1232_p3 }
  0x23   : > { %1242 = shalt.err (!%p1239_p10)
}
  0x24   : > { %s1376_s21 = smov 128   ;;  %s1377_s29 = smov 8  }
  0x25   : > { %1148 = dma.hbm_to_vmem [thread:$0]  (!%p1464_p7), %s1712_s2, 512, %s1458_s30, [#allocation7], %s1376_s21, %s1376_s21, %s1377_s29  }
  0x26   : > { %s1243_s14 = scalar_lea.hbm %s1713_s3, 256 }
  0x27   : > { %p1244_p1 = scmp.ne.s32.totalorder %s1713_s3, %s1243_s14  ;;  %p1250_p13 = scmp.lt.u32.totalorder %s1243_s14, %s1713_s3 }
  0x29   : > { %p1246_p11 = pnand %p1244_p1, %p1480_p9 }
  0x2b   : > { %p1247_p12 = pneg %p1246_p11 }
  0x2d   : > { %p1252_p0 = pnand %p1250_p13, %p1247_p12 }
  0x2f   : > { %1255 = shalt.err (!%p1252_p0)
}
  0x30   : > { %s1256_s30 = scalar_lea.vmem %s1468_s9, 256  ;;  %p1264_p8 = scmp.lt.s32.totalorder %s1468_s9, %s1468_s9 }
  0x31   : > { %p1257_p2 = scmp.ne.s32.totalorder %s1468_s9, %s1256_s30  ;;  %p1265_p10 = scmp.lt.s32.totalorder %s1256_s30, %s1256_s30 }
  0x33   : > { %p1259_p3 = pnand %p1257_p2, %p1480_p9  ;;  %p1266_p1 = por %p1265_p10, %p1264_p8 }
  0x35   : > { %p1260_p6 = pneg %p1259_p3 }
  0x37   : > { %p1267_p11 = pnand %p1266_p1, %p1260_p6 }
  0x39   : > { %1270 = shalt.err (!%p1267_p11)
}
  0x3a   : > { %1151 = dma.hbm_to_vmem [thread:$0]  (!%p1464_p7), %s1713_s3, 256, %s1468_s9, [#allocation7], %s1376_s21, %s1376_s21, %s1377_s29  }
  0x3b   : > { %s1271_s13 = scalar_lea.hbm %s1714_s4, 256 }
  0x3c   : > { %p1272_p12 = scmp.ne.s32.totalorder %s1714_s4, %s1271_s13  ;;  %p1278_p2 = scmp.lt.u32.totalorder %s1271_s13, %s1714_s4 }
  0x3e   : > { %p1274_p13 = pnand %p1272_p12, %p1480_p9 }
  0x40   : > { %p1275_p0 = pneg %p1274_p13 }
  0x42   : > { %p1280_p3 = pnand %p1278_p2, %p1275_p0 }
  0x44   : > { %1283 = shalt.err (!%p1280_p3)
}
  0x45   : > { %s1284_s19 = scalar_lea.vmem %s231_s11, 256  ;;  %p1292_p1 = scmp.lt.s32.totalorder %s231_s11, %s231_s11 }
  0x46   : > { %p1285_p6 = scmp.ne.s32.totalorder %s231_s11, %s1284_s19  ;;  %p1293_p11 = scmp.lt.s32.totalorder %s1284_s19, %s1284_s19 }
  0x48   : > { %p1287_p8 = pnand %p1285_p6, %p1480_p9  ;;  %p1294_p4 = por %p1293_p11, %p1292_p1 }
  0x4a   : > { %p1288_p10 = pneg %p1287_p8 }
  0x4c   : > { %p1295_p5 = pnand %p1294_p4, %p1288_p10 }
  0x4e   : > { %1298 = shalt.err (!%p1295_p5)
}
  0x4f   : > { %1154 = dma.hbm_to_vmem [thread:$0]  (!%p1464_p7), %s1714_s4, 256, %s231_s11, [#allocation10], %s1376_s21, %s1376_s21, %s1377_s29  }
  0x50   : > { %s1553_s17 = sadd.s32 1, %s1371_s24   ;;  %s29_s20 = sadd.s32 1, %s1367_s23 }
  0x51   : > { %s26_s7 = ssub.s32 %s1371_s24, %s1553_s17  ;;  %p36_p5 = scmp.ne.s32.totalorder %s1367_s23, %s1363_s22 }
  0x52   : > { %p27_p4 = scmp.eq.s32.totalorder %s26_s7, 0  ;;  %p37_p9 = scmp.eq.s32.totalorder %s1371_s24, 0 }
  0x53   : > { %p1162_p12 = scmp.lt.s32.totalorder %s1371_s24, 4  ;;  %s244_s10 = sand.u32 1, %s1367_s23  }
  0x54   : > { %s1563_s8 = scalar_select %p27_p4, %s1367_s23, %s29_s20  }
  0x55   : > { %p38_p13 = por %p37_p9, %p36_p5  ;;  %s1018_s12 = sshll.u32 %s244_s10, 5 }
  0x56   : > { %s1054_s13 = sshll.u32 %s1371_s24, 9  ;;  %s248_s11 = scalar_lea.vmem [#allocation4], %s1018_s12 }
  0x57   : > { %s1570_s16 = scalar_lea.hbm %s1710_s0, %s1054_s13  ;;  %s256_s18 = sshll.u32 %s248_s11, 4  ;;  %s1572_s18 = int_to_ptr.vmem [resolvable:$true] %s256_s18 }
  0x58   : > { %p1574_p7 = pnand %p1162_p12, %p38_p13  ;;  %s1578_s9 = scalar_lea.sflag [#allocation5], %s244_s10 }
  0x59   : > { %s1299_s30 = scalar_lea.hbm %s1570_s16, 512  ;;  %s1304_s12 = scalar_lea.hbm %s1710_s0, 2048 }
  0x5a   : > { %p1300_p0 = scmp.ne.s32.totalorder %s1570_s16, %s1299_s30  ;;  %p1301_p2 = pneg %p1574_p7 }
  0x5b   : > { %p1305_p8 = scmp.lt.u32.totalorder %s1570_s16, %s1710_s0  ;;  %p1306_p10 = scmp.lt.u32.totalorder %s1304_s12, %s1299_s30 }
  0x5c   : > { %p1302_p3 = pnand %p1301_p2, %p1300_p0  ;;  %p1308_p11 = scmp.lt.u32.totalorder %s1299_s30, %s1570_s16 }
  0x5d   : > { %p1307_p1 = por %p1306_p10, %p1305_p8 }
  0x5e   : > { %p1303_p6 = pneg %p1302_p3 }
  0x5f   : > { %p1309_p4 = por %p1308_p11, %p1307_p1 }
  0x61   : > { %p1310_p5 = pnand %p1309_p4, %p1303_p6 }
  0x63   : > { %1313 = shalt.err (!%p1310_p5)
}
  0x64   : > { %s1314_s10 = scalar_lea.vmem %s1572_s18, 512  ;;  %s1378_s15 = smov [#allocation4]  }
  0x65   : > { %p1315_p9 = scmp.ne.s32.totalorder %s1572_s18, %s1314_s10  ;;  %s1319_s11 = sshll.u32 %s1378_s15, 4  ;;  %s1320_s11 = int_to_ptr.vmem [resolvable:$false] %s1319_s11 }
  0x66   : > { %s1321_s7 = scalar_lea.vmem %s1320_s11, 1024  ;;  %p1322_p0 = scmp.lt.s32.totalorder %s1572_s18, %s1320_s11 }
  0x67   : > { %p1317_p12 = pnand %p1315_p9, %p1301_p2  ;;  %p1323_p3 = scmp.lt.s32.totalorder %s1321_s7, %s1314_s10 }
  0x69   : > { %p1318_p13 = pneg %p1317_p12  ;;  %p1324_p8 = por %p1323_p3, %p1322_p0 }
  0x6b   : > { %p1325_p10 = pnand %p1324_p8, %p1318_p13 }
  0x6d   : > { %1328 = shalt.err (!%p1325_p10)
}
  0x6e   : > { %1158 = dma.hbm_to_vmem [thread:$0]  (!%p1574_p7), %s1570_s16, 512, %s1572_s18, %s1578_s9, %s1376_s21, %s1376_s21, %s1377_s29  }
  0x6f   : > { %p1727_p2 = scmp.ne.s32.totalorder %s1723_s28, 0 }
  0x70   : > { %s270_s30 = sand.u32 (!%p1727_p2), 1, %s1363_s22   ;;  %p1728_p6 = scmp.ne.s32.totalorder (!%p1727_p2), %s1722_s27, 0 }
  0x71   : > { %268 = sbr.rel (%p1727_p2) target bundleno = 1076 (0x434), region = 40  ;;  %s1023_s20 = sshll.u32 (!%p1727_p2), %s270_s30, 5 }
  0x72   : > { %s271_s12 = scalar_lea.sflag (!%p1727_p2), [#allocation5], %s270_s30  ;;  %s274_s13 = scalar_lea.vmem (!%p1727_p2), [#allocation4], %s1023_s20 }
  0x78   : > { %1346 = dma.done.wait (%p1728_p6), %s271_s12, 512  }
  0x79   : > { %1348 = vsyncadd (%p1728_p6), %s271_s12, 4294966784  ;;  %p1729_p1 = scmp.ne.s32.totalorder %s1721_s26, 0 }
  0x7b   : > { %1350 = dma.done.wait (%p1729_p1), [#allocation7], 768  }
  0x7c   : > { %1352 = vsyncadd (%p1729_p1), [#allocation7], 4294966528 }
  0x7d   : > { %1354 = dma.done.wait (%p1729_p1), [#allocation10], 256  }
  0x7e   : > { %1356 = vsyncadd (%p1729_p1), [#allocation10], 4294967040  ;;  %vm341_vm0 = vcmask 130048   ;;  %v339_v0 = vld [vmem:[#allocation8] sm:$0xff]  ;;  %v340_v1 = vld [vmem:[#allocation8 + $0x8] sm:$0xff]  ;;  %vm526_vm1 = vcmask 64512  }
  0x7f   : > { %v439_v2 = vld [vmem:[#allocation9] sm:$0xff]  ;;  %v1115_v3 = vpack.c.bf16 %v340_v1, %v339_v0  ;;  %v440_v4 = vld [vmem:[#allocation9 + $0x8] sm:$0xff]  ;;  %v1624_v5 = vld [vmem:[%s274_s13] sm:$0xff]  ;;  %s1379_s26 = smov 8   ;;  %s1380_s27 = smov 16   ;;  %vm537_vm2 = vcmask 195712  }
  0x80   : > { %v1119_v6 = vpack.c.bf16 %v440_v4, %v439_v2  ;;  %1082 = vmatprep.mubr.msk.f32.mxu0 %vm341_vm0, %v1624_v5  ;;  %1092 = vmatprep.mubr.msk.f32.mxu1 %vm341_vm0, %v1624_v5  ;;  %v1630_v7 = vld [vmem:[%s274_s13 + $0x8] sm:$0xff]  ;;  %v1632_v8 = vld [vmem:[%s274_s13 + $0x10] sm:$0xff]  ;;  %v1642_v9 = vld [vmem:[%s274_s13 + $0x18] sm:$0xff]  ;;  %s1381_s28 = smov 32   ;;  %vm550_vm3 = vcmask 392448   ;;  %vm581_vm4 = vcmask 261248  }
  0x81   : > { %1116 = vmatprep.subr.bf16.mxu0 %v1115_v3  ;;  %v678_v18 = vld [vmem:[#allocation6] sm:$0xff]  ;;  %vm590_vm5 = vcmask 523648   ;;  %vm561_vm6 = vcmask 130112   ;;  %vm570_vm7 = vcmask 261312   ;;  %v679_v35 = vld [vmem:[#allocation6 + $0x8] sm:$0xff]  ;;  %v680_v36 = vld [vmem:[#allocation6 + $0x10] sm:$0xff] }
  0x82   : > { %1120 = vmatprep.subr.bf16.mxu1 %v1119_v6  ;;  %1118 = vmatpush3.bf16.msra.mxu0 %v1115_v3  ;;  %v593_v19 = vld [vmem:[%s1711_s1] sm:$0xff]  ;;  %v681_v40 = vld [vmem:[#allocation6 + $0x18] sm:$0xff]  ;;  %v594_v41 = vld [vmem:[%s1711_s1 + $0x8] sm:$0xff]  ;;  %s1382_s19 = smov 112   ;;  %s1383_s9 = smov 96  }
  0x83   : > { %1122 = vmatpush3.bf16.msra.mxu1 %v1119_v6  ;;  %s1027_s14 = sshll.u32 %s1011_s25, 1  ;;  %s1384_s12 = smov 120  }
  0x84   : > { %p323_p7 = scmp.lt.s32.totalorder %s1027_s14, 7 }
  0x85   : > { %1083 = vmatmul.mubr.msk.f32.vlgmr.msra.gmra.mrb[0].mxu0 %vm341_vm0, %v1630_v7 }
  0x86   : > { %1093 = vmatmul.mubr.msk.f32.vlgmr.msra.gmra.mrb[0].mxu1 %vm341_vm0, %v1630_v7  ;;  %1085 = vmatprep.mubr.msk.f32.mxu0 %vm341_vm0, %v1632_v8  ;;  %s1735_s14 = smov (!%p323_p7, %s1027_s14), 7 }
  0x87   : > { %1095 = vmatprep.mubr.msk.f32.mxu1 %vm341_vm0, %v1632_v8  ;;  %s1055_s10 = sshll.u32 %s1735_s14, 4  ;;  %s1028_s11 = sshll.u32 %s1735_s14, 3 }
  0x88   : > { %s333_s15 = scalar_lea.vmem %s1716_s6, %s1055_s10  ;;  %s326_s20 = scalar_lea.vmem %s1715_s5, %s1028_s11 }
  0x89   : > { %1086 = vmatmul.mubr.msk.f32.gmra.mrb[2].mxu0 %vm341_vm0, %v1642_v9 }
  0x8a   : > { %1096 = vmatmul.mubr.msk.f32.gmra.mrb[2].mxu1 %vm341_vm0, %v1642_v9  ;;  %1102 = vmatprep.mubr.msk.f32.mxu0 %vm341_vm0, %v593_v19 }
  0x8b   : > { %1109 = vmatprep.mubr.msk.f32.mxu1 %vm341_vm0, %v678_v18 }
 0x158   : > { %v1084_v10 = vpop.f32.mrb[0].mxu0 }
 0x159   : > { %528 = vst.msk [vmem:[#allocation2 + $0x8] sm:$0xff] %vm526_vm1, %v1084_v10  ;;  %v1094_v11 = vpop.f32.mrb[0].mxu1  ;;  %533 = vrot.lane.b32.xlu1 %v1084_v10, %s1379_s26  ;;  %v420_v12 = vpop.f32.mrb[1].mxu0 }
 0x15a   : > { %541 = vst.msk [vmem:[#allocation3 + $0x8] sm:$0xff] %vm341_vm0, %v1094_v11  ;;  %546 = vrot.lane.b32.xlu0 %v1094_v11, %s1380_s27  ;;  %v507_v13 = vpop.f32.mrb[1].mxu1 }
 0x15b   : > { %527 = vst.msk [vmem:[#allocation2] sm:$0xff] %vm526_vm1, %v420_v12 }
 0x15c   : > { %540 = vst.msk [vmem:[#allocation3] sm:$0xff] %vm341_vm0, %v507_v13  ;;  %v1087_v14 = vpop.f32.mrb[2].mxu0 }
 0x15d   : > { %v1097_v15 = vpop.f32.mrb[2].mxu1  ;;  %v430_v16 = vpop.f32.mrb[3].mxu0 }
 0x15e   : > { %544 = vrot.lane.b32.xlu0 %v507_v13, %s1380_s27  ;;  %v517_v17 = vpop.f32.mrb[3].mxu1  ;;  %577 = vrot.lane.b32.xlu1 %v1097_v15, %s1380_s27 }
 0x162   : > { %586 = vrot.lane.b32.xlu1 %v1097_v15, %s1381_s28  ;;  %531 = vrot.lane.b32.xlu0 %v420_v12, %s1379_s26 }
 0x166   : > { %575 = vrot.lane.b32.xlu1 %v517_v17, %s1380_s27  ;;  %584 = vrot.lane.b32.xlu0 %v517_v17, %s1381_s28 }
 0x16a   : > { %557 = vrot.lane.b32.xlu1 %v1087_v14, %s1379_s26  ;;  %555 = vrot.lane.b32.xlu0 %v430_v16, %s1379_s26 }
 0x16e   : > { %566 = vrot.lane.b32.xlu1 %v1087_v14, %s1380_s27  ;;  %564 = vrot.lane.b32.xlu0 %v430_v16, %s1380_s27 }
 0x1cb   : > { %v534_v20 = vpop.permute.xlu1 %533 }
 0x1cc   : > { %v547_v21 = vpop.permute.xlu0 %546  ;;  %539 = vst.msk [vmem:[#allocation2 + $0x8] sm:$0xff] %vm537_vm2, %v534_v20 }
 0x1cd   : > { %552 = vst.msk [vmem:[#allocation3 + $0x8] sm:$0xff] %vm550_vm3, %v547_v21 }
 0x1d0   : > { %v545_v22 = vpop.permute.xlu0 %544  ;;  %v578_v23 = vpop.permute.xlu1 %577 }
 0x1d1   : > { %551 = vst.msk [vmem:[#allocation3] sm:$0xff] %vm550_vm3, %v545_v22 }
 0x1d2   : > { %583 = vst.msk [vmem:[#allocation3 + $0x8] sm:$0xff] %vm581_vm4, %v578_v23 }
 0x1d4   : > { %v587_v24 = vpop.permute.xlu1 %586  ;;  %v532_v25 = vpop.permute.xlu0 %531 }
 0x1d5   : > { %592 = vst.msk [vmem:[#allocation3 + $0x8] sm:$0xff] %vm590_vm5, %v587_v24 }
 0x1d6   : > { %538 = vst.msk [vmem:[#allocation2] sm:$0xff] %vm537_vm2, %v532_v25 }
 0x1d8   : > { %v576_v26 = vpop.permute.xlu1 %575  ;;  %v585_v27 = vpop.permute.xlu0 %584 }
 0x1d9   : > { %582 = vst.msk [vmem:[#allocation3] sm:$0xff] %vm581_vm4, %v576_v26 }
 0x1da   : > { %591 = vst.msk [vmem:[#allocation3] sm:$0xff] %vm590_vm5, %v585_v27 }
 0x1dc   : > { %v558_v28 = vpop.permute.xlu1 %557  ;;  %v556_v29 = vpop.permute.xlu0 %555  ;;  %v683_v33 = vld [vmem:[#allocation3 + $0x8] sm:$0xff] }
 0x1dd   : > { %563 = vst.msk [vmem:[#allocation2 + $0x8] sm:$0xff] %vm561_vm6, %v558_v28  ;;  %562 = vst.msk [vmem:[#allocation2] sm:$0xff] %vm561_vm6, %v556_v29 }
 0x1e0   : > { %v567_v30 = vpop.permute.xlu1 %566  ;;  %v565_v31 = vpop.permute.xlu0 %564 }
 0x1e1   : > { %572 = vst.msk [vmem:[#allocation2 + $0x8] sm:$0xff] %vm570_vm7, %v567_v30  ;;  %571 = vst.msk [vmem:[#allocation2] sm:$0xff] %vm570_vm7, %v565_v31  ;;  %v682_v32 = vld [vmem:[#allocation3] sm:$0xff] }
 0x1e2   : > { %v1127_v34 = vpack.c.bf16 %v683_v33, %v682_v32 }
 0x1e4   : > { %1128 = vmatprep.subr.bf16.mxu1 %v1127_v34 }
 0x1e5   : > { %1130 = vmatpush3.bf16.msra.mxu1 %v1127_v34 }
 0x1e8   : > { %1110 = vmatmul.mubr.msk.f32.vlgmr.msra.gmra.mrb[4].mxu1 %vm341_vm0, %v679_v35  ;;  %v595_v37 = vld [vmem:[#allocation2] sm:$0xff]  ;;  %v596_v38 = vld [vmem:[#allocation2 + $0x8] sm:$0xff] }
 0x1e9   : > { %v1123_v39 = vpack.c.bf16 %v596_v38, %v595_v37  ;;  %1112 = vmatprep.mubr.msk.f32.mxu1 %vm341_vm0, %v680_v36 }
 0x1eb   : > { %1124 = vmatprep.subr.bf16.mxu0 %v1123_v39 }
 0x1ec   : > { %1126 = vmatpush3.bf16.msra.mxu0 %v1123_v39  ;;  %1113 = vmatmul.mubr.msk.f32.gmra.mrb[6].mxu1 %vm341_vm0, %v681_v40 }
 0x1ef   : > { %1103 = vmatmul.mubr.msk.f32.vlgmr.msra.gmra.mrb[4].mxu0 %vm341_vm0, %v594_v41 }
 0x2bb   : > { %v1111_v42 = vpop.f32.mrb[4].mxu1 }
 0x2bc   : > { %v762_v43 = vpop.f32.mrb[5].mxu1 }
 0x2bf   : > { %v1114_v44 = vpop.f32.mrb[6].mxu1 }
 0x2c0   : > { %v772_v45 = vpop.f32.mrb[7].mxu1  ;;  %816 = vrot.lane.b32.xlu1 %v1114_v44, %s1381_s28 }
 0x2c1   : > { %814 = vrot.lane.b32.xlu0 %v772_v45, %s1381_s28 }
 0x2c2   : > { %v1104_v46 = vpop.f32.mrb[4].mxu0 }
 0x2c3   : > { %v669_v47 = vpop.f32.mrb[5].mxu0 }
 0x2c4   : > { %782 = vrot.lane.b32.xlu1 %v1104_v46, %s1382_s19 }
 0x2c5   : > { %786 = vrot.lane.b32.xlu0 %v1104_v46, %s1380_s27 }
 0x2c8   : > { %806 = vrot.lane.b32.xlu1 %v772_v45, %s1383_s9 }
 0x2c9   : > { %808 = vrot.lane.b32.xlu0 %v1114_v44, %s1383_s9 }
 0x332   : > { %v817_v48 = vpop.permute.xlu1 %816 }
 0x333   : > { %v821_v49 = vadd.f32 %v1111_v42, %v817_v48  ;;  %v815_v50 = vpop.permute.xlu0 %814 }
 0x334   : > { %v820_v51 = vadd.f32 %v815_v50, %v762_v43 }
 0x335   : > { %v825_v52 = vmul.f32 %v821_v49, %v821_v49 }
 0x336   : > { %v824_v53 = vmul.f32 %v820_v51, %v820_v51  ;;  %v783_v57 = vpop.permute.xlu1 %782 }
 0x337   : > { %830 = vrot.lane.b32.xlu1 %v825_v52, %s1383_s9  ;;  %v787_v54 = vpop.permute.xlu0 %786  ;;  %v785_v63 = vsub.f32 %v669_v47, %v783_v57 }
 0x338   : > { %v789_v55 = vadd.f32 %v787_v54, %v669_v47  ;;  %828 = vrot.lane.b32.xlu0 %v824_v53, %s1383_s9 }
 0x339   : > { %v790_v6 = vmul.f32 %v785_v63, %v785_v63 }
 0x33a   : > { %v791_v56 = vmul.f32 %v789_v55, %v789_v55  ;;  %v807_v59 = vpop.permute.xlu1 %806 }
 0x33b   : > { %v809_v58 = vpop.permute.xlu0 %808  ;;  %v812_v61 = vsub.f32 %v762_v43, %v807_v59 }
 0x33c   : > { %793 = vrot.lane.b32.xlu0 %v791_v56, %s1382_s19  ;;  %v813_v60 = vsub.f32 %v1111_v42, %v809_v58 }
 0x33d   : > { %v822_v0 = vmul.f32 %v812_v61, %v812_v61 }
 0x33e   : > { %v823_v62 = vmul.f32 %v813_v60, %v813_v60 }
 0x3a9   : > { %v831_v1 = vpop.permute.xlu1 %830 }
 0x3aa   : > { %v835_v2 = vadd.f32 %v831_v1, %v823_v62  ;;  %v829_v3 = vpop.permute.xlu0 %828 }
 0x3ab   : > { %v834_v4 = vadd.f32 %v829_v3, %v822_v0 }
 0x3ac   : > { %1209 = vrsqrt.f32 %v835_v2  ;;  %vm845_vm8 = vcmp.eq.f32.partialorder %v835_v2, inf  ;;  %v848_v15 = vand.u32 2147483648, %v835_v2  ;;  %vm847_vm9 = vcmp.eq.f32.partialorder %v835_v2, 0.0 }
 0x3ad   : > { %1211 = vrsqrt.f32 %v834_v4  ;;  %vm838_vm10 = vcmp.eq.f32.partialorder %v834_v4, inf  ;;  %v841_v18 = vand.u32 2147483648, %v834_v4  ;;  %vm840_vm11 = vcmp.eq.f32.partialorder %v834_v4, 0.0 }
 0x3ae   : > { %v794_v10 = vpop.permute.xlu0 %793 }
 0x3af   : > { %v796_v11 = vadd.f32 %v794_v10, %v790_v6 }
 0x3b1   : > { %1213 = vrsqrt.f32 %v796_v11  ;;  %vm799_vm12 = vcmp.eq.f32.partialorder %v796_v11, inf  ;;  %v802_v26 = vand.u32 2147483648, %v796_v11  ;;  %vm801_vm13 = vcmp.eq.f32.partialorder %v796_v11, 0.0 }
 0x3b6   : > { %v1210_v12 = vpop.eup %1209 }
 0x3b7   : > { %v1212_v13 = vpop.eup %1211  ;;  %v844_v14 = vmul.f32 %v1210_v12, %v835_v2 }
 0x3b8   : > { %v837_v16 = vmul.f32 %v1212_v13, %v834_v4 }
 0x3b9   : > { %v846_v17 = vsel %vm845_vm8, %v835_v2, %v844_v14 }
 0x3ba   : > { %v849_v19 = vsel %vm847_vm9, %v848_v15, %v846_v17  ;;  %v839_v20 = vsel %vm838_vm10, %v834_v4, %v837_v16 }
 0x3bb   : > { %v1214_v21 = vpop.eup %1213  ;;  %870 = vrot.lane.b32.xlu0 %v849_v19, %s1382_s19  ;;  %v854_v22 = vsub.f32 %v1630_v7, %v849_v19  ;;  %v842_v23 = vsel %vm840_vm11, %v841_v18, %v839_v20 }
 0x3bc   : > { %868 = vrot.lane.b32.xlu1 %v842_v23, %s1382_s19  ;;  %v853_v24 = vsub.f32 %v1624_v5, %v842_v23  ;;  %v798_v25 = vmul.f32 %v1214_v21, %v796_v11 }
 0x3bd   : > { %856 = vst.msk [vmem:[%s333_s15 + $0x8] sm:$0xff] %vm341_vm0, %v854_v22 }
 0x3be   : > { %855 = vst.msk [vmem:[%s333_s15] sm:$0xff] %vm341_vm0, %v853_v24  ;;  %v800_v27 = vsel %vm799_vm12, %v796_v11, %v798_v25 }
 0x3bf   : > { %v803_v28 = vsel %vm801_vm13, %v802_v26, %v800_v27 }
 0x3c0   : > { %858 = vrot.lane.b32.xlu1 %v803_v28, %s1384_s12  ;;  %850 = vst.msk [vmem:[%s326_s20] sm:$0xff] %vm526_vm1, %v803_v28 }
 0x42d   : > { %v871_v7 = vpop.permute.xlu0 %870 }
 0x42e   : > { %v875_v5 = vsub.f32 %v1642_v9, %v871_v7  ;;  %v869_v29 = vpop.permute.xlu1 %868 }
 0x42f   : > { %v874_v30 = vsub.f32 %v1632_v8, %v869_v29 }
 0x430   : > { %1050 = vst.msk [vmem:[%s333_s15 + $0x18] sm:$0xff] %vm341_vm0, %v875_v5 }
 0x431   : > { %1049 = vst.msk [vmem:[%s333_s15 + $0x10] sm:$0xff] %vm341_vm0, %v874_v30 }
 0x432   : > { %v859_v31 = vpop.permute.xlu1 %858 }
 0x433   : > { %1046 = vst.msk [vmem:[%s326_s20 + $0x8] sm:$0xff] %vm526_vm1, %v859_v31 }
 0x434 PF: > { %p19_p11 = scmp.ge.s32.totalorder %s1553_s17, 6   ;;  %s1730_s21 = smov %s1363_s22 }
 0x435   : > { %s1731_s22 = smov %s1367_s23  ;;  %s1732_s23 = smov %s1563_s8 }
 0x436   : > { %s1733_s24 = smov %s1553_s17  ;;  %21 = sbr.rel (!%p19_p11) target bundleno = 5 (0x5), region = 107 }
 0x43d   :  { %920 = vsyncpa [#allocation5], 1 }
 0x43e   :  { %922 = vsyncpa [#allocation5 + $0x1], 1 }
 0x43f   :  { %923 = vsyncpa [#allocation7], 1 }
 0x440   :  { %924 = vsyncpa [#allocation10], 1 }

// kernel: flc_pooling_learn_alpha_blurred.3
= control target key start
LH: loop header
LB: loop body
LE: loop exit
PB: predicated region body
PF: predicated region fallthrough
CT: control target
= control target key end

     0   :  { %s10495_s17 = smov 0   ;;  %s13381_s0 = inlined_call_operand.vmem [shape: f32[2,4,11,11,4], index: 0, kind: input, shape index: {}]   ;;  %s13382_s1 = inlined_call_operand.vmem [shape: f32[2,4,64], index: 1, kind: input, shape index: {}]   ;;  %s13383_s2 = inlined_call_operand.vmem [shape: f32[49,4,4], index: 2, kind: input, shape index: {}]   ;;  %s13384_s3 = inlined_call_operand.<no memory space> [shape: f32[1,1], index: 3, kind: input, shape index: {}]   ;;  %s13385_s4 = inlined_call_operand.vmem [shape: f32[2,4,64], index: 4, kind: output, shape index: {}]  }
   0x1   :  { %9 = sst [smem:[#allocation3]] %s13384_s3 }
   0x2 LB: > { %s8461_s18 = sadd.s32 4294967295, %s10465_s17   ;;  %p8465_p0 = scmp.ge.s32.totalorder %s10465_s17, 1  ;;  %s10465_s17 = sphi %s10495_s17, %s15_s17  }
   0x3   : > { %p172_p1 = scmp.lt.s32.totalorder %s10465_s17, 3 }
   0x5   : > { %p173_p2 = pnand %p8465_p0, %p172_p1 }
   0x7   : > { %176 = sbr.rel (%p173_p2) target bundleno = 858 (0x35a), region = 36 }
   0xe   : > { %v222_v0 = vld [vmem:[%s13383_s2] sm:$0xf]  ;;  %vm248_vm0 = vcmask 1043456   ;;  %p201_p3 = scmp.lt.s32.totalorder %s8461_s18, 1  ;;  %v8486_v1 = vld [vmem:[%s13383_s2 + $0x4] sm:$0xf] }
   0xf   : > { %10447 = vmatprep.subr.msk.mxu1 %vm248_vm0, %v222_v0  ;;  %9761 = vmatprep.subr.msk.mxu0 %vm248_vm0, %v222_v0  ;;  %v8496_v2 = vld [vmem:[%s13383_s2 + $0x8] sm:$0xf]  ;;  %vm223_vm1 = vcmask 31744   ;;  %v8514_v9 = vld [vmem:[%s13383_s2 + $0xc] sm:$0xf]  ;;  %vm8394_vm2 = vcmask 519168  }
  0x10   : > { %10448 = vmatpush3.msk.msra.mxu1 %vm248_vm0, %v222_v0  ;;  %9762 = vmatpush3.msk.msra.mxu0 %vm248_vm0, %v222_v0  ;;  %s13569_s18 = smov (!%p201_p3, %s8461_s18), 1  ;;  %v8524_v10 = vld [vmem:[%s13383_s2 + $0x10] sm:$0xf]  ;;  %v8542_v19 = vld [vmem:[%s13383_s2 + $0x14] sm:$0xf] }
  0x11   : > { %9775 = vmatprep.subr.msk.mxu1 %vm248_vm0, %v8486_v1  ;;  %9789 = vmatprep.subr.msk.mxu0 %vm248_vm0, %v8496_v2  ;;  %s10449_s24 = smul.u32 704, %s13569_s18  ;;  %v8552_v20 = vld [vmem:[%s13383_s2 + $0x18] sm:$0xf]  ;;  %v8570_v37 = vld [vmem:[%s13383_s2 + $0x1c] sm:$0xf]  ;;  %s8467_s23 = sshll.u32 %s13569_s18, 2 }
  0x12   : > { %v8588_v38 = vld [vmem:[%s13383_s2 + $0x20] sm:$0xf]  ;;  %v8606_v55 = vld [vmem:[%s13383_s2 + $0x24] sm:$0xf]  ;;  %v8624_v56 = vld [vmem:[%s13383_s2 + $0x28] sm:$0xf]  ;;  %s209_s28 = scalar_lea.vmem %s13382_s1, %s8467_s23  ;;  %s213_s5 = scalar_lea.vmem %s13385_s4, %s8467_s23 }
  0x13   : > { %s10524_s27 = scalar_lea.vmem %s13381_s0, %s10449_s24 }
  0x14   : > { %v214_v3 = vld [vmem:[%s10524_s27] sm:$0xff]  ;;  %v10531_v5 = vld [vmem:[%s10524_s27 + $0x10] sm:$0xff] }
  0x15   : > { %v10528_v4 = vld [vmem:[%s10524_s27 + $0x40] sm:$0xff]  ;;  %9763 = vmatprep.mubr.msk.f32.mxu0 %vm223_vm1, %v214_v3  ;;  %v10537_v6 = vld [vmem:[%s10524_s27 + $0x50] sm:$0xff] }
  0x16   : > { %9769 = vmatprep.mubr.msk.f32.mxu1 %vm223_vm1, %v10528_v4  ;;  %v10540_v7 = vld [vmem:[%s10524_s27 + $0x60] sm:$0xff]  ;;  %9764 = vmatmul.mubr.msk.f32.vlgmr.msra.gmra.mrb[0].mxu0 %vm223_vm1, %v10531_v5  ;;  %v10559_v11 = vld [vmem:[%s10524_s27 + $0x70] sm:$0xff] }
  0x17   : > { %9770 = vmatmul.mubr.msk.f32.vlgmr.msra.gmra.mrb[0].mxu1 %vm223_vm1, %v10537_v6  ;;  %v10547_v8 = vld [vmem:[%s10524_s27 + $0x20] sm:$0xff]  ;;  %v10562_v12 = vld [vmem:[%s10524_s27 + $0x30] sm:$0xff]  ;;  %9790 = vmatpush3.msk.msra.mxu0 %vm248_vm0, %v8496_v2 }
  0x18   : > { %9776 = vmatpush3.msk.msra.mxu1 %vm248_vm0, %v8486_v1  ;;  %9772 = vmatprep.mubr.msk.f32.mxu1 %vm223_vm1, %v10540_v7  ;;  %v8478_v13 = vld [vmem:[%s10524_s27 + $0xb0] sm:$0xff]  ;;  %v532_v14 = vld [vmem:[%s10524_s27 + $0x1] sm:$0xff] }
  0x19   : > { %9766 = vmatprep.mubr.msk.f32.mxu0 %vm223_vm1, %v10547_v8  ;;  %9803 = vmatprep.subr.msk.mxu1 %vm248_vm0, %v8514_v9  ;;  %v10577_v15 = vld [vmem:[%s10524_s27 + $0xc0] sm:$0xff]  ;;  %v10581_v16 = vld [vmem:[%s10524_s27 + $0x11] sm:$0xff] }
  0x1a   : > { %9817 = vmatprep.subr.msk.mxu0 %vm248_vm0, %v8524_v10  ;;  %9767 = vmatmul.mubr.msk.f32.gmra.mrb[2].mxu0 %vm223_vm1, %v10562_v12  ;;  %v10584_v17 = vld [vmem:[%s10524_s27 + $0xd0] sm:$0xff]  ;;  %v10587_v18 = vld [vmem:[%s10524_s27 + $0x21] sm:$0xff] }
  0x1b   : > { %9773 = vmatmul.mubr.msk.f32.gmra.mrb[2].mxu1 %vm223_vm1, %v10559_v11  ;;  %9791 = vmatprep.mubr.msk.f32.mxu0 %vm223_vm1, %v532_v14  ;;  %v10602_v21 = vld [vmem:[%s10524_s27 + $0xe0] sm:$0xff]  ;;  %v10606_v22 = vld [vmem:[%s10524_s27 + $0x31] sm:$0xff] }
  0x1c   : > { %9777 = vmatprep.mubr.msk.f32.mxu1 %vm223_vm1, %v8478_v13  ;;  %v10609_v23 = vld [vmem:[%s10524_s27 + $0xf0] sm:$0xff]  ;;  %v10615_v24 = vld [vmem:[%s10524_s27 + $0x41] sm:$0xff] }
  0x1d   : > { %v10626_v25 = vld [vmem:[%s10524_s27 + $0x100] sm:$0xff]  ;;  %v10631_v26 = vld [vmem:[%s10524_s27 + $0x51] sm:$0xff] }
  0x1e   : > { %9792 = vmatmul.mubr.msk.f32.vlgmr.msra.gmra.mrb[4].mxu0 %vm223_vm1, %v10581_v16  ;;  %v10634_v27 = vld [vmem:[%s10524_s27 + $0x110] sm:$0xff]  ;;  %v10637_v28 = vld [vmem:[%s10524_s27 + $0x61] sm:$0xff] }
  0x1f   : > { %9778 = vmatmul.mubr.msk.f32.vlgmr.msra.gmra.mrb[4].mxu1 %vm223_vm1, %v10577_v15  ;;  %9794 = vmatprep.mubr.msk.f32.mxu0 %vm223_vm1, %v10587_v18  ;;  %v10646_v29 = vld [vmem:[%s10524_s27 + $0x120] sm:$0xff]  ;;  %v10651_v30 = vld [vmem:[%s10524_s27 + $0x71] sm:$0xff] }
  0x20   : > { %9780 = vmatprep.mubr.msk.f32.mxu1 %vm223_vm1, %v10584_v17  ;;  %9804 = vmatpush3.msk.msra.mxu1 %vm248_vm0, %v8514_v9  ;;  %v8506_v31 = vld [vmem:[%s10524_s27 + $0xb1] sm:$0xff]  ;;  %v864_v32 = vld [vmem:[%s10524_s27 + $0x2] sm:$0xff] }
  0x21   : > { %9818 = vmatpush3.msk.msra.mxu0 %vm248_vm0, %v8524_v10  ;;  %9831 = vmatprep.subr.msk.mxu1 %vm248_vm0, %v8542_v19  ;;  %v10661_v33 = vld [vmem:[%s10524_s27 + $0xc1] sm:$0xff]  ;;  %v10665_v34 = vld [vmem:[%s10524_s27 + $0x12] sm:$0xff] }
  0x22   : > { %9845 = vmatprep.subr.msk.mxu0 %vm248_vm0, %v8552_v20  ;;  %9795 = vmatmul.mubr.msk.f32.gmra.mrb[6].mxu0 %vm223_vm1, %v10606_v22  ;;  %v10668_v35 = vld [vmem:[%s10524_s27 + $0xd1] sm:$0xff]  ;;  %v10671_v36 = vld [vmem:[%s10524_s27 + $0x22] sm:$0xff] }
  0x23   : > { %9781 = vmatmul.mubr.msk.f32.gmra.mrb[6].mxu1 %vm223_vm1, %v10602_v21  ;;  %9797 = vmatprep.mubr.msk.f32.mxu0 %vm223_vm1, %v10615_v24  ;;  %v10686_v39 = vld [vmem:[%s10524_s27 + $0xe1] sm:$0xff]  ;;  %v10690_v40 = vld [vmem:[%s10524_s27 + $0x32] sm:$0xff] }
  0x24   : > { %9783 = vmatprep.mubr.msk.f32.mxu1 %vm223_vm1, %v10609_v23  ;;  %v10693_v41 = vld [vmem:[%s10524_s27 + $0xf1] sm:$0xff]  ;;  %v10699_v42 = vld [vmem:[%s10524_s27 + $0x42] sm:$0xff] }
  0x25   : > { %v10710_v43 = vld [vmem:[%s10524_s27 + $0x101] sm:$0xff]  ;;  %v10715_v44 = vld [vmem:[%s10524_s27 + $0x52] sm:$0xff] }
  0x26   : > { %9798 = vmatmul.mubr.msk.f32.gmra.mrb[8].mxu0 %vm223_vm1, %v10631_v26  ;;  %v10718_v45 = vld [vmem:[%s10524_s27 + $0x111] sm:$0xff]  ;;  %v10721_v46 = vld [vmem:[%s10524_s27 + $0x62] sm:$0xff] }
  0x27   : > { %9784 = vmatmul.mubr.msk.f32.gmra.mrb[8].mxu1 %vm223_vm1, %v10626_v25  ;;  %9800 = vmatprep.mubr.msk.f32.mxu0 %vm223_vm1, %v10637_v28  ;;  %v10730_v47 = vld [vmem:[%s10524_s27 + $0x121] sm:$0xff]  ;;  %v10735_v48 = vld [vmem:[%s10524_s27 + $0x72] sm:$0xff] }
  0x28   : > { %9786 = vmatprep.mubr.msk.f32.mxu1 %vm223_vm1, %v10634_v27  ;;  %v8534_v49 = vld [vmem:[%s10524_s27 + $0xb2] sm:$0xff]  ;;  %v1196_v50 = vld [vmem:[%s10524_s27 + $0x3] sm:$0xff] }
  0x29   : > { %v10745_v51 = vld [vmem:[%s10524_s27 + $0xc2] sm:$0xff]  ;;  %v10749_v52 = vld [vmem:[%s10524_s27 + $0x13] sm:$0xff] }
  0x2a   : > { %9801 = vmatmul.mubr.msk.f32.gmra.mrb[10].mxu0 %vm223_vm1, %v10651_v30  ;;  %v10752_v53 = vld [vmem:[%s10524_s27 + $0xd2] sm:$0xff]  ;;  %v10755_v54 = vld [vmem:[%s10524_s27 + $0x23] sm:$0xff] }
  0x2b   : > { %9787 = vmatmul.mubr.msk.f32.gmra.mrb[10].mxu1 %vm223_vm1, %v10646_v29  ;;  %9819 = vmatprep.mubr.msk.f32.mxu0 %vm223_vm1, %v864_v32  ;;  %v10770_v57 = vld [vmem:[%s10524_s27 + $0xe2] sm:$0xff]  ;;  %v10774_v58 = vld [vmem:[%s10524_s27 + $0x33] sm:$0xff] }
  0x2c   : > { %9805 = vmatprep.mubr.msk.f32.mxu1 %vm223_vm1, %v8506_v31  ;;  %v10777_v59 = vld [vmem:[%s10524_s27 + $0xf2] sm:$0xff]  ;;  %v10783_v60 = vld [vmem:[%s10524_s27 + $0x43] sm:$0xff] }
  0x2d   : > { %v10794_v61 = vld [vmem:[%s10524_s27 + $0x102] sm:$0xff]  ;;  %v10799_v62 = vld [vmem:[%s10524_s27 + $0x53] sm:$0xff] }
  0x2e   : > { %9820 = vmatmul.mubr.msk.f32.vlgmr.msra.gmra.mrb[12].mxu0 %vm223_vm1, %v10665_v34  ;;  %v10802_v63 = vld [vmem:[%s10524_s27 + $0x112] sm:$0xff]  ;;  %v10805_v0 = vld [vmem:[%s10524_s27 + $0x63] sm:$0xff] }
  0x2f   : > { %9806 = vmatmul.mubr.msk.f32.vlgmr.msra.gmra.mrb[12].mxu1 %vm223_vm1, %v10661_v33  ;;  %9822 = vmatprep.mubr.msk.f32.mxu0 %vm223_vm1, %v10671_v36  ;;  %v10814_v1 = vld [vmem:[%s10524_s27 + $0x122] sm:$0xff]  ;;  %v10819_v2 = vld [vmem:[%s10524_s27 + $0x73] sm:$0xff] }
  0x30   : > { %9808 = vmatprep.mubr.msk.f32.mxu1 %vm223_vm1, %v10668_v35  ;;  %9832 = vmatpush3.msk.msra.mxu1 %vm248_vm0, %v8542_v19  ;;  %v8562_v3 = vld [vmem:[%s10524_s27 + $0x160] sm:$0xff]  ;;  %v8580_v9 = vld [vmem:[%s10524_s27 + $0x210] sm:$0xff] }
  0x31   : > { %9846 = vmatpush3.msk.msra.mxu0 %vm248_vm0, %v8552_v20  ;;  %9859 = vmatprep.subr.msk.mxu1 %vm248_vm0, %v8570_v37  ;;  %v10829_v10 = vld [vmem:[%s10524_s27 + $0x170] sm:$0xff]  ;;  %v10833_v13 = vld [vmem:[%s10524_s27 + $0x220] sm:$0xff]  ;;  %v8642_v20 = vld [vmem:[%s13383_s2 + $0x2c] sm:$0xf] }
  0x32   : > { %9873 = vmatprep.subr.msk.mxu0 %vm248_vm0, %v8588_v38  ;;  %9823 = vmatmul.mubr.msk.f32.gmra.mrb[14].mxu0 %vm223_vm1, %v10690_v40  ;;  %v10836_v14 = vld [vmem:[%s10524_s27 + $0x180] sm:$0xff]  ;;  %v10839_v19 = vld [vmem:[%s10524_s27 + $0x230] sm:$0xff] }
  0x33   : > { %9809 = vmatmul.mubr.msk.f32.gmra.mrb[14].mxu1 %vm223_vm1, %v10686_v39  ;;  %9825 = vmatprep.mubr.msk.f32.mxu0 %vm223_vm1, %v10699_v42  ;;  %v8660_v31 = vld [vmem:[%s13383_s2 + $0x30] sm:$0xf] }
  0x34   : > { %9811 = vmatprep.mubr.msk.f32.mxu1 %vm223_vm1, %v10693_v41  ;;  %v10854_v32 = vld [vmem:[%s10524_s27 + $0x190] sm:$0xff] }
  0x36   : > { %9826 = vmatmul.mubr.msk.f32.gmra.mrb[16].mxu0 %vm223_vm1, %v10715_v44 }
  0x37   : > { %9812 = vmatmul.mubr.msk.f32.gmra.mrb[16].mxu1 %vm223_vm1, %v10710_v43  ;;  %9828 = vmatprep.mubr.msk.f32.mxu0 %vm223_vm1, %v10721_v46 }
  0x38   : > { %9814 = vmatprep.mubr.msk.f32.mxu1 %vm223_vm1, %v10718_v45 }
  0x3a   : > { %9829 = vmatmul.mubr.msk.f32.gmra.mrb[18].mxu0 %vm223_vm1, %v10735_v48 }
  0x3b   : > { %9815 = vmatmul.mubr.msk.f32.gmra.mrb[18].mxu1 %vm223_vm1, %v10730_v47  ;;  %9847 = vmatprep.mubr.msk.f32.mxu0 %vm223_vm1, %v1196_v50  ;;  %v10878_v50 = vld [vmem:[%s10524_s27 + $0x1b0] sm:$0xff] }
  0x3c   : > { %9833 = vmatprep.mubr.msk.f32.mxu1 %vm223_vm1, %v8534_v49  ;;  %v10867_v49 = vld [vmem:[%s10524_s27 + $0x250] sm:$0xff]  ;;  %13423 = vst [vmem:[#allocation7_spill] sm:$0xff] %v10878_v50 }
  0x3d   : > { %13422 = vst [vmem:[#allocation6_spill] sm:$0xff] %v10867_v49 }
  0x3e   : > { %9848 = vmatmul.mubr.msk.f32.vlgmr.msra.gmra.mrb[20].mxu0 %vm223_vm1, %v10749_v52 }
  0x3f   : > { %9834 = vmatmul.mubr.msk.f32.vlgmr.msra.gmra.mrb[20].mxu1 %vm223_vm1, %v10745_v51  ;;  %9850 = vmatprep.mubr.msk.f32.mxu0 %vm223_vm1, %v10755_v54 }
  0x40   : > { %9836 = vmatprep.mubr.msk.f32.mxu1 %vm223_vm1, %v10752_v53  ;;  %9860 = vmatpush3.msk.msra.mxu1 %vm248_vm0, %v8570_v37  ;;  %v10858_v37 = vld [vmem:[%s10524_s27 + $0x240] sm:$0xff] }
  0x41   : > { %9874 = vmatpush3.msk.msra.mxu0 %vm248_vm0, %v8588_v38  ;;  %9887 = vmatprep.subr.msk.mxu1 %vm248_vm0, %v8606_v55  ;;  %13420 = vst [vmem:[#allocation4_spill] sm:$0xff] %v10858_v37  ;;  %v10861_v38 = vld [vmem:[%s10524_s27 + $0x1a0] sm:$0xff] }
  0x42   : > { %9901 = vmatprep.subr.msk.mxu0 %vm248_vm0, %v8624_v56  ;;  %9851 = vmatmul.mubr.msk.f32.gmra.mrb[22].mxu0 %vm223_vm1, %v10774_v58  ;;  %13421 = vst [vmem:[#allocation5_spill] sm:$0xff] %v10861_v38 }
  0x43   : > { %9837 = vmatmul.mubr.msk.f32.gmra.mrb[22].mxu1 %vm223_vm1, %v10770_v57  ;;  %9853 = vmatprep.mubr.msk.f32.mxu0 %vm223_vm1, %v10783_v60 }
  0x44   : > { %9839 = vmatprep.mubr.msk.f32.mxu1 %vm223_vm1, %v10777_v59 }
  0x46   : > { %9854 = vmatmul.mubr.msk.f32.gmra.mrb[24].mxu0 %vm223_vm1, %v10799_v62 }
  0x47   : > { %9840 = vmatmul.mubr.msk.f32.gmra.mrb[24].mxu1 %vm223_vm1, %v10794_v61  ;;  %9856 = vmatprep.mubr.msk.f32.mxu0 %vm223_vm1, %v10805_v0 }
  0x48   : > { %9842 = vmatprep.mubr.msk.f32.mxu1 %vm223_vm1, %v10802_v63 }
  0x4a   : > { %9857 = vmatmul.mubr.msk.f32.gmra.mrb[26].mxu0 %vm223_vm1, %v10819_v2 }
  0x4b   : > { %9843 = vmatmul.mubr.msk.f32.gmra.mrb[26].mxu1 %vm223_vm1, %v10814_v1  ;;  %9875 = vmatprep.mubr.msk.f32.mxu0 %vm223_vm1, %v8580_v9  ;;  %v10898_v9 = vld [vmem:[%s10524_s27 + $0x1d0] sm:$0xff] }
  0x4c   : > { %9861 = vmatprep.mubr.msk.f32.mxu1 %vm223_vm1, %v8562_v3  ;;  %v10889_v3 = vld [vmem:[%s10524_s27 + $0x270] sm:$0xff]  ;;  %13427 = vst [vmem:[#allocation11_spill] sm:$0xff] %v10898_v9 }
  0x4d   : > { %13426 = vst [vmem:[#allocation10_spill] sm:$0xff] %v10889_v3 }
  0x4e   : > { %9876 = vmatmul.mubr.msk.f32.vlgmr.msra.gmra.mrb[28].mxu0 %vm223_vm1, %v10833_v13 }
  0x4f   : > { %9862 = vmatmul.mubr.msk.f32.vlgmr.msra.gmra.mrb[28].mxu1 %vm223_vm1, %v10829_v10  ;;  %9878 = vmatprep.mubr.msk.f32.mxu0 %vm223_vm1, %v10839_v19 }
  0x50   : > { %9864 = vmatprep.mubr.msk.f32.mxu1 %vm223_vm1, %v10836_v14  ;;  %9888 = vmatpush3.msk.msra.mxu1 %vm248_vm0, %v8606_v55  ;;  %v10883_v55 = vld [vmem:[%s10524_s27 + $0x260] sm:$0xff] }
  0x51   : > { %9902 = vmatpush3.msk.msra.mxu0 %vm248_vm0, %v8624_v56  ;;  %9915 = vmatprep.subr.msk.mxu1 %vm248_vm0, %v8642_v20  ;;  %13424 = vst [vmem:[#allocation8_spill] sm:$0xff] %v10883_v55  ;;  %v10886_v56 = vld [vmem:[%s10524_s27 + $0x1c0] sm:$0xff] }
  0x52   : > { %9929 = vmatprep.subr.msk.mxu0 %vm248_vm0, %v8660_v31  ;;  %9879 = vmatmul.mubr.msk.f32.gmra.mrb[30].mxu0 %vm223_vm1, %v10858_v37  ;;  %13425 = vst [vmem:[#allocation9_spill] sm:$0xff] %v10886_v56  ;;  %v8616_v37 = vld [vmem:[%s10524_s27 + $0x211] sm:$0xff] }
  0x53   : > { %9865 = vmatmul.mubr.msk.f32.gmra.mrb[30].mxu1 %vm223_vm1, %v10854_v32  ;;  %9881 = vmatprep.mubr.msk.f32.mxu0 %vm223_vm1, %v10867_v49  ;;  %v10903_v49 = vld [vmem:[%s10524_s27 + $0x280] sm:$0xff] }
  0x54   : > { %9867 = vmatprep.mubr.msk.f32.mxu1 %vm223_vm1, %v10861_v38  ;;  %13428 = vst [vmem:[#allocation12_spill] sm:$0xff] %v10903_v49  ;;  %v8598_v38 = vld [vmem:[%s10524_s27 + $0x161] sm:$0xff] }
  0x56   : > { %9882 = vmatmul.mubr.msk.f32.gmra.mrb[32].mxu0 %vm223_vm1, %v10883_v55  ;;  %v10920_v55 = vld [vmem:[%s10524_s27 + $0x181] sm:$0xff] }
  0x57   : > { %9868 = vmatmul.mubr.msk.f32.gmra.mrb[32].mxu1 %vm223_vm1, %v10878_v50  ;;  %9884 = vmatprep.mubr.msk.f32.mxu0 %vm223_vm1, %v10889_v3  ;;  %v10917_v3 = vld [vmem:[%s10524_s27 + $0x221] sm:$0xff]  ;;  %13431 = vst [vmem:[#allocation15_spill] sm:$0xff] %v10920_v55  ;;  %v10923_v50 = vld [vmem:[%s10524_s27 + $0x231] sm:$0xff] }
  0x58   : > { %9870 = vmatprep.mubr.msk.f32.mxu1 %vm223_vm1, %v10886_v56  ;;  %v10913_v56 = vld [vmem:[%s10524_s27 + $0x171] sm:$0xff]  ;;  %13430 = vst [vmem:[#allocation14_spill] sm:$0xff] %v10917_v3  ;;  %13432 = vst [vmem:[#allocation16_spill] sm:$0xff] %v10923_v50 }
  0x59   : > { %13429 = vst [vmem:[#allocation13_spill] sm:$0xff] %v10913_v56 }
  0x5a   : > { %9885 = vmatmul.mubr.msk.f32.gmra.mrb[34].mxu0 %vm223_vm1, %v10903_v49  ;;  %v10938_v49 = vld [vmem:[%s10524_s27 + $0x191] sm:$0xff] }
  0x5b   : > { %9871 = vmatmul.mubr.msk.f32.gmra.mrb[34].mxu1 %vm223_vm1, %v10898_v9  ;;  %9903 = vmatprep.mubr.msk.f32.mxu0 %vm223_vm1, %v8616_v37  ;;  %v8696_v37 = vld [vmem:[%s13383_s2 + $0x38] sm:$0xf]  ;;  %13433 = vst [vmem:[#allocation17_spill] sm:$0xff] %v10938_v49 }
  0x5c   : > { %9889 = vmatprep.mubr.msk.f32.mxu1 %vm223_vm1, %v8598_v38  ;;  %v8678_v38 = vld [vmem:[%s13383_s2 + $0x34] sm:$0xf] }
  0x5d   : > { %v10951_v9 = vld [vmem:[%s10524_s27 + $0x251] sm:$0xff] }
  0x5e   : > { %9904 = vmatmul.mubr.msk.f32.vlgmr.msra.gmra.mrb[36].mxu0 %vm223_vm1, %v10917_v3  ;;  %v10942_v3 = vld [vmem:[%s10524_s27 + $0x241] sm:$0xff]  ;;  %13436 = vst [vmem:[#allocation20_spill] sm:$0xff] %v10951_v9 }
  0x5f   : > { %9890 = vmatmul.mubr.msk.f32.vlgmr.msra.gmra.mrb[36].mxu1 %vm223_vm1, %v10913_v56  ;;  %13434 = vst [vmem:[#allocation18_spill] sm:$0xff] %v10942_v3  ;;  %v10945_v56 = vld [vmem:[%s10524_s27 + $0x1a1] sm:$0xff]  ;;  %9906 = vmatprep.mubr.msk.f32.mxu0 %vm223_vm1, %v10923_v50 }
  0x60   : > { %9892 = vmatprep.mubr.msk.f32.mxu1 %vm223_vm1, %v10920_v55  ;;  %9916 = vmatpush3.msk.msra.mxu1 %vm248_vm0, %v8642_v20  ;;  %13435 = vst [vmem:[#allocation19_spill] sm:$0xff] %v10945_v56  ;;  %v10962_v20 = vld [vmem:[%s10524_s27 + $0x1b1] sm:$0xff]  ;;  %v10970_v50 = vld [vmem:[%s10524_s27 + $0x1c1] sm:$0xff] }
  0x61   : > { %9930 = vmatpush3.msk.msra.mxu0 %vm248_vm0, %v8660_v31  ;;  %9943 = vmatprep.subr.msk.mxu1 %vm248_vm0, %v8678_v38  ;;  %13437 = vst [vmem:[#allocation21_spill] sm:$0xff] %v10962_v20  ;;  %v10967_v31 = vld [vmem:[%s10524_s27 + $0x261] sm:$0xff]  ;;  %13439 = vst [vmem:[#allocation23_spill] sm:$0xff] %v10970_v50  ;;  %v10973_v55 = vld [vmem:[%s10524_s27 + $0x271] sm:$0xff] }
  0x62   : > { %9957 = vmatprep.subr.msk.mxu0 %vm248_vm0, %v8696_v37  ;;  %9907 = vmatmul.mubr.msk.f32.gmra.mrb[38].mxu0 %vm223_vm1, %v10942_v3  ;;  %13438 = vst [vmem:[#allocation22_spill] sm:$0xff] %v10967_v31  ;;  %13440 = vst [vmem:[#allocation24_spill] sm:$0xff] %v10973_v55  ;;  %v8634_v3 = vld [vmem:[%s10524_s27 + $0x162] sm:$0xff] }
  0x63   : > { %9893 = vmatmul.mubr.msk.f32.gmra.mrb[38].mxu1 %vm223_vm1, %v10938_v49  ;;  %9909 = vmatprep.mubr.msk.f32.mxu0 %vm223_vm1, %v10951_v9  ;;  %v10987_v9 = vld [vmem:[%s10524_s27 + $0x281] sm:$0xff]  ;;  %v8652_v49 = vld [vmem:[%s10524_s27 + $0x212] sm:$0xff] }
  0x64   : > { %9895 = vmatprep.mubr.msk.f32.mxu1 %vm223_vm1, %v10945_v56  ;;  %v10982_v56 = vld [vmem:[%s10524_s27 + $0x1d1] sm:$0xff]  ;;  %13442 = vst [vmem:[#allocation26_spill] sm:$0xff] %v10987_v9 }
  0x65   : > { %13441 = vst [vmem:[#allocation25_spill] sm:$0xff] %v10982_v56 }
  0x66   : > { %9910 = vmatmul.mubr.msk.f32.gmra.mrb[40].mxu0 %vm223_vm1, %v10967_v31  ;;  %v11004_v31 = vld [vmem:[%s10524_s27 + $0x182] sm:$0xff] }
  0x67   : > { %9896 = vmatmul.mubr.msk.f32.gmra.mrb[40].mxu1 %vm223_vm1, %v10962_v20  ;;  %9912 = vmatprep.mubr.msk.f32.mxu0 %vm223_vm1, %v10973_v55  ;;  %v11001_v55 = vld [vmem:[%s10524_s27 + $0x222] sm:$0xff]  ;;  %13445 = vst [vmem:[#allocation29_spill] sm:$0xff] %v11004_v31  ;;  %v11007_v20 = vld [vmem:[%s10524_s27 + $0x232] sm:$0xff] }
  0x68   : > { %9898 = vmatprep.mubr.msk.f32.mxu1 %vm223_vm1, %v10970_v50  ;;  %v10997_v50 = vld [vmem:[%s10524_s27 + $0x172] sm:$0xff]  ;;  %13444 = vst [vmem:[#allocation28_spill] sm:$0xff] %v11001_v55  ;;  %13446 = vst [vmem:[#allocation30_spill] sm:$0xff] %v11007_v20 }
  0x69   : > { %13443 = vst [vmem:[#allocation27_spill] sm:$0xff] %v10997_v50 }
  0x6a   : > { %9913 = vmatmul.mubr.msk.f32.gmra.mrb[42].mxu0 %vm223_vm1, %v10987_v9  ;;  %v11022_v9 = vld [vmem:[%s10524_s27 + $0x192] sm:$0xff] }
  0x6b   : > { %9899 = vmatmul.mubr.msk.f32.gmra.mrb[42].mxu1 %vm223_vm1, %v10982_v56  ;;  %9931 = vmatprep.mubr.msk.f32.mxu0 %vm223_vm1, %v8652_v49  ;;  %v8732_v49 = vld [vmem:[%s13383_s2 + $0x40] sm:$0xf]  ;;  %v11035_v56 = vld [vmem:[%s10524_s27 + $0x252] sm:$0xff] }
  0x6c   : > { %9917 = vmatprep.mubr.msk.f32.mxu1 %vm223_vm1, %v8634_v3  ;;  %v8714_v3 = vld [vmem:[%s13383_s2 + $0x3c] sm:$0xf]  ;;  %13449 = vst [vmem:[#allocation33_spill] sm:$0xff] %v11035_v56 }
  0x6e   : > { %9932 = vmatmul.mubr.msk.f32.vlgmr.msra.gmra.mrb[44].mxu0 %vm223_vm1, %v11001_v55  ;;  %v11026_v55 = vld [vmem:[%s10524_s27 + $0x242] sm:$0xff] }
  0x6f   : > { %9918 = vmatmul.mubr.msk.f32.vlgmr.msra.gmra.mrb[44].mxu1 %vm223_vm1, %v10997_v50  ;;  %13447 = vst [vmem:[#allocation31_spill] sm:$0xff] %v11026_v55  ;;  %v11029_v50 = vld [vmem:[%s10524_s27 + $0x1a2] sm:$0xff]  ;;  %9934 = vmatprep.mubr.msk.f32.mxu0 %vm223_vm1, %v11007_v20 }
  0x70   : > { %9920 = vmatprep.mubr.msk.f32.mxu1 %vm223_vm1, %v11004_v31  ;;  %9944 = vmatpush3.msk.msra.mxu1 %vm248_vm0, %v8678_v38  ;;  %13448 = vst [vmem:[#allocation32_spill] sm:$0xff] %v11029_v50  ;;  %v11046_v38 = vld [vmem:[%s10524_s27 + $0x1b2] sm:$0xff]  ;;  %v11054_v20 = vld [vmem:[%s10524_s27 + $0x1c2] sm:$0xff] }
  0x71   : > { %9958 = vmatpush3.msk.msra.mxu0 %vm248_vm0, %v8696_v37  ;;  %9971 = vmatprep.subr.msk.mxu1 %vm248_vm0, %v8714_v3  ;;  %v11051_v37 = vld [vmem:[%s10524_s27 + $0x262] sm:$0xff]  ;;  %13451 = vst [vmem:[#allocation35_spill] sm:$0xff] %v11054_v20  ;;  %v11057_v31 = vld [vmem:[%s10524_s27 + $0x272] sm:$0xff] }
  0x72   : > { %9985 = vmatprep.subr.msk.mxu0 %vm248_vm0, %v8732_v49  ;;  %9935 = vmatmul.mubr.msk.f32.gmra.mrb[46].mxu0 %vm223_vm1, %v11026_v55  ;;  %13450 = vst [vmem:[#allocation34_spill] sm:$0xff] %v11051_v37  ;;  %v8670_v55 = vld [vmem:[%s10524_s27 + $0x163] sm:$0xff] }
  0x73   : > { %9921 = vmatmul.mubr.msk.f32.gmra.mrb[46].mxu1 %vm223_vm1, %v11022_v9  ;;  %9937 = vmatprep.mubr.msk.f32.mxu0 %vm223_vm1, %v11035_v56  ;;  %v11071_v56 = vld [vmem:[%s10524_s27 + $0x282] sm:$0xff] }
  0x74   : > { %9923 = vmatprep.mubr.msk.f32.mxu1 %vm223_vm1, %v11029_v50  ;;  %v11066_v50 = vld [vmem:[%s10524_s27 + $0x1d2] sm:$0xff]  ;;  %13452 = vst [vmem:[#allocation36_spill] sm:$0xff] %v11071_v56 }
  0x76   : > { %9938 = vmatmul.mubr.msk.f32.gmra.mrb[48].mxu0 %vm223_vm1, %v11051_v37  ;;  %v11080_v37 = vld [vmem:[%s10524_s27 + $0x173] sm:$0xff] }
  0x77   : > { %9924 = vmatmul.mubr.msk.f32.gmra.mrb[48].mxu1 %vm223_vm1, %v11046_v38  ;;  %9940 = vmatprep.mubr.msk.f32.mxu0 %vm223_vm1, %v11057_v31  ;;  %13453 = vst [vmem:[#allocation37_spill] sm:$0xff] %v11080_v37 }
  0x78   : > { %9926 = vmatprep.mubr.msk.f32.mxu1 %vm223_vm1, %v11054_v20  ;;  %v11085_v20 = vld [vmem:[%s10524_s27 + $0x183] sm:$0xff] }
  0x7a   : > { %9941 = vmatmul.mubr.msk.f32.gmra.mrb[50].mxu0 %vm223_vm1, %v11071_v56  ;;  %v8750_v56 = vld [vmem:[%s13383_s2 + $0x44] sm:$0xf] }
  0x7b   : > { %9927 = vmatmul.mubr.msk.f32.gmra.mrb[50].mxu1 %vm223_vm1, %v11066_v50  ;;  %9959 = vmatprep.mubr.msk.f32.mxu0 %vm223_vm1, %v10531_v5  ;;  %v11100_v5 = vld [vmem:[%s10524_s27 + $0x193] sm:$0xff] }
  0x7c   : > { %9945 = vmatprep.mubr.msk.f32.mxu1 %vm223_vm1, %v8670_v55  ;;  %v8768_v55 = vld [vmem:[%s13383_s2 + $0x48] sm:$0xf] }
  0x7e   : > { %9960 = vmatmul.mubr.msk.f32.vlgmr.msra.gmra.mrb[52].mxu0 %vm223_vm1, %v10547_v8  ;;  %v11118_v8 = vld [vmem:[%s10524_s27 + $0x1b3] sm:$0xff] }
  0x7f   : > { %9946 = vmatmul.mubr.msk.f32.vlgmr.msra.gmra.mrb[52].mxu1 %vm223_vm1, %v11080_v37  ;;  %v11104_v37 = vld [vmem:[%s10524_s27 + $0x1a3] sm:$0xff]  ;;  %9962 = vmatprep.mubr.msk.f32.mxu0 %vm223_vm1, %v10562_v12 }
  0x80   : > { %9948 = vmatprep.mubr.msk.f32.mxu1 %vm223_vm1, %v11085_v20  ;;  %9972 = vmatpush3.msk.msra.mxu1 %vm248_vm0, %v8714_v3  ;;  %v11123_v12 = vld [vmem:[%s10524_s27 + $0x1c3] sm:$0xff] }
  0x81   : > { %9986 = vmatpush3.msk.msra.mxu0 %vm248_vm0, %v8732_v49  ;;  %9999 = vmatprep.subr.msk.mxu1 %vm248_vm0, %v8750_v56  ;;  %v11137_v3 = vld [vmem:[%s10524_s27 + $0x80] sm:$0xff]  ;;  %v13483_v49 = vld [vmem:[#allocation33_spill] sm:$0xff] }
  0x82   : > { %10013 = vmatprep.subr.msk.mxu0 %vm248_vm0, %v8768_v55  ;;  %9963 = vmatmul.mubr.msk.f32.gmra.mrb[54].mxu0 %vm223_vm1, %v10528_v4  ;;  %v11132_v4 = vld [vmem:[%s10524_s27 + $0x1d3] sm:$0xff] }
  0x83   : > { %9949 = vmatmul.mubr.msk.f32.gmra.mrb[54].mxu1 %vm223_vm1, %v11100_v5  ;;  %9965 = vmatprep.mubr.msk.f32.mxu0 %vm223_vm1, %v10537_v6  ;;  %v8786_v6 = vld [vmem:[%s13383_s2 + $0x4c] sm:$0xf] }
  0x84   : > { %9951 = vmatprep.mubr.msk.f32.mxu1 %vm223_vm1, %v11104_v37 }
  0x86   : > { %9966 = vmatmul.mubr.msk.f32.gmra.mrb[56].mxu0 %vm223_vm1, %v10540_v7  ;;  %v8804_v7 = vld [vmem:[%s13383_s2 + $0x50] sm:$0xf] }
  0x87   : > { %9952 = vmatmul.mubr.msk.f32.gmra.mrb[56].mxu1 %vm223_vm1, %v11118_v8  ;;  %9968 = vmatprep.mubr.msk.f32.mxu0 %vm223_vm1, %v10559_v11  ;;  %v8713_v11 = vld [vmem:[%s10524_s27 + $0x130] sm:$0xff] }
  0x88   : > { %9954 = vmatprep.mubr.msk.f32.mxu1 %vm223_vm1, %v11123_v12 }
  0x8a   : > { %9969 = vmatmul.mubr.msk.f32.gmra.mrb[58].mxu0 %vm223_vm1, %v11137_v3 }
  0x8b   : > { %9955 = vmatmul.mubr.msk.f32.gmra.mrb[58].mxu1 %vm223_vm1, %v11132_v4  ;;  %9987 = vmatprep.mubr.msk.f32.mxu0 %vm223_vm1, %v10581_v16  ;;  %v8822_v16 = vld [vmem:[%s13383_s2 + $0x54] sm:$0xf] }
  0x8c   : > { %9973 = vmatprep.mubr.msk.f32.mxu1 %vm223_vm1, %v10577_v15  ;;  %v8731_v15 = vld [vmem:[%s10524_s27 + $0x81] sm:$0xff] }
  0x8e   : > { %9988 = vmatmul.mubr.msk.f32.vlgmr.msra.gmra.mrb[60].mxu0 %vm223_vm1, %v10587_v18  ;;  %v8749_v18 = vld [vmem:[%s10524_s27 + $0x131] sm:$0xff] }
  0x8f   : > { %9974 = vmatmul.mubr.msk.f32.vlgmr.msra.gmra.mrb[60].mxu1 %vm223_vm1, %v10584_v17  ;;  %9990 = vmatprep.mubr.msk.f32.mxu0 %vm223_vm1, %v10606_v22  ;;  %v8840_v17 = vld [vmem:[%s13383_s2 + $0x58] sm:$0xf]  ;;  %v8858_v22 = vld [vmem:[%s13383_s2 + $0x5c] sm:$0xf] }
  0x90   : > { %9976 = vmatprep.mubr.msk.f32.mxu1 %vm223_vm1, %v10602_v21  ;;  %10000 = vmatpush3.msk.msra.mxu1 %vm248_vm0, %v8750_v56  ;;  %v8767_v21 = vld [vmem:[%s10524_s27 + $0x82] sm:$0xff] }
  0x91   : > { %10014 = vmatpush3.msk.msra.mxu0 %vm248_vm0, %v8768_v55  ;;  %10027 = vmatprep.subr.msk.mxu1 %vm248_vm0, %v8786_v6  ;;  %v13482_v56 = vld [vmem:[#allocation32_spill] sm:$0xff]  ;;  %v13485_v55 = vld [vmem:[#allocation35_spill] sm:$0xff] }
  0x92   : > { %10041 = vmatprep.subr.msk.mxu0 %vm248_vm0, %v8804_v7  ;;  %9991 = vmatmul.mubr.msk.f32.gmra.mrb[62].mxu0 %vm223_vm1, %v10615_v24  ;;  %v8785_v24 = vld [vmem:[%s10524_s27 + $0x132] sm:$0xff] }
  0x93   : > { %9977 = vmatmul.mubr.msk.f32.gmra.mrb[62].mxu1 %vm223_vm1, %v10609_v23  ;;  %9993 = vmatprep.mubr.msk.f32.mxu0 %vm223_vm1, %v10631_v26  ;;  %v8876_v23 = vld [vmem:[%s13383_s2 + $0x60] sm:$0xf]  ;;  %v8894_v26 = vld [vmem:[%s13383_s2 + $0x64] sm:$0xf] }
  0x94   : > { %9979 = vmatprep.mubr.msk.f32.mxu1 %vm223_vm1, %v10626_v25  ;;  %v8803_v25 = vld [vmem:[%s10524_s27 + $0x83] sm:$0xff] }
  0x96   : > { %9994 = vmatmul.mubr.msk.f32.gmra.mrb[64].mxu0 %vm223_vm1, %v10637_v28  ;;  %v13454_v28 = vld [vmem:[#allocation4_spill] sm:$0xff] }
  0x97   : > { %9980 = vmatmul.mubr.msk.f32.gmra.mrb[64].mxu1 %vm223_vm1, %v10634_v27  ;;  %9996 = vmatprep.mubr.msk.f32.mxu0 %vm223_vm1, %v10651_v30  ;;  %v8912_v27 = vld [vmem:[%s13383_s2 + $0x68] sm:$0xf]  ;;  %v13456_v30 = vld [vmem:[#allocation6_spill] sm:$0xff] }
  0x98   : > { %9982 = vmatprep.mubr.msk.f32.mxu1 %vm223_vm1, %v10646_v29  ;;  %v13455_v29 = vld [vmem:[#allocation5_spill] sm:$0xff] }
  0x9a   : > { %9997 = vmatmul.mubr.msk.f32.gmra.mrb[66].mxu0 %vm223_vm1, %v8731_v15  ;;  %v8940_v15 = vld [vmem:[%s10524_s27 + $0x20] sm:$0xff] }
  0x9b   : > { %9983 = vmatmul.mubr.msk.f32.gmra.mrb[66].mxu1 %vm223_vm1, %v8713_v11  ;;  %10015 = vmatprep.mubr.msk.f32.mxu0 %vm223_vm1, %v10665_v34  ;;  %v13458_v34 = vld [vmem:[#allocation8_spill] sm:$0xff]  ;;  %v8911_v11 = vld [vmem:[%s10524_s27 + $0x292] sm:$0xff] }
  0x9c   : > { %10001 = vmatprep.mubr.msk.f32.mxu1 %vm223_vm1, %v10661_v33  ;;  %v13457_v33 = vld [vmem:[#allocation7_spill] sm:$0xff] }
  0x9e   : > { %10016 = vmatmul.mubr.msk.f32.vlgmr.msra.gmra.mrb[68].mxu0 %vm223_vm1, %v10671_v36  ;;  %v13460_v36 = vld [vmem:[#allocation10_spill] sm:$0xff] }
  0x9f   : > { %10002 = vmatmul.mubr.msk.f32.vlgmr.msra.gmra.mrb[68].mxu1 %vm223_vm1, %v10668_v35  ;;  %10018 = vmatprep.mubr.msk.f32.mxu0 %vm223_vm1, %v10690_v40  ;;  %v13459_v35 = vld [vmem:[#allocation9_spill] sm:$0xff]  ;;  %v8821_v40 = vld [vmem:[%s10524_s27 + $0x1e0] sm:$0xff] }
  0xa0   : > { %10004 = vmatprep.mubr.msk.f32.mxu1 %vm223_vm1, %v10686_v39  ;;  %10028 = vmatpush3.msk.msra.mxu1 %vm248_vm0, %v8786_v6  ;;  %v13461_v39 = vld [vmem:[#allocation11_spill] sm:$0xff]  ;;  %v8893_v6 = vld [vmem:[%s10524_s27 + $0x1e2] sm:$0xff] }
  0xa1   : > { %10042 = vmatpush3.msk.msra.mxu0 %vm248_vm0, %v8804_v7  ;;  %10055 = vmatprep.subr.msk.mxu1 %vm248_vm0, %v8822_v16  ;;  %v13486_v7 = vld [vmem:[#allocation36_spill] sm:$0xff] }
  0xa2   : > { %10069 = vmatprep.subr.msk.mxu0 %vm248_vm0, %v8840_v17  ;;  %10019 = vmatmul.mubr.msk.f32.gmra.mrb[70].mxu0 %vm223_vm1, %v10699_v42  ;;  %v8839_v42 = vld [vmem:[%s10524_s27 + $0x290] sm:$0xff] }
  0xa3   : > { %10005 = vmatmul.mubr.msk.f32.gmra.mrb[70].mxu1 %vm223_vm1, %v10693_v41  ;;  %10021 = vmatprep.mubr.msk.f32.mxu0 %vm223_vm1, %v10715_v44  ;;  %v13462_v41 = vld [vmem:[#allocation12_spill] sm:$0xff]  ;;  %v13464_v44 = vld [vmem:[#allocation14_spill] sm:$0xff] }
  0xa4   : > { %10007 = vmatprep.mubr.msk.f32.mxu1 %vm223_vm1, %v10710_v43  ;;  %v13463_v43 = vld [vmem:[#allocation13_spill] sm:$0xff] }
  0xa6   : > { %10022 = vmatmul.mubr.msk.f32.gmra.mrb[72].mxu0 %vm223_vm1, %v10721_v46  ;;  %v13466_v46 = vld [vmem:[#allocation16_spill] sm:$0xff] }
  0xa7   : > { %10008 = vmatmul.mubr.msk.f32.gmra.mrb[72].mxu1 %vm223_vm1, %v10718_v45  ;;  %10024 = vmatprep.mubr.msk.f32.mxu0 %vm223_vm1, %v10735_v48  ;;  %v13465_v45 = vld [vmem:[#allocation15_spill] sm:$0xff]  ;;  %v8948_v48 = vld [vmem:[%s13383_s2 + $0x70] sm:$0xf] }
  0xa8   : > { %10010 = vmatprep.mubr.msk.f32.mxu1 %vm223_vm1, %v10730_v47  ;;  %v8930_v47 = vld [vmem:[%s13383_s2 + $0x6c] sm:$0xf] }
  0xaa   : > { %10025 = vmatmul.mubr.msk.f32.gmra.mrb[74].mxu0 %vm223_vm1, %v8767_v21 }
  0xab   : > { %10011 = vmatmul.mubr.msk.f32.gmra.mrb[74].mxu1 %vm223_vm1, %v8749_v18  ;;  %10043 = vmatprep.mubr.msk.f32.mxu0 %vm223_vm1, %v10749_v52  ;;  %v13468_v52 = vld [vmem:[#allocation18_spill] sm:$0xff] }
  0xac   : > { %10029 = vmatprep.mubr.msk.f32.mxu1 %vm223_vm1, %v10745_v51  ;;  %v13467_v51 = vld [vmem:[#allocation17_spill] sm:$0xff] }
  0xae   : > { %10044 = vmatmul.mubr.msk.f32.vlgmr.msra.gmra.mrb[76].mxu0 %vm223_vm1, %v10755_v54  ;;  %v13470_v54 = vld [vmem:[#allocation20_spill] sm:$0xff] }
  0xaf   : > { %10030 = vmatmul.mubr.msk.f32.vlgmr.msra.gmra.mrb[76].mxu1 %vm223_vm1, %v10752_v53  ;;  %10046 = vmatprep.mubr.msk.f32.mxu0 %vm223_vm1, %v10774_v58  ;;  %v13469_v53 = vld [vmem:[#allocation19_spill] sm:$0xff]  ;;  %v13472_v58 = vld [vmem:[#allocation22_spill] sm:$0xff] }
  0xb0   : > { %10032 = vmatprep.mubr.msk.f32.mxu1 %vm223_vm1, %v10770_v57  ;;  %10056 = vmatpush3.msk.msra.mxu1 %vm248_vm0, %v8822_v16  ;;  %v13471_v57 = vld [vmem:[#allocation21_spill] sm:$0xff] }
  0xb1   : > { %10070 = vmatpush3.msk.msra.mxu0 %vm248_vm0, %v8840_v17  ;;  %10083 = vmatprep.subr.msk.mxu1 %vm248_vm0, %v8858_v22 }
  0xb2   : > { %10097 = vmatprep.subr.msk.mxu0 %vm248_vm0, %v8876_v23  ;;  %10047 = vmatmul.mubr.msk.f32.gmra.mrb[78].mxu0 %vm223_vm1, %v10783_v60  ;;  %v13474_v60 = vld [vmem:[#allocation24_spill] sm:$0xff] }
  0xb3   : > { %10033 = vmatmul.mubr.msk.f32.gmra.mrb[78].mxu1 %vm223_vm1, %v10777_v59  ;;  %10049 = vmatprep.mubr.msk.f32.mxu0 %vm223_vm1, %v10799_v62  ;;  %v13473_v59 = vld [vmem:[#allocation23_spill] sm:$0xff]  ;;  %v8857_v62 = vld [vmem:[%s10524_s27 + $0x1e1] sm:$0xff] }
  0xb4   : > { %10035 = vmatprep.mubr.msk.f32.mxu1 %vm223_vm1, %v10794_v61  ;;  %v13475_v61 = vld [vmem:[#allocation25_spill] sm:$0xff] }
  0xb6   : > { %10050 = vmatmul.mubr.msk.f32.gmra.mrb[80].mxu0 %vm223_vm1, %v10805_v0  ;;  %v8875_v0 = vld [vmem:[%s10524_s27 + $0x291] sm:$0xff] }
  0xb7   : > { %10036 = vmatmul.mubr.msk.f32.gmra.mrb[80].mxu1 %vm223_vm1, %v10802_v63  ;;  %10052 = vmatprep.mubr.msk.f32.mxu0 %vm223_vm1, %v10819_v2  ;;  %v13476_v63 = vld [vmem:[#allocation26_spill] sm:$0xff]  ;;  %v13478_v2 = vld [vmem:[#allocation28_spill] sm:$0xff] }
  0xb8   : > { %10038 = vmatprep.mubr.msk.f32.mxu1 %vm223_vm1, %v10814_v1  ;;  %v13477_v1 = vld [vmem:[#allocation27_spill] sm:$0xff] }
  0xba   : > { %10053 = vmatmul.mubr.msk.f32.gmra.mrb[82].mxu0 %vm223_vm1, %v8803_v25 }
  0xbb   : > { %10039 = vmatmul.mubr.msk.f32.gmra.mrb[82].mxu1 %vm223_vm1, %v8785_v24  ;;  %10071 = vmatprep.mubr.msk.f32.mxu0 %vm223_vm1, %v10833_v13  ;;  %v13480_v13 = vld [vmem:[#allocation30_spill] sm:$0xff] }
  0xbc   : > { %10057 = vmatprep.mubr.msk.f32.mxu1 %vm223_vm1, %v10829_v10  ;;  %v13479_v10 = vld [vmem:[#allocation29_spill] sm:$0xff] }
  0xbe   : > { %10072 = vmatmul.mubr.msk.f32.vlgmr.msra.gmra.mrb[84].mxu0 %vm223_vm1, %v10839_v19  ;;  %v8984_v19 = vld [vmem:[%s13383_s2 + $0x78] sm:$0xf] }
  0xbf   : > { %10058 = vmatmul.mubr.msk.f32.vlgmr.msra.gmra.mrb[84].mxu1 %vm223_vm1, %v10836_v14  ;;  %10074 = vmatprep.mubr.msk.f32.mxu0 %vm223_vm1, %v13454_v28  ;;  %v8966_v14 = vld [vmem:[%s13383_s2 + $0x74] sm:$0xf]  ;;  %v8944_v28 = vld [vmem:[%s10524_s27 + $0x60] sm:$0xff] }
  0xc0   : > { %10060 = vmatprep.mubr.msk.f32.mxu1 %vm223_vm1, %v10854_v32  ;;  %10084 = vmatpush3.msk.msra.mxu1 %vm248_vm0, %v8858_v22  ;;  %v13481_v32 = vld [vmem:[#allocation31_spill] sm:$0xff] }
  0xc1   : > { %10098 = vmatpush3.msk.msra.mxu0 %vm248_vm0, %v8876_v23  ;;  %10111 = vmatprep.subr.msk.mxu1 %vm248_vm0, %v8894_v26  ;;  %v8942_v23 = vld [vmem:[%s10524_s27 + $0x40] sm:$0xff] }
  0xc2   : > { %10125 = vmatprep.subr.msk.mxu0 %vm248_vm0, %v8912_v27  ;;  %10075 = vmatmul.mubr.msk.f32.gmra.mrb[86].mxu0 %vm223_vm1, %v13456_v30 }
  0xc3   : > { %10061 = vmatmul.mubr.msk.f32.gmra.mrb[86].mxu1 %vm223_vm1, %v13455_v29  ;;  %10077 = vmatprep.mubr.msk.f32.mxu0 %vm223_vm1, %v13458_v34 }
  0xc4   : > { %10063 = vmatprep.mubr.msk.f32.mxu1 %vm223_vm1, %v13457_v33 }
  0xc6   : > { %10078 = vmatmul.mubr.msk.f32.gmra.mrb[88].mxu0 %vm223_vm1, %v13460_v36 }
  0xc7   : > { %10064 = vmatmul.mubr.msk.f32.gmra.mrb[88].mxu1 %vm223_vm1, %v13459_v35  ;;  %10080 = vmatprep.mubr.msk.f32.mxu0 %vm223_vm1, %v13462_v41 }
  0xc8   : > { %10066 = vmatprep.mubr.msk.f32.mxu1 %vm223_vm1, %v13461_v39 }
  0xca   : > { %10081 = vmatmul.mubr.msk.f32.gmra.mrb[90].mxu0 %vm223_vm1, %v8839_v42 }
  0xcb   : > { %10067 = vmatmul.mubr.msk.f32.gmra.mrb[90].mxu1 %vm223_vm1, %v8821_v40  ;;  %10099 = vmatprep.mubr.msk.f32.mxu0 %vm223_vm1, %v13464_v44  ;;  %v8945_v40 = vld [vmem:[%s10524_s27 + $0x70] sm:$0xff] }
  0xcc   : > { %10085 = vmatprep.mubr.msk.f32.mxu1 %vm223_vm1, %v13463_v43 }
  0xce   : > { %10100 = vmatmul.mubr.msk.f32.vlgmr.msra.gmra.mrb[92].mxu0 %vm223_vm1, %v13466_v46 }
  0xcf   : > { %10086 = vmatmul.mubr.msk.f32.vlgmr.msra.gmra.mrb[92].mxu1 %vm223_vm1, %v13465_v45  ;;  %10102 = vmatprep.mubr.msk.f32.mxu0 %vm223_vm1, %v13468_v52  ;;  %v8976_v52 = vld [vmem:[%s10524_s27 + $0x21] sm:$0xff] }
  0xd0   : > { %10088 = vmatprep.mubr.msk.f32.mxu1 %vm223_vm1, %v13467_v51  ;;  %10112 = vmatpush3.msk.msra.mxu1 %vm248_vm0, %v8894_v26  ;;  %v11413_v26 = vld [vmem:[%s13383_s2 + $0x7c] sm:$0xf]  ;;  %v8958_v51 = vld [vmem:[%s10524_s27 + $0xd0] sm:$0xff] }
  0xd1   : > { %10126 = vmatpush3.msk.msra.mxu0 %vm248_vm0, %v8912_v27  ;;  %10139 = vmatprep.subr.msk.mxu1 %vm248_vm0, %v8930_v47  ;;  %v11418_v27 = vld [vmem:[%s13383_s2 + $0x80] sm:$0xf] }
  0xd2   : > { %10153 = vmatprep.subr.msk.mxu0 %vm248_vm0, %v8948_v48  ;;  %10103 = vmatmul.mubr.msk.f32.gmra.mrb[94].mxu0 %vm223_vm1, %v13470_v54 }
  0xd3   : > { %10089 = vmatmul.mubr.msk.f32.gmra.mrb[94].mxu1 %vm223_vm1, %v13469_v53  ;;  %10105 = vmatprep.mubr.msk.f32.mxu0 %vm223_vm1, %v13472_v58 }
  0xd4   : > { %10091 = vmatprep.mubr.msk.f32.mxu1 %vm223_vm1, %v13471_v57 }
  0xd6   : > { %10106 = vmatmul.mubr.msk.f32.gmra.mrb[96].mxu0 %vm223_vm1, %v13474_v60 }
  0xd7   : > { %10092 = vmatmul.mubr.msk.f32.gmra.mrb[96].mxu1 %vm223_vm1, %v13473_v59  ;;  %10108 = vmatprep.mubr.msk.f32.mxu0 %vm223_vm1, %v13476_v63 }
  0xd8   : > { %10094 = vmatprep.mubr.msk.f32.mxu1 %vm223_vm1, %v13475_v61  ;;  %v8959_v61 = vld [vmem:[%s10524_s27 + $0xe0] sm:$0xff] }
  0xda   : > { %10109 = vmatmul.mubr.msk.f32.gmra.mrb[98].mxu0 %vm223_vm1, %v8875_v0 }
  0xdb   : > { %10095 = vmatmul.mubr.msk.f32.gmra.mrb[98].mxu1 %vm223_vm1, %v8857_v62  ;;  %10127 = vmatprep.mubr.msk.f32.mxu0 %vm223_vm1, %v13478_v2  ;;  %v8977_v62 = vld [vmem:[%s10524_s27 + $0x31] sm:$0xff] }
  0xdc   : > { %10113 = vmatprep.mubr.msk.f32.mxu1 %vm223_vm1, %v13477_v1  ;;  %v8960_v1 = vld [vmem:[%s10524_s27 + $0xf0] sm:$0xff] }
  0xde   : > { %10128 = vmatmul.mubr.msk.f32.vlgmr.msra.gmra.mrb[100].mxu0 %vm223_vm1, %v13480_v13 }
  0xdf   : > { %10114 = vmatmul.mubr.msk.f32.vlgmr.msra.gmra.mrb[100].mxu1 %vm223_vm1, %v13479_v10  ;;  %10130 = vmatprep.mubr.msk.f32.mxu0 %vm223_vm1, %v13481_v32  ;;  %v11474_v32 = vld [vmem:[%s13383_s2 + $0x84] sm:$0xf] }
  0xe0   : > { %10116 = vmatprep.mubr.msk.f32.mxu1 %vm223_vm1, %v11022_v9  ;;  %10140 = vmatpush3.msk.msra.mxu1 %vm248_vm0, %v8930_v47  ;;  %v13484_v9 = vld [vmem:[#allocation34_spill] sm:$0xff]  ;;  %v8929_v47 = vld [vmem:[%s10524_s27 + $0x1e3] sm:$0xff] }
  0xe1   : > { %10154 = vmatpush3.msk.msra.mxu0 %vm248_vm0, %v8948_v48  ;;  %10167 = vmatprep.subr.msk.mxu1 %vm248_vm0, %v8966_v14  ;;  %v8947_v48 = vld [vmem:[%s10524_s27 + $0x90] sm:$0xff] }
  0xe2   : > { %10181 = vmatprep.subr.msk.mxu0 %vm248_vm0, %v8984_v19  ;;  %10131 = vmatmul.mubr.msk.f32.gmra.mrb[102].mxu0 %vm223_vm1, %v13483_v49 }
  0xe3   : > { %10117 = vmatmul.mubr.msk.f32.gmra.mrb[102].mxu1 %vm223_vm1, %v13482_v56  ;;  %10133 = vmatprep.mubr.msk.f32.mxu0 %vm223_vm1, %v13484_v9 }
  0xe4   : > { %10119 = vmatprep.mubr.msk.f32.mxu1 %vm223_vm1, %v11046_v38 }
  0xe6   : > { %10134 = vmatmul.mubr.msk.f32.gmra.mrb[104].mxu0 %vm223_vm1, %v11057_v31  ;;  %v8941_v31 = vld [vmem:[%s10524_s27 + $0x30] sm:$0xff] }
  0xe7   : > { %10120 = vmatmul.mubr.msk.f32.gmra.mrb[104].mxu1 %vm223_vm1, %v13485_v55  ;;  %10136 = vmatprep.mubr.msk.f32.mxu0 %vm223_vm1, %v13486_v7 }
  0xe8   : > { %10122 = vmatprep.mubr.msk.f32.mxu1 %vm223_vm1, %v11066_v50  ;;  %v13487_v50 = vld [vmem:[#allocation37_spill] sm:$0xff] }
  0xe9   : > { %v9765_v38 = vpop.f32.mrb[0].mxu0 }
  0xea   : > { %v9771_v16 = vpop.f32.mrb[0].mxu1  ;;  %358 = vst.msk [vmem:[#allocation2 + $0x8] sm:$0xff] %vm223_vm1, %v9765_v38  ;;  %v318_v17 = vpop.f32.mrb[1].mxu0  ;;  %10137 = vmatmul.mubr.msk.f32.gmra.mrb[106].mxu0 %vm223_vm1, %v8911_v11  ;;  %v8979_v38 = vld [vmem:[%s10524_s27 + $0x51] sm:$0xff] }
  0xeb   : > { %362 = vst.msk [vmem:[#allocation2 + $0x28] sm:$0xff] %vm223_vm1, %v9771_v16  ;;  %v338_v18 = vpop.f32.mrb[1].mxu1  ;;  %10123 = vmatmul.mubr.msk.f32.gmra.mrb[106].mxu1 %vm223_vm1, %v8893_v6  ;;  %357 = vst.msk [vmem:[#allocation2] sm:$0xff] %vm223_vm1, %v318_v17  ;;  %10155 = vmatprep.mubr.msk.f32.mxu0 %vm223_vm1, %v8940_v15  ;;  %v11484_v6 = vld [vmem:[%s13383_s2 + $0x88] sm:$0xf]  ;;  %v8961_v15 = vld [vmem:[%s10524_s27 + $0x100] sm:$0xff] }
  0xec   : > { %361 = vst.msk [vmem:[#allocation2 + $0x20] sm:$0xff] %vm223_vm1, %v338_v18  ;;  %10141 = vmatprep.mubr.msk.f32.mxu1 %vm223_vm1, %v13487_v50  ;;  %v8962_v18 = vld [vmem:[%s10524_s27 + $0x110] sm:$0xff]  ;;  %v8980_v50 = vld [vmem:[%s10524_s27 + $0x61] sm:$0xff] }
  0xed   : > { %v9768_v22 = vpop.f32.mrb[2].mxu0 }
  0xee   : > { %v9774_v21 = vpop.f32.mrb[2].mxu1  ;;  %360 = vst.msk [vmem:[#allocation2 + $0x18] sm:$0xff] %vm223_vm1, %v9768_v22  ;;  %v328_v25 = vpop.f32.mrb[3].mxu0  ;;  %10156 = vmatmul.mubr.msk.f32.vlgmr.msra.gmra.mrb[108].mxu0 %vm223_vm1, %v8941_v31 }
  0xef   : > { %364 = vst.msk [vmem:[#allocation2 + $0x38] sm:$0xff] %vm223_vm1, %v9774_v21  ;;  %v348_v24 = vpop.f32.mrb[3].mxu1  ;;  %10142 = vmatmul.mubr.msk.f32.vlgmr.msra.gmra.mrb[108].mxu1 %vm223_vm1, %v11085_v20  ;;  %359 = vst.msk [vmem:[#allocation2 + $0x10] sm:$0xff] %vm223_vm1, %v328_v25  ;;  %v8943_v20 = vld [vmem:[%s10524_s27 + $0x50] sm:$0xff]  ;;  %10158 = vmatprep.mubr.msk.f32.mxu0 %vm223_vm1, %v8942_v23 }
  0xf0   : > { %363 = vst.msk [vmem:[#allocation2 + $0x30] sm:$0xff] %vm223_vm1, %v348_v24  ;;  %10144 = vmatprep.mubr.msk.f32.mxu1 %vm223_vm1, %v11100_v5  ;;  %10168 = vmatpush3.msk.msra.mxu1 %vm248_vm0, %v8966_v14 }
  0xf1   : > { %10182 = vmatpush3.msk.msra.mxu0 %vm248_vm0, %v8984_v19  ;;  %v509_v30 = vld [vmem:[#allocation2 + $0x8] sm:$0xff]  ;;  %v9793_v33 = vpop.f32.mrb[4].mxu0  ;;  %10195 = vmatprep.subr.msk.mxu1 %vm248_vm0, %v11413_v26 }
  0xf2   : > { %v9779_v29 = vpop.f32.mrb[4].mxu1  ;;  %10209 = vmatprep.subr.msk.mxu0 %vm248_vm0, %v11418_v27  ;;  %v508_v35 = vld [vmem:[#allocation2] sm:$0xff]  ;;  %v635_v36 = vpop.f32.mrb[5].mxu0  ;;  %10159 = vmatmul.mubr.msk.f32.gmra.mrb[110].mxu0 %vm223_vm1, %v8943_v20  ;;  %v513_v53 = vld [vmem:[#allocation2 + $0x28] sm:$0xff] }
  0xf3   : > { %v517_v34 = vadd.f32 %v9779_v29, %v509_v30  ;;  %v469_v5 = vpop.f32.mrb[5].mxu1  ;;  %10145 = vmatmul.mubr.msk.f32.gmra.mrb[110].mxu1 %vm223_vm1, %v11104_v37  ;;  %10161 = vmatprep.mubr.msk.f32.mxu0 %vm223_vm1, %v8944_v28  ;;  %v512_v58 = vld [vmem:[#allocation2 + $0x20] sm:$0xff]  ;;  %v8964_v29 = vld [vmem:[%s10524_s27 + $0x130] sm:$0xff] }
  0xf4   : > { %v516_v39 = vadd.f32 %v508_v35, %v469_v5  ;;  %10147 = vmatprep.mubr.msk.f32.mxu1 %vm223_vm1, %v11118_v8  ;;  %v8978_v19 = vld [vmem:[%s10524_s27 + $0x41] sm:$0xff] }
  0xf5   : > { %525 = vst.msk [vmem:[#allocation2 + $0x8] sm:$0xff] %vm223_vm1, %v517_v34  ;;  %v511_v42 = vld [vmem:[#allocation2 + $0x18] sm:$0xff]  ;;  %v9796_v37 = vpop.f32.mrb[6].mxu0  ;;  %v8982_v30 = vld [vmem:[%s10524_s27 + $0x81] sm:$0xff] }
  0xf6   : > { %524 = vst.msk [vmem:[#allocation2] sm:$0xff] %vm223_vm1, %v516_v39  ;;  %v9782_v41 = vpop.f32.mrb[6].mxu1  ;;  %v510_v45 = vld [vmem:[#allocation2 + $0x10] sm:$0xff]  ;;  %v645_v46 = vpop.f32.mrb[7].mxu0  ;;  %10162 = vmatmul.mubr.msk.f32.gmra.mrb[112].mxu0 %vm223_vm1, %v8945_v40  ;;  %v515_v13 = vld [vmem:[#allocation2 + $0x38] sm:$0xff] }
  0xf7   : > { %v519_v43 = vadd.f32 %v9782_v41, %v511_v42  ;;  %v479_v44 = vpop.f32.mrb[7].mxu1  ;;  %10148 = vmatmul.mubr.msk.f32.gmra.mrb[112].mxu1 %vm223_vm1, %v11123_v12  ;;  %10164 = vmatprep.mubr.msk.f32.mxu0 %vm223_vm1, %v11137_v3  ;;  %v514_v9 = vld [vmem:[#allocation2 + $0x30] sm:$0xff] }
  0xf8   : > { %v518_v8 = vadd.f32 %v510_v45, %v479_v44  ;;  %10150 = vmatprep.mubr.msk.f32.mxu1 %vm223_vm1, %v11132_v4  ;;  %v8983_v44 = vld [vmem:[%s10524_s27 + $0x91] sm:$0xff] }
  0xf9   : > { %527 = vst.msk [vmem:[#allocation2 + $0x18] sm:$0xff] %vm223_vm1, %v519_v43  ;;  %v11455_v54 = vpop.f32.mrb[8].mxu0  ;;  %v8965_v43 = vld [vmem:[%s10524_s27 + $0x140] sm:$0xff] }
  0xfa   : > { %526 = vst.msk [vmem:[#allocation2 + $0x10] sm:$0xff] %vm223_vm1, %v518_v8  ;;  %v9785_v12 = vpop.f32.mrb[8].mxu1  ;;  %v11457_v59 = vpop.f32.mrb[9].mxu0  ;;  %10165 = vmatmul.mubr.msk.f32.gmra.mrb[114].mxu0 %vm223_vm1, %v8947_v48  ;;  %v8994_v8 = vld [vmem:[%s10524_s27 + $0xd1] sm:$0xff] }
  0xfb   : > { %v521_v57 = vadd.f32 %v9785_v12, %v513_v53  ;;  %v489_v4 = vpop.f32.mrb[9].mxu1  ;;  %10151 = vmatmul.mubr.msk.f32.gmra.mrb[114].mxu1 %vm223_vm1, %v8929_v47  ;;  %10183 = vmatprep.mubr.msk.f32.mxu0 %vm223_vm1, %v8976_v52  ;;  %v9012_v47 = vld [vmem:[%s10524_s27 + $0x22] sm:$0xff] }
  0xfc   : > { %v520_v3 = vadd.f32 %v512_v58, %v489_v4  ;;  %v675_v60 = vld [vmem:[#allocation2 + $0x8] sm:$0xff]  ;;  %10169 = vmatprep.mubr.msk.f32.mxu1 %vm223_vm1, %v8958_v51 }
  0xfd   : > { %529 = vst.msk [vmem:[#allocation2 + $0x28] sm:$0xff] %vm223_vm1, %v521_v57  ;;  %v683_v63 = vadd.f32 %v9793_v33, %v675_v60  ;;  %v674_v0 = vld [vmem:[#allocation2] sm:$0xff]  ;;  %v11468_v14 = vpop.f32.mrb[10].mxu0  ;;  %v8996_v60 = vld [vmem:[%s10524_s27 + $0xf1] sm:$0xff] }
  0xfe   : > { %528 = vst.msk [vmem:[#allocation2 + $0x20] sm:$0xff] %vm223_vm1, %v520_v3  ;;  %v682_v2 = vadd.f32 %v674_v0, %v635_v36  ;;  %v9788_v10 = vpop.f32.mrb[10].mxu1  ;;  %v11477_v55 = vpop.f32.mrb[11].mxu0  ;;  %10184 = vmatmul.mubr.msk.f32.vlgmr.msra.gmra.mrb[116].mxu0 %vm223_vm1, %v8977_v62  ;;  %v9013_v3 = vld [vmem:[%s10524_s27 + $0x32] sm:$0xff]  ;;  %v9014_v0 = vld [vmem:[%s10524_s27 + $0x42] sm:$0xff] }
  0xff   : > { %691 = vst.msk [vmem:[#allocation2 + $0x8] sm:$0xff] %vm223_vm1, %v683_v63  ;;  %v523_v56 = vadd.f32 %v9788_v10, %v515_v13  ;;  %v499_v49 = vpop.f32.mrb[11].mxu1  ;;  %10170 = vmatmul.mubr.msk.f32.vlgmr.msra.gmra.mrb[116].mxu1 %vm223_vm1, %v8959_v61  ;;  %10186 = vmatprep.mubr.msk.f32.mxu0 %vm223_vm1, %v8978_v19  ;;  %v11567_v19 = vld [vmem:[%s13383_s2 + $0x90] sm:$0xf] }
 0x100   : > { %690 = vst.msk [vmem:[#allocation2] sm:$0xff] %vm223_vm1, %v682_v2  ;;  %v522_v7 = vadd.f32 %v514_v9, %v499_v49  ;;  %v677_v11 = vld [vmem:[#allocation2 + $0x18] sm:$0xff]  ;;  %10172 = vmatprep.mubr.msk.f32.mxu1 %vm223_vm1, %v8960_v1  ;;  %10196 = vmatpush3.msk.msra.mxu1 %vm248_vm0, %v11413_v26  ;;  %v8963_v26 = vld [vmem:[%s10524_s27 + $0x120] sm:$0xff]  ;;  %v11558_v1 = vld [vmem:[%s13383_s2 + $0x8c] sm:$0xf] }
 0x101   : > { %531 = vst.msk [vmem:[#allocation2 + $0x38] sm:$0xff] %vm223_vm1, %v523_v56  ;;  %v685_v16 = vadd.f32 %v9796_v37, %v677_v11  ;;  %v676_v17 = vld [vmem:[#allocation2 + $0x10] sm:$0xff]  ;;  %10210 = vmatpush3.msk.msra.mxu0 %vm248_vm0, %v11418_v27  ;;  %v11499_v22 = vpop.f32.mrb[12].mxu0  ;;  %10223 = vmatprep.subr.msk.mxu1 %vm248_vm0, %v11474_v32  ;;  %v8997_v9 = vld [vmem:[%s10524_s27 + $0x101] sm:$0xff] }
 0x102   : > { %530 = vst.msk [vmem:[#allocation2 + $0x30] sm:$0xff] %vm223_vm1, %v522_v7  ;;  %v684_v31 = vadd.f32 %v676_v17, %v645_v46  ;;  %v9807_v21 = vpop.f32.mrb[12].mxu1  ;;  %10237 = vmatprep.subr.msk.mxu0 %vm248_vm0, %v11484_v6  ;;  %v11506_v24 = vpop.f32.mrb[13].mxu0  ;;  %10187 = vmatmul.mubr.msk.f32.gmra.mrb[118].mxu0 %vm223_vm1, %v8979_v38  ;;  %v8981_v27 = vld [vmem:[%s10524_s27 + $0x71] sm:$0xff]  ;;  %v9016_v38 = vld [vmem:[%s10524_s27 + $0x62] sm:$0xff] }
 0x103   : > { %693 = vst.msk [vmem:[#allocation2 + $0x18] sm:$0xff] %vm223_vm1, %v685_v16  ;;  %v801_v23 = vpop.f32.mrb[13].mxu1  ;;  %10173 = vmatmul.mubr.msk.f32.gmra.mrb[118].mxu1 %vm223_vm1, %v8961_v15  ;;  %10189 = vmatprep.mubr.msk.f32.mxu0 %vm223_vm1, %v8980_v50  ;;  %v8998_v15 = vld [vmem:[%s10524_s27 + $0x111] sm:$0xff] }
 0x104   : > { %692 = vst.msk [vmem:[#allocation2 + $0x10] sm:$0xff] %vm223_vm1, %v684_v31  ;;  %v679_v25 = vld [vmem:[#allocation2 + $0x28] sm:$0xff]  ;;  %10175 = vmatprep.mubr.msk.f32.mxu1 %vm223_vm1, %v8962_v18 }
 0x105   : > { %v687_v20 = vadd.f32 %v11455_v54, %v679_v25  ;;  %v678_v28 = vld [vmem:[#allocation2 + $0x20] sm:$0xff]  ;;  %v11519_v35 = vpop.f32.mrb[14].mxu0  ;;  %v9017_v25 = vld [vmem:[%s10524_s27 + $0x72] sm:$0xff] }
 0x106   : > { %v686_v33 = vadd.f32 %v678_v28, %v11457_v59  ;;  %v841_v34 = vld [vmem:[#allocation2 + $0x8] sm:$0xff]  ;;  %v9810_v5 = vpop.f32.mrb[14].mxu1  ;;  %v11522_v41 = vpop.f32.mrb[15].mxu0  ;;  %10190 = vmatmul.mubr.msk.f32.gmra.mrb[120].mxu0 %vm223_vm1, %v8981_v27 }
 0x107   : > { %695 = vst.msk [vmem:[#allocation2 + $0x28] sm:$0xff] %vm223_vm1, %v687_v20  ;;  %v849_v36 = vadd.f32 %v9807_v21, %v841_v34  ;;  %v840_v39 = vld [vmem:[#allocation2] sm:$0xff]  ;;  %v811_v40 = vpop.f32.mrb[15].mxu1  ;;  %10176 = vmatmul.mubr.msk.f32.gmra.mrb[120].mxu1 %vm223_vm1, %v8963_v26  ;;  %10192 = vmatprep.mubr.msk.f32.mxu0 %vm223_vm1, %v8982_v30  ;;  %v9000_v20 = vld [vmem:[%s10524_s27 + $0x131] sm:$0xff] }
 0x108   : > { %694 = vst.msk [vmem:[#allocation2 + $0x20] sm:$0xff] %vm223_vm1, %v686_v33  ;;  %v848_v42 = vadd.f32 %v840_v39, %v801_v23  ;;  %v681_v37 = vld [vmem:[#allocation2 + $0x38] sm:$0xff]  ;;  %10178 = vmatprep.mubr.msk.f32.mxu1 %vm223_vm1, %v8964_v29  ;;  %v8995_v59 = vld [vmem:[%s10524_s27 + $0xe1] sm:$0xff] }
 0x109   : > { %857 = vst.msk [vmem:[#allocation2 + $0x8] sm:$0xff] %vm223_vm1, %v849_v36  ;;  %v689_v45 = vadd.f32 %v11468_v14, %v681_v37  ;;  %v680_v46 = vld [vmem:[#allocation2 + $0x30] sm:$0xff]  ;;  %v11537_v12 = vpop.f32.mrb[16].mxu0  ;;  %v9018_v28 = vld [vmem:[%s10524_s27 + $0x82] sm:$0xff] }
 0x10a   : > { %856 = vst.msk [vmem:[#allocation2] sm:$0xff] %vm223_vm1, %v848_v42  ;;  %v688_v48 = vadd.f32 %v680_v46, %v11477_v55  ;;  %v843_v51 = vld [vmem:[#allocation2 + $0x18] sm:$0xff]  ;;  %v9813_v52 = vpop.f32.mrb[16].mxu1  ;;  %v11540_v4 = vpop.f32.mrb[17].mxu0  ;;  %10193 = vmatmul.mubr.msk.f32.gmra.mrb[122].mxu0 %vm223_vm1, %v8983_v44  ;;  %v9001_v36 = vld [vmem:[%s10524_s27 + $0x141] sm:$0xff] }
 0x10b   : > { %697 = vst.msk [vmem:[#allocation2 + $0x38] sm:$0xff] %vm223_vm1, %v689_v45  ;;  %v851_v53 = vadd.f32 %v9810_v5, %v843_v51  ;;  %v842_v54 = vld [vmem:[#allocation2 + $0x10] sm:$0xff]  ;;  %v821_v57 = vpop.f32.mrb[17].mxu1  ;;  %10179 = vmatmul.mubr.msk.f32.gmra.mrb[122].mxu1 %vm223_vm1, %v8965_v43  ;;  %10211 = vmatprep.mubr.msk.f32.mxu0 %vm223_vm1, %v9012_v47  ;;  %v9048_v37 = vld [vmem:[%s10524_s27 + $0x23] sm:$0xff] }
 0x10c   : > { %696 = vst.msk [vmem:[#allocation2 + $0x30] sm:$0xff] %vm223_vm1, %v688_v48  ;;  %v850_v58 = vadd.f32 %v842_v54, %v811_v40  ;;  %10197 = vmatprep.mubr.msk.f32.mxu1 %vm223_vm1, %v8994_v8  ;;  %v9015_v55 = vld [vmem:[%s10524_s27 + $0x52] sm:$0xff] }
 0x10d   : > { %859 = vst.msk [vmem:[#allocation2 + $0x18] sm:$0xff] %vm223_vm1, %v851_v53  ;;  %v11552_v63 = vpop.f32.mrb[18].mxu0  ;;  %v9019_v39 = vld [vmem:[%s10524_s27 + $0x92] sm:$0xff]  ;;  %v9031_v53 = vld [vmem:[%s10524_s27 + $0xe2] sm:$0xff] }
 0x10e   : > { %858 = vst.msk [vmem:[#allocation2 + $0x10] sm:$0xff] %vm223_vm1, %v850_v58  ;;  %v845_v61 = vld [vmem:[#allocation2 + $0x28] sm:$0xff]  ;;  %v9816_v62 = vpop.f32.mrb[18].mxu1  ;;  %v11560_v14 = vpop.f32.mrb[19].mxu0  ;;  %10212 = vmatmul.mubr.msk.f32.vlgmr.msra.gmra.mrb[124].mxu0 %vm223_vm1, %v9013_v3  ;;  %v9030_v42 = vld [vmem:[%s10524_s27 + $0xd2] sm:$0xff] }
 0x10f   : > { %v853_v2 = vadd.f32 %v9813_v52, %v845_v61  ;;  %v844_v10 = vld [vmem:[#allocation2 + $0x20] sm:$0xff]  ;;  %v831_v13 = vpop.f32.mrb[19].mxu1  ;;  %10198 = vmatmul.mubr.msk.f32.vlgmr.msra.gmra.mrb[124].mxu1 %vm223_vm1, %v8995_v59  ;;  %10214 = vmatprep.mubr.msk.f32.mxu0 %vm223_vm1, %v9014_v0  ;;  %v9049_v54 = vld [vmem:[%s10524_s27 + $0x33] sm:$0xff] }
 0x110   : > { %v852_v56 = vadd.f32 %v844_v10, %v821_v57  ;;  %v1007_v49 = vld [vmem:[#allocation2 + $0x8] sm:$0xff]  ;;  %10200 = vmatprep.mubr.msk.f32.mxu1 %vm223_vm1, %v8996_v60  ;;  %10224 = vmatpush3.msk.msra.mxu1 %vm248_vm0, %v11474_v32  ;;  %v9032_v58 = vld [vmem:[%s10524_s27 + $0xf2] sm:$0xff] }
 0x111   : > { %861 = vst.msk [vmem:[#allocation2 + $0x28] sm:$0xff] %vm223_vm1, %v853_v2  ;;  %v1015_v7 = vadd.f32 %v11499_v22, %v1007_v49  ;;  %v1006_v11 = vld [vmem:[#allocation2] sm:$0xff]  ;;  %10238 = vmatpush3.msk.msra.mxu0 %vm248_vm0, %v11484_v6  ;;  %v11583_v18 = vpop.f32.mrb[20].mxu0  ;;  %10251 = vmatprep.subr.msk.mxu1 %vm248_vm0, %v11558_v1  ;;  %v11644_v0 = vld [vmem:[%s13383_s2 + $0x94] sm:$0xf] }
 0x112   : > { %860 = vst.msk [vmem:[#allocation2 + $0x20] sm:$0xff] %vm223_vm1, %v852_v56  ;;  %v1014_v16 = vadd.f32 %v1006_v11, %v11506_v24  ;;  %v847_v17 = vld [vmem:[#allocation2 + $0x38] sm:$0xff]  ;;  %v9835_v32 = vpop.f32.mrb[20].mxu1  ;;  %10265 = vmatprep.subr.msk.mxu0 %vm248_vm0, %v11567_v19  ;;  %v11590_v21 = vpop.f32.mrb[21].mxu0  ;;  %10215 = vmatmul.mubr.msk.f32.gmra.mrb[126].mxu0 %vm223_vm1, %v9015_v55  ;;  %v8999_v24 = vld [vmem:[%s10524_s27 + $0x121] sm:$0xff] }
 0x113   : > { %1023 = vst.msk [vmem:[#allocation2 + $0x8] sm:$0xff] %vm223_vm1, %v1015_v7  ;;  %v855_v6 = vadd.f32 %v9816_v62, %v847_v17  ;;  %v846_v50 = vld [vmem:[#allocation2 + $0x30] sm:$0xff]  ;;  %v1133_v31 = vpop.f32.mrb[21].mxu1  ;;  %10201 = vmatmul.mubr.msk.f32.gmra.mrb[126].mxu1 %vm223_vm1, %v8997_v9  ;;  %10217 = vmatprep.mubr.msk.f32.mxu0 %vm223_vm1, %v9016_v38  ;;  %v9050_v62 = vld [vmem:[%s10524_s27 + $0x43] sm:$0xff] }
 0x114   : > { %1022 = vst.msk [vmem:[#allocation2] sm:$0xff] %vm223_vm1, %v1014_v16  ;;  %v854_v22 = vadd.f32 %v846_v50, %v831_v13  ;;  %v1009_v23 = vld [vmem:[#allocation2 + $0x18] sm:$0xff]  ;;  %10203 = vmatprep.mubr.msk.f32.mxu1 %vm223_vm1, %v8998_v15  ;;  %v9033_v49 = vld [vmem:[%s10524_s27 + $0x102] sm:$0xff] }
 0x115   : > { %863 = vst.msk [vmem:[#allocation2 + $0x38] sm:$0xff] %vm223_vm1, %v855_v6  ;;  %v1017_v26 = vadd.f32 %v11519_v35, %v1009_v23  ;;  %v1008_v27 = vld [vmem:[#allocation2 + $0x10] sm:$0xff]  ;;  %v11605_v33 = vpop.f32.mrb[22].mxu0  ;;  %v9052_v7 = vld [vmem:[%s10524_s27 + $0x63] sm:$0xff] }
 0x116   : > { %862 = vst.msk [vmem:[#allocation2 + $0x30] sm:$0xff] %vm223_vm1, %v854_v22  ;;  %v1016_v29 = vadd.f32 %v1008_v27, %v11522_v41  ;;  %v9838_v30 = vpop.f32.mrb[22].mxu1  ;;  %v11608_v5 = vpop.f32.mrb[23].mxu0  ;;  %10218 = vmatmul.mubr.msk.f32.gmra.mrb[128].mxu0 %vm223_vm1, %v9017_v25  ;;  %v9051_v9 = vld [vmem:[%s10524_s27 + $0x53] sm:$0xff]  ;;  %v9035_v50 = vld [vmem:[%s10524_s27 + $0x122] sm:$0xff] }
 0x117   : > { %1025 = vst.msk [vmem:[#allocation2 + $0x18] sm:$0xff] %vm223_vm1, %v1017_v26  ;;  %v1143_v34 = vpop.f32.mrb[23].mxu1  ;;  %10204 = vmatmul.mubr.msk.f32.gmra.mrb[128].mxu1 %vm223_vm1, %v8999_v24  ;;  %10220 = vmatprep.mubr.msk.f32.mxu0 %vm223_vm1, %v9018_v28  ;;  %v9034_v55 = vld [vmem:[%s10524_s27 + $0x112] sm:$0xff]  ;;  %v9054_v25 = vld [vmem:[%s10524_s27 + $0x83] sm:$0xff] }
 0x118   : > { %1024 = vst.msk [vmem:[#allocation2 + $0x10] sm:$0xff] %vm223_vm1, %v1016_v29  ;;  %v1011_v35 = vld [vmem:[#allocation2 + $0x28] sm:$0xff]  ;;  %10206 = vmatprep.mubr.msk.f32.mxu1 %vm223_vm1, %v9000_v20  ;;  %v9036_v24 = vld [vmem:[%s10524_s27 + $0x132] sm:$0xff] }
 0x119   : > { %v1019_v40 = vadd.f32 %v11537_v12, %v1011_v35  ;;  %v1010_v41 = vld [vmem:[#allocation2 + $0x20] sm:$0xff]  ;;  %v11621_v46 = vpop.f32.mrb[24].mxu0 }
 0x11a   : > { %v1018_v43 = vadd.f32 %v1010_v41, %v11540_v4  ;;  %v1173_v44 = vld [vmem:[#allocation2 + $0x8] sm:$0xff]  ;;  %v9841_v45 = vpop.f32.mrb[24].mxu1  ;;  %v11624_v51 = vpop.f32.mrb[25].mxu0  ;;  %10221 = vmatmul.mubr.msk.f32.gmra.mrb[130].mxu0 %vm223_vm1, %v9019_v39  ;;  %v9055_v39 = vld [vmem:[%s10524_s27 + $0x93] sm:$0xff] }
 0x11b   : > { %1027 = vst.msk [vmem:[#allocation2 + $0x28] sm:$0xff] %vm223_vm1, %v1019_v40  ;;  %v1181_v8 = vadd.f32 %v9835_v32, %v1173_v44  ;;  %v1172_v47 = vld [vmem:[#allocation2] sm:$0xff]  ;;  %v1153_v48 = vpop.f32.mrb[25].mxu1  ;;  %10207 = vmatmul.mubr.msk.f32.gmra.mrb[130].mxu1 %vm223_vm1, %v9001_v36  ;;  %10239 = vmatprep.mubr.msk.f32.mxu0 %vm223_vm1, %v9048_v37  ;;  %v9084_v37 = vld [vmem:[%s10524_s27 + $0x230] sm:$0xff] }
 0x11c   : > { %1026 = vst.msk [vmem:[#allocation2 + $0x20] sm:$0xff] %vm223_vm1, %v1018_v43  ;;  %v1180_v52 = vadd.f32 %v1172_v47, %v1133_v31  ;;  %v1013_v12 = vld [vmem:[#allocation2 + $0x38] sm:$0xff]  ;;  %10225 = vmatprep.mubr.msk.f32.mxu1 %vm223_vm1, %v9030_v42  ;;  %v9037_v36 = vld [vmem:[%s10524_s27 + $0x142] sm:$0xff] }
 0x11d   : > { %1189 = vst.msk [vmem:[#allocation2 + $0x8] sm:$0xff] %vm223_vm1, %v1181_v8  ;;  %v1021_v57 = vadd.f32 %v11552_v63, %v1013_v12  ;;  %v1012_v4 = vld [vmem:[#allocation2 + $0x30] sm:$0xff]  ;;  %v11638_v61 = vpop.f32.mrb[26].mxu0  ;;  %v9066_v42 = vld [vmem:[%s10524_s27 + $0x180] sm:$0xff] }
 0x11e   : > { %1188 = vst.msk [vmem:[#allocation2] sm:$0xff] %vm223_vm1, %v1180_v52  ;;  %v1020_v59 = vadd.f32 %v1012_v4, %v11560_v14  ;;  %v1175_v3 = vld [vmem:[#allocation2 + $0x18] sm:$0xff]  ;;  %v9844_v60 = vpop.f32.mrb[26].mxu1  ;;  %v11647_v13 = vpop.f32.mrb[27].mxu0  ;;  %10240 = vmatmul.mubr.msk.f32.vlgmr.msra.gmra.mrb[132].mxu0 %vm223_vm1, %v9049_v54 }
 0x11f   : > { %1029 = vst.msk [vmem:[#allocation2 + $0x38] sm:$0xff] %vm223_vm1, %v1021_v57  ;;  %v1183_v63 = vadd.f32 %v9838_v30, %v1175_v3  ;;  %v1174_v2 = vld [vmem:[#allocation2 + $0x10] sm:$0xff]  ;;  %v1163_v10 = vpop.f32.mrb[27].mxu1  ;;  %10226 = vmatmul.mubr.msk.f32.vlgmr.msra.gmra.mrb[132].mxu1 %vm223_vm1, %v9031_v53  ;;  %v11654_v14 = vld [vmem:[%s13383_s2 + $0x98] sm:$0xf]  ;;  %10242 = vmatprep.mubr.msk.f32.mxu0 %vm223_vm1, %v9050_v62  ;;  %v9068_v53 = vld [vmem:[%s10524_s27 + $0x1a0] sm:$0xff] }
 0x120   : > { %1028 = vst.msk [vmem:[#allocation2 + $0x30] sm:$0xff] %vm223_vm1, %v1020_v59  ;;  %v1182_v56 = vadd.f32 %v1174_v2, %v1143_v34  ;;  %10228 = vmatprep.mubr.msk.f32.mxu1 %vm223_vm1, %v9032_v58  ;;  %10252 = vmatpush3.msk.msra.mxu1 %vm248_vm0, %v11558_v1  ;;  %v9053_v31 = vld [vmem:[%s10524_s27 + $0x73] sm:$0xff]  ;;  %v11742_v3 = vld [vmem:[%s13383_s2 + $0x9c] sm:$0xf] }
 0x121   : > { %1191 = vst.msk [vmem:[#allocation2 + $0x18] sm:$0xff] %vm223_vm1, %v1183_v63  ;;  %10266 = vmatpush3.msk.msra.mxu0 %vm248_vm0, %v11567_v19  ;;  %v11671_v38 = vpop.f32.mrb[28].mxu0  ;;  %10279 = vmatprep.subr.msk.mxu1 %vm248_vm0, %v11644_v0  ;;  %v9086_v59 = vld [vmem:[%s10524_s27 + $0x250] sm:$0xff]  ;;  %v11755_v63 = vld [vmem:[%s13383_s2 + $0xa0] sm:$0xf] }
 0x122   : > { %1190 = vst.msk [vmem:[#allocation2 + $0x10] sm:$0xff] %vm223_vm1, %v1182_v56  ;;  %v1177_v11 = vld [vmem:[#allocation2 + $0x28] sm:$0xff]  ;;  %v11669_v15 = vpop.f32.mrb[28].mxu1  ;;  %10293 = vmatprep.subr.msk.mxu0 %vm248_vm0, %v11654_v14  ;;  %v11679_v17 = vpop.f32.mrb[29].mxu0  ;;  %10243 = vmatmul.mubr.msk.f32.gmra.mrb[134].mxu0 %vm223_vm1, %v9051_v9  ;;  %v9069_v56 = vld [vmem:[%s10524_s27 + $0x1b0] sm:$0xff] }
 0x123   : > { %v1185_v1 = vadd.f32 %v9841_v45, %v1177_v11  ;;  %v1176_v19 = vld [vmem:[#allocation2 + $0x20] sm:$0xff]  ;;  %v11677_v16 = vpop.f32.mrb[29].mxu1  ;;  %10229 = vmatmul.mubr.msk.f32.gmra.mrb[134].mxu1 %vm223_vm1, %v9033_v49  ;;  %10245 = vmatprep.mubr.msk.f32.mxu0 %vm223_vm1, %v9052_v7  ;;  %v9088_v11 = vld [vmem:[%s10524_s27 + $0x270] sm:$0xff] }
 0x124   : > { %v1184_v32 = vadd.f32 %v1176_v19, %v1153_v48  ;;  %v1339_v6 = vld [vmem:[#allocation2 + $0x8] sm:$0xff]  ;;  %10231 = vmatprep.mubr.msk.f32.mxu1 %vm223_vm1, %v9034_v55  ;;  %v9085_v48 = vld [vmem:[%s10524_s27 + $0x240] sm:$0xff] }
 0x125   : > { %1193 = vst.msk [vmem:[#allocation2 + $0x28] sm:$0xff] %vm223_vm1, %v1185_v1  ;;  %v1347_v22 = vadd.f32 %v11583_v18, %v1339_v6  ;;  %v1338_v23 = vld [vmem:[#allocation2] sm:$0xff]  ;;  %v11695_v28 = vpop.f32.mrb[30].mxu0  ;;  %v9071_v6 = vld [vmem:[%s10524_s27 + $0x1d0] sm:$0xff] }
 0x126   : > { %1192 = vst.msk [vmem:[#allocation2 + $0x20] sm:$0xff] %vm223_vm1, %v1184_v32  ;;  %v1346_v26 = vadd.f32 %v1338_v23, %v11590_v21  ;;  %v1179_v27 = vld [vmem:[#allocation2 + $0x38] sm:$0xff]  ;;  %v11693_v20 = vpop.f32.mrb[30].mxu1  ;;  %v11700_v34 = vpop.f32.mrb[31].mxu0  ;;  %10246 = vmatmul.mubr.msk.f32.gmra.mrb[136].mxu0 %vm223_vm1, %v9053_v31  ;;  %v9087_v49 = vld [vmem:[%s10524_s27 + $0x260] sm:$0xff] }
 0x127   : > { %1355 = vst.msk [vmem:[#allocation2 + $0x8] sm:$0xff] %vm223_vm1, %v1347_v22  ;;  %v1187_v29 = vadd.f32 %v9844_v60, %v1179_v27  ;;  %v1178_v30 = vld [vmem:[#allocation2 + $0x30] sm:$0xff]  ;;  %v11698_v18 = vpop.f32.mrb[31].mxu1  ;;  %10232 = vmatmul.mubr.msk.f32.gmra.mrb[136].mxu1 %vm223_vm1, %v9035_v50  ;;  %10248 = vmatprep.mubr.msk.f32.mxu0 %vm223_vm1, %v9054_v25  ;;  %v9070_v7 = vld [vmem:[%s10524_s27 + $0x1c0] sm:$0xff] }
 0x128   : > { %1354 = vst.msk [vmem:[#allocation2] sm:$0xff] %vm223_vm1, %v1346_v26  ;;  %v1186_v21 = vadd.f32 %v1178_v30, %v1163_v10  ;;  %v1341_v35 = vld [vmem:[#allocation2 + $0x18] sm:$0xff]  ;;  %10234 = vmatprep.mubr.msk.f32.mxu1 %vm223_vm1, %v9036_v24  ;;  %v9089_v50 = vld [vmem:[%s10524_s27 + $0x280] sm:$0xff]  ;;  %v9090_v22 = vld [vmem:[%s10524_s27 + $0x290] sm:$0xff] }
 0x129   : > { %1195 = vst.msk [vmem:[#allocation2 + $0x38] sm:$0xff] %vm223_vm1, %v1187_v29  ;;  %v1349_v40 = vadd.f32 %v11605_v33, %v1341_v35  ;;  %v1340_v41 = vld [vmem:[#allocation2 + $0x10] sm:$0xff]  ;;  %v11717_v45 = vpop.f32.mrb[32].mxu0  ;;  %v9072_v31 = vld [vmem:[%s10524_s27 + $0x1e0] sm:$0xff] }
 0x12a   : > { %1194 = vst.msk [vmem:[#allocation2 + $0x30] sm:$0xff] %vm223_vm1, %v1186_v21  ;;  %v1348_v43 = vadd.f32 %v1340_v41, %v11608_v5  ;;  %v11715_v44 = vpop.f32.mrb[32].mxu1  ;;  %v11722_v47 = vpop.f32.mrb[33].mxu0  ;;  %10249 = vmatmul.mubr.msk.f32.gmra.mrb[138].mxu0 %vm223_vm1, %v9055_v39  ;;  %v9067_v5 = vld [vmem:[%s10524_s27 + $0x190] sm:$0xff]  ;;  %v9091_v35 = vld [vmem:[%s10524_s27 + $0x2a0] sm:$0xff] }
 0x12b   : > { %1357 = vst.msk [vmem:[#allocation2 + $0x18] sm:$0xff] %vm223_vm1, %v1349_v40  ;;  %v11720_v8 = vpop.f32.mrb[33].mxu1  ;;  %10235 = vmatmul.mubr.msk.f32.gmra.mrb[138].mxu1 %vm223_vm1, %v9037_v36  ;;  %10267 = vmatprep.mubr.msk.f32.mxu0 %vm223_vm1, %v9084_v37  ;;  %v9073_v21 = vld [vmem:[%s10524_s27 + $0x1f0] sm:$0xff]  ;;  %v9102_v40 = vld [vmem:[%s10524_s27 + $0x181] sm:$0xff] }
 0x12c   : > { %1356 = vst.msk [vmem:[#allocation2 + $0x10] sm:$0xff] %vm223_vm1, %v1348_v43  ;;  %v1343_v33 = vld [vmem:[#allocation2 + $0x28] sm:$0xff]  ;;  %10253 = vmatprep.mubr.msk.f32.mxu1 %vm223_vm1, %v9066_v42  ;;  %v9120_v41 = vld [vmem:[%s10524_s27 + $0x231] sm:$0xff] }
 0x12d   : > { %v1351_v52 = vadd.f32 %v11621_v46, %v1343_v33  ;;  %v1342_v12 = vld [vmem:[#allocation2 + $0x20] sm:$0xff]  ;;  %v11736_v58 = vpop.f32.mrb[34].mxu0 }
 0x12e   : > { %v1350_v54 = vadd.f32 %v1342_v12, %v11624_v51  ;;  %v1506_v57 = vld [vmem:[#allocation2 + $0x8] sm:$0xff]  ;;  %v11734_v4 = vpop.f32.mrb[34].mxu1  ;;  %v11748_v62 = vpop.f32.mrb[35].mxu0  ;;  %10268 = vmatmul.mubr.msk.f32.vlgmr.msra.gmra.mrb[140].mxu0 %vm223_vm1, %v9085_v48 }
 0x12f   : > { %1359 = vst.msk [vmem:[#allocation2 + $0x28] sm:$0xff] %vm223_vm1, %v1351_v52  ;;  %v1514_v46 = vadd.f32 %v11669_v15, %v1506_v57  ;;  %v1505_v60 = vld [vmem:[#allocation2] sm:$0xff]  ;;  %v11746_v51 = vpop.f32.mrb[35].mxu1  ;;  %10254 = vmatmul.mubr.msk.f32.vlgmr.msra.gmra.mrb[140].mxu1 %vm223_vm1, %v9067_v5  ;;  %10270 = vmatprep.mubr.msk.f32.mxu0 %vm223_vm1, %v9086_v59  ;;  %v9103_v52 = vld [vmem:[%s10524_s27 + $0x191] sm:$0xff] }
 0x130   : > { %1358 = vst.msk [vmem:[#allocation2 + $0x20] sm:$0xff] %vm223_vm1, %v1350_v54  ;;  %v1513_v2 = vadd.f32 %v1505_v60, %v11677_v16  ;;  %v1345_v10 = vld [vmem:[#allocation2 + $0x38] sm:$0xff]  ;;  %10256 = vmatprep.mubr.msk.f32.mxu1 %vm223_vm1, %v9068_v53  ;;  %10280 = vmatpush3.msk.msra.mxu1 %vm248_vm0, %v11644_v0  ;;  %v9121_v12 = vld [vmem:[%s10524_s27 + $0x241] sm:$0xff] }
 0x131   : > { %1522 = vst.msk [vmem:[#allocation2 + $0x8] sm:$0xff] %vm223_vm1, %v1514_v46  ;;  %v1353_v9 = vadd.f32 %v11638_v61, %v1345_v10  ;;  %v1344_v55 = vld [vmem:[#allocation2 + $0x30] sm:$0xff]  ;;  %10294 = vmatpush3.msk.msra.mxu0 %vm248_vm0, %v11654_v14  ;;  %v11775_v19 = vpop.f32.mrb[36].mxu0  ;;  %10307 = vmatprep.subr.msk.mxu1 %vm248_vm0, %v11742_v3  ;;  %v9104_v57 = vld [vmem:[%s10524_s27 + $0x1a1] sm:$0xff] }
 0x132   : > { %1521 = vst.msk [vmem:[#allocation2] sm:$0xff] %vm223_vm1, %v1513_v2  ;;  %v1352_v15 = vadd.f32 %v1344_v55, %v11647_v13  ;;  %v1508_v1 = vld [vmem:[#allocation2 + $0x18] sm:$0xff]  ;;  %v11773_v0 = vpop.f32.mrb[36].mxu1  ;;  %10321 = vmatprep.subr.msk.mxu0 %vm248_vm0, %v11755_v63  ;;  %v11785_v16 = vpop.f32.mrb[37].mxu0  ;;  %10271 = vmatmul.mubr.msk.f32.gmra.mrb[142].mxu0 %vm223_vm1, %v9087_v49  ;;  %v9123_v49 = vld [vmem:[%s10524_s27 + $0x261] sm:$0xff] }
 0x133   : > { %1361 = vst.msk [vmem:[#allocation2 + $0x38] sm:$0xff] %vm223_vm1, %v1353_v9  ;;  %v1516_v61 = vadd.f32 %v11693_v20, %v1508_v1  ;;  %v1507_v13 = vld [vmem:[#allocation2 + $0x10] sm:$0xff]  ;;  %v11783_v14 = vpop.f32.mrb[37].mxu1  ;;  %10257 = vmatmul.mubr.msk.f32.gmra.mrb[142].mxu1 %vm223_vm1, %v9069_v56  ;;  %10273 = vmatprep.mubr.msk.f32.mxu0 %vm223_vm1, %v9088_v11 }
 0x134   : > { %1360 = vst.msk [vmem:[#allocation2 + $0x30] sm:$0xff] %vm223_vm1, %v1352_v15  ;;  %v1515_v32 = vadd.f32 %v1507_v13, %v11698_v18  ;;  %10259 = vmatprep.mubr.msk.f32.mxu1 %vm223_vm1, %v9070_v7  ;;  %v9122_v60 = vld [vmem:[%s10524_s27 + $0x251] sm:$0xff]  ;;  %v9106_v7 = vld [vmem:[%s10524_s27 + $0x1c1] sm:$0xff] }
 0x135   : > { %1524 = vst.msk [vmem:[#allocation2 + $0x18] sm:$0xff] %vm223_vm1, %v1516_v61  ;;  %v11801_v25 = vpop.f32.mrb[38].mxu0  ;;  %v9105_v56 = vld [vmem:[%s10524_s27 + $0x1b1] sm:$0xff] }
 0x136   : > { %1523 = vst.msk [vmem:[#allocation2 + $0x10] sm:$0xff] %vm223_vm1, %v1515_v32  ;;  %v1510_v23 = vld [vmem:[#allocation2 + $0x28] sm:$0xff]  ;;  %v11799_v24 = vpop.f32.mrb[38].mxu1  ;;  %v11806_v29 = vpop.f32.mrb[39].mxu0  ;;  %10274 = vmatmul.mubr.msk.f32.gmra.mrb[144].mxu0 %vm223_vm1, %v9089_v50  ;;  %v9124_v11 = vld [vmem:[%s10524_s27 + $0x271] sm:$0xff] }
 0x137   : > { %v1518_v26 = vadd.f32 %v11715_v44, %v1510_v23  ;;  %v1509_v27 = vld [vmem:[#allocation2 + $0x20] sm:$0xff]  ;;  %v11804_v20 = vpop.f32.mrb[39].mxu1  ;;  %10260 = vmatmul.mubr.msk.f32.gmra.mrb[144].mxu1 %vm223_vm1, %v9071_v6  ;;  %10276 = vmatprep.mubr.msk.f32.mxu0 %vm223_vm1, %v9090_v22  ;;  %v9107_v50 = vld [vmem:[%s10524_s27 + $0x1d1] sm:$0xff] }
 0x138   : > { %v1517_v30 = vadd.f32 %v1509_v27, %v11720_v8  ;;  %v1673_v18 = vld [vmem:[#allocation2 + $0x8] sm:$0xff]  ;;  %10262 = vmatprep.mubr.msk.f32.mxu1 %vm223_vm1, %v9072_v31 }
 0x139   : > { %1526 = vst.msk [vmem:[#allocation2 + $0x28] sm:$0xff] %vm223_vm1, %v1518_v26  ;;  %v1681_v36 = vadd.f32 %v11671_v38, %v1673_v18  ;;  %v1672_v39 = vld [vmem:[#allocation2] sm:$0xff]  ;;  %v11823_v44 = vpop.f32.mrb[40].mxu0  ;;  %v9126_v26 = vld [vmem:[%s10524_s27 + $0x291] sm:$0xff] }
 0x13a   : > { %1525 = vst.msk [vmem:[#allocation2 + $0x20] sm:$0xff] %vm223_vm1, %v1517_v30  ;;  %v1680_v42 = vadd.f32 %v1672_v39, %v11679_v17  ;;  %v1512_v37 = vld [vmem:[#allocation2 + $0x38] sm:$0xff]  ;;  %v11821_v43 = vpop.f32.mrb[40].mxu1  ;;  %v11829_v5 = vpop.f32.mrb[41].mxu0  ;;  %10277 = vmatmul.mubr.msk.f32.gmra.mrb[146].mxu0 %vm223_vm1, %v9091_v35  ;;  %v9108_v23 = vld [vmem:[%s10524_s27 + $0x1e1] sm:$0xff] }
 0x13b   : > { %1689 = vst.msk [vmem:[#allocation2 + $0x8] sm:$0xff] %vm223_vm1, %v1681_v36  ;;  %v1520_v8 = vadd.f32 %v11734_v4, %v1512_v37  ;;  %v1511_v38 = vld [vmem:[#allocation2 + $0x30] sm:$0xff]  ;;  %v11827_v33 = vpop.f32.mrb[41].mxu1  ;;  %10263 = vmatmul.mubr.msk.f32.gmra.mrb[146].mxu1 %vm223_vm1, %v9073_v21  ;;  %10295 = vmatprep.mubr.msk.f32.mxu0 %vm223_vm1, %v9120_v41 }
 0x13c   : > { %1688 = vst.msk [vmem:[#allocation2] sm:$0xff] %vm223_vm1, %v1680_v42  ;;  %v1519_v17 = vadd.f32 %v1511_v38, %v11746_v51  ;;  %v1675_v48 = vld [vmem:[#allocation2 + $0x18] sm:$0xff]  ;;  %10281 = vmatprep.mubr.msk.f32.mxu1 %vm223_vm1, %v9102_v40  ;;  %v9127_v40 = vld [vmem:[%s10524_s27 + $0x2a1] sm:$0xff] }
 0x13d   : > { %1528 = vst.msk [vmem:[#allocation2 + $0x38] sm:$0xff] %vm223_vm1, %v1520_v8  ;;  %v1683_v53 = vadd.f32 %v11695_v28, %v1675_v48  ;;  %v1674_v54 = vld [vmem:[#allocation2 + $0x10] sm:$0xff]  ;;  %v11846_v46 = vpop.f32.mrb[42].mxu0  ;;  %v11859_v28 = vld [vmem:[%s13383_s2 + $0xa4] sm:$0xf] }
 0x13e   : > { %1527 = vst.msk [vmem:[#allocation2 + $0x30] sm:$0xff] %vm223_vm1, %v1519_v17  ;;  %v1682_v4 = vadd.f32 %v1674_v54, %v11700_v34  ;;  %v11844_v59 = vpop.f32.mrb[42].mxu1  ;;  %v11852_v2 = vpop.f32.mrb[43].mxu0  ;;  %10296 = vmatmul.mubr.msk.f32.vlgmr.msra.gmra.mrb[148].mxu0 %vm223_vm1, %v9121_v12  ;;  %v11864_v34 = vld [vmem:[%s13383_s2 + $0xa8] sm:$0xf]  ;;  %v9109_v39 = vld [vmem:[%s10524_s27 + $0x1f1] sm:$0xff] }
 0x13f   : > { %1691 = vst.msk [vmem:[#allocation2 + $0x18] sm:$0xff] %vm223_vm1, %v1683_v53  ;;  %v11850_v51 = vpop.f32.mrb[43].mxu1  ;;  %10282 = vmatmul.mubr.msk.f32.vlgmr.msra.gmra.mrb[148].mxu1 %vm223_vm1, %v9103_v52  ;;  %10298 = vmatprep.mubr.msk.f32.mxu0 %vm223_vm1, %v9122_v60  ;;  %v9156_v41 = vld [vmem:[%s10524_s27 + $0x232] sm:$0xff]  ;;  %v9157_v54 = vld [vmem:[%s10524_s27 + $0x242] sm:$0xff] }
 0x140   : > { %1690 = vst.msk [vmem:[#allocation2 + $0x10] sm:$0xff] %vm223_vm1, %v1682_v4  ;;  %v1677_v10 = vld [vmem:[#allocation2 + $0x28] sm:$0xff]  ;;  %10284 = vmatprep.mubr.msk.f32.mxu1 %vm223_vm1, %v9104_v57  ;;  %10308 = vmatpush3.msk.msra.mxu1 %vm248_vm0, %v11742_v3  ;;  %v9139_v53 = vld [vmem:[%s10524_s27 + $0x192] sm:$0xff] }
 0x141   : > { %v1685_v9 = vadd.f32 %v11717_v45, %v1677_v10  ;;  %v1676_v55 = vld [vmem:[#allocation2 + $0x20] sm:$0xff]  ;;  %10322 = vmatpush3.msk.msra.mxu0 %vm248_vm0, %v11755_v63  ;;  %v11881_v13 = vpop.f32.mrb[44].mxu0  ;;  %10335 = vmatprep.subr.msk.mxu1 %vm248_vm0, %v11859_v28 }
 0x142   : > { %v1684_v15 = vadd.f32 %v1676_v55, %v11722_v47  ;;  %v1839_v1 = vld [vmem:[#allocation2 + $0x8] sm:$0xff]  ;;  %v11879_v61 = vpop.f32.mrb[44].mxu1  ;;  %10349 = vmatprep.subr.msk.mxu0 %vm248_vm0, %v11864_v34  ;;  %v11891_v63 = vpop.f32.mrb[45].mxu0  ;;  %10299 = vmatmul.mubr.msk.f32.gmra.mrb[150].mxu0 %vm223_vm1, %v9123_v49  ;;  %v9158_v49 = vld [vmem:[%s10524_s27 + $0x252] sm:$0xff] }
 0x143   : > { %1693 = vst.msk [vmem:[#allocation2 + $0x28] sm:$0xff] %vm223_vm1, %v1685_v9  ;;  %v1847_v45 = vadd.f32 %v11773_v0, %v1839_v1  ;;  %v1838_v3 = vld [vmem:[#allocation2] sm:$0xff]  ;;  %v11889_v47 = vpop.f32.mrb[45].mxu1  ;;  %10285 = vmatmul.mubr.msk.f32.gmra.mrb[150].mxu1 %vm223_vm1, %v9105_v56  ;;  %10301 = vmatprep.mubr.msk.f32.mxu0 %vm223_vm1, %v9124_v11  ;;  %v11958_v9 = vld [vmem:[%s13383_s2 + $0xac] sm:$0xf]  ;;  %v9141_v1 = vld [vmem:[%s10524_s27 + $0x1b2] sm:$0xff] }
 0x144   : > { %1692 = vst.msk [vmem:[#allocation2 + $0x20] sm:$0xff] %vm223_vm1, %v1684_v15  ;;  %v1846_v32 = vadd.f32 %v1838_v3, %v11783_v14  ;;  %v1679_v6 = vld [vmem:[#allocation2 + $0x38] sm:$0xff]  ;;  %10287 = vmatprep.mubr.msk.f32.mxu1 %vm223_vm1, %v9106_v7  ;;  %v9125_v0 = vld [vmem:[%s10524_s27 + $0x281] sm:$0xff]  ;;  %v11971_v11 = vld [vmem:[%s13383_s2 + $0xb0] sm:$0xf] }
 0x145   : > { %1855 = vst.msk [vmem:[#allocation2 + $0x8] sm:$0xff] %vm223_vm1, %v1847_v45  ;;  %v1687_v31 = vadd.f32 %v11736_v58, %v1679_v6  ;;  %v1678_v22 = vld [vmem:[#allocation2 + $0x30] sm:$0xff]  ;;  %v11909_v18 = vpop.f32.mrb[46].mxu0  ;;  %v9140_v4 = vld [vmem:[%s10524_s27 + $0x1a2] sm:$0xff] }
 0x146   : > { %1854 = vst.msk [vmem:[#allocation2] sm:$0xff] %vm223_vm1, %v1846_v32  ;;  %v1686_v27 = vadd.f32 %v1678_v22, %v11748_v62  ;;  %v1841_v14 = vld [vmem:[#allocation2 + $0x18] sm:$0xff]  ;;  %v11907_v30 = vpop.f32.mrb[46].mxu1  ;;  %v11915_v36 = vpop.f32.mrb[47].mxu0  ;;  %10302 = vmatmul.mubr.msk.f32.gmra.mrb[152].mxu0 %vm223_vm1, %v9125_v0  ;;  %v9159_v45 = vld [vmem:[%s10524_s27 + $0x262] sm:$0xff] }
 0x147   : > { %1695 = vst.msk [vmem:[#allocation2 + $0x38] sm:$0xff] %vm223_vm1, %v1687_v31  ;;  %v1849_v58 = vadd.f32 %v11799_v24, %v1841_v14  ;;  %v1840_v21 = vld [vmem:[#allocation2 + $0x10] sm:$0xff]  ;;  %v11913_v35 = vpop.f32.mrb[47].mxu1  ;;  %10288 = vmatmul.mubr.msk.f32.gmra.mrb[152].mxu1 %vm223_vm1, %v9107_v50  ;;  %10304 = vmatprep.mubr.msk.f32.mxu0 %vm223_vm1, %v9126_v26  ;;  %v9138_v24 = vld [vmem:[%s10524_s27 + $0x182] sm:$0xff] }
 0x148   : > { %1694 = vst.msk [vmem:[#allocation2 + $0x30] sm:$0xff] %vm223_vm1, %v1686_v27  ;;  %v1848_v62 = vadd.f32 %v1840_v21, %v11804_v20  ;;  %10290 = vmatprep.mubr.msk.f32.mxu1 %vm223_vm1, %v9108_v23  ;;  %v9142_v6 = vld [vmem:[%s10524_s27 + $0x1c2] sm:$0xff]  ;;  %v9143_v31 = vld [vmem:[%s10524_s27 + $0x1d2] sm:$0xff] }
 0x149   : > { %1857 = vst.msk [vmem:[#allocation2 + $0x18] sm:$0xff] %vm223_vm1, %v1849_v58  ;;  %v11931_v8 = vpop.f32.mrb[48].mxu0  ;;  %v9161_v22 = vld [vmem:[%s10524_s27 + $0x282] sm:$0xff]  ;;  %v9162_v14 = vld [vmem:[%s10524_s27 + $0x292] sm:$0xff] }
 0x14a   : > { %1856 = vst.msk [vmem:[#allocation2 + $0x10] sm:$0xff] %vm223_vm1, %v1848_v62  ;;  %v1843_v42 = vld [vmem:[#allocation2 + $0x28] sm:$0xff]  ;;  %v11929_v37 = vpop.f32.mrb[48].mxu1  ;;  %v11936_v48 = vpop.f32.mrb[49].mxu0  ;;  %10305 = vmatmul.mubr.msk.f32.gmra.mrb[154].mxu0 %vm223_vm1, %v9127_v40 }
 0x14b   : > { %v1851_v20 = vadd.f32 %v11821_v43, %v1843_v42  ;;  %v1842_v38 = vld [vmem:[#allocation2 + $0x20] sm:$0xff]  ;;  %v11934_v17 = vpop.f32.mrb[49].mxu1  ;;  %10291 = vmatmul.mubr.msk.f32.gmra.mrb[154].mxu1 %vm223_vm1, %v9109_v39  ;;  %10323 = vmatprep.mubr.msk.f32.mxu0 %vm223_vm1, %v9156_v41 }
 0x14c   : > { %v1850_v52 = vadd.f32 %v1842_v38, %v11827_v33  ;;  %v2005_v12 = vld [vmem:[#allocation2 + $0x8] sm:$0xff]  ;;  %10309 = vmatprep.mubr.msk.f32.mxu1 %vm223_vm1, %v9138_v24 }
 0x14d   : > { %1859 = vst.msk [vmem:[#allocation2 + $0x28] sm:$0xff] %vm223_vm1, %v1851_v20  ;;  %v2013_v43 = vadd.f32 %v11775_v19, %v2005_v12  ;;  %v2004_v57 = vld [vmem:[#allocation2] sm:$0xff]  ;;  %v11952_v33 = vpop.f32.mrb[50].mxu0  ;;  %v9145_v20 = vld [vmem:[%s10524_s27 + $0x1f2] sm:$0xff] }
 0x14e   : > { %1858 = vst.msk [vmem:[#allocation2 + $0x20] sm:$0xff] %vm223_vm1, %v1850_v52  ;;  %v2012_v60 = vadd.f32 %v2004_v57, %v11785_v16  ;;  %v1845_v10 = vld [vmem:[#allocation2 + $0x38] sm:$0xff]  ;;  %v11950_v56 = vpop.f32.mrb[50].mxu1  ;;  %v11964_v7 = vpop.f32.mrb[51].mxu0  ;;  %10324 = vmatmul.mubr.msk.f32.vlgmr.msra.gmra.mrb[156].mxu0 %vm223_vm1, %v9157_v54  ;;  %v9144_v27 = vld [vmem:[%s10524_s27 + $0x1e2] sm:$0xff] }
 0x14f   : > { %2021 = vst.msk [vmem:[#allocation2 + $0x8] sm:$0xff] %vm223_vm1, %v2013_v43  ;;  %v1853_v19 = vadd.f32 %v11844_v59, %v1845_v10  ;;  %v1844_v55 = vld [vmem:[#allocation2 + $0x30] sm:$0xff]  ;;  %v11962_v16 = vpop.f32.mrb[51].mxu1  ;;  %10310 = vmatmul.mubr.msk.f32.vlgmr.msra.gmra.mrb[156].mxu1 %vm223_vm1, %v9139_v53  ;;  %10326 = vmatprep.mubr.msk.f32.mxu0 %vm223_vm1, %v9158_v49  ;;  %v9174_v12 = vld [vmem:[%s10524_s27 + $0x183] sm:$0xff] }
 0x150   : > { %2020 = vst.msk [vmem:[#allocation2] sm:$0xff] %vm223_vm1, %v2012_v60  ;;  %v1852_v59 = vadd.f32 %v1844_v55, %v11850_v51  ;;  %v2007_v15 = vld [vmem:[#allocation2 + $0x18] sm:$0xff]  ;;  %10312 = vmatprep.mubr.msk.f32.mxu1 %vm223_vm1, %v9140_v4  ;;  %10336 = vmatpush3.msk.msra.mxu1 %vm248_vm0, %v11859_v28  ;;  %v9192_v53 = vld [vmem:[%s10524_s27 + $0x30] sm:$0xff] }
 0x151   : > { %1861 = vst.msk [vmem:[#allocation2 + $0x38] sm:$0xff] %vm223_vm1, %v1853_v19  ;;  %v2015_v3 = vadd.f32 %v11801_v25, %v2007_v15  ;;  %v2006_v32 = vld [vmem:[#allocation2 + $0x10] sm:$0xff]  ;;  %10350 = vmatpush3.msk.msra.mxu0 %vm248_vm0, %v11864_v34  ;;  %v11991_v0 = vpop.f32.mrb[52].mxu0  ;;  %10363 = vmatprep.subr.msk.mxu1 %vm248_vm0, %v11958_v9  ;;  %v9176_v19 = vld [vmem:[%s10524_s27 + $0x1a3] sm:$0xff] }
 0x152   : > { %v9160_v51 = vld [vmem:[%s10524_s27 + $0x272] sm:$0xff]  ;;  %1860 = vst.msk [vmem:[#allocation2 + $0x30] sm:$0xff] %vm223_vm1, %v1852_v59  ;;  %v2014_v50 = vadd.f32 %v2006_v32, %v11806_v29  ;;  %v11989_v28 = vpop.f32.mrb[52].mxu1  ;;  %10377 = vmatprep.subr.msk.mxu0 %vm248_vm0, %v11971_v11  ;;  %v12000_v34 = vpop.f32.mrb[53].mxu0  ;;  %10327 = vmatmul.mubr.msk.f32.gmra.mrb[158].mxu0 %vm223_vm1, %v9159_v45 }
 0x153   : > { %2023 = vst.msk [vmem:[#allocation2 + $0x18] sm:$0xff] %vm223_vm1, %v2015_v3  ;;  %v11998_v25 = vpop.f32.mrb[53].mxu1  ;;  %10313 = vmatmul.mubr.msk.f32.gmra.mrb[158].mxu1 %vm223_vm1, %v9141_v1  ;;  %10329 = vmatprep.mubr.msk.f32.mxu0 %vm223_vm1, %v9160_v51  ;;  %v9175_v49 = vld [vmem:[%s10524_s27 + $0x193] sm:$0xff] }
 0x154   : > { %2022 = vst.msk [vmem:[#allocation2 + $0x10] sm:$0xff] %vm223_vm1, %v2014_v50  ;;  %v2009_v29 = vld [vmem:[#allocation2 + $0x28] sm:$0xff]  ;;  %10315 = vmatprep.mubr.msk.f32.mxu1 %vm223_vm1, %v9142_v6  ;;  %v9194_v1 = vld [vmem:[%s10524_s27 + $0x50] sm:$0xff]  ;;  %v12078_v51 = vld [vmem:[%s13383_s2 + $0xb8] sm:$0xf] }
 0x155   : > { %v2017_v23 = vadd.f32 %v11823_v44, %v2009_v29  ;;  %v2008_v26 = vld [vmem:[#allocation2 + $0x20] sm:$0xff]  ;;  %v12015_v39 = vpop.f32.mrb[54].mxu0 }
 0x156   : > { %v2016_v58 = vadd.f32 %v2008_v26, %v11829_v5  ;;  %v2171_v21 = vld [vmem:[#allocation2 + $0x8] sm:$0xff]  ;;  %v12013_v62 = vpop.f32.mrb[54].mxu1  ;;  %v12021_v41 = vpop.f32.mrb[55].mxu0  ;;  %10330 = vmatmul.mubr.msk.f32.gmra.mrb[160].mxu0 %vm223_vm1, %v9161_v22 }
 0x157   : > { %2025 = vst.msk [vmem:[#allocation2 + $0x28] sm:$0xff] %vm223_vm1, %v2017_v23  ;;  %v2179_v40 = vadd.f32 %v11879_v61, %v2171_v21  ;;  %v2170_v24 = vld [vmem:[#allocation2] sm:$0xff]  ;;  %v12019_v44 = vpop.f32.mrb[55].mxu1  ;;  %10316 = vmatmul.mubr.msk.f32.gmra.mrb[160].mxu1 %vm223_vm1, %v9143_v31  ;;  %10332 = vmatprep.mubr.msk.f32.mxu0 %vm223_vm1, %v9162_v14 }
 0x158   : > { %2024 = vst.msk [vmem:[#allocation2 + $0x20] sm:$0xff] %vm223_vm1, %v2016_v58  ;;  %v2178_v5 = vadd.f32 %v2170_v24, %v11889_v47  ;;  %v2011_v42 = vld [vmem:[#allocation2 + $0x38] sm:$0xff]  ;;  %10318 = vmatprep.mubr.msk.f32.mxu1 %vm223_vm1, %v9144_v27  ;;  %v9163_v61 = vld [vmem:[%s10524_s27 + $0x2a2] sm:$0xff] }
 0x159   : > { %2187 = vst.msk [vmem:[#allocation2 + $0x8] sm:$0xff] %vm223_vm1, %v2179_v40  ;;  %v2019_v38 = vadd.f32 %v11846_v46, %v2011_v42  ;;  %v2010_v52 = vld [vmem:[#allocation2 + $0x30] sm:$0xff]  ;;  %v12039_v57 = vpop.f32.mrb[56].mxu0  ;;  %v9195_v31 = vld [vmem:[%s10524_s27 + $0x60] sm:$0xff] }
 0x15a   : > { %2186 = vst.msk [vmem:[#allocation2] sm:$0xff] %vm223_vm1, %v2178_v5  ;;  %v2018_v54 = vadd.f32 %v2010_v52, %v11852_v2  ;;  %v2173_v47 = vld [vmem:[#allocation2 + $0x18] sm:$0xff]  ;;  %v12037_v43 = vpop.f32.mrb[56].mxu1  ;;  %v12045_v10 = vpop.f32.mrb[57].mxu0  ;;  %10333 = vmatmul.mubr.msk.f32.gmra.mrb[162].mxu0 %vm223_vm1, %v9163_v61  ;;  %v9178_v26 = vld [vmem:[%s10524_s27 + $0x1c3] sm:$0xff] }
 0x15b   : > { %2027 = vst.msk [vmem:[#allocation2 + $0x38] sm:$0xff] %vm223_vm1, %v2019_v38  ;;  %v2181_v4 = vadd.f32 %v11907_v30, %v2173_v47  ;;  %v2172_v46 = vld [vmem:[#allocation2 + $0x10] sm:$0xff]  ;;  %v12043_v60 = vpop.f32.mrb[57].mxu1  ;;  %10319 = vmatmul.mubr.msk.f32.gmra.mrb[162].mxu1 %vm223_vm1, %v9145_v20  ;;  %10351 = vmatprep.mubr.msk.f32.mxu0 %vm223_vm1, %v9192_v53  ;;  %v9193_v30 = vld [vmem:[%s10524_s27 + $0x40] sm:$0xff] }
 0x15c   : > { %2026 = vst.msk [vmem:[#allocation2 + $0x30] sm:$0xff] %vm223_vm1, %v2018_v54  ;;  %v2180_v2 = vadd.f32 %v2172_v46, %v11913_v35  ;;  %10337 = vmatprep.mubr.msk.f32.mxu1 %vm223_vm1, %v9174_v12  ;;  %v12066_v35 = vld [vmem:[%s13383_s2 + $0xb4] sm:$0xf]  ;;  %v9180_v61 = vld [vmem:[%s10524_s27 + $0x1e3] sm:$0xff] }
 0x15d   : > { %2189 = vst.msk [vmem:[#allocation2 + $0x18] sm:$0xff] %vm223_vm1, %v2181_v4  ;;  %v12060_v15 = vpop.f32.mrb[58].mxu0  ;;  %v9179_v5 = vld [vmem:[%s10524_s27 + $0x1d3] sm:$0xff]  ;;  %v9199_v47 = vld [vmem:[%s10524_s27 + $0xa0] sm:$0xff] }
 0x15e   : > { %2188 = vst.msk [vmem:[#allocation2 + $0x10] sm:$0xff] %vm223_vm1, %v2180_v2  ;;  %v2175_v55 = vld [vmem:[#allocation2 + $0x28] sm:$0xff]  ;;  %v12058_v59 = vpop.f32.mrb[58].mxu1  ;;  %v12071_v6 = vpop.f32.mrb[59].mxu0  ;;  %10352 = vmatmul.mubr.msk.f32.vlgmr.msra.gmra.mrb[164].mxu0 %vm223_vm1, %v9193_v30  ;;  %v9198_v38 = vld [vmem:[%s10524_s27 + $0x90] sm:$0xff]  ;;  %v9210_v2 = vld [vmem:[%s10524_s27 + $0xe0] sm:$0xff] }
 0x15f   : > { %v2183_v45 = vadd.f32 %v11929_v37, %v2175_v55  ;;  %v2174_v3 = vld [vmem:[#allocation2 + $0x20] sm:$0xff]  ;;  %v12069_v32 = vpop.f32.mrb[59].mxu1  ;;  %10338 = vmatmul.mubr.msk.f32.vlgmr.msra.gmra.mrb[164].mxu1 %vm223_vm1, %v9175_v49  ;;  %v9177_v37 = vld [vmem:[%s10524_s27 + $0x1b3] sm:$0xff]  ;;  %10354 = vmatprep.mubr.msk.f32.mxu0 %vm223_vm1, %v9194_v1 }
 0x160   : > { %v2182_v50 = vadd.f32 %v2174_v3, %v11934_v17  ;;  %v2337_v29 = vld [vmem:[#allocation2 + $0x8] sm:$0xff]  ;;  %10340 = vmatprep.mubr.msk.f32.mxu1 %vm223_vm1, %v9176_v19  ;;  %10364 = vmatpush3.msk.msra.mxu1 %vm248_vm0, %v11958_v9  ;;  %v9196_v17 = vld [vmem:[%s10524_s27 + $0x70] sm:$0xff] }
 0x161   : > { %2191 = vst.msk [vmem:[#allocation2 + $0x28] sm:$0xff] %vm223_vm1, %v2183_v45  ;;  %v2345_v22 = vadd.f32 %v11881_v13, %v2337_v29  ;;  %v2336_v23 = vld [vmem:[#allocation2] sm:$0xff]  ;;  %10378 = vmatpush3.msk.msra.mxu0 %vm248_vm0, %v11971_v11  ;;  %v12097_v58 = vpop.f32.mrb[60].mxu0  ;;  %10391 = vmatprep.subr.msk.mxu1 %vm248_vm0, %v12066_v35  ;;  %v9228_v49 = vld [vmem:[%s10524_s27 + $0x31] sm:$0xff] }
 0x162   : > { %2190 = vst.msk [vmem:[#allocation2 + $0x20] sm:$0xff] %vm223_vm1, %v2182_v50  ;;  %v2344_v27 = vadd.f32 %v2336_v23, %v11891_v63  ;;  %v2177_v14 = vld [vmem:[#allocation2 + $0x38] sm:$0xff]  ;;  %v12095_v9 = vpop.f32.mrb[60].mxu1  ;;  %10405 = vmatprep.subr.msk.mxu0 %vm248_vm0, %v12078_v51  ;;  %v12107_v21 = vpop.f32.mrb[61].mxu0  ;;  %10355 = vmatmul.mubr.msk.f32.gmra.mrb[166].mxu0 %vm223_vm1, %v9195_v31  ;;  %v9212_v23 = vld [vmem:[%s10524_s27 + $0x100] sm:$0xff] }
 0x163   : > { %2353 = vst.msk [vmem:[#allocation2 + $0x8] sm:$0xff] %vm223_vm1, %v2345_v22  ;;  %v2185_v13 = vadd.f32 %v11950_v56, %v2177_v14  ;;  %v2176_v11 = vld [vmem:[#allocation2 + $0x30] sm:$0xff]  ;;  %v12105_v63 = vpop.f32.mrb[61].mxu1  ;;  %10341 = vmatmul.mubr.msk.f32.gmra.mrb[166].mxu1 %vm223_vm1, %v9177_v37  ;;  %10357 = vmatprep.mubr.msk.f32.mxu0 %vm223_vm1, %v9196_v17  ;;  %v9197_v56 = vld [vmem:[%s10524_s27 + $0x80] sm:$0xff] }
 0x164   : > { %2352 = vst.msk [vmem:[#allocation2] sm:$0xff] %vm223_vm1, %v2344_v27  ;;  %v2184_v40 = vadd.f32 %v2176_v11, %v11962_v16  ;;  %v2339_v24 = vld [vmem:[#allocation2 + $0x18] sm:$0xff]  ;;  %10343 = vmatprep.mubr.msk.f32.mxu1 %vm223_vm1, %v9178_v26  ;;  %v9211_v37 = vld [vmem:[%s10524_s27 + $0xf0] sm:$0xff] }
 0x165   : > { %2193 = vst.msk [vmem:[#allocation2 + $0x38] sm:$0xff] %vm223_vm1, %v2185_v13  ;;  %v2347_v42 = vadd.f32 %v11909_v18, %v2339_v24  ;;  %v2338_v20 = vld [vmem:[#allocation2 + $0x10] sm:$0xff]  ;;  %v12125_v12 = vpop.f32.mrb[62].mxu0  ;;  %v12174_v13 = vld [vmem:[%s13383_s2 + $0xbc] sm:$0xf] }
 0x166   : > { %2192 = vst.msk [vmem:[#allocation2 + $0x30] sm:$0xff] %vm223_vm1, %v2184_v40  ;;  %v2346_v16 = vadd.f32 %v2338_v20, %v11915_v36  ;;  %v12123_v52 = vpop.f32.mrb[62].mxu1  ;;  %v12130_v18 = vpop.f32.mrb[63].mxu0  ;;  %10358 = vmatmul.mubr.msk.f32.gmra.mrb[168].mxu0 %vm223_vm1, %v9197_v56  ;;  %v9181_v36 = vld [vmem:[%s10524_s27 + $0x1f3] sm:$0xff]  ;;  %v12187_v24 = vld [vmem:[%s13383_s2 + $0xc0] sm:$0xf] }
 0x167   : > { %2355 = vst.msk [vmem:[#allocation2 + $0x18] sm:$0xff] %vm223_vm1, %v2347_v42  ;;  %v12128_v53 = vpop.f32.mrb[63].mxu1  ;;  %10344 = vmatmul.mubr.msk.f32.gmra.mrb[168].mxu1 %vm223_vm1, %v9179_v5  ;;  %10360 = vmatprep.mubr.msk.f32.mxu0 %vm223_vm1, %v9198_v38  ;;  %v9230_v14 = vld [vmem:[%s10524_s27 + $0x51] sm:$0xff]  ;;  %v9231_v56 = vld [vmem:[%s10524_s27 + $0x61] sm:$0xff] }
 0x168   : > { %2354 = vst.msk [vmem:[#allocation2 + $0x10] sm:$0xff] %vm223_vm1, %v2346_v16  ;;  %v2341_v54 = vld [vmem:[#allocation2 + $0x28] sm:$0xff]  ;;  %10346 = vmatprep.mubr.msk.f32.mxu1 %vm223_vm1, %v9180_v61  ;;  %v9214_v42 = vld [vmem:[%s10524_s27 + $0x120] sm:$0xff]  ;;  %v9232_v20 = vld [vmem:[%s10524_s27 + $0x71] sm:$0xff] }
 0x169   : > { %v2349_v4 = vadd.f32 %v11931_v8, %v2341_v54  ;;  %v2340_v46 = vld [vmem:[#allocation2 + $0x20] sm:$0xff]  ;;  %v12145_v1 = vpop.f32.mrb[64].mxu0 }
 0x16a   : > { %v2348_v30 = vadd.f32 %v2340_v46, %v11936_v48  ;;  %v2503_v19 = vld [vmem:[#allocation2 + $0x8] sm:$0xff]  ;;  %v12143_v55 = vpop.f32.mrb[64].mxu1  ;;  %v12151_v8 = vpop.f32.mrb[65].mxu0  ;;  %10361 = vmatmul.mubr.msk.f32.gmra.mrb[170].mxu0 %vm223_vm1, %v9199_v47 }
 0x16b   : > { %2357 = vst.msk [vmem:[#allocation2 + $0x28] sm:$0xff] %vm223_vm1, %v2349_v4  ;;  %v2511_v45 = vadd.f32 %v11989_v28, %v2503_v19  ;;  %v2502_v3 = vld [vmem:[#allocation2] sm:$0xff]  ;;  %v12149_v50 = vpop.f32.mrb[65].mxu1  ;;  %10347 = vmatmul.mubr.msk.f32.gmra.mrb[170].mxu1 %vm223_vm1, %v9181_v36  ;;  %10379 = vmatprep.mubr.msk.f32.mxu0 %vm223_vm1, %v9228_v49  ;;  %v9215_v4 = vld [vmem:[%s10524_s27 + $0x130] sm:$0xff] }
 0x16c   : > { %2356 = vst.msk [vmem:[#allocation2 + $0x20] sm:$0xff] %vm223_vm1, %v2348_v30  ;;  %v2510_v48 = vadd.f32 %v2502_v3, %v11998_v25  ;;  %v2343_v29 = vld [vmem:[#allocation2 + $0x38] sm:$0xff]  ;;  %10365 = vmatprep.mubr.msk.f32.mxu1 %vm223_vm1, %v9210_v2  ;;  %v9229_v28 = vld [vmem:[%s10524_s27 + $0x41] sm:$0xff] }
 0x16d   : > { %2519 = vst.msk [vmem:[#allocation2 + $0x8] sm:$0xff] %vm223_vm1, %v2511_v45  ;;  %v2351_v31 = vadd.f32 %v11952_v33, %v2343_v29  ;;  %v2342_v22 = vld [vmem:[#allocation2 + $0x30] sm:$0xff]  ;;  %v12168_v27 = vpop.f32.mrb[66].mxu0  ;;  %v9233_v46 = vld [vmem:[%s10524_s27 + $0x81] sm:$0xff] }
 0x16e   : > { %2518 = vst.msk [vmem:[#allocation2] sm:$0xff] %vm223_vm1, %v2510_v48  ;;  %v2350_v26 = vadd.f32 %v2342_v22, %v11964_v7  ;;  %v2505_v17 = vld [vmem:[#allocation2 + $0x18] sm:$0xff]  ;;  %v12166_v25 = vpop.f32.mrb[66].mxu1  ;;  %v12180_v40 = vpop.f32.mrb[67].mxu0  ;;  %10380 = vmatmul.mubr.msk.f32.vlgmr.msra.gmra.mrb[172].mxu0 %vm223_vm1, %v9229_v28  ;;  %v9216_v49 = vld [vmem:[%s10524_s27 + $0x140] sm:$0xff] }
 0x16f   : > { %2359 = vst.msk [vmem:[#allocation2 + $0x38] sm:$0xff] %vm223_vm1, %v2351_v31  ;;  %v2513_v33 = vadd.f32 %v12013_v62, %v2505_v17  ;;  %v2504_v11 = vld [vmem:[#allocation2 + $0x10] sm:$0xff]  ;;  %v12178_v7 = vpop.f32.mrb[67].mxu1  ;;  %10366 = vmatmul.mubr.msk.f32.vlgmr.msra.gmra.mrb[172].mxu1 %vm223_vm1, %v9211_v37  ;;  %10382 = vmatprep.mubr.msk.f32.mxu0 %vm223_vm1, %v9230_v14 }
 0x170   : > { %2358 = vst.msk [vmem:[#allocation2 + $0x30] sm:$0xff] %vm223_vm1, %v2350_v26  ;;  %v2512_v5 = vadd.f32 %v2504_v11, %v12019_v44  ;;  %10368 = vmatprep.mubr.msk.f32.mxu1 %vm223_vm1, %v9212_v23  ;;  %v9213_v62 = vld [vmem:[%s10524_s27 + $0x110] sm:$0xff]  ;;  %10392 = vmatpush3.msk.msra.mxu1 %vm248_vm0, %v12066_v35  ;;  %v9246_v26 = vld [vmem:[%s10524_s27 + $0xe1] sm:$0xff] }
 0x171   : > { %2521 = vst.msk [vmem:[#allocation2 + $0x18] sm:$0xff] %vm223_vm1, %v2513_v33  ;;  %10406 = vmatpush3.msk.msra.mxu0 %vm248_vm0, %v12078_v51  ;;  %v12205_v38 = vpop.f32.mrb[68].mxu0  ;;  %10419 = vmatprep.subr.msk.mxu1 %vm248_vm0, %v12174_v13  ;;  %v9234_v30 = vld [vmem:[%s10524_s27 + $0x91] sm:$0xff] }
 0x172   : > { %2520 = vst.msk [vmem:[#allocation2 + $0x10] sm:$0xff] %vm223_vm1, %v2512_v5  ;;  %v2507_v44 = vld [vmem:[#allocation2 + $0x28] sm:$0xff]  ;;  %v12203_v61 = vpop.f32.mrb[68].mxu1  ;;  %10433 = vmatprep.subr.msk.mxu0 %vm248_vm0, %v12187_v24  ;;  %v12214_v54 = vpop.f32.mrb[69].mxu0  ;;  %10383 = vmatmul.mubr.msk.f32.gmra.mrb[174].mxu0 %vm223_vm1, %v9231_v56  ;;  %v9217_v31 = vld [vmem:[%s10524_s27 + $0x150] sm:$0xff] }
 0x173   : > { %v2515_v35 = vadd.f32 %v12037_v43, %v2507_v44  ;;  %v2506_v51 = vld [vmem:[#allocation2 + $0x20] sm:$0xff]  ;;  %v12212_v16 = vpop.f32.mrb[69].mxu1  ;;  %10369 = vmatmul.mubr.msk.f32.gmra.mrb[174].mxu1 %vm223_vm1, %v9213_v62  ;;  %10385 = vmatprep.mubr.msk.f32.mxu0 %vm223_vm1, %v9232_v20  ;;  %v9264_v17 = vld [vmem:[%s10524_s27 + $0x32] sm:$0xff] }
 0x174   : > { %v2514_v36 = vadd.f32 %v2506_v51, %v12043_v60  ;;  %v2670_v47 = vld [vmem:[#allocation2 + $0x8] sm:$0xff]  ;;  %10371 = vmatprep.mubr.msk.f32.mxu1 %vm223_vm1, %v9214_v42 }
 0x175   : > { %2523 = vst.msk [vmem:[#allocation2 + $0x28] sm:$0xff] %vm223_vm1, %v2515_v35  ;;  %v2678_v43 = vadd.f32 %v11991_v0, %v2670_v47  ;;  %v2669_v2 = vld [vmem:[#allocation2] sm:$0xff]  ;;  %v12231_v3 = vpop.f32.mrb[70].mxu0  ;;  %v9266_v47 = vld [vmem:[%s10524_s27 + $0x52] sm:$0xff] }
 0x176   : > { %2522 = vst.msk [vmem:[#allocation2 + $0x20] sm:$0xff] %vm223_vm1, %v2514_v36  ;;  %v2677_v19 = vadd.f32 %v2669_v2, %v12000_v34  ;;  %v2509_v60 = vld [vmem:[#allocation2 + $0x38] sm:$0xff]  ;;  %v12229_v45 = vpop.f32.mrb[70].mxu1  ;;  %v12237_v37 = vpop.f32.mrb[71].mxu0  ;;  %10386 = vmatmul.mubr.msk.f32.gmra.mrb[176].mxu0 %vm223_vm1, %v9233_v46  ;;  %v9265_v62 = vld [vmem:[%s10524_s27 + $0x42] sm:$0xff] }
 0x177   : > { %2686 = vst.msk [vmem:[#allocation2 + $0x8] sm:$0xff] %vm223_vm1, %v2678_v43  ;;  %v2517_v48 = vadd.f32 %v12058_v59, %v2509_v60  ;;  %v2508_v0 = vld [vmem:[#allocation2 + $0x30] sm:$0xff]  ;;  %v12235_v29 = vpop.f32.mrb[71].mxu1  ;;  %10372 = vmatmul.mubr.msk.f32.gmra.mrb[176].mxu1 %vm223_vm1, %v9215_v4  ;;  %10388 = vmatprep.mubr.msk.f32.mxu0 %vm223_vm1, %v9234_v30  ;;  %v9235_v59 = vld [vmem:[%s10524_s27 + $0xa1] sm:$0xff] }
 0x178   : > { %2685 = vst.msk [vmem:[#allocation2] sm:$0xff] %vm223_vm1, %v2677_v19  ;;  %v2516_v34 = vadd.f32 %v2508_v0, %v12069_v32  ;;  %v2672_v28 = vld [vmem:[#allocation2 + $0x18] sm:$0xff]  ;;  %10374 = vmatprep.mubr.msk.f32.mxu1 %vm223_vm1, %v9216_v49  ;;  %v9248_v20 = vld [vmem:[%s10524_s27 + $0x101] sm:$0xff] }
 0x179   : > { %2525 = vst.msk [vmem:[#allocation2 + $0x38] sm:$0xff] %vm223_vm1, %v2517_v48  ;;  %v2680_v22 = vadd.f32 %v12015_v39, %v2672_v28  ;;  %v2671_v23 = vld [vmem:[#allocation2 + $0x10] sm:$0xff]  ;;  %v12255_v33 = vpop.f32.mrb[72].mxu0  ;;  %v9250_v60 = vld [vmem:[%s10524_s27 + $0x121] sm:$0xff] }
 0x17a   : > { %2524 = vst.msk [vmem:[#allocation2 + $0x30] sm:$0xff] %vm223_vm1, %v2516_v34  ;;  %v2679_v32 = vadd.f32 %v2671_v23, %v12021_v41  ;;  %v12253_v14 = vpop.f32.mrb[72].mxu1  ;;  %v12260_v5 = vpop.f32.mrb[73].mxu0  ;;  %10389 = vmatmul.mubr.msk.f32.gmra.mrb[178].mxu0 %vm223_vm1, %v9235_v59  ;;  %v9247_v41 = vld [vmem:[%s10524_s27 + $0xf1] sm:$0xff] }
 0x17b   : > { %2688 = vst.msk [vmem:[#allocation2 + $0x18] sm:$0xff] %vm223_vm1, %v2680_v22  ;;  %v12258_v11 = vpop.f32.mrb[73].mxu1  ;;  %10375 = vmatmul.mubr.msk.f32.gmra.mrb[178].mxu1 %vm223_vm1, %v9217_v31  ;;  %10407 = vmatprep.mubr.msk.f32.mxu0 %vm223_vm1, %v9264_v17  ;;  %v9249_v49 = vld [vmem:[%s10524_s27 + $0x111] sm:$0xff]  ;;  %v9269_v22 = vld [vmem:[%s10524_s27 + $0x82] sm:$0xff] }
 0x17c   : > { %2687 = vst.msk [vmem:[#allocation2 + $0x10] sm:$0xff] %vm223_vm1, %v2679_v32  ;;  %v2674_v39 = vld [vmem:[#allocation2 + $0x28] sm:$0xff]  ;;  %10393 = vmatprep.mubr.msk.f32.mxu1 %vm223_vm1, %v9246_v26  ;;  %v9251_v59 = vld [vmem:[%s10524_s27 + $0x131] sm:$0xff] }
 0x17d   : > { %v2682_v56 = vadd.f32 %v12039_v57, %v2674_v39  ;;  %v2673_v42 = vld [vmem:[#allocation2 + $0x20] sm:$0xff]  ;;  %v12274_v36 = vpop.f32.mrb[74].mxu0  ;;  %v9270_v23 = vld [vmem:[%s10524_s27 + $0x92] sm:$0xff] }
 0x17e   : > { %v2681_v44 = vadd.f32 %v2673_v42, %v12045_v10  ;;  %v2837_v35 = vld [vmem:[#allocation2 + $0x8] sm:$0xff]  ;;  %v12272_v51 = vpop.f32.mrb[74].mxu1  ;;  %v12281_v57 = vpop.f32.mrb[75].mxu0  ;;  %10408 = vmatmul.mubr.msk.f32.vlgmr.msra.gmra.mrb[180].mxu0 %vm223_vm1, %v9265_v62 }
 0x17f   : > { %2690 = vst.msk [vmem:[#allocation2 + $0x28] sm:$0xff] %vm223_vm1, %v2682_v56  ;;  %v2845_v4 = vadd.f32 %v12095_v9, %v2837_v35  ;;  %v2836_v46 = vld [vmem:[#allocation2] sm:$0xff]  ;;  %v12279_v43 = vpop.f32.mrb[75].mxu1  ;;  %10394 = vmatmul.mubr.msk.f32.vlgmr.msra.gmra.mrb[180].mxu1 %vm223_vm1, %v9247_v41  ;;  %10410 = vmatprep.mubr.msk.f32.mxu0 %vm223_vm1, %v9266_v47 }
 0x180   : > { %2689 = vst.msk [vmem:[#allocation2 + $0x20] sm:$0xff] %vm223_vm1, %v2681_v44  ;;  %v2844_v10 = vadd.f32 %v2836_v46, %v12105_v63  ;;  %v2676_v2 = vld [vmem:[#allocation2 + $0x38] sm:$0xff]  ;;  %10396 = vmatprep.mubr.msk.f32.mxu1 %vm223_vm1, %v9248_v20  ;;  %10420 = vmatpush3.msk.msra.mxu1 %vm248_vm0, %v12174_v13  ;;  %v9267_v9 = vld [vmem:[%s10524_s27 + $0x62] sm:$0xff] }
 0x181   : > { %2853 = vst.msk [vmem:[#allocation2 + $0x8] sm:$0xff] %vm223_vm1, %v2845_v4  ;;  %v2684_v30 = vadd.f32 %v12060_v15, %v2676_v2  ;;  %v2675_v19 = vld [vmem:[#allocation2 + $0x30] sm:$0xff]  ;;  %10434 = vmatpush3.msk.msra.mxu0 %vm248_vm0, %v12187_v24  ;;  %v12303_v34 = vpop.f32.mrb[76].mxu0  ;;  %v9271_v44 = vld [vmem:[%s10524_s27 + $0xa2] sm:$0xff] }
 0x182   : > { %v9268_v63 = vld [vmem:[%s10524_s27 + $0x72] sm:$0xff]  ;;  %2852 = vst.msk [vmem:[#allocation2] sm:$0xff] %vm223_vm1, %v2844_v10  ;;  %v2683_v48 = vadd.f32 %v2675_v19, %v12071_v6  ;;  %v12301_v0 = vpop.f32.mrb[76].mxu1  ;;  %v12309_v31 = vpop.f32.mrb[77].mxu0  ;;  %10411 = vmatmul.mubr.msk.f32.gmra.mrb[182].mxu0 %vm223_vm1, %v9267_v9  ;;  %v9282_v47 = vld [vmem:[%s10524_s27 + $0xe2] sm:$0xff] }
 0x183   : > { %v2839_v13 = vld [vmem:[#allocation2 + $0x18] sm:$0xff]  ;;  %2692 = vst.msk [vmem:[#allocation2 + $0x38] sm:$0xff] %vm223_vm1, %v2684_v30  ;;  %v2838_v28 = vld [vmem:[#allocation2 + $0x10] sm:$0xff]  ;;  %v12307_v24 = vpop.f32.mrb[77].mxu1  ;;  %10397 = vmatmul.mubr.msk.f32.gmra.mrb[182].mxu1 %vm223_vm1, %v9249_v49  ;;  %10413 = vmatprep.mubr.msk.f32.mxu0 %vm223_vm1, %v9268_v63 }
 0x184   : > { %v2847_v15 = vadd.f32 %v12123_v52, %v2839_v13  ;;  %2691 = vst.msk [vmem:[#allocation2 + $0x30] sm:$0xff] %vm223_vm1, %v2683_v48  ;;  %v2846_v6 = vadd.f32 %v2838_v28, %v12128_v53  ;;  %10399 = vmatprep.mubr.msk.f32.mxu1 %vm223_vm1, %v9250_v60  ;;  %v9252_v52 = vld [vmem:[%s10524_s27 + $0x141] sm:$0xff]  ;;  %v9253_v20 = vld [vmem:[%s10524_s27 + $0x151] sm:$0xff] }
 0x185   : > { %v12325_v32 = vpop.f32.mrb[78].mxu0  ;;  %v9300_v4 = vld [vmem:[%s10524_s27 + $0x33] sm:$0xff]  ;;  %v9284_v13 = vld [vmem:[%s10524_s27 + $0x102] sm:$0xff] }
 0x186   : > { %2855 = vst.msk [vmem:[#allocation2 + $0x18] sm:$0xff] %vm223_vm1, %v2847_v15  ;;  %2854 = vst.msk [vmem:[#allocation2 + $0x10] sm:$0xff] %vm223_vm1, %v2846_v6  ;;  %v2841_v26 = vld [vmem:[#allocation2 + $0x28] sm:$0xff]  ;;  %v12323_v17 = vpop.f32.mrb[78].mxu1  ;;  %v12330_v62 = vpop.f32.mrb[79].mxu0  ;;  %10414 = vmatmul.mubr.msk.f32.gmra.mrb[184].mxu0 %vm223_vm1, %v9269_v22  ;;  %v9283_v60 = vld [vmem:[%s10524_s27 + $0xf2] sm:$0xff] }
 0x187   : > { %v2849_v53 = vadd.f32 %v12143_v55, %v2841_v26  ;;  %v2840_v39 = vld [vmem:[#allocation2 + $0x20] sm:$0xff]  ;;  %v12328_v41 = vpop.f32.mrb[79].mxu1  ;;  %10400 = vmatmul.mubr.msk.f32.gmra.mrb[184].mxu1 %vm223_vm1, %v9251_v59  ;;  %10416 = vmatprep.mubr.msk.f32.mxu0 %vm223_vm1, %v9270_v23  ;;  %v9302_v15 = vld [vmem:[%s10524_s27 + $0x53] sm:$0xff] }
 0x188   : > { %v2848_v56 = vadd.f32 %v2840_v39, %v12149_v50  ;;  %v3003_v42 = vld [vmem:[#allocation2 + $0x8] sm:$0xff]  ;;  %10402 = vmatprep.mubr.msk.f32.mxu1 %vm223_vm1, %v9252_v52  ;;  %v9304_v39 = vld [vmem:[%s10524_s27 + $0x73] sm:$0xff] }
 0x189   : > { %2857 = vst.msk [vmem:[#allocation2 + $0x28] sm:$0xff] %vm223_vm1, %v2849_v53  ;;  %v3011_v55 = vadd.f32 %v12097_v58, %v3003_v42  ;;  %v3002_v35 = vld [vmem:[#allocation2] sm:$0xff]  ;;  %v12347_v2 = vpop.f32.mrb[80].mxu0 }
 0x18a   : > { %2856 = vst.msk [vmem:[#allocation2 + $0x20] sm:$0xff] %vm223_vm1, %v2848_v56  ;;  %v3010_v46 = vadd.f32 %v3002_v35, %v12107_v21  ;;  %v2843_v50 = vld [vmem:[#allocation2 + $0x38] sm:$0xff]  ;;  %v12345_v10 = vpop.f32.mrb[80].mxu1  ;;  %v12353_v30 = vpop.f32.mrb[81].mxu0  ;;  %10417 = vmatmul.mubr.msk.f32.gmra.mrb[186].mxu0 %vm223_vm1, %v9271_v44  ;;  %v9303_v52 = vld [vmem:[%s10524_s27 + $0x63] sm:$0xff] }
 0x18b   : > { %3019 = vst.msk [vmem:[#allocation2 + $0x8] sm:$0xff] %vm223_vm1, %v3011_v55  ;;  %v2851_v49 = vadd.f32 %v12166_v25, %v2843_v50  ;;  %v2842_v58 = vld [vmem:[#allocation2 + $0x30] sm:$0xff]  ;;  %v12351_v9 = vpop.f32.mrb[81].mxu1  ;;  %10403 = vmatmul.mubr.msk.f32.gmra.mrb[186].mxu1 %vm223_vm1, %v9253_v20  ;;  %10435 = vmatprep.mubr.msk.f32.mxu0 %vm223_vm1, %v9300_v4  ;;  %v9301_v25 = vld [vmem:[%s10524_s27 + $0x43] sm:$0xff] }
 0x18c   : > { %3018 = vst.msk [vmem:[#allocation2] sm:$0xff] %vm223_vm1, %v3010_v46  ;;  %v2850_v21 = vadd.f32 %v2842_v58, %v12178_v7  ;;  %10421 = vmatprep.mubr.msk.f32.mxu1 %vm223_vm1, %v9282_v47  ;;  %v9286_v53 = vld [vmem:[%s10524_s27 + $0x122] sm:$0xff]  ;;  %v9287_v46 = vld [vmem:[%s10524_s27 + $0x132] sm:$0xff] }
 0x18d   : > { %v3005_v19 = vld [vmem:[#allocation2 + $0x18] sm:$0xff]  ;;  %2859 = vst.msk [vmem:[#allocation2 + $0x38] sm:$0xff] %vm223_vm1, %v2851_v49  ;;  %v3004_v48 = vld [vmem:[#allocation2 + $0x10] sm:$0xff]  ;;  %v12371_v6 = vpop.f32.mrb[82].mxu0  ;;  %v9288_v58 = vld [vmem:[%s10524_s27 + $0x142] sm:$0xff] }
 0x18e   : > { %v3013_v63 = vadd.f32 %v12125_v12, %v3005_v19  ;;  %2858 = vst.msk [vmem:[#allocation2 + $0x30] sm:$0xff] %vm223_vm1, %v2850_v21  ;;  %v3012_v7 = vadd.f32 %v3004_v48, %v12130_v18  ;;  %v12369_v28 = vpop.f32.mrb[82].mxu1  ;;  %v12376_v12 = vpop.f32.mrb[83].mxu0  ;;  %10436 = vmatmul.mubr.msk.f32.vlgmr.msra.gmra.mrb[188].mxu0 %vm223_vm1, %v9301_v25  ;;  %v9285_v18 = vld [vmem:[%s10524_s27 + $0x112] sm:$0xff] }
 0x18f   : > { %v12374_v59 = vpop.f32.mrb[83].mxu1  ;;  %10422 = vmatmul.mubr.msk.f32.vlgmr.msra.gmra.mrb[188].mxu1 %vm223_vm1, %v9283_v60  ;;  %10438 = vmatprep.mubr.msk.f32.mxu0 %vm223_vm1, %v9302_v15  ;;  %v9306_v21 = vld [vmem:[%s10524_s27 + $0x93] sm:$0xff] }
 0x190   : > { %3021 = vst.msk [vmem:[#allocation2 + $0x18] sm:$0xff] %vm223_vm1, %v3013_v63  ;;  %3020 = vst.msk [vmem:[#allocation2 + $0x10] sm:$0xff] %vm223_vm1, %v3012_v7  ;;  %v3007_v22 = vld [vmem:[#allocation2 + $0x28] sm:$0xff]  ;;  %10424 = vmatprep.mubr.msk.f32.mxu1 %vm223_vm1, %v9284_v13  ;;  %v9289_v15 = vld [vmem:[%s10524_s27 + $0x152] sm:$0xff] }
 0x191   : > { %v3015_v23 = vadd.f32 %v12145_v1, %v3007_v22  ;;  %v3006_v26 = vld [vmem:[#allocation2 + $0x20] sm:$0xff]  ;;  %v12391_v44 = vpop.f32.mrb[84].mxu0 }
 0x192   : > { %v3014_v56 = vadd.f32 %v3006_v26, %v12151_v8  ;;  %v3169_v42 = vld [vmem:[#allocation2 + $0x8] sm:$0xff]  ;;  %v12389_v20 = vpop.f32.mrb[84].mxu1  ;;  %v12397_v47 = vpop.f32.mrb[85].mxu0  ;;  %10439 = vmatmul.mubr.msk.f32.gmra.mrb[190].mxu0 %vm223_vm1, %v9303_v52 }
 0x193   : > { %3023 = vst.msk [vmem:[#allocation2 + $0x28] sm:$0xff] %vm223_vm1, %v3015_v23  ;;  %v3177_v55 = vadd.f32 %v12203_v61, %v3169_v42  ;;  %v3168_v35 = vld [vmem:[#allocation2] sm:$0xff]  ;;  %v12395_v1 = vpop.f32.mrb[85].mxu1  ;;  %10425 = vmatmul.mubr.msk.f32.gmra.mrb[190].mxu1 %vm223_vm1, %v9285_v18  ;;  %10441 = vmatprep.mubr.msk.f32.mxu0 %vm223_vm1, %v9304_v39 }
 0x194   : > { %3022 = vst.msk [vmem:[#allocation2 + $0x20] sm:$0xff] %vm223_vm1, %v3014_v56  ;;  %v3176_v8 = vadd.f32 %v3168_v35, %v12212_v16  ;;  %v3009_v4 = vld [vmem:[#allocation2 + $0x38] sm:$0xff]  ;;  %10427 = vmatprep.mubr.msk.f32.mxu1 %vm223_vm1, %v9286_v53  ;;  %v9305_v61 = vld [vmem:[%s10524_s27 + $0x83] sm:$0xff] }
 0x195   : > { %3185 = vst.msk [vmem:[#allocation2 + $0x8] sm:$0xff] %vm223_vm1, %v3177_v55  ;;  %v3017_v50 = vadd.f32 %v12168_v27, %v3009_v4  ;;  %v3008_v49 = vld [vmem:[#allocation2 + $0x30] sm:$0xff]  ;;  %v12415_v25 = vpop.f32.mrb[86].mxu0  ;;  %v9307_v7 = vld [vmem:[%s10524_s27 + $0xa3] sm:$0xff]  ;;  %s8346_s27 = sld [smem:[#allocation3]] }
 0x196   : > { %3184 = vst.msk [vmem:[#allocation2] sm:$0xff] %vm223_vm1, %v3176_v8  ;;  %v3016_v19 = vadd.f32 %v3008_v49, %v12180_v40  ;;  %v12413_v60 = vpop.f32.mrb[86].mxu1  ;;  %v12421_v13 = vpop.f32.mrb[87].mxu0  ;;  %10442 = vmatmul.mubr.msk.f32.gmra.mrb[192].mxu0 %vm223_vm1, %v9305_v61 }
 0x197   : > { %v3171_v16 = vld [vmem:[#allocation2 + $0x18] sm:$0xff]  ;;  %3025 = vst.msk [vmem:[#allocation2 + $0x38] sm:$0xff] %vm223_vm1, %v3017_v50  ;;  %v3170_v48 = vld [vmem:[#allocation2 + $0x10] sm:$0xff]  ;;  %v12419_v27 = vpop.f32.mrb[87].mxu1  ;;  %10428 = vmatmul.mubr.msk.f32.gmra.mrb[192].mxu1 %vm223_vm1, %v9287_v46  ;;  %10444 = vmatprep.mubr.msk.f32.mxu0 %vm223_vm1, %v9306_v21 }
 0x198   : > { %v3179_v63 = vadd.f32 %v12229_v45, %v3171_v16  ;;  %3024 = vst.msk [vmem:[#allocation2 + $0x30] sm:$0xff] %vm223_vm1, %v3016_v19  ;;  %v3178_v40 = vadd.f32 %v3170_v48, %v12235_v29  ;;  %10430 = vmatprep.mubr.msk.f32.mxu1 %vm223_vm1, %v9288_v58 }
 0x199   : > { %v12435_v18 = vpop.f32.mrb[88].mxu0 }
 0x19a   : > { %3187 = vst.msk [vmem:[#allocation2 + $0x18] sm:$0xff] %vm223_vm1, %v3179_v63  ;;  %3186 = vst.msk [vmem:[#allocation2 + $0x10] sm:$0xff] %vm223_vm1, %v3178_v40  ;;  %v3173_v45 = vld [vmem:[#allocation2 + $0x28] sm:$0xff]  ;;  %v12433_v22 = vpop.f32.mrb[88].mxu1  ;;  %v12440_v29 = vpop.f32.mrb[89].mxu0  ;;  %10445 = vmatmul.mubr.msk.f32.gmra.mrb[194].mxu0 %vm223_vm1, %v9307_v7 }
 0x19b   : > { %v3181_v52 = vadd.f32 %v12253_v14, %v3173_v45  ;;  %v3172_v23 = vld [vmem:[#allocation2 + $0x20] sm:$0xff]  ;;  %v12438_v26 = vpop.f32.mrb[89].mxu1  ;;  %10431 = vmatmul.mubr.msk.f32.gmra.mrb[194].mxu1 %vm223_vm1, %v9289_v15  ;;  %s8387_s24 = ssub.f32 1.0, %s8346_s27 }
 0x19c   : > { %v3180_v53 = vadd.f32 %v3172_v23, %v12258_v11  ;;  %v3335_v39 = vld [vmem:[#allocation2 + $0x8] sm:$0xff] }
 0x19d   : > { %3189 = vst.msk [vmem:[#allocation2 + $0x28] sm:$0xff] %vm223_vm1, %v3181_v52  ;;  %v3343_v56 = vadd.f32 %v12205_v38, %v3335_v39  ;;  %v3334_v42 = vld [vmem:[#allocation2] sm:$0xff]  ;;  %v12451_v8 = vpop.f32.mrb[90].mxu0 }
 0x19e   : > { %3188 = vst.msk [vmem:[#allocation2 + $0x20] sm:$0xff] %vm223_vm1, %v3180_v53  ;;  %v3342_v14 = vadd.f32 %v3334_v42, %v12214_v54  ;;  %v3175_v55 = vld [vmem:[#allocation2 + $0x38] sm:$0xff]  ;;  %v12449_v35 = vpop.f32.mrb[90].mxu1  ;;  %v12457_v61 = vpop.f32.mrb[91].mxu0 }
 0x19f   : > { %3351 = vst.msk [vmem:[#allocation2 + $0x8] sm:$0xff] %vm223_vm1, %v3343_v56  ;;  %v3183_v4 = vadd.f32 %v12272_v51, %v3175_v55  ;;  %v3174_v11 = vld [vmem:[#allocation2 + $0x30] sm:$0xff]  ;;  %v12455_v46 = vpop.f32.mrb[91].mxu1 }
 0x1a0   : > { %3350 = vst.msk [vmem:[#allocation2] sm:$0xff] %vm223_vm1, %v3342_v14  ;;  %v3182_v38 = vadd.f32 %v3174_v11, %v12279_v43 }
 0x1a1   : > { %v3337_v50 = vld [vmem:[#allocation2 + $0x18] sm:$0xff]  ;;  %3191 = vst.msk [vmem:[#allocation2 + $0x38] sm:$0xff] %vm223_vm1, %v3183_v4  ;;  %v3336_v49 = vld [vmem:[#allocation2 + $0x10] sm:$0xff]  ;;  %v12467_v21 = vpop.f32.mrb[92].mxu0 }
 0x1a2   : > { %v3345_v54 = vadd.f32 %v12231_v3, %v3337_v50  ;;  %3190 = vst.msk [vmem:[#allocation2 + $0x30] sm:$0xff] %vm223_vm1, %v3182_v38  ;;  %v3344_v58 = vadd.f32 %v3336_v49, %v12237_v37  ;;  %v12465_v51 = vpop.f32.mrb[92].mxu1  ;;  %v12472_v16 = vpop.f32.mrb[93].mxu0 }
 0x1a3   : > { %v12470_v19 = vpop.f32.mrb[93].mxu1 }
 0x1a4   : > { %3353 = vst.msk [vmem:[#allocation2 + $0x18] sm:$0xff] %vm223_vm1, %v3345_v54  ;;  %3352 = vst.msk [vmem:[#allocation2 + $0x10] sm:$0xff] %vm223_vm1, %v3344_v58  ;;  %v3339_v43 = vld [vmem:[#allocation2 + $0x28] sm:$0xff] }
 0x1a5   : > { %v3347_v3 = vadd.f32 %v12255_v33, %v3339_v43  ;;  %v3338_v63 = vld [vmem:[#allocation2 + $0x20] sm:$0xff]  ;;  %v12479_v15 = vpop.f32.mrb[94].mxu0 }
 0x1a6   : > { %v3346_v48 = vadd.f32 %v3338_v63, %v12260_v5  ;;  %v3501_v40 = vld [vmem:[#allocation2 + $0x8] sm:$0xff]  ;;  %v12477_v37 = vpop.f32.mrb[94].mxu1  ;;  %v12485_v23 = vpop.f32.mrb[95].mxu0 }
 0x1a7   : > { %3355 = vst.msk [vmem:[#allocation2 + $0x28] sm:$0xff] %vm223_vm1, %v3347_v3  ;;  %v3509_v7 = vadd.f32 %v12301_v0, %v3501_v40  ;;  %v3500_v45 = vld [vmem:[#allocation2] sm:$0xff]  ;;  %v12483_v52 = vpop.f32.mrb[95].mxu1 }
 0x1a8   : > { %3354 = vst.msk [vmem:[#allocation2 + $0x20] sm:$0xff] %vm223_vm1, %v3346_v48  ;;  %v3508_v33 = vadd.f32 %v3500_v45, %v12307_v24  ;;  %v3341_v53 = vld [vmem:[#allocation2 + $0x38] sm:$0xff] }
 0x1a9   : > { %3517 = vst.msk [vmem:[#allocation2 + $0x8] sm:$0xff] %vm223_vm1, %v3509_v7  ;;  %v3349_v5 = vadd.f32 %v12274_v36, %v3341_v53  ;;  %v3340_v39 = vld [vmem:[#allocation2 + $0x30] sm:$0xff]  ;;  %v12495_v14 = vpop.f32.mrb[96].mxu0 }
 0x1aa   : > { %3516 = vst.msk [vmem:[#allocation2] sm:$0xff] %vm223_vm1, %v3508_v33  ;;  %v3348_v56 = vadd.f32 %v3340_v39, %v12281_v57  ;;  %v12493_v42 = vpop.f32.mrb[96].mxu1  ;;  %v12501_v11 = vpop.f32.mrb[97].mxu0 }
 0x1ab   : > { %v3503_v0 = vld [vmem:[#allocation2 + $0x18] sm:$0xff]  ;;  %3357 = vst.msk [vmem:[#allocation2 + $0x38] sm:$0xff] %vm223_vm1, %v3349_v5  ;;  %v3502_v24 = vld [vmem:[#allocation2 + $0x10] sm:$0xff]  ;;  %v12499_v4 = vpop.f32.mrb[97].mxu1 }
 0x1ac   : > { %v3511_v55 = vadd.f32 %v12323_v17, %v3503_v0  ;;  %3356 = vst.msk [vmem:[#allocation2 + $0x30] sm:$0xff] %vm223_vm1, %v3348_v56  ;;  %v3510_v36 = vadd.f32 %v3502_v24, %v12328_v41 }
 0x1ad   : > { %v12509_v50 = vpop.f32.mrb[98].mxu0 }
 0x1ae   : > { %3519 = vst.msk [vmem:[#allocation2 + $0x18] sm:$0xff] %vm223_vm1, %v3511_v55  ;;  %3518 = vst.msk [vmem:[#allocation2 + $0x10] sm:$0xff] %vm223_vm1, %v3510_v36  ;;  %v3505_v57 = vld [vmem:[#allocation2 + $0x28] sm:$0xff]  ;;  %v12507_v38 = vpop.f32.mrb[98].mxu1  ;;  %v12514_v58 = vpop.f32.mrb[99].mxu0 }
 0x1af   : > { %v3513_v17 = vadd.f32 %v12345_v10, %v3505_v57  ;;  %v3504_v54 = vld [vmem:[#allocation2 + $0x20] sm:$0xff]  ;;  %v12512_v49 = vpop.f32.mrb[99].mxu1 }
 0x1b0   : > { %v3512_v43 = vadd.f32 %v3504_v54, %v12351_v9  ;;  %v3667_v3 = vld [vmem:[#allocation2 + $0x8] sm:$0xff] }
 0x1b1   : > { %3521 = vst.msk [vmem:[#allocation2 + $0x28] sm:$0xff] %vm223_vm1, %v3513_v17  ;;  %v3675_v41 = vadd.f32 %v12303_v34, %v3667_v3  ;;  %v3666_v63 = vld [vmem:[#allocation2] sm:$0xff]  ;;  %v12523_v10 = vpop.f32.mrb[100].mxu0 }
 0x1b2   : > { %3520 = vst.msk [vmem:[#allocation2 + $0x20] sm:$0xff] %vm223_vm1, %v3512_v43  ;;  %v3674_v48 = vadd.f32 %v3666_v63, %v12309_v31  ;;  %v3507_v40 = vld [vmem:[#allocation2 + $0x38] sm:$0xff]  ;;  %v12521_v7 = vpop.f32.mrb[100].mxu1  ;;  %v12529_v53 = vpop.f32.mrb[101].mxu0 }
 0x1b3   : > { %3683 = vst.msk [vmem:[#allocation2 + $0x8] sm:$0xff] %vm223_vm1, %v3675_v41  ;;  %v3515_v45 = vadd.f32 %v12369_v28, %v3507_v40  ;;  %v3506_v9 = vld [vmem:[#allocation2 + $0x30] sm:$0xff]  ;;  %v12527_v33 = vpop.f32.mrb[101].mxu1 }
 0x1b4   : > { %3682 = vst.msk [vmem:[#allocation2] sm:$0xff] %vm223_vm1, %v3674_v48  ;;  %v3514_v34 = vadd.f32 %v3506_v9, %v12374_v59 }
 0x1b5   : > { %v3669_v5 = vld [vmem:[#allocation2 + $0x18] sm:$0xff]  ;;  %3523 = vst.msk [vmem:[#allocation2 + $0x38] sm:$0xff] %vm223_vm1, %v3515_v45  ;;  %v3668_v39 = vld [vmem:[#allocation2 + $0x10] sm:$0xff]  ;;  %v12539_v0 = vpop.f32.mrb[102].mxu0 }
 0x1b6   : > { %v3677_v31 = vadd.f32 %v12325_v32, %v3669_v5  ;;  %3522 = vst.msk [vmem:[#allocation2 + $0x30] sm:$0xff] %vm223_vm1, %v3514_v34  ;;  %v3676_v56 = vadd.f32 %v3668_v39, %v12330_v62  ;;  %v12537_v28 = vpop.f32.mrb[102].mxu1  ;;  %v12544_v24 = vpop.f32.mrb[103].mxu0 }
 0x1b7   : > { %v12542_v55 = vpop.f32.mrb[103].mxu1 }
 0x1b8   : > { %3685 = vst.msk [vmem:[#allocation2 + $0x18] sm:$0xff] %vm223_vm1, %v3677_v31  ;;  %3684 = vst.msk [vmem:[#allocation2 + $0x10] sm:$0xff] %vm223_vm1, %v3676_v56  ;;  %v3671_v59 = vld [vmem:[#allocation2 + $0x28] sm:$0xff] }
 0x1b9   : > { %v3679_v32 = vadd.f32 %v12347_v2, %v3671_v59  ;;  %v3670_v36 = vld [vmem:[#allocation2 + $0x20] sm:$0xff]  ;;  %v12551_v54 = vpop.f32.mrb[104].mxu0 }
 0x1ba   : > { %v3678_v57 = vadd.f32 %v3670_v36, %v12353_v30  ;;  %v3834_v17 = vld [vmem:[#allocation2 + $0x8] sm:$0xff]  ;;  %v12549_v62 = vpop.f32.mrb[104].mxu1  ;;  %v12557_v63 = vpop.f32.mrb[105].mxu0 }
 0x1bb   : > { %3687 = vst.msk [vmem:[#allocation2 + $0x28] sm:$0xff] %vm223_vm1, %v3679_v32  ;;  %v3842_v43 = vadd.f32 %v12389_v20, %v3834_v17  ;;  %v3833_v3 = vld [vmem:[#allocation2] sm:$0xff]  ;;  %v12555_v41 = vpop.f32.mrb[105].mxu1 }
 0x1bc   : > { %3686 = vst.msk [vmem:[#allocation2 + $0x20] sm:$0xff] %vm223_vm1, %v3678_v57  ;;  %v3841_v2 = vadd.f32 %v3833_v3, %v12395_v1  ;;  %v3673_v48 = vld [vmem:[#allocation2 + $0x38] sm:$0xff] }
 0x1bd   : > { %3850 = vst.msk [vmem:[#allocation2 + $0x8] sm:$0xff] %vm223_vm1, %v3842_v43  ;;  %v3681_v30 = vadd.f32 %v12371_v6, %v3673_v48  ;;  %v3672_v40 = vld [vmem:[#allocation2 + $0x30] sm:$0xff]  ;;  %v12567_v34 = vpop.f32.mrb[106].mxu0 }
 0x1be   : > { %3849 = vst.msk [vmem:[#allocation2] sm:$0xff] %vm223_vm1, %v3841_v2  ;;  %v3680_v45 = vadd.f32 %v3672_v40, %v12376_v12  ;;  %v12565_v9 = vpop.f32.mrb[106].mxu1  ;;  %v12573_v39 = vpop.f32.mrb[107].mxu0 }
 0x1bf   : > { %v3836_v20 = vld [vmem:[#allocation2 + $0x18] sm:$0xff]  ;;  %3689 = vst.msk [vmem:[#allocation2 + $0x38] sm:$0xff] %vm223_vm1, %v3681_v30  ;;  %v3835_v1 = vld [vmem:[#allocation2 + $0x10] sm:$0xff]  ;;  %v12571_v31 = vpop.f32.mrb[107].mxu1 }
 0x1c0   : > { %v3844_v5 = vadd.f32 %v12413_v60, %v3836_v20  ;;  %3688 = vst.msk [vmem:[#allocation2 + $0x30] sm:$0xff] %vm223_vm1, %v3680_v45  ;;  %v3843_v6 = vadd.f32 %v3835_v1, %v12419_v27 }
 0x1c1   : > { %v12581_v59 = vpop.f32.mrb[108].mxu0 }
 0x1c2   : > { %3852 = vst.msk [vmem:[#allocation2 + $0x18] sm:$0xff] %vm223_vm1, %v3844_v5  ;;  %3851 = vst.msk [vmem:[#allocation2 + $0x10] sm:$0xff] %vm223_vm1, %v3843_v6  ;;  %v3838_v12 = vld [vmem:[#allocation2 + $0x28] sm:$0xff]  ;;  %v12579_v56 = vpop.f32.mrb[108].mxu1  ;;  %v12586_v57 = vpop.f32.mrb[109].mxu0 }
 0x1c3   : > { %v3846_v60 = vadd.f32 %v12433_v22, %v3838_v12  ;;  %v3837_v32 = vld [vmem:[#allocation2 + $0x20] sm:$0xff]  ;;  %v12584_v36 = vpop.f32.mrb[109].mxu1 }
 0x1c4   : > { %v3845_v17 = vadd.f32 %v3837_v32, %v12438_v26  ;;  %v4001_v43 = vld [vmem:[#allocation2 + $0x8] sm:$0xff] }
 0x1c5   : > { %3854 = vst.msk [vmem:[#allocation2 + $0x28] sm:$0xff] %vm223_vm1, %v3846_v60  ;;  %v4009_v27 = vadd.f32 %v12391_v44, %v4001_v43  ;;  %v4000_v3 = vld [vmem:[#allocation2] sm:$0xff]  ;;  %v12595_v22 = vpop.f32.mrb[110].mxu0 }
 0x1c6   : > { %3853 = vst.msk [vmem:[#allocation2 + $0x20] sm:$0xff] %vm223_vm1, %v3845_v17  ;;  %v4008_v2 = vadd.f32 %v4000_v3, %v12397_v47  ;;  %v3840_v48 = vld [vmem:[#allocation2 + $0x38] sm:$0xff]  ;;  %v12593_v30 = vpop.f32.mrb[110].mxu1  ;;  %v12601_v20 = vpop.f32.mrb[111].mxu0 }
 0x1c7   : > { %4017 = vst.msk [vmem:[#allocation2 + $0x8] sm:$0xff] %vm223_vm1, %v4009_v27  ;;  %v3848_v40 = vadd.f32 %v12449_v35, %v3840_v48  ;;  %v3839_v26 = vld [vmem:[#allocation2 + $0x30] sm:$0xff]  ;;  %v12599_v45 = vpop.f32.mrb[111].mxu1 }
 0x1c8   : > { %4016 = vst.msk [vmem:[#allocation2] sm:$0xff] %vm223_vm1, %v4008_v2  ;;  %v3847_v44 = vadd.f32 %v3839_v26, %v12455_v46 }
 0x1c9   : > { %v4003_v5 = vld [vmem:[#allocation2 + $0x18] sm:$0xff]  ;;  %3856 = vst.msk [vmem:[#allocation2 + $0x38] sm:$0xff] %vm223_vm1, %v3848_v40  ;;  %v4002_v1 = vld [vmem:[#allocation2 + $0x10] sm:$0xff]  ;;  %v12611_v12 = vpop.f32.mrb[112].mxu0 }
 0x1ca   : > { %v4011_v47 = vadd.f32 %v12415_v25, %v4003_v5  ;;  %3855 = vst.msk [vmem:[#allocation2 + $0x30] sm:$0xff] %vm223_vm1, %v3847_v44  ;;  %v4010_v6 = vadd.f32 %v4002_v1, %v12421_v13  ;;  %v12609_v35 = vpop.f32.mrb[112].mxu1  ;;  %v12616_v32 = vpop.f32.mrb[113].mxu0 }
 0x1cb   : > { %v12614_v60 = vpop.f32.mrb[113].mxu1 }
 0x1cc   : > { %4019 = vst.msk [vmem:[#allocation2 + $0x18] sm:$0xff] %vm223_vm1, %v4011_v47  ;;  %4018 = vst.msk [vmem:[#allocation2 + $0x10] sm:$0xff] %vm223_vm1, %v4010_v6  ;;  %v4005_v46 = vld [vmem:[#allocation2 + $0x28] sm:$0xff] }
 0x1cd   : > { %v4013_v25 = vadd.f32 %v12435_v18, %v4005_v46  ;;  %v4004_v17 = vld [vmem:[#allocation2 + $0x20] sm:$0xff]  ;;  %v12623_v3 = vpop.f32.mrb[114].mxu0 }
 0x1ce   : > { %v4012_v43 = vadd.f32 %v4004_v17, %v12440_v29  ;;  %v4167_v27 = vld [vmem:[#allocation2 + $0x8] sm:$0xff]  ;;  %v12621_v13 = vpop.f32.mrb[114].mxu1  ;;  %v12629_v26 = vpop.f32.mrb[115].mxu0 }
 0x1cf   : > { %4021 = vst.msk [vmem:[#allocation2 + $0x28] sm:$0xff] %vm223_vm1, %v4013_v25  ;;  %v4175_v2 = vadd.f32 %v12465_v51, %v4167_v27  ;;  %v4166_v48 = vld [vmem:[#allocation2] sm:$0xff]  ;;  %v12627_v40 = vpop.f32.mrb[115].mxu1 }
 0x1d0   : > { %4020 = vst.msk [vmem:[#allocation2 + $0x20] sm:$0xff] %vm223_vm1, %v4012_v43  ;;  %v4174_v18 = vadd.f32 %v4166_v48, %v12470_v19  ;;  %v4007_v44 = vld [vmem:[#allocation2 + $0x38] sm:$0xff] }
 0x1d1   : > { %4183 = vst.msk [vmem:[#allocation2 + $0x8] sm:$0xff] %vm223_vm1, %v4175_v2  ;;  %v4015_v29 = vadd.f32 %v12451_v8, %v4007_v44  ;;  %v4006_v5 = vld [vmem:[#allocation2 + $0x30] sm:$0xff]  ;;  %v12639_v6 = vpop.f32.mrb[116].mxu0 }
 0x1d2   : > { %4182 = vst.msk [vmem:[#allocation2] sm:$0xff] %vm223_vm1, %v4174_v18  ;;  %v4014_v47 = vadd.f32 %v4006_v5, %v12457_v61  ;;  %v12637_v1 = vpop.f32.mrb[116].mxu1  ;;  %v12645_v17 = vpop.f32.mrb[117].mxu0 }
 0x1d3   : > { %v4169_v51 = vld [vmem:[#allocation2 + $0x18] sm:$0xff]  ;;  %4023 = vst.msk [vmem:[#allocation2 + $0x38] sm:$0xff] %vm223_vm1, %v4015_v29  ;;  %v4168_v19 = vld [vmem:[#allocation2 + $0x10] sm:$0xff]  ;;  %v12643_v25 = vpop.f32.mrb[117].mxu1 }
 0x1d4   : > { %v4177_v46 = vadd.f32 %v12477_v37, %v4169_v51  ;;  %4022 = vst.msk [vmem:[#allocation2 + $0x30] sm:$0xff] %vm223_vm1, %v4014_v47  ;;  %v4176_v8 = vadd.f32 %v4168_v19, %v12483_v52 }
 0x1d5   : > { %v12653_v27 = vpop.f32.mrb[118].mxu0 }
 0x1d6   : > { %4185 = vst.msk [vmem:[#allocation2 + $0x18] sm:$0xff] %vm223_vm1, %v4177_v46  ;;  %4184 = vst.msk [vmem:[#allocation2 + $0x10] sm:$0xff] %vm223_vm1, %v4176_v8  ;;  %v4171_v61 = vld [vmem:[#allocation2 + $0x28] sm:$0xff]  ;;  %v12651_v43 = vpop.f32.mrb[118].mxu1  ;;  %v12658_v18 = vpop.f32.mrb[119].mxu0 }
 0x1d7   : > { %v4179_v37 = vadd.f32 %v12493_v42, %v4171_v61  ;;  %v4170_v2 = vld [vmem:[#allocation2 + $0x20] sm:$0xff]  ;;  %v12656_v48 = vpop.f32.mrb[119].mxu1 }
 0x1d8   : > { %v4178_v44 = vadd.f32 %v4170_v2, %v12499_v4  ;;  %v4333_v29 = vld [vmem:[#allocation2 + $0x8] sm:$0xff] }
 0x1d9   : > { %4187 = vst.msk [vmem:[#allocation2 + $0x28] sm:$0xff] %vm223_vm1, %v4179_v37  ;;  %v4341_v52 = vadd.f32 %v12467_v21, %v4333_v29  ;;  %v4332_v5 = vld [vmem:[#allocation2] sm:$0xff]  ;;  %v12667_v42 = vpop.f32.mrb[120].mxu0 }
 0x1da   : > { %4186 = vst.msk [vmem:[#allocation2 + $0x20] sm:$0xff] %vm223_vm1, %v4178_v44  ;;  %v4340_v47 = vadd.f32 %v4332_v5, %v12472_v16  ;;  %v4173_v51 = vld [vmem:[#allocation2 + $0x38] sm:$0xff]  ;;  %v12665_v46 = vpop.f32.mrb[120].mxu1  ;;  %v12673_v61 = vpop.f32.mrb[121].mxu0 }
 0x1db   : > { %4349 = vst.msk [vmem:[#allocation2 + $0x8] sm:$0xff] %vm223_vm1, %v4341_v52  ;;  %v4181_v19 = vadd.f32 %v12507_v38, %v4173_v51  ;;  %v4172_v4 = vld [vmem:[#allocation2 + $0x30] sm:$0xff]  ;;  %v12671_v8 = vpop.f32.mrb[121].mxu1 }
 0x1dc   : > { %4348 = vst.msk [vmem:[#allocation2] sm:$0xff] %vm223_vm1, %v4340_v47  ;;  %v4180_v21 = vadd.f32 %v4172_v4, %v12512_v49 }
 0x1dd   : > { %v4335_v37 = vld [vmem:[#allocation2 + $0x18] sm:$0xff]  ;;  %4189 = vst.msk [vmem:[#allocation2 + $0x38] sm:$0xff] %vm223_vm1, %v4181_v19  ;;  %v4334_v2 = vld [vmem:[#allocation2 + $0x10] sm:$0xff]  ;;  %v12683_v29 = vpop.f32.mrb[122].mxu0 }
 0x1de   : > { %v4343_v16 = vadd.f32 %v12479_v15, %v4335_v37  ;;  %4188 = vst.msk [vmem:[#allocation2 + $0x30] sm:$0xff] %vm223_vm1, %v4180_v21  ;;  %v4342_v44 = vadd.f32 %v4334_v2, %v12485_v23  ;;  %v12681_v38 = vpop.f32.mrb[122].mxu1  ;;  %v12688_v5 = vpop.f32.mrb[123].mxu0 }
 0x1df   : > { %v12686_v52 = vpop.f32.mrb[123].mxu1 }
 0x1e0   : > { %4351 = vst.msk [vmem:[#allocation2 + $0x18] sm:$0xff] %vm223_vm1, %v4343_v16  ;;  %4350 = vst.msk [vmem:[#allocation2 + $0x10] sm:$0xff] %vm223_vm1, %v4342_v44  ;;  %v4337_v49 = vld [vmem:[#allocation2 + $0x28] sm:$0xff] }
 0x1e1   : > { %v4345_v15 = vadd.f32 %v12495_v14, %v4337_v49  ;;  %v4336_v47 = vld [vmem:[#allocation2 + $0x20] sm:$0xff]  ;;  %v12695_v4 = vpop.f32.mrb[124].mxu0 }
 0x1e2   : > { %v4344_v51 = vadd.f32 %v4336_v47, %v12501_v11  ;;  %v4499_v19 = vld [vmem:[#allocation2 + $0x8] sm:$0xff]  ;;  %v12693_v23 = vpop.f32.mrb[124].mxu1  ;;  %v12701_v2 = vpop.f32.mrb[125].mxu0 }
 0x1e3   : > { %4353 = vst.msk [vmem:[#allocation2 + $0x28] sm:$0xff] %vm223_vm1, %v4345_v15  ;;  %v4507_v21 = vadd.f32 %v12521_v7, %v4499_v19  ;;  %v4498_v37 = vld [vmem:[#allocation2] sm:$0xff]  ;;  %v12699_v16 = vpop.f32.mrb[125].mxu1 }
 0x1e4   : > { %4352 = vst.msk [vmem:[#allocation2 + $0x20] sm:$0xff] %vm223_vm1, %v4344_v51  ;;  %v4506_v14 = vadd.f32 %v4498_v37, %v12527_v33  ;;  %v4339_v44 = vld [vmem:[#allocation2 + $0x38] sm:$0xff] }
 0x1e5   : > { %4515 = vst.msk [vmem:[#allocation2 + $0x8] sm:$0xff] %vm223_vm1, %v4507_v21  ;;  %v4347_v11 = vadd.f32 %v12509_v50, %v4339_v44  ;;  %v4338_v49 = vld [vmem:[#allocation2 + $0x30] sm:$0xff]  ;;  %v12711_v19 = vpop.f32.mrb[126].mxu0 }
 0x1e6   : > { %4514 = vst.msk [vmem:[#allocation2] sm:$0xff] %vm223_vm1, %v4506_v14  ;;  %v4346_v15 = vadd.f32 %v4338_v49, %v12514_v58  ;;  %v12709_v47 = vpop.f32.mrb[126].mxu1  ;;  %v12717_v21 = vpop.f32.mrb[127].mxu0 }
 0x1e7   : > { %v4501_v7 = vld [vmem:[#allocation2 + $0x18] sm:$0xff]  ;;  %4355 = vst.msk [vmem:[#allocation2 + $0x38] sm:$0xff] %vm223_vm1, %v4347_v11  ;;  %v4500_v33 = vld [vmem:[#allocation2 + $0x10] sm:$0xff]  ;;  %v12715_v37 = vpop.f32.mrb[127].mxu1  ;;  %13488 = vst [vmem:[#allocation4_spill] sm:$0xff] %v12717_v21 }
 0x1e8   : > { %v4509_v51 = vadd.f32 %v12537_v28, %v4501_v7  ;;  %4354 = vst.msk [vmem:[#allocation2 + $0x30] sm:$0xff] %vm223_vm1, %v4346_v15  ;;  %v4508_v50 = vadd.f32 %v4500_v33, %v12542_v55 }
 0x1e9   : > { %v12725_v44 = vpop.f32.mrb[128].mxu0 }
 0x1ea   : > { %4517 = vst.msk [vmem:[#allocation2 + $0x18] sm:$0xff] %vm223_vm1, %v4509_v51  ;;  %4516 = vst.msk [vmem:[#allocation2 + $0x10] sm:$0xff] %vm223_vm1, %v4508_v50  ;;  %v4503_v58 = vld [vmem:[#allocation2 + $0x28] sm:$0xff]  ;;  %v12723_v14 = vpop.f32.mrb[128].mxu1  ;;  %v12730_v7 = vpop.f32.mrb[129].mxu0 }
 0x1eb   : > { %13489 = vst [vmem:[#allocation5_spill] sm:$0xff] %v12725_v44  ;;  %v4511_v28 = vadd.f32 %v12549_v62, %v4503_v58  ;;  %v4502_v11 = vld [vmem:[#allocation2 + $0x20] sm:$0xff]  ;;  %v12728_v49 = vpop.f32.mrb[129].mxu1 }
 0x1ec   : > { %v4510_v15 = vadd.f32 %v4502_v11, %v12555_v41  ;;  %v4665_v21 = vld [vmem:[#allocation2 + $0x8] sm:$0xff] }
 0x1ed   : > { %4519 = vst.msk [vmem:[#allocation2 + $0x28] sm:$0xff] %vm223_vm1, %v4511_v28  ;;  %v4673_v55 = vadd.f32 %v12523_v10, %v4665_v21  ;;  %v4664_v51 = vld [vmem:[#allocation2] sm:$0xff]  ;;  %v12739_v62 = vpop.f32.mrb[130].mxu0 }
 0x1ee   : > { %4518 = vst.msk [vmem:[#allocation2 + $0x20] sm:$0xff] %vm223_vm1, %v4510_v15  ;;  %v4672_v33 = vadd.f32 %v4664_v51, %v12529_v53  ;;  %v4505_v50 = vld [vmem:[#allocation2 + $0x38] sm:$0xff]  ;;  %v12737_v44 = vpop.f32.mrb[130].mxu1  ;;  %v12745_v28 = vpop.f32.mrb[131].mxu0 }
 0x1ef   : > { %4681 = vst.msk [vmem:[#allocation2 + $0x8] sm:$0xff] %vm223_vm1, %v4673_v55  ;;  %v4513_v58 = vadd.f32 %v12565_v9, %v4505_v50  ;;  %v4504_v41 = vld [vmem:[#allocation2 + $0x30] sm:$0xff]  ;;  %v12743_v11 = vpop.f32.mrb[131].mxu1 }
 0x1f0   : > { %4680 = vst.msk [vmem:[#allocation2] sm:$0xff] %vm223_vm1, %v4672_v33  ;;  %v4512_v10 = vadd.f32 %v4504_v41, %v12571_v31 }
 0x1f1   : > { %v4667_v21 = vld [vmem:[#allocation2 + $0x18] sm:$0xff]  ;;  %4521 = vst.msk [vmem:[#allocation2 + $0x38] sm:$0xff] %vm223_vm1, %v4513_v58  ;;  %v4666_v15 = vld [vmem:[#allocation2 + $0x10] sm:$0xff]  ;;  %v12755_v51 = vpop.f32.mrb[132].mxu0 }
 0x1f2   : > { %v4675_v53 = vadd.f32 %v12539_v0, %v4667_v21  ;;  %4520 = vst.msk [vmem:[#allocation2 + $0x30] sm:$0xff] %vm223_vm1, %v4512_v10  ;;  %v4674_v55 = vadd.f32 %v4666_v15, %v12544_v24  ;;  %v12753_v9 = vpop.f32.mrb[132].mxu1  ;;  %13490 = vst [vmem:[#allocation6_spill] sm:$0xff] %v12755_v51  ;;  %v12760_v33 = vpop.f32.mrb[133].mxu0 }
 0x1f3   : > { %v12758_v50 = vpop.f32.mrb[133].mxu1  ;;  %13491 = vst [vmem:[#allocation7_spill] sm:$0xff] %v12760_v33 }
 0x1f4   : > { %4683 = vst.msk [vmem:[#allocation2 + $0x18] sm:$0xff] %vm223_vm1, %v4675_v53  ;;  %4682 = vst.msk [vmem:[#allocation2 + $0x10] sm:$0xff] %vm223_vm1, %v4674_v55  ;;  %v4669_v31 = vld [vmem:[#allocation2 + $0x28] sm:$0xff] }
 0x1f5   : > { %v4677_v0 = vadd.f32 %v12551_v54, %v4669_v31  ;;  %v4668_v58 = vld [vmem:[#allocation2 + $0x20] sm:$0xff]  ;;  %v12767_v21 = vpop.f32.mrb[134].mxu0 }
 0x1f6   : > { %v4676_v41 = vadd.f32 %v4668_v58, %v12557_v63  ;;  %v4831_v10 = vld [vmem:[#allocation2 + $0x8] sm:$0xff]  ;;  %v12765_v24 = vpop.f32.mrb[134].mxu1  ;;  %v12773_v33 = vpop.f32.mrb[135].mxu0 }
 0x1f7   : > { %4685 = vst.msk [vmem:[#allocation2 + $0x28] sm:$0xff] %vm223_vm1, %v4677_v0  ;;  %v4839_v53 = vadd.f32 %v12579_v56, %v4831_v10  ;;  %v4830_v15 = vld [vmem:[#allocation2] sm:$0xff]  ;;  %v12771_v51 = vpop.f32.mrb[135].mxu1 }
 0x1f8   : > { %4684 = vst.msk [vmem:[#allocation2 + $0x20] sm:$0xff] %vm223_vm1, %v4676_v41  ;;  %v4838_v54 = vadd.f32 %v4830_v15, %v12584_v36  ;;  %v4671_v55 = vld [vmem:[#allocation2 + $0x38] sm:$0xff] }
 0x1f9   : > { %4847 = vst.msk [vmem:[#allocation2 + $0x8] sm:$0xff] %vm223_vm1, %v4839_v53  ;;  %v4679_v63 = vadd.f32 %v12567_v34, %v4671_v55  ;;  %v4670_v31 = vld [vmem:[#allocation2 + $0x30] sm:$0xff]  ;;  %v12783_v10 = vpop.f32.mrb[136].mxu0 }
 0x1fa   : > { %4846 = vst.msk [vmem:[#allocation2] sm:$0xff] %vm223_vm1, %v4838_v54  ;;  %v4678_v0 = vadd.f32 %v4670_v31, %v12573_v39  ;;  %v12781_v58 = vpop.f32.mrb[136].mxu1  ;;  %v12789_v53 = vpop.f32.mrb[137].mxu0 }
 0x1fb   : > { %v4833_v56 = vld [vmem:[#allocation2 + $0x18] sm:$0xff]  ;;  %4687 = vst.msk [vmem:[#allocation2 + $0x38] sm:$0xff] %vm223_vm1, %v4679_v63  ;;  %v4832_v36 = vld [vmem:[#allocation2 + $0x10] sm:$0xff]  ;;  %v12787_v15 = vpop.f32.mrb[137].mxu1  ;;  %13492 = vst [vmem:[#allocation8_spill] sm:$0xff] %v12789_v53 }
 0x1fc   : > { %v4841_v41 = vadd.f32 %v12593_v30, %v4833_v56  ;;  %4686 = vst.msk [vmem:[#allocation2 + $0x30] sm:$0xff] %vm223_vm1, %v4678_v0  ;;  %v4840_v34 = vadd.f32 %v4832_v36, %v12599_v45 }
 0x1fd   : > { %v12797_v55 = vpop.f32.mrb[138].mxu0 }
 0x1fe   : > { %4849 = vst.msk [vmem:[#allocation2 + $0x18] sm:$0xff] %vm223_vm1, %v4841_v41  ;;  %4848 = vst.msk [vmem:[#allocation2 + $0x10] sm:$0xff] %vm223_vm1, %v4840_v34  ;;  %v4835_v39 = vld [vmem:[#allocation2 + $0x28] sm:$0xff]  ;;  %v12795_v54 = vpop.f32.mrb[138].mxu1  ;;  %v12802_v56 = vpop.f32.mrb[139].mxu0 }
 0x1ff   : > { %13493 = vst [vmem:[#allocation9_spill] sm:$0xff] %v12797_v55  ;;  %v4843_v30 = vadd.f32 %v12609_v35, %v4835_v39  ;;  %v4834_v63 = vld [vmem:[#allocation2 + $0x20] sm:$0xff]  ;;  %v12800_v31 = vpop.f32.mrb[139].mxu1 }
 0x200   : > { %v4842_v0 = vadd.f32 %v4834_v63, %v12614_v60  ;;  %v4998_v53 = vld [vmem:[#allocation2 + $0x8] sm:$0xff] }
 0x201   : > { %4851 = vst.msk [vmem:[#allocation2 + $0x28] sm:$0xff] %vm223_vm1, %v4843_v30  ;;  %v5006_v45 = vadd.f32 %v12581_v59, %v4998_v53  ;;  %v4997_v41 = vld [vmem:[#allocation2] sm:$0xff]  ;;  %v12811_v35 = vpop.f32.mrb[140].mxu0 }
 0x202   : > { %4850 = vst.msk [vmem:[#allocation2 + $0x20] sm:$0xff] %vm223_vm1, %v4842_v0  ;;  %v5005_v36 = vadd.f32 %v4997_v41, %v12586_v57  ;;  %v4837_v34 = vld [vmem:[#allocation2 + $0x38] sm:$0xff]  ;;  %v12809_v55 = vpop.f32.mrb[140].mxu1  ;;  %v12817_v30 = vpop.f32.mrb[141].mxu0 }
 0x203   : > { %5014 = vst.msk [vmem:[#allocation2 + $0x8] sm:$0xff] %vm223_vm1, %v5006_v45  ;;  %v4845_v39 = vadd.f32 %v12621_v13, %v4837_v34  ;;  %v4836_v60 = vld [vmem:[#allocation2 + $0x30] sm:$0xff]  ;;  %v12815_v63 = vpop.f32.mrb[141].mxu1 }
 0x204   : > { %5013 = vst.msk [vmem:[#allocation2] sm:$0xff] %vm223_vm1, %v5005_v36  ;;  %v4844_v59 = vadd.f32 %v4836_v60, %v12627_v40 }
 0x205   : > { %v5000_v53 = vld [vmem:[#allocation2 + $0x18] sm:$0xff]  ;;  %4853 = vst.msk [vmem:[#allocation2 + $0x38] sm:$0xff] %vm223_vm1, %v4845_v39  ;;  %v4999_v0 = vld [vmem:[#allocation2 + $0x10] sm:$0xff]  ;;  %v12827_v41 = vpop.f32.mrb[142].mxu0 }
 0x206   : > { %v5008_v57 = vadd.f32 %v12595_v22, %v5000_v53  ;;  %4852 = vst.msk [vmem:[#allocation2 + $0x30] sm:$0xff] %vm223_vm1, %v4844_v59  ;;  %v5007_v45 = vadd.f32 %v4999_v0, %v12601_v20  ;;  %v12825_v13 = vpop.f32.mrb[142].mxu1  ;;  %13494 = vst [vmem:[#allocation10_spill] sm:$0xff] %v12827_v41  ;;  %v12832_v36 = vpop.f32.mrb[143].mxu0 }
 0x207   : > { %v12830_v34 = vpop.f32.mrb[143].mxu1  ;;  %13495 = vst [vmem:[#allocation11_spill] sm:$0xff] %v12832_v36 }
 0x208   : > { %5016 = vst.msk [vmem:[#allocation2 + $0x18] sm:$0xff] %vm223_vm1, %v5008_v57  ;;  %5015 = vst.msk [vmem:[#allocation2 + $0x10] sm:$0xff] %vm223_vm1, %v5007_v45  ;;  %v5002_v40 = vld [vmem:[#allocation2 + $0x28] sm:$0xff] }
 0x209   : > { %v5010_v22 = vadd.f32 %v12611_v12, %v5002_v40  ;;  %v5001_v39 = vld [vmem:[#allocation2 + $0x20] sm:$0xff]  ;;  %v12839_v53 = vpop.f32.mrb[144].mxu0 }
 0x20a   : > { %v5009_v60 = vadd.f32 %v5001_v39, %v12616_v32  ;;  %v5165_v59 = vld [vmem:[#allocation2 + $0x8] sm:$0xff]  ;;  %v12837_v20 = vpop.f32.mrb[144].mxu1  ;;  %v12845_v36 = vpop.f32.mrb[145].mxu0 }
 0x20b   : > { %5018 = vst.msk [vmem:[#allocation2 + $0x28] sm:$0xff] %vm223_vm1, %v5010_v22  ;;  %v5173_v57 = vadd.f32 %v12637_v1, %v5165_v59  ;;  %v5164_v0 = vld [vmem:[#allocation2] sm:$0xff]  ;;  %v12843_v41 = vpop.f32.mrb[145].mxu1 }
 0x20c   : > { %5017 = vst.msk [vmem:[#allocation2 + $0x20] sm:$0xff] %vm223_vm1, %v5009_v60  ;;  %v5172_v12 = vadd.f32 %v5164_v0, %v12643_v25  ;;  %v5004_v45 = vld [vmem:[#allocation2 + $0x38] sm:$0xff] }
 0x20d   : > { %5181 = vst.msk [vmem:[#allocation2 + $0x8] sm:$0xff] %vm223_vm1, %v5173_v57  ;;  %v5012_v32 = vadd.f32 %v12623_v3, %v5004_v45  ;;  %v5003_v40 = vld [vmem:[#allocation2 + $0x30] sm:$0xff]  ;;  %v12855_v59 = vpop.f32.mrb[146].mxu0 }
 0x20e   : > { %5180 = vst.msk [vmem:[#allocation2] sm:$0xff] %vm223_vm1, %v5172_v12  ;;  %v5011_v22 = vadd.f32 %v5003_v40, %v12629_v26  ;;  %v12853_v39 = vpop.f32.mrb[146].mxu1  ;;  %v12861_v57 = vpop.f32.mrb[147].mxu0 }
 0x20f   : > { %v5167_v1 = vld [vmem:[#allocation2 + $0x18] sm:$0xff]  ;;  %5020 = vst.msk [vmem:[#allocation2 + $0x38] sm:$0xff] %vm223_vm1, %v5012_v32  ;;  %v5166_v25 = vld [vmem:[#allocation2 + $0x10] sm:$0xff]  ;;  %v12859_v0 = vpop.f32.mrb[147].mxu1  ;;  %13496 = vst [vmem:[#allocation12_spill] sm:$0xff] %v12861_v57 }
 0x210   : > { %v5175_v60 = vadd.f32 %v12651_v43, %v5167_v1  ;;  %5019 = vst.msk [vmem:[#allocation2 + $0x30] sm:$0xff] %vm223_vm1, %v5011_v22  ;;  %v5174_v3 = vadd.f32 %v5166_v25, %v12656_v48 }
 0x211   : > { %v12869_v45 = vpop.f32.mrb[148].mxu0 }
 0x212   : > { %5183 = vst.msk [vmem:[#allocation2 + $0x18] sm:$0xff] %vm223_vm1, %v5175_v60  ;;  %5182 = vst.msk [vmem:[#allocation2 + $0x10] sm:$0xff] %vm223_vm1, %v5174_v3  ;;  %v5169_v26 = vld [vmem:[#allocation2 + $0x28] sm:$0xff]  ;;  %v12867_v12 = vpop.f32.mrb[148].mxu1  ;;  %v12874_v1 = vpop.f32.mrb[149].mxu0 }
 0x213   : > { %13497 = vst [vmem:[#allocation13_spill] sm:$0xff] %v12869_v45  ;;  %v5177_v43 = vadd.f32 %v12665_v46, %v5169_v26  ;;  %v5168_v32 = vld [vmem:[#allocation2 + $0x20] sm:$0xff]  ;;  %v12872_v40 = vpop.f32.mrb[149].mxu1 }
 0x214   : > { %v5176_v22 = vadd.f32 %v5168_v32, %v12671_v8  ;;  %v5331_v57 = vld [vmem:[#allocation2 + $0x8] sm:$0xff] }
 0x215   : > { %5185 = vst.msk [vmem:[#allocation2 + $0x28] sm:$0xff] %vm223_vm1, %v5177_v43  ;;  %v5339_v48 = vadd.f32 %v12639_v6, %v5331_v57  ;;  %v5330_v60 = vld [vmem:[#allocation2] sm:$0xff]  ;;  %v12883_v46 = vpop.f32.mrb[150].mxu0 }
 0x216   : > { %5184 = vst.msk [vmem:[#allocation2 + $0x20] sm:$0xff] %vm223_vm1, %v5176_v22  ;;  %v5338_v25 = vadd.f32 %v5330_v60, %v12645_v17  ;;  %v5171_v3 = vld [vmem:[#allocation2 + $0x38] sm:$0xff]  ;;  %v12881_v45 = vpop.f32.mrb[150].mxu1  ;;  %v12889_v43 = vpop.f32.mrb[151].mxu0 }
 0x217   : > { %5347 = vst.msk [vmem:[#allocation2 + $0x8] sm:$0xff] %vm223_vm1, %v5339_v48  ;;  %v5179_v26 = vadd.f32 %v12681_v38, %v5171_v3  ;;  %v5170_v8 = vld [vmem:[#allocation2 + $0x30] sm:$0xff]  ;;  %v12887_v32 = vpop.f32.mrb[151].mxu1 }
 0x218   : > { %5346 = vst.msk [vmem:[#allocation2] sm:$0xff] %vm223_vm1, %v5338_v25  ;;  %v5178_v6 = vadd.f32 %v5170_v8, %v12686_v52 }
 0x219   : > { %v5333_v57 = vld [vmem:[#allocation2 + $0x18] sm:$0xff]  ;;  %5187 = vst.msk [vmem:[#allocation2 + $0x38] sm:$0xff] %vm223_vm1, %v5179_v26  ;;  %v5332_v22 = vld [vmem:[#allocation2 + $0x10] sm:$0xff]  ;;  %v12899_v60 = vpop.f32.mrb[152].mxu0 }
 0x21a   : > { %v5341_v17 = vadd.f32 %v12653_v27, %v5333_v57  ;;  %5186 = vst.msk [vmem:[#allocation2 + $0x30] sm:$0xff] %vm223_vm1, %v5178_v6  ;;  %v5340_v48 = vadd.f32 %v5332_v22, %v12658_v18  ;;  %v12897_v38 = vpop.f32.mrb[152].mxu1  ;;  %13498 = vst [vmem:[#allocation14_spill] sm:$0xff] %v12899_v60  ;;  %v12904_v25 = vpop.f32.mrb[153].mxu0 }
 0x21b   : > { %v12902_v3 = vpop.f32.mrb[153].mxu1  ;;  %13499 = vst [vmem:[#allocation15_spill] sm:$0xff] %v12904_v25 }
 0x21c   : > { %5349 = vst.msk [vmem:[#allocation2 + $0x18] sm:$0xff] %vm223_vm1, %v5341_v17  ;;  %5348 = vst.msk [vmem:[#allocation2 + $0x10] sm:$0xff] %vm223_vm1, %v5340_v48  ;;  %v5335_v52 = vld [vmem:[#allocation2 + $0x28] sm:$0xff] }
 0x21d   : > { %v5343_v27 = vadd.f32 %v12667_v42, %v5335_v52  ;;  %v5334_v26 = vld [vmem:[#allocation2 + $0x20] sm:$0xff]  ;;  %v12911_v57 = vpop.f32.mrb[154].mxu0 }
 0x21e   : > { %v5342_v8 = vadd.f32 %v5334_v26, %v12673_v61  ;;  %v5497_v6 = vld [vmem:[#allocation2 + $0x8] sm:$0xff]  ;;  %v12909_v18 = vpop.f32.mrb[154].mxu1  ;;  %v12917_v25 = vpop.f32.mrb[155].mxu0 }
 0x21f   : > { %5351 = vst.msk [vmem:[#allocation2 + $0x28] sm:$0xff] %vm223_vm1, %v5343_v27  ;;  %v5505_v17 = vadd.f32 %v12693_v23, %v5497_v6  ;;  %v5496_v22 = vld [vmem:[#allocation2] sm:$0xff]  ;;  %v12915_v60 = vpop.f32.mrb[155].mxu1 }
 0x220   : > { %5350 = vst.msk [vmem:[#allocation2 + $0x20] sm:$0xff] %vm223_vm1, %v5342_v8  ;;  %v5504_v42 = vadd.f32 %v5496_v22, %v12699_v16  ;;  %v5337_v48 = vld [vmem:[#allocation2 + $0x38] sm:$0xff] }
 0x221   : > { %5513 = vst.msk [vmem:[#allocation2 + $0x8] sm:$0xff] %vm223_vm1, %v5505_v17  ;;  %v5345_v61 = vadd.f32 %v12683_v29, %v5337_v48  ;;  %v5336_v52 = vld [vmem:[#allocation2 + $0x30] sm:$0xff]  ;;  %v12927_v6 = vpop.f32.mrb[156].mxu0 }
 0x222   : > { %5512 = vst.msk [vmem:[#allocation2] sm:$0xff] %vm223_vm1, %v5504_v42  ;;  %v5344_v27 = vadd.f32 %v5336_v52, %v12688_v5  ;;  %v12925_v26 = vpop.f32.mrb[156].mxu1  ;;  %v12933_v17 = vpop.f32.mrb[157].mxu0 }
 0x223   : > { %v5499_v23 = vld [vmem:[#allocation2 + $0x18] sm:$0xff]  ;;  %5353 = vst.msk [vmem:[#allocation2 + $0x38] sm:$0xff] %vm223_vm1, %v5345_v61  ;;  %v5498_v16 = vld [vmem:[#allocation2 + $0x10] sm:$0xff]  ;;  %v12931_v22 = vpop.f32.mrb[157].mxu1  ;;  %13500 = vst [vmem:[#allocation16_spill] sm:$0xff] %v12933_v17 }
 0x224   : > { %v5507_v8 = vadd.f32 %v12709_v47, %v5499_v23  ;;  %5352 = vst.msk [vmem:[#allocation2 + $0x30] sm:$0xff] %vm223_vm1, %v5344_v27  ;;  %v5506_v29 = vadd.f32 %v5498_v16, %v12715_v37 }
 0x225   : > { %v12941_v48 = vpop.f32.mrb[158].mxu0 }
 0x226   : > { %5515 = vst.msk [vmem:[#allocation2 + $0x18] sm:$0xff] %vm223_vm1, %v5507_v8  ;;  %5514 = vst.msk [vmem:[#allocation2 + $0x10] sm:$0xff] %vm223_vm1, %v5506_v29  ;;  %v5501_v5 = vld [vmem:[#allocation2 + $0x28] sm:$0xff]  ;;  %v12939_v42 = vpop.f32.mrb[158].mxu1  ;;  %v12946_v23 = vpop.f32.mrb[159].mxu0 }
 0x227   : > { %13501 = vst [vmem:[#allocation17_spill] sm:$0xff] %v12941_v48  ;;  %v5509_v47 = vadd.f32 %v12723_v14, %v5501_v5  ;;  %v5500_v61 = vld [vmem:[#allocation2 + $0x20] sm:$0xff]  ;;  %v12944_v52 = vpop.f32.mrb[159].mxu1 }
 0x228   : > { %v5508_v27 = vadd.f32 %v5500_v61, %v12728_v49  ;;  %v5663_v17 = vld [vmem:[#allocation2 + $0x8] sm:$0xff] }
 0x229   : > { %5517 = vst.msk [vmem:[#allocation2 + $0x28] sm:$0xff] %vm223_vm1, %v5509_v47  ;;  %v5671_v37 = vadd.f32 %v12695_v4, %v5663_v17  ;;  %v5662_v8 = vld [vmem:[#allocation2] sm:$0xff]  ;;  %v12955_v14 = vpop.f32.mrb[160].mxu0 }
 0x22a   : > { %5516 = vst.msk [vmem:[#allocation2 + $0x20] sm:$0xff] %vm223_vm1, %v5508_v27  ;;  %v5670_v16 = vadd.f32 %v5662_v8, %v12701_v2  ;;  %v5503_v29 = vld [vmem:[#allocation2 + $0x38] sm:$0xff]  ;;  %v12953_v48 = vpop.f32.mrb[160].mxu1  ;;  %13502 = vst [vmem:[#allocation18_spill] sm:$0xff] %v12955_v14  ;;  %v12961_v47 = vpop.f32.mrb[161].mxu0 }
 0x22b   : > { %5679 = vst.msk [vmem:[#allocation2 + $0x8] sm:$0xff] %vm223_vm1, %v5671_v37  ;;  %v5511_v5 = vadd.f32 %v12737_v44, %v5503_v29  ;;  %v5502_v49 = vld [vmem:[#allocation2 + $0x30] sm:$0xff]  ;;  %v12959_v61 = vpop.f32.mrb[161].mxu1  ;;  %13503 = vst [vmem:[#allocation19_spill] sm:$0xff] %v12961_v47  ;;  %v13504_v37 = vld [vmem:[#allocation4_spill] sm:$0xff] }
 0x22c   : > { %5678 = vst.msk [vmem:[#allocation2] sm:$0xff] %vm223_vm1, %v5670_v16  ;;  %v5510_v4 = vadd.f32 %v5502_v49, %v12743_v11 }
 0x22d   : > { %v5665_v17 = vld [vmem:[#allocation2 + $0x18] sm:$0xff]  ;;  %5519 = vst.msk [vmem:[#allocation2 + $0x38] sm:$0xff] %vm223_vm1, %v5511_v5  ;;  %v5664_v27 = vld [vmem:[#allocation2 + $0x10] sm:$0xff]  ;;  %v12971_v29 = vpop.f32.mrb[162].mxu0  ;;  %v13507_v5 = vld [vmem:[#allocation5_spill] sm:$0xff] }
 0x22e   : > { %v5673_v2 = vadd.f32 %v12711_v19, %v5665_v17  ;;  %5518 = vst.msk [vmem:[#allocation2 + $0x30] sm:$0xff] %vm223_vm1, %v5510_v4  ;;  %v5672_v8 = vadd.f32 %v5664_v27, %v13504_v37  ;;  %v12969_v44 = vpop.f32.mrb[162].mxu1  ;;  %13505 = vst [vmem:[#allocation20_spill] sm:$0xff] %v12971_v29  ;;  %v12976_v16 = vpop.f32.mrb[163].mxu0 }
 0x22f   : > { %v12974_v47 = vpop.f32.mrb[163].mxu1  ;;  %13506 = vst [vmem:[#allocation21_spill] sm:$0xff] %v12976_v16 }
 0x230   : > { %5681 = vst.msk [vmem:[#allocation2 + $0x18] sm:$0xff] %vm223_vm1, %v5673_v2  ;;  %5680 = vst.msk [vmem:[#allocation2 + $0x10] sm:$0xff] %vm223_vm1, %v5672_v8  ;;  %v5667_v11 = vld [vmem:[#allocation2 + $0x28] sm:$0xff] }
 0x231   : > { %v5675_v19 = vadd.f32 %v13507_v5, %v5667_v11  ;;  %v5666_v49 = vld [vmem:[#allocation2 + $0x20] sm:$0xff]  ;;  %v12983_v37 = vpop.f32.mrb[164].mxu0 }
 0x232   : > { %v5674_v4 = vadd.f32 %v5666_v49, %v12730_v7  ;;  %v5829_v17 = vld [vmem:[#allocation2 + $0x8] sm:$0xff]  ;;  %v12981_v27 = vpop.f32.mrb[164].mxu1  ;;  %v12989_v16 = vpop.f32.mrb[165].mxu0 }
 0x233   : > { %5683 = vst.msk [vmem:[#allocation2 + $0x28] sm:$0xff] %vm223_vm1, %v5675_v19  ;;  %v5837_v2 = vadd.f32 %v12753_v9, %v5829_v17  ;;  %v5828_v29 = vld [vmem:[#allocation2] sm:$0xff]  ;;  %v12987_v14 = vpop.f32.mrb[165].mxu1  ;;  %13508 = vst [vmem:[#allocation22_spill] sm:$0xff] %v12989_v16 }
 0x234   : > { %5682 = vst.msk [vmem:[#allocation2 + $0x20] sm:$0xff] %vm223_vm1, %v5674_v4  ;;  %v5836_v8 = vadd.f32 %v5828_v29, %v12758_v50  ;;  %v5669_v11 = vld [vmem:[#allocation2 + $0x38] sm:$0xff] }
 0x235   : > { %5845 = vst.msk [vmem:[#allocation2 + $0x8] sm:$0xff] %vm223_vm1, %v5837_v2  ;;  %v5677_v7 = vadd.f32 %v12739_v62, %v5669_v11  ;;  %v5668_v5 = vld [vmem:[#allocation2 + $0x30] sm:$0xff]  ;;  %v12999_v17 = vpop.f32.mrb[166].mxu0 }
 0x236   : > { %5844 = vst.msk [vmem:[#allocation2] sm:$0xff] %vm223_vm1, %v5836_v8  ;;  %v5676_v19 = vadd.f32 %v5668_v5, %v12745_v28  ;;  %v12997_v49 = vpop.f32.mrb[166].mxu1  ;;  %13509 = vst [vmem:[#allocation23_spill] sm:$0xff] %v12999_v17  ;;  %v13005_v2 = vpop.f32.mrb[167].mxu0 }
 0x237   : > { %v5831_v9 = vld [vmem:[#allocation2 + $0x18] sm:$0xff]  ;;  %5685 = vst.msk [vmem:[#allocation2 + $0x38] sm:$0xff] %vm223_vm1, %v5677_v7  ;;  %v5830_v50 = vld [vmem:[#allocation2 + $0x10] sm:$0xff]  ;;  %v13003_v29 = vpop.f32.mrb[167].mxu1  ;;  %13510 = vst [vmem:[#allocation24_spill] sm:$0xff] %v13005_v2 }
 0x238   : > { %v5839_v4 = vadd.f32 %v12765_v24, %v5831_v9  ;;  %5684 = vst.msk [vmem:[#allocation2 + $0x30] sm:$0xff] %vm223_vm1, %v5676_v19  ;;  %v5838_v62 = vadd.f32 %v5830_v50, %v12771_v51  ;;  %v13512_v51 = vld [vmem:[#allocation6_spill] sm:$0xff] }
 0x239   : > { %v13013_v11 = vpop.f32.mrb[168].mxu0 }
 0x23a   : > { %5847 = vst.msk [vmem:[#allocation2 + $0x18] sm:$0xff] %vm223_vm1, %v5839_v4  ;;  %5846 = vst.msk [vmem:[#allocation2 + $0x10] sm:$0xff] %vm223_vm1, %v5838_v62  ;;  %v5833_v28 = vld [vmem:[#allocation2 + $0x28] sm:$0xff]  ;;  %v13011_v8 = vpop.f32.mrb[168].mxu1  ;;  %v13018_v9 = vpop.f32.mrb[169].mxu0  ;;  %v13513_v62 = vld [vmem:[#allocation7_spill] sm:$0xff] }
 0x23b   : > { %13511 = vst [vmem:[#allocation25_spill] sm:$0xff] %v13013_v11  ;;  %v5841_v24 = vadd.f32 %v12781_v58, %v5833_v28  ;;  %v5832_v7 = vld [vmem:[#allocation2 + $0x20] sm:$0xff]  ;;  %v13016_v5 = vpop.f32.mrb[169].mxu1 }
 0x23c   : > { %v5840_v19 = vadd.f32 %v5832_v7, %v12787_v15  ;;  %v5995_v2 = vld [vmem:[#allocation2 + $0x8] sm:$0xff] }
 0x23d   : > { %5849 = vst.msk [vmem:[#allocation2 + $0x28] sm:$0xff] %vm223_vm1, %v5841_v24  ;;  %v6003_v4 = vadd.f32 %v13512_v51, %v5995_v2  ;;  %v5994_v50 = vld [vmem:[#allocation2] sm:$0xff]  ;;  %v13027_v58 = vpop.f32.mrb[170].mxu0 }
 0x23e   : > { %5848 = vst.msk [vmem:[#allocation2 + $0x20] sm:$0xff] %vm223_vm1, %v5840_v19  ;;  %v6002_v17 = vadd.f32 %v5994_v50, %v13513_v62  ;;  %v5835_v11 = vld [vmem:[#allocation2 + $0x38] sm:$0xff]  ;;  %v13025_v16 = vpop.f32.mrb[170].mxu1  ;;  %v13033_v24 = vpop.f32.mrb[171].mxu0 }
 0x23f   : > { %6011 = vst.msk [vmem:[#allocation2 + $0x8] sm:$0xff] %vm223_vm1, %v6003_v4  ;;  %v5843_v28 = vadd.f32 %v12795_v54, %v5835_v11  ;;  %v5834_v15 = vld [vmem:[#allocation2 + $0x30] sm:$0xff]  ;;  %v13031_v7 = vpop.f32.mrb[171].mxu1  ;;  %13514 = vst [vmem:[#allocation26_spill] sm:$0xff] %v13033_v24 }
 0x240   : > { %6010 = vst.msk [vmem:[#allocation2] sm:$0xff] %vm223_vm1, %v6002_v17  ;;  %v5842_v2 = vadd.f32 %v5834_v15, %v12800_v31  ;;  %v13517_v15 = vld [vmem:[#allocation8_spill] sm:$0xff] }
 0x241   : > { %v5997_v19 = vld [vmem:[#allocation2 + $0x18] sm:$0xff]  ;;  %5851 = vst.msk [vmem:[#allocation2 + $0x38] sm:$0xff] %vm223_vm1, %v5843_v28  ;;  %v5996_v50 = vld [vmem:[#allocation2 + $0x10] sm:$0xff]  ;;  %v13043_v11 = vpop.f32.mrb[172].mxu0 }
 0x242   : > { %v6005_v51 = vadd.f32 %v12767_v21, %v5997_v19  ;;  %5850 = vst.msk [vmem:[#allocation2 + $0x30] sm:$0xff] %vm223_vm1, %v5842_v2  ;;  %v6004_v4 = vadd.f32 %v5996_v50, %v12773_v33  ;;  %v13041_v54 = vpop.f32.mrb[172].mxu1  ;;  %13515 = vst [vmem:[#allocation27_spill] sm:$0xff] %v13043_v11  ;;  %v13048_v17 = vpop.f32.mrb[173].mxu0 }
 0x243   : > { %v13046_v62 = vpop.f32.mrb[173].mxu1  ;;  %13516 = vst [vmem:[#allocation28_spill] sm:$0xff] %v13048_v17 }
 0x244   : > { %6013 = vst.msk [vmem:[#allocation2 + $0x18] sm:$0xff] %vm223_vm1, %v6005_v51  ;;  %6012 = vst.msk [vmem:[#allocation2 + $0x10] sm:$0xff] %vm223_vm1, %v6004_v4  ;;  %v5999_v31 = vld [vmem:[#allocation2 + $0x28] sm:$0xff] }
 0x245   : > { %v6007_v21 = vadd.f32 %v12783_v10, %v5999_v31  ;;  %v5998_v28 = vld [vmem:[#allocation2 + $0x20] sm:$0xff]  ;;  %v13055_v50 = vpop.f32.mrb[174].mxu0  ;;  %v13519_v31 = vld [vmem:[#allocation9_spill] sm:$0xff] }
 0x246   : > { %v6006_v2 = vadd.f32 %v5998_v28, %v13517_v15  ;;  %v6162_v19 = vld [vmem:[#allocation2 + $0x8] sm:$0xff]  ;;  %v13053_v33 = vpop.f32.mrb[174].mxu1  ;;  %13518 = vst [vmem:[#allocation29_spill] sm:$0xff] %v13055_v50  ;;  %v13061_v17 = vpop.f32.mrb[175].mxu0 }
 0x247   : > { %6015 = vst.msk [vmem:[#allocation2 + $0x28] sm:$0xff] %vm223_vm1, %v6007_v21  ;;  %v6170_v51 = vadd.f32 %v12809_v55, %v6162_v19  ;;  %v6161_v11 = vld [vmem:[#allocation2] sm:$0xff]  ;;  %v13059_v24 = vpop.f32.mrb[175].mxu1 }
 0x248   : > { %6014 = vst.msk [vmem:[#allocation2 + $0x20] sm:$0xff] %vm223_vm1, %v6006_v2  ;;  %v6169_v10 = vadd.f32 %v6161_v11, %v12815_v63  ;;  %v6001_v4 = vld [vmem:[#allocation2 + $0x38] sm:$0xff] }
 0x249   : > { %6178 = vst.msk [vmem:[#allocation2 + $0x8] sm:$0xff] %vm223_vm1, %v6170_v51  ;;  %v6009_v28 = vadd.f32 %v13519_v31, %v6001_v4  ;;  %v6000_v15 = vld [vmem:[#allocation2 + $0x30] sm:$0xff]  ;;  %v13071_v50 = vpop.f32.mrb[176].mxu0 }
 0x24a   : > { %6177 = vst.msk [vmem:[#allocation2] sm:$0xff] %vm223_vm1, %v6169_v10  ;;  %v6008_v21 = vadd.f32 %v6000_v15, %v12802_v56  ;;  %v13069_v19 = vpop.f32.mrb[176].mxu1  ;;  %v13077_v51 = vpop.f32.mrb[177].mxu0 }
 0x24b   : > { %v6164_v55 = vld [vmem:[#allocation2 + $0x18] sm:$0xff]  ;;  %6017 = vst.msk [vmem:[#allocation2 + $0x38] sm:$0xff] %vm223_vm1, %v6009_v28  ;;  %v6163_v63 = vld [vmem:[#allocation2 + $0x10] sm:$0xff]  ;;  %v13075_v11 = vpop.f32.mrb[177].mxu1  ;;  %13520 = vst [vmem:[#allocation30_spill] sm:$0xff] %v13077_v51 }
 0x24c   : > { %v6172_v2 = vadd.f32 %v12825_v13, %v6164_v55  ;;  %6016 = vst.msk [vmem:[#allocation2 + $0x30] sm:$0xff] %vm223_vm1, %v6008_v21  ;;  %v6171_v10 = vadd.f32 %v6163_v63, %v12830_v34 }
 0x24d   : > { %v13085_v31 = vpop.f32.mrb[178].mxu0 }
 0x24e   : > { %6180 = vst.msk [vmem:[#allocation2 + $0x18] sm:$0xff] %vm223_vm1, %v6172_v2  ;;  %6179 = vst.msk [vmem:[#allocation2 + $0x10] sm:$0xff] %vm223_vm1, %v6171_v10  ;;  %v6166_v56 = vld [vmem:[#allocation2 + $0x28] sm:$0xff]  ;;  %v13083_v4 = vpop.f32.mrb[178].mxu1  ;;  %v13090_v55 = vpop.f32.mrb[179].mxu0 }
 0x24f   : > { %13521 = vst [vmem:[#allocation31_spill] sm:$0xff] %v13085_v31  ;;  %v6174_v13 = vadd.f32 %v12837_v20, %v6166_v56  ;;  %v6165_v28 = vld [vmem:[#allocation2 + $0x20] sm:$0xff]  ;;  %v13088_v15 = vpop.f32.mrb[179].mxu1 }
 0x250   : > { %v6173_v21 = vadd.f32 %v6165_v28, %v12843_v41  ;;  %v6329_v51 = vld [vmem:[#allocation2 + $0x8] sm:$0xff] }
 0x251   : > { %6182 = vst.msk [vmem:[#allocation2 + $0x28] sm:$0xff] %vm223_vm1, %v6174_v13  ;;  %v6337_v34 = vadd.f32 %v12811_v35, %v6329_v51  ;;  %v6328_v2 = vld [vmem:[#allocation2] sm:$0xff]  ;;  %v13099_v20 = vpop.f32.mrb[180].mxu0 }
 0x252   : > { %6181 = vst.msk [vmem:[#allocation2 + $0x20] sm:$0xff] %vm223_vm1, %v6173_v21  ;;  %v6336_v63 = vadd.f32 %v6328_v2, %v12817_v30  ;;  %v6168_v10 = vld [vmem:[#allocation2 + $0x38] sm:$0xff]  ;;  %v13097_v31 = vpop.f32.mrb[180].mxu1  ;;  %13522 = vst [vmem:[#allocation32_spill] sm:$0xff] %v13099_v20  ;;  %v13105_v13 = vpop.f32.mrb[181].mxu0  ;;  %v13524_v30 = vld [vmem:[#allocation10_spill] sm:$0xff] }
 0x253   : > { %6345 = vst.msk [vmem:[#allocation2 + $0x8] sm:$0xff] %vm223_vm1, %v6337_v34  ;;  %v6176_v56 = vadd.f32 %v12853_v39, %v6168_v10  ;;  %v6167_v41 = vld [vmem:[#allocation2 + $0x30] sm:$0xff]  ;;  %v13103_v28 = vpop.f32.mrb[181].mxu1  ;;  %13523 = vst [vmem:[#allocation33_spill] sm:$0xff] %v13105_v13  ;;  %v13525_v34 = vld [vmem:[#allocation11_spill] sm:$0xff] }
 0x254   : > { %6344 = vst.msk [vmem:[#allocation2] sm:$0xff] %vm223_vm1, %v6336_v63  ;;  %v6175_v35 = vadd.f32 %v6167_v41, %v12859_v0 }
 0x255   : > { %v6331_v51 = vld [vmem:[#allocation2 + $0x18] sm:$0xff]  ;;  %6184 = vst.msk [vmem:[#allocation2 + $0x38] sm:$0xff] %vm223_vm1, %v6176_v56  ;;  %v6330_v2 = vld [vmem:[#allocation2 + $0x10] sm:$0xff]  ;;  %v13115_v10 = vpop.f32.mrb[182].mxu0 }
 0x256   : > { %v6339_v21 = vadd.f32 %v13524_v30, %v6331_v51  ;;  %6183 = vst.msk [vmem:[#allocation2 + $0x30] sm:$0xff] %vm223_vm1, %v6175_v35  ;;  %v6338_v20 = vadd.f32 %v6330_v2, %v13525_v34  ;;  %v13113_v39 = vpop.f32.mrb[182].mxu1  ;;  %13526 = vst [vmem:[#allocation34_spill] sm:$0xff] %v13115_v10  ;;  %v13120_v63 = vpop.f32.mrb[183].mxu0 }
 0x257   : > { %v13118_v13 = vpop.f32.mrb[183].mxu1  ;;  %13527 = vst [vmem:[#allocation35_spill] sm:$0xff] %v13120_v63 }
 0x258   : > { %6347 = vst.msk [vmem:[#allocation2 + $0x18] sm:$0xff] %vm223_vm1, %v6339_v21  ;;  %6346 = vst.msk [vmem:[#allocation2 + $0x10] sm:$0xff] %vm223_vm1, %v6338_v20  ;;  %v6333_v0 = vld [vmem:[#allocation2 + $0x28] sm:$0xff] }
 0x259   : > { %v6341_v56 = vadd.f32 %v12839_v53, %v6333_v0  ;;  %v6332_v41 = vld [vmem:[#allocation2 + $0x20] sm:$0xff]  ;;  %v13127_v2 = vpop.f32.mrb[184].mxu0 }
 0x25a   : > { %v6340_v35 = vadd.f32 %v6332_v41, %v12845_v36  ;;  %v6495_v51 = vld [vmem:[#allocation2 + $0x8] sm:$0xff]  ;;  %v13125_v30 = vpop.f32.mrb[184].mxu1  ;;  %13528 = vst [vmem:[#allocation36_spill] sm:$0xff] %v13127_v2  ;;  %v13133_v63 = vpop.f32.mrb[185].mxu0 }
 0x25b   : > { %6349 = vst.msk [vmem:[#allocation2 + $0x28] sm:$0xff] %vm223_vm1, %v6341_v56  ;;  %v6503_v21 = vadd.f32 %v12867_v12, %v6495_v51  ;;  %v6494_v34 = vld [vmem:[#allocation2] sm:$0xff]  ;;  %v13131_v10 = vpop.f32.mrb[185].mxu1 }
 0x25c   : > { %6348 = vst.msk [vmem:[#allocation2 + $0x20] sm:$0xff] %vm223_vm1, %v6340_v35  ;;  %v6502_v53 = vadd.f32 %v6494_v34, %v12872_v40  ;;  %v6335_v20 = vld [vmem:[#allocation2 + $0x38] sm:$0xff]  ;;  %v13529_v56 = vld [vmem:[#allocation12_spill] sm:$0xff] }
 0x25d   : > { %6511 = vst.msk [vmem:[#allocation2 + $0x8] sm:$0xff] %vm223_vm1, %v6503_v21  ;;  %v6343_v36 = vadd.f32 %v12855_v59, %v6335_v20  ;;  %v6334_v0 = vld [vmem:[#allocation2 + $0x30] sm:$0xff]  ;;  %v13143_v2 = vpop.f32.mrb[186].mxu0 }
 0x25e   : > { %6510 = vst.msk [vmem:[#allocation2] sm:$0xff] %vm223_vm1, %v6502_v53  ;;  %v6342_v41 = vadd.f32 %v6334_v0, %v13529_v56  ;;  %v13141_v51 = vpop.f32.mrb[186].mxu1  ;;  %13530 = vst [vmem:[#allocation37_spill] sm:$0xff] %v13143_v2  ;;  %v13149_v21 = vpop.f32.mrb[187].mxu0 }
 0x25f   : > { %v6497_v12 = vld [vmem:[#allocation2 + $0x18] sm:$0xff]  ;;  %6351 = vst.msk [vmem:[#allocation2 + $0x38] sm:$0xff] %vm223_vm1, %v6343_v36  ;;  %v6496_v40 = vld [vmem:[#allocation2 + $0x10] sm:$0xff]  ;;  %v13147_v34 = vpop.f32.mrb[187].mxu1  ;;  %13531 = vst [vmem:[#allocation4_spill] sm:$0xff] %v13149_v21 }
 0x260   : > { %v6505_v35 = vadd.f32 %v12881_v45, %v6497_v12  ;;  %6350 = vst.msk [vmem:[#allocation2 + $0x30] sm:$0xff] %vm223_vm1, %v6342_v41  ;;  %v6504_v59 = vadd.f32 %v6496_v40, %v12887_v32  ;;  %v13533_v32 = vld [vmem:[#allocation13_spill] sm:$0xff] }
 0x261   : > { %v13157_v0 = vpop.f32.mrb[188].mxu0 }
 0x262   : > { %6513 = vst.msk [vmem:[#allocation2 + $0x18] sm:$0xff] %vm223_vm1, %v6505_v35  ;;  %6512 = vst.msk [vmem:[#allocation2 + $0x10] sm:$0xff] %vm223_vm1, %v6504_v59  ;;  %v6499_v53 = vld [vmem:[#allocation2 + $0x28] sm:$0xff]  ;;  %v13155_v20 = vpop.f32.mrb[188].mxu1  ;;  %v13162_v12 = vpop.f32.mrb[189].mxu0 }
 0x263   : > { %13532 = vst [vmem:[#allocation5_spill] sm:$0xff] %v13157_v0  ;;  %v6507_v45 = vadd.f32 %v12897_v38, %v6499_v53  ;;  %v6498_v36 = vld [vmem:[#allocation2 + $0x20] sm:$0xff]  ;;  %v13160_v56 = vpop.f32.mrb[189].mxu1 }
 0x264   : > { %v6506_v41 = vadd.f32 %v6498_v36, %v12902_v3  ;;  %v6661_v21 = vld [vmem:[#allocation2 + $0x8] sm:$0xff] }
 0x265   : > { %6515 = vst.msk [vmem:[#allocation2 + $0x28] sm:$0xff] %vm223_vm1, %v6507_v45  ;;  %v6669_v35 = vadd.f32 %v13533_v32, %v6661_v21  ;;  %v6660_v40 = vld [vmem:[#allocation2] sm:$0xff]  ;;  %v13171_v38 = vpop.f32.mrb[190].mxu0 }
 0x266   : > { %6514 = vst.msk [vmem:[#allocation2 + $0x20] sm:$0xff] %vm223_vm1, %v6506_v41  ;;  %v6668_v59 = vadd.f32 %v6660_v40, %v12874_v1  ;;  %v6501_v0 = vld [vmem:[#allocation2 + $0x38] sm:$0xff]  ;;  %v13169_v2 = vpop.f32.mrb[190].mxu1  ;;  %13534 = vst [vmem:[#allocation6_spill] sm:$0xff] %v13171_v38  ;;  %v13177_v45 = vpop.f32.mrb[191].mxu0 }
 0x267   : > { %6677 = vst.msk [vmem:[#allocation2 + $0x8] sm:$0xff] %vm223_vm1, %v6669_v35  ;;  %v6509_v53 = vadd.f32 %v12909_v18, %v6501_v0  ;;  %v6500_v3 = vld [vmem:[#allocation2 + $0x30] sm:$0xff]  ;;  %v13175_v36 = vpop.f32.mrb[191].mxu1  ;;  %13535 = vst [vmem:[#allocation7_spill] sm:$0xff] %v13177_v45 }
 0x268   : > { %6676 = vst.msk [vmem:[#allocation2] sm:$0xff] %vm223_vm1, %v6668_v59  ;;  %v6508_v21 = vadd.f32 %v6500_v3, %v12915_v60 }
 0x269   : > { %v6663_v41 = vld [vmem:[#allocation2 + $0x18] sm:$0xff]  ;;  %6517 = vst.msk [vmem:[#allocation2 + $0x38] sm:$0xff] %vm223_vm1, %v6509_v53  ;;  %v6662_v32 = vld [vmem:[#allocation2 + $0x10] sm:$0xff]  ;;  %v13187_v0 = vpop.f32.mrb[192].mxu0 }
 0x26a   : > { %v6671_v1 = vadd.f32 %v12883_v46, %v6663_v41  ;;  %6516 = vst.msk [vmem:[#allocation2 + $0x30] sm:$0xff] %vm223_vm1, %v6508_v21  ;;  %v6670_v35 = vadd.f32 %v6662_v32, %v12889_v43  ;;  %v13185_v18 = vpop.f32.mrb[192].mxu1  ;;  %13536 = vst [vmem:[#allocation8_spill] sm:$0xff] %v13187_v0  ;;  %v13192_v59 = vpop.f32.mrb[193].mxu0  ;;  %v13538_v53 = vld [vmem:[#allocation14_spill] sm:$0xff]  ;;  %v13539_v41 = vld [vmem:[#allocation15_spill] sm:$0xff] }
 0x26b   : > { %v13190_v40 = vpop.f32.mrb[193].mxu1  ;;  %13537 = vst [vmem:[#allocation9_spill] sm:$0xff] %v13192_v59 }
 0x26c   : > { %6679 = vst.msk [vmem:[#allocation2 + $0x18] sm:$0xff] %vm223_vm1, %v6671_v1  ;;  %6678 = vst.msk [vmem:[#allocation2 + $0x10] sm:$0xff] %vm223_vm1, %v6670_v35  ;;  %v6665_v60 = vld [vmem:[#allocation2 + $0x28] sm:$0xff] }
 0x26d   : > { %v6673_v46 = vadd.f32 %v13538_v53, %v6665_v60  ;;  %v6664_v3 = vld [vmem:[#allocation2 + $0x20] sm:$0xff]  ;;  %v13199_v32 = vpop.f32.mrb[194].mxu0 }
 0x26e   : > { %v6672_v21 = vadd.f32 %v6664_v3, %v13539_v41  ;;  %v6827_v45 = vld [vmem:[#allocation2 + $0x8] sm:$0xff]  ;;  %v13197_v43 = vpop.f32.mrb[194].mxu1  ;;  %v13205_v59 = vpop.f32.mrb[195].mxu0 }
 0x26f   : > { %6681 = vst.msk [vmem:[#allocation2 + $0x28] sm:$0xff] %vm223_vm1, %v6673_v46  ;;  %v6835_v1 = vadd.f32 %v12925_v26, %v6827_v45  ;;  %v6826_v0 = vld [vmem:[#allocation2] sm:$0xff]  ;;  %v13203_v38 = vpop.f32.mrb[195].mxu1 }
 0x270   : > { %6680 = vst.msk [vmem:[#allocation2 + $0x20] sm:$0xff] %vm223_vm1, %v6672_v21  ;;  %v6834_v35 = vadd.f32 %v6826_v0, %v12931_v22  ;;  %v6667_v60 = vld [vmem:[#allocation2 + $0x38] sm:$0xff] }
 0x271   : > { %6843 = vst.msk [vmem:[#allocation2 + $0x8] sm:$0xff] %vm223_vm1, %v6835_v1  ;;  %v6675_v53 = vadd.f32 %v12911_v57, %v6667_v60  ;;  %v6666_v3 = vld [vmem:[#allocation2 + $0x30] sm:$0xff]  ;;  %v13540_v60 = vld [vmem:[#allocation16_spill] sm:$0xff] }
 0x272   : > { %6842 = vst.msk [vmem:[#allocation2] sm:$0xff] %vm223_vm1, %v6834_v35  ;;  %v6674_v46 = vadd.f32 %v6666_v3, %v12917_v25 }
 0x273   : > { %v6829_v26 = vld [vmem:[#allocation2 + $0x18] sm:$0xff]  ;;  %6683 = vst.msk [vmem:[#allocation2 + $0x38] sm:$0xff] %vm223_vm1, %v6675_v53  ;;  %v6828_v41 = vld [vmem:[#allocation2 + $0x10] sm:$0xff] }
 0x274   : > { %v6837_v45 = vadd.f32 %v12939_v42, %v6829_v26  ;;  %6682 = vst.msk [vmem:[#allocation2 + $0x30] sm:$0xff] %vm223_vm1, %v6674_v46  ;;  %v6836_v22 = vadd.f32 %v6828_v41, %v12944_v52  ;;  %v13541_v26 = vld [vmem:[#allocation17_spill] sm:$0xff] }
 0x276   : > { %6845 = vst.msk [vmem:[#allocation2 + $0x18] sm:$0xff] %vm223_vm1, %v6837_v45  ;;  %6844 = vst.msk [vmem:[#allocation2 + $0x10] sm:$0xff] %vm223_vm1, %v6836_v22  ;;  %v6831_v57 = vld [vmem:[#allocation2 + $0x28] sm:$0xff]  ;;  %v13542_v22 = vld [vmem:[#allocation18_spill] sm:$0xff] }
 0x277   : > { %v6839_v0 = vadd.f32 %v12953_v48, %v6831_v57  ;;  %v6830_v21 = vld [vmem:[#allocation2 + $0x20] sm:$0xff] }
 0x278   : > { %v6838_v25 = vadd.f32 %v6830_v21, %v12959_v61  ;;  %v6993_v1 = vld [vmem:[#allocation2 + $0x8] sm:$0xff]  ;;  %v13543_v21 = vld [vmem:[#allocation19_spill] sm:$0xff] }
 0x279   : > { %6847 = vst.msk [vmem:[#allocation2 + $0x28] sm:$0xff] %vm223_vm1, %v6839_v0  ;;  %v7001_v42 = vadd.f32 %v12927_v6, %v6993_v1  ;;  %v6992_v35 = vld [vmem:[#allocation2] sm:$0xff] }
 0x27a   : > { %6846 = vst.msk [vmem:[#allocation2 + $0x20] sm:$0xff] %vm223_vm1, %v6838_v25  ;;  %v7000_v52 = vadd.f32 %v6992_v35, %v13540_v60  ;;  %v6833_v53 = vld [vmem:[#allocation2 + $0x38] sm:$0xff]  ;;  %v13544_v60 = vld [vmem:[#allocation20_spill] sm:$0xff] }
 0x27b   : > { %7009 = vst.msk [vmem:[#allocation2 + $0x8] sm:$0xff] %vm223_vm1, %v7001_v42  ;;  %v6841_v3 = vadd.f32 %v12969_v44, %v6833_v53  ;;  %v6832_v46 = vld [vmem:[#allocation2 + $0x30] sm:$0xff] }
 0x27c   : > { %7008 = vst.msk [vmem:[#allocation2] sm:$0xff] %vm223_vm1, %v7000_v52  ;;  %v6840_v48 = vadd.f32 %v6832_v46, %v12974_v47 }
 0x27d   : > { %v6995_v61 = vld [vmem:[#allocation2 + $0x18] sm:$0xff]  ;;  %6849 = vst.msk [vmem:[#allocation2 + $0x38] sm:$0xff] %vm223_vm1, %v6841_v3  ;;  %v6994_v45 = vld [vmem:[#allocation2 + $0x10] sm:$0xff]  ;;  %v13545_v3 = vld [vmem:[#allocation21_spill] sm:$0xff] }
 0x27e   : > { %v7003_v6 = vadd.f32 %v13541_v26, %v6995_v61  ;;  %6848 = vst.msk [vmem:[#allocation2 + $0x30] sm:$0xff] %vm223_vm1, %v6840_v48  ;;  %v7002_v41 = vadd.f32 %v6994_v45, %v12946_v23 }
 0x280   : > { %7011 = vst.msk [vmem:[#allocation2 + $0x18] sm:$0xff] %vm223_vm1, %v7003_v6  ;;  %7010 = vst.msk [vmem:[#allocation2 + $0x10] sm:$0xff] %vm223_vm1, %v7002_v41  ;;  %v6997_v44 = vld [vmem:[#allocation2 + $0x28] sm:$0xff] }
 0x281   : > { %v7005_v57 = vadd.f32 %v13542_v22, %v6997_v44  ;;  %v6996_v0 = vld [vmem:[#allocation2 + $0x20] sm:$0xff] }
 0x282   : > { %v7004_v47 = vadd.f32 %v6996_v0, %v13543_v21  ;;  %v7159_v25 = vld [vmem:[#allocation2 + $0x8] sm:$0xff] }
 0x283   : > { %7013 = vst.msk [vmem:[#allocation2 + $0x28] sm:$0xff] %vm223_vm1, %v7005_v57  ;;  %v7167_v1 = vadd.f32 %v12981_v27, %v7159_v25  ;;  %v7158_v42 = vld [vmem:[#allocation2] sm:$0xff]  ;;  %v13546_v57 = vld [vmem:[#allocation22_spill] sm:$0xff]  ;;  %v13547_v25 = vld [vmem:[#allocation23_spill] sm:$0xff] }
 0x284   : > { %7012 = vst.msk [vmem:[#allocation2 + $0x20] sm:$0xff] %vm223_vm1, %v7004_v47  ;;  %v7166_v23 = vadd.f32 %v7158_v42, %v12987_v14  ;;  %v6999_v35 = vld [vmem:[#allocation2 + $0x38] sm:$0xff]  ;;  %v13548_v42 = vld [vmem:[#allocation24_spill] sm:$0xff] }
 0x285   : > { %7175 = vst.msk [vmem:[#allocation2 + $0x8] sm:$0xff] %vm223_vm1, %v7167_v1  ;;  %v7007_v52 = vadd.f32 %v13544_v60, %v6999_v35  ;;  %v6998_v53 = vld [vmem:[#allocation2 + $0x30] sm:$0xff]  ;;  %v13549_v35 = vld [vmem:[#allocation25_spill] sm:$0xff] }
 0x286   : > { %7174 = vst.msk [vmem:[#allocation2] sm:$0xff] %vm223_vm1, %v7166_v23  ;;  %v7006_v46 = vadd.f32 %v6998_v53, %v13545_v3 }
 0x287   : > { %v7161_v48 = vld [vmem:[#allocation2 + $0x18] sm:$0xff]  ;;  %7015 = vst.msk [vmem:[#allocation2 + $0x38] sm:$0xff] %vm223_vm1, %v7007_v52  ;;  %v7160_v61 = vld [vmem:[#allocation2 + $0x10] sm:$0xff] }
 0x288   : > { %v7169_v27 = vadd.f32 %v12997_v49, %v7161_v48  ;;  %7014 = vst.msk [vmem:[#allocation2 + $0x30] sm:$0xff] %vm223_vm1, %v7006_v46  ;;  %v7168_v14 = vadd.f32 %v7160_v61, %v13003_v29 }
 0x28a   : > { %7177 = vst.msk [vmem:[#allocation2 + $0x18] sm:$0xff] %vm223_vm1, %v7169_v27  ;;  %7176 = vst.msk [vmem:[#allocation2 + $0x10] sm:$0xff] %vm223_vm1, %v7168_v14  ;;  %v7163_v26 = vld [vmem:[#allocation2 + $0x28] sm:$0xff] }
 0x28b   : > { %v7171_v6 = vadd.f32 %v13011_v8, %v7163_v26  ;;  %v7162_v45 = vld [vmem:[#allocation2 + $0x20] sm:$0xff]  ;;  %v13550_v26 = vld [vmem:[#allocation26_spill] sm:$0xff] }
 0x28c   : > { %v7170_v41 = vadd.f32 %v7162_v45, %v13016_v5  ;;  %v7326_v44 = vld [vmem:[#allocation2 + $0x8] sm:$0xff] }
 0x28d   : > { %7179 = vst.msk [vmem:[#allocation2 + $0x28] sm:$0xff] %vm223_vm1, %v7171_v6  ;;  %v7334_v49 = vadd.f32 %v12983_v37, %v7326_v44  ;;  %v7325_v22 = vld [vmem:[#allocation2] sm:$0xff] }
 0x28e   : > { %7178 = vst.msk [vmem:[#allocation2 + $0x20] sm:$0xff] %vm223_vm1, %v7170_v41  ;;  %v7333_v29 = vadd.f32 %v7325_v22, %v13546_v57  ;;  %v7165_v0 = vld [vmem:[#allocation2 + $0x38] sm:$0xff] }
 0x28f   : > { %7342 = vst.msk [vmem:[#allocation2 + $0x8] sm:$0xff] %vm223_vm1, %v7334_v49  ;;  %v7173_v21 = vadd.f32 %v13025_v16, %v7165_v0  ;;  %v7164_v47 = vld [vmem:[#allocation2 + $0x30] sm:$0xff]  ;;  %v13551_v57 = vld [vmem:[#allocation27_spill] sm:$0xff]  ;;  %v13552_v0 = vld [vmem:[#allocation28_spill] sm:$0xff] }
 0x290   : > { %7341 = vst.msk [vmem:[#allocation2] sm:$0xff] %vm223_vm1, %v7333_v29  ;;  %v7172_v8 = vadd.f32 %v7164_v47, %v13031_v7 }
 0x291   : > { %v7328_v5 = vld [vmem:[#allocation2 + $0x18] sm:$0xff]  ;;  %7181 = vst.msk [vmem:[#allocation2 + $0x38] sm:$0xff] %vm223_vm1, %v7173_v21  ;;  %v7327_v1 = vld [vmem:[#allocation2 + $0x10] sm:$0xff] }
 0x292   : > { %v7336_v37 = vadd.f32 %v13547_v25, %v7328_v5  ;;  %7180 = vst.msk [vmem:[#allocation2 + $0x30] sm:$0xff] %vm223_vm1, %v7172_v8  ;;  %v7335_v23 = vadd.f32 %v7327_v1, %v13548_v42  ;;  %v13553_v5 = vld [vmem:[#allocation29_spill] sm:$0xff] }
 0x294   : > { %7344 = vst.msk [vmem:[#allocation2 + $0x18] sm:$0xff] %vm223_vm1, %v7336_v37  ;;  %7343 = vst.msk [vmem:[#allocation2 + $0x10] sm:$0xff] %vm223_vm1, %v7335_v23  ;;  %v7330_v16 = vld [vmem:[#allocation2 + $0x28] sm:$0xff] }
 0x295   : > { %v7338_v60 = vadd.f32 %v13549_v35, %v7330_v16  ;;  %v7329_v52 = vld [vmem:[#allocation2 + $0x20] sm:$0xff]  ;;  %v13554_v16 = vld [vmem:[#allocation30_spill] sm:$0xff] }
 0x296   : > { %v7337_v7 = vadd.f32 %v7329_v52, %v13018_v9  ;;  %v7493_v53 = vld [vmem:[#allocation2 + $0x8] sm:$0xff] }
 0x297   : > { %7346 = vst.msk [vmem:[#allocation2 + $0x28] sm:$0xff] %vm223_vm1, %v7338_v60  ;;  %v7501_v3 = vadd.f32 %v13041_v54, %v7493_v53  ;;  %v7492_v46 = vld [vmem:[#allocation2] sm:$0xff]  ;;  %v13555_v53 = vld [vmem:[#allocation31_spill] sm:$0xff] }
 0x298   : > { %7345 = vst.msk [vmem:[#allocation2 + $0x20] sm:$0xff] %vm223_vm1, %v7337_v7  ;;  %v7500_v48 = vadd.f32 %v7492_v46, %v13046_v62  ;;  %v7332_v27 = vld [vmem:[#allocation2 + $0x38] sm:$0xff] }
 0x299   : > { %7509 = vst.msk [vmem:[#allocation2 + $0x8] sm:$0xff] %vm223_vm1, %v7501_v3  ;;  %v7340_v61 = vadd.f32 %v13027_v58, %v7332_v27  ;;  %v7331_v14 = vld [vmem:[#allocation2 + $0x30] sm:$0xff] }
 0x29a   : > { %7508 = vst.msk [vmem:[#allocation2] sm:$0xff] %vm223_vm1, %v7500_v48  ;;  %v7339_v9 = vadd.f32 %v7331_v14, %v13550_v26 }
 0x29b   : > { %v7495_v6 = vld [vmem:[#allocation2 + $0x18] sm:$0xff]  ;;  %7348 = vst.msk [vmem:[#allocation2 + $0x38] sm:$0xff] %vm223_vm1, %v7340_v61  ;;  %v7494_v45 = vld [vmem:[#allocation2 + $0x10] sm:$0xff] }
 0x29c   : > { %v7503_v54 = vadd.f32 %v13053_v33, %v7495_v6  ;;  %7347 = vst.msk [vmem:[#allocation2 + $0x30] sm:$0xff] %vm223_vm1, %v7339_v9  ;;  %v7502_v62 = vadd.f32 %v7494_v45, %v13059_v24  ;;  %v13556_v6 = vld [vmem:[#allocation32_spill] sm:$0xff]  ;;  %v13557_v45 = vld [vmem:[#allocation33_spill] sm:$0xff] }
 0x29e   : > { %7511 = vst.msk [vmem:[#allocation2 + $0x18] sm:$0xff] %vm223_vm1, %v7503_v54  ;;  %7510 = vst.msk [vmem:[#allocation2 + $0x10] sm:$0xff] %vm223_vm1, %v7502_v62  ;;  %v7497_v58 = vld [vmem:[#allocation2 + $0x28] sm:$0xff] }
 0x29f   : > { %v7505_v41 = vadd.f32 %v13069_v19, %v7497_v58  ;;  %v7496_v44 = vld [vmem:[#allocation2 + $0x20] sm:$0xff] }
 0x2a0   : > { %v7504_v49 = vadd.f32 %v7496_v44, %v13075_v11  ;;  %v7659_v22 = vld [vmem:[#allocation2 + $0x8] sm:$0xff]  ;;  %v13558_v44 = vld [vmem:[#allocation34_spill] sm:$0xff] }
 0x2a1   : > { %7513 = vst.msk [vmem:[#allocation2 + $0x28] sm:$0xff] %vm223_vm1, %v7505_v41  ;;  %v7667_v33 = vadd.f32 %v13551_v57, %v7659_v22  ;;  %v7658_v29 = vld [vmem:[#allocation2] sm:$0xff]  ;;  %v13559_v57 = vld [vmem:[#allocation35_spill] sm:$0xff] }
 0x2a2   : > { %7512 = vst.msk [vmem:[#allocation2 + $0x20] sm:$0xff] %vm223_vm1, %v7504_v49  ;;  %v7666_v24 = vadd.f32 %v7658_v29, %v13552_v0  ;;  %v7499_v21 = vld [vmem:[#allocation2 + $0x38] sm:$0xff]  ;;  %v13560_v29 = vld [vmem:[#allocation36_spill] sm:$0xff] }
 0x2a3   : > { %7675 = vst.msk [vmem:[#allocation2 + $0x8] sm:$0xff] %vm223_vm1, %v7667_v33  ;;  %v7507_v47 = vadd.f32 %v13083_v4, %v7499_v21  ;;  %v7498_v8 = vld [vmem:[#allocation2 + $0x30] sm:$0xff] }
 0x2a4   : > { %7674 = vst.msk [vmem:[#allocation2] sm:$0xff] %vm223_vm1, %v7666_v24  ;;  %v7506_v19 = vadd.f32 %v7498_v8, %v13088_v15 }
 0x2a5   : > { %v7661_v11 = vld [vmem:[#allocation2 + $0x18] sm:$0xff]  ;;  %7515 = vst.msk [vmem:[#allocation2 + $0x38] sm:$0xff] %vm223_vm1, %v7507_v47  ;;  %v7660_v37 = vld [vmem:[#allocation2 + $0x10] sm:$0xff] }
 0x2a6   : > { %v7669_v25 = vadd.f32 %v13553_v5, %v7661_v11  ;;  %7514 = vst.msk [vmem:[#allocation2 + $0x30] sm:$0xff] %vm223_vm1, %v7506_v19  ;;  %v7668_v1 = vadd.f32 %v7660_v37, %v13061_v17  ;;  %v13561_v5 = vld [vmem:[#allocation37_spill] sm:$0xff] }
 0x2a8   : > { %7677 = vst.msk [vmem:[#allocation2 + $0x18] sm:$0xff] %vm223_vm1, %v7669_v25  ;;  %7676 = vst.msk [vmem:[#allocation2 + $0x10] sm:$0xff] %vm223_vm1, %v7668_v1  ;;  %v7663_v4 = vld [vmem:[#allocation2 + $0x28] sm:$0xff]  ;;  %v13562_v1 = vld [vmem:[#allocation4_spill] sm:$0xff] }
 0x2a9   : > { %v7671_v42 = vadd.f32 %v13071_v50, %v7663_v4  ;;  %v7662_v23 = vld [vmem:[#allocation2 + $0x20] sm:$0xff] }
 0x2aa   : > { %v7670_v15 = vadd.f32 %v7662_v23, %v13554_v16  ;;  %v7825_v35 = vld [vmem:[#allocation2 + $0x8] sm:$0xff] }
 0x2ab   : > { %7679 = vst.msk [vmem:[#allocation2 + $0x28] sm:$0xff] %vm223_vm1, %v7671_v42  ;;  %v7833_v60 = vadd.f32 %v13097_v31, %v7825_v35  ;;  %v7824_v52 = vld [vmem:[#allocation2] sm:$0xff] }
 0x2ac   : > { %7678 = vst.msk [vmem:[#allocation2 + $0x20] sm:$0xff] %vm223_vm1, %v7670_v15  ;;  %v7832_v17 = vadd.f32 %v7824_v52, %v13103_v28  ;;  %v7665_v7 = vld [vmem:[#allocation2 + $0x38] sm:$0xff]  ;;  %v13563_v52 = vld [vmem:[#allocation5_spill] sm:$0xff] }
 0x2ad   : > { %7841 = vst.msk [vmem:[#allocation2 + $0x8] sm:$0xff] %vm223_vm1, %v7833_v60  ;;  %v7673_v3 = vadd.f32 %v13555_v53, %v7665_v7  ;;  %v7664_v46 = vld [vmem:[#allocation2 + $0x30] sm:$0xff] }
 0x2ae   : > { %7840 = vst.msk [vmem:[#allocation2] sm:$0xff] %vm223_vm1, %v7832_v17  ;;  %v7672_v50 = vadd.f32 %v7664_v46, %v13090_v55  ;;  %v13564_v46 = vld [vmem:[#allocation6_spill] sm:$0xff] }
 0x2af   : > { %v7827_v48 = vld [vmem:[#allocation2 + $0x18] sm:$0xff]  ;;  %7681 = vst.msk [vmem:[#allocation2 + $0x38] sm:$0xff] %vm223_vm1, %v7673_v3  ;;  %v7826_v27 = vld [vmem:[#allocation2 + $0x10] sm:$0xff] }
 0x2b0   : > { %v7835_v31 = vadd.f32 %v13113_v39, %v7827_v48  ;;  %7680 = vst.msk [vmem:[#allocation2 + $0x30] sm:$0xff] %vm223_vm1, %v7672_v50  ;;  %v7834_v28 = vadd.f32 %v7826_v27, %v13118_v13  ;;  %v13566_v27 = vld [vmem:[#allocation8_spill] sm:$0xff] }
 0x2b2   : > { %7843 = vst.msk [vmem:[#allocation2 + $0x18] sm:$0xff] %vm223_vm1, %v7835_v31  ;;  %7842 = vst.msk [vmem:[#allocation2 + $0x10] sm:$0xff] %vm223_vm1, %v7834_v28  ;;  %v7829_v61 = vld [vmem:[#allocation2 + $0x28] sm:$0xff]  ;;  %v13565_v31 = vld [vmem:[#allocation7_spill] sm:$0xff] }
 0x2b3   : > { %v7837_v14 = vadd.f32 %v13125_v30, %v7829_v61  ;;  %v7828_v26 = vld [vmem:[#allocation2 + $0x20] sm:$0xff] }
 0x2b4   : > { %v7836_v55 = vadd.f32 %v7828_v26, %v13131_v10  ;;  %v7991_v9 = vld [vmem:[#allocation2 + $0x8] sm:$0xff] }
 0x2b5   : > { %7845 = vst.msk [vmem:[#allocation2 + $0x28] sm:$0xff] %vm223_vm1, %v7837_v14  ;;  %v7999_v39 = vadd.f32 %v13556_v6, %v7991_v9  ;;  %v7990_v54 = vld [vmem:[#allocation2] sm:$0xff]  ;;  %v13567_v14 = vld [vmem:[#allocation9_spill] sm:$0xff] }
 0x2b6   : > { %7844 = vst.msk [vmem:[#allocation2 + $0x20] sm:$0xff] %vm223_vm1, %v7836_v55  ;;  %v7998_v13 = vadd.f32 %v7990_v54, %v13557_v45  ;;  %v7831_v62 = vld [vmem:[#allocation2 + $0x38] sm:$0xff] }
 0x2b7   : > { %8007 = vst.msk [vmem:[#allocation2 + $0x8] sm:$0xff] %vm223_vm1, %v7999_v39  ;;  %v7839_v58 = vadd.f32 %v13141_v51, %v7831_v62  ;;  %v7830_v41 = vld [vmem:[#allocation2 + $0x30] sm:$0xff] }
 0x2b8   : > { %8006 = vst.msk [vmem:[#allocation2] sm:$0xff] %vm223_vm1, %v7998_v13  ;;  %v7838_v10 = vadd.f32 %v7830_v41, %v13147_v34 }
 0x2b9   : > { %v7993_v30 = vld [vmem:[#allocation2 + $0x18] sm:$0xff]  ;;  %7847 = vst.msk [vmem:[#allocation2 + $0x38] sm:$0xff] %vm223_vm1, %v7839_v58  ;;  %v7992_v22 = vld [vmem:[#allocation2 + $0x10] sm:$0xff] }
 0x2ba   : > { %v8001_v49 = vadd.f32 %v13558_v44, %v7993_v30  ;;  %7846 = vst.msk [vmem:[#allocation2 + $0x30] sm:$0xff] %vm223_vm1, %v7838_v10  ;;  %v8000_v33 = vadd.f32 %v7992_v22, %v13559_v57  ;;  %v8389_v10 = vstv %s8387_s24  ;;  %v8391_v30 = vstv %s8346_s27 }
 0x2bc   : > { %8009 = vst.msk [vmem:[#allocation2 + $0x18] sm:$0xff] %vm223_vm1, %v8001_v49  ;;  %8008 = vst.msk [vmem:[#allocation2 + $0x10] sm:$0xff] %vm223_vm1, %v8000_v33  ;;  %v7995_v51 = vld [vmem:[#allocation2 + $0x28] sm:$0xff] }
 0x2bd   : > { %v8003_v0 = vadd.f32 %v13560_v29, %v7995_v51  ;;  %v7994_v24 = vld [vmem:[#allocation2 + $0x20] sm:$0xff] }
 0x2be   : > { %v8002_v34 = vadd.f32 %v7994_v24, %v13133_v63  ;;  %v8157_v21 = vld [vmem:[#allocation2 + $0x8] sm:$0xff] }
 0x2bf   : > { %8011 = vst.msk [vmem:[#allocation2 + $0x28] sm:$0xff] %vm223_vm1, %v8003_v0  ;;  %v8165_v47 = vadd.f32 %v13155_v20, %v8157_v21  ;;  %v8156_v8 = vld [vmem:[#allocation2] sm:$0xff] }
 0x2c0   : > { %8010 = vst.msk [vmem:[#allocation2 + $0x20] sm:$0xff] %vm223_vm1, %v8002_v34  ;;  %v8164_v19 = vadd.f32 %v8156_v8, %v13160_v56  ;;  %v7997_v11 = vld [vmem:[#allocation2 + $0x38] sm:$0xff] }
 0x2c1   : > { %8173 = vst.msk [vmem:[#allocation2 + $0x8] sm:$0xff] %vm223_vm1, %v8165_v47  ;;  %v8005_v25 = vadd.f32 %v13561_v5, %v7997_v11  ;;  %v7996_v37 = vld [vmem:[#allocation2 + $0x30] sm:$0xff] }
 0x2c2   : > { %8172 = vst.msk [vmem:[#allocation2] sm:$0xff] %vm223_vm1, %v8164_v19  ;;  %v8004_v63 = vadd.f32 %v7996_v37, %v13562_v1 }
 0x2c3   : > { %v8159_v4 = vld [vmem:[#allocation2 + $0x18] sm:$0xff]  ;;  %8013 = vst.msk [vmem:[#allocation2 + $0x38] sm:$0xff] %vm223_vm1, %v8005_v25  ;;  %v8158_v42 = vld [vmem:[#allocation2 + $0x10] sm:$0xff] }
 0x2c4   : > { %v8167_v20 = vadd.f32 %v13169_v2, %v8159_v4  ;;  %8012 = vst.msk [vmem:[#allocation2 + $0x30] sm:$0xff] %vm223_vm1, %v8004_v63  ;;  %v8166_v56 = vadd.f32 %v8158_v42, %v13175_v36 }
 0x2c6   : > { %8175 = vst.msk [vmem:[#allocation2 + $0x18] sm:$0xff] %vm223_vm1, %v8167_v20  ;;  %8174 = vst.msk [vmem:[#allocation2 + $0x10] sm:$0xff] %vm223_vm1, %v8166_v56  ;;  %v8161_v23 = vld [vmem:[#allocation2 + $0x28] sm:$0xff] }
 0x2c7   : > { %v8169_v16 = vadd.f32 %v13185_v18, %v8161_v23  ;;  %v8160_v15 = vld [vmem:[#allocation2 + $0x20] sm:$0xff] }
 0x2c8   : > { %v8168_v35 = vadd.f32 %v8160_v15, %v13190_v40  ;;  %v8323_v60 = vld [vmem:[#allocation2 + $0x8] sm:$0xff] }
 0x2c9   : > { %8177 = vst.msk [vmem:[#allocation2 + $0x28] sm:$0xff] %vm223_vm1, %v8169_v16  ;;  %v8331_v2 = vadd.f32 %v13563_v52, %v8323_v60  ;;  %v8322_v17 = vld [vmem:[#allocation2] sm:$0xff] }
 0x2ca   : > { %8176 = vst.msk [vmem:[#allocation2 + $0x20] sm:$0xff] %vm223_vm1, %v8168_v35  ;;  %v8330_v36 = vadd.f32 %v8322_v17, %v13162_v12  ;;  %v8163_v7 = vld [vmem:[#allocation2 + $0x38] sm:$0xff] }
 0x2cb   : > { %8339 = vst.msk [vmem:[#allocation2 + $0x8] sm:$0xff] %vm223_vm1, %v8331_v2  ;;  %v8171_v53 = vadd.f32 %v13197_v43, %v8163_v7  ;;  %v8162_v3 = vld [vmem:[#allocation2 + $0x30] sm:$0xff] }
 0x2cc   : > { %8338 = vst.msk [vmem:[#allocation2] sm:$0xff] %vm223_vm1, %v8330_v36  ;;  %v8170_v18 = vadd.f32 %v8162_v3, %v13203_v38 }
 0x2cd   : > { %v8325_v40 = vld [vmem:[#allocation2 + $0x18] sm:$0xff]  ;;  %8179 = vst.msk [vmem:[#allocation2 + $0x38] sm:$0xff] %vm223_vm1, %v8171_v53  ;;  %v8324_v48 = vld [vmem:[#allocation2 + $0x10] sm:$0xff] }
 0x2ce   : > { %v8333_v50 = vadd.f32 %v13564_v46, %v8325_v40  ;;  %8178 = vst.msk [vmem:[#allocation2 + $0x30] sm:$0xff] %vm223_vm1, %v8170_v18  ;;  %v8332_v12 = vadd.f32 %v8324_v48, %v13565_v31 }
 0x2d0   : > { %8341 = vst.msk [vmem:[#allocation2 + $0x18] sm:$0xff] %vm223_vm1, %v8333_v50  ;;  %8340 = vst.msk [vmem:[#allocation2 + $0x10] sm:$0xff] %vm223_vm1, %v8332_v12  ;;  %v8327_v43 = vld [vmem:[#allocation2 + $0x28] sm:$0xff] }
 0x2d1   : > { %v8335_v28 = vadd.f32 %v13566_v27, %v8327_v43  ;;  %v8326_v61 = vld [vmem:[#allocation2 + $0x20] sm:$0xff] }
 0x2d2   : > { %v8334_v38 = vadd.f32 %v8326_v61, %v13567_v14  ;;  %v8348_v54 = vld [vmem:[#allocation2 + $0x8] sm:$0xff] }
 0x2d3   : > { %8343 = vst.msk [vmem:[#allocation2 + $0x28] sm:$0xff] %vm223_vm1, %v8335_v28  ;;  %v8347_v26 = vld [vmem:[#allocation2] sm:$0xff] }
 0x2d4   : > { %8342 = vst.msk [vmem:[#allocation2 + $0x20] sm:$0xff] %vm223_vm1, %v8334_v38  ;;  %8355 = vxpose.xlu0.b32.start [1/8] (short) (narrow) %v8347_v26, 8  ;;  %v8329_v55 = vld [vmem:[#allocation2 + $0x38] sm:$0xff] }
 0x2d5   : > { %v8337_v9 = vadd.f32 %v13199_v32, %v8329_v55  ;;  %v8328_v6 = vld [vmem:[#allocation2 + $0x30] sm:$0xff] }
 0x2d6   : > { %v8336_v39 = vadd.f32 %v8328_v6, %v13205_v59  ;;  %v8388_v59 = vld [vmem:[%s209_s28] sm:$0xf] }
 0x2d7   : > { %8345 = vst.msk [vmem:[#allocation2 + $0x38] sm:$0xff] %vm223_vm1, %v8337_v9  ;;  %v8349_v45 = vld [vmem:[#allocation2 + $0x10] sm:$0xff]  ;;  %v8350_v13 = vld [vmem:[#allocation2 + $0x18] sm:$0xff]  ;;  %v8390_v44 = vmul.f32 %v8389_v10, %v8388_v59 }
 0x2d8   : > { %8344 = vst.msk [vmem:[#allocation2 + $0x30] sm:$0xff] %vm223_vm1, %v8336_v39  ;;  %8356 = vxpose.xlu0.b32.cont [2/8] (short) (narrow) %v8348_v54, 8 }
 0x2da   : > { %v8352_v58 = vld [vmem:[#allocation2 + $0x28] sm:$0xff] }
 0x2db   : > { %v8351_v62 = vld [vmem:[#allocation2 + $0x20] sm:$0xff] }
 0x2dc   : > { %8357 = vxpose.xlu0.b32.cont [3/8] (short) (narrow) %v8349_v45, 8 }
 0x2de   : > { %v8354_v32 = vld [vmem:[#allocation2 + $0x38] sm:$0xff] }
 0x2df   : > { %v8353_v41 = vld [vmem:[#allocation2 + $0x30] sm:$0xff] }
 0x2e0   : > { %8358 = vxpose.xlu0.b32.cont [4/8] (short) (narrow) %v8350_v13, 8 }
 0x2e4   : > { %8359 = vxpose.xlu0.b32.cont [5/8] (short) (narrow) %v8351_v62, 8 }
 0x2e8   : > { %8360 = vxpose.xlu0.b32.cont [6/8] (short) (narrow) %v8352_v58, 8 }
 0x2ec   : > { %8361 = vxpose.xlu0.b32.cont [7/8] (short) (narrow) %v8353_v41, 8 }
 0x2f0   : > { %8362 = vxpose.xlu0.b32.end [8/8] (short) (narrow) %v8354_v32, 8 }
 0x354   : > { %v8371_v49 = vpop.trf.xlu0 }
 0x355   : > { %v8392_v22 = vmul.f32 %v8391_v30, %v8371_v49 }
 0x357   : > { %v8393_v57 = vadd.f32 %v8392_v22, %v8390_v44 }
 0x359   : > { %8395 = vst.msk [vmem:[%s213_s5] sm:$0xf] %vm8394_vm2, %v8393_v57 }
 0x35a PF: > { %s15_s17 = sadd.s32 1, %s10465_s17  }
 0x35b   : > { %p12_p4 = scmp.ge.s32.totalorder %s15_s17, 4  }
 0x35d   :  { %14 = sbr.rel (!%p12_p4) target bundleno = 2 (0x2), region = 130 }

</bundles_post_ra>
